<compile_context>
chip_gen: v5e
topology: v5e:2x2
jax: 0.10.0
libtpu: 0.0.40
codegen_flags: <defaults>
</compile_context>

<pallas_src>
import functools

import jax
import jax.numpy as jnp
from jax import lax
from jax.experimental import pallas as pl
from jax.experimental.pallas import tpu as pltpu

DEPTH = 2
CHANNELS = (4, 2, 1)
SCALE = 2
CONV_K = 3
CONV_PAD = 1


# ----------------------------------------------------------------------------
# In-kernel helpers
# ----------------------------------------------------------------------------
def _make_shifts(shape, D, H, W):
    """Shift helpers for 2-D (rows, lanes) arrays.

    rows hold the (possibly padded) D axis, lanes hold the flattened (n, h, w)
    index (n major, w minor).  shift_*(v, s)[pos] = v[pos + s] along the given
    logical axis, producing zero where the source falls outside the logical
    extent (this implements the conv zero padding and keeps batches separate).
    Rolls go to the XLU; wrapped-around garbage is always masked out.
    """
    rows, lanes = shape
    dpos = lax.broadcasted_iota(jnp.int32, shape, 0)
    lpos = lax.broadcasted_iota(jnp.int32, shape, 1)
    hwpos = lpos % (H * W)   # position inside one batch's (h, w) block
    wpos = lpos % W          # position inside one w row

    def _masked(pos, s, extent, rolled):
        ok = (pos + s >= 0) & (pos + s < extent)
        return jnp.where(ok, rolled, 0.0)

    def shift_d(v, s):
        if s == 0:
            return v
        return _masked(dpos, s, D, pltpu.roll(v, (-s) % rows, axis=0))

    def shift_h(v, s):
        if s == 0:
            return v
        return _masked(hwpos, s * W, H * W,
                       pltpu.roll(v, (-s * W) % lanes, axis=1))

    def shift_w(v, s):
        if s == 0:
            return v
        return _masked(wpos, s, W, pltpu.roll(v, (-s) % lanes, axis=1))

    return shift_d, shift_h, shift_w


def _up_conv(ins, c_in, c_out, w_ref, b_ref, parity, shift):
    """Conv3d(kernel 3 along one axis, pad 1, stride 1) applied to the
    nearest-x2-upsampled input, evaluated only at fine positions of the given
    parity.  The upsample is folded into a 2-tap conv on the coarse grid:
        even (parity 0): y[i] = w0*x[i-1] + (w1+w2)*x[i]
        odd  (parity 1): y[i] = (w0+w1)*x[i] + w2*x[i+1]
    ins: list of c_in coarse-grid (rows, lanes) arrays.  Weights live in SMEM
    flattened as (c_out, c_in, 3)."""
    s = -1 if parity == 0 else 1
    shifted = [shift(v, s) for v in ins]
    outs = []
    for co in range(c_out):
        acc = jnp.zeros_like(ins[0]) + b_ref[co]
        for ci in range(c_in):
            w0 = w_ref[(co * c_in + ci) * 3 + 0]
            w1 = w_ref[(co * c_in + ci) * 3 + 1]
            w2 = w_ref[(co * c_in + ci) * 3 + 2]
            if parity == 0:
                acc = acc + (w1 + w2) * ins[ci] + w0 * shifted[ci]
            else:
                acc = acc + (w0 + w1) * ins[ci] + w2 * shifted[ci]
        outs.append(acc)
    return outs


# ----------------------------------------------------------------------------
# Kernels
# ----------------------------------------------------------------------------
def _up_block_kernel(x_ref, wx_ref, bx_ref, wy_ref, by_ref, wz_ref, bz_ref,
                     o_ref, *, c_in, c_out, D, H, W):
    """One UpBlock (upsample x2 + convx + convy + convz + ReLU).

    x_ref : (c_in, rows, lanes) VMEM, coarse grid, rows>=D, lanes>=N*H*W.
    o_ref : (2, 2, 2, c_out, rows, lanes) VMEM, even/odd output planes over
            the coarse grid (plane (pd,ph,pw) holds fine index 2*i+p)."""
    shape = x_ref.shape[1:]
    shift_d, shift_h, shift_w = _make_shifts(shape, D, H, W)
    xs = [x_ref[c] for c in range(c_in)]
    for pd in range(2):
        cx = _up_conv(xs, c_in, c_out, wx_ref, bx_ref, pd, shift_d)
        for ph in range(2):
            cy = _up_conv(cx, c_out, c_out, wy_ref, by_ref, ph, shift_h)
            for pw in range(2):
                cz = _up_conv(cy, c_out, c_out, wz_ref, bz_ref, pw, shift_w)
                for co in range(c_out):
                    o_ref[pd, ph, pw, co] = jnp.maximum(cz[co], 0.0)


def _up_block_vox_kernel(x_ref, wx_ref, bx_ref, wy_ref, by_ref, wz_ref, bz_ref,
                         wv_ref, bv_ref, o_ref, *, c_in, D, H, W):
    """Final UpBlock (c_out == 1) fused with the dense 3x3x3 `vox` conv.

    The x2-finer activation is kept as 8 even/odd planes over the coarse grid;
    vox taps are routed to the right plane / coarse shift via divmod."""
    shape = x_ref.shape[1:]
    shift_d, shift_h, shift_w = _make_shifts(shape, D, H, W)
    xs = [x_ref[c] for c in range(c_in)]

    # --- UpBlock: polyphase planes of the (2D, 2H, 2W) post-ReLU activation --
    z = {}
    for pd in range(2):
        cx = _up_conv(xs, c_in, 1, wx_ref, bx_ref, pd, shift_d)
        for ph in range(2):
            cy = _up_conv(cx, 1, 1, wy_ref, by_ref, ph, shift_h)
            for pw in range(2):
                cz = _up_conv(cy, 1, 1, wz_ref, bz_ref, pw, shift_w)
                z[(pd, ph, pw)] = jnp.maximum(cz[0], 0.0)

    # --- vox: Conv3d(1, 1, 3, stride=1, padding=1) on the fine grid ----------
    memo = {}

    def zshift(plane, s):
        key = (plane, s)
        if key in memo:
            return memo[key]
        sd, sh, sw = s
        if sw != 0:
            v = shift_w(zshift(plane, (sd, sh, 0)), sw)
        elif sh != 0:
            v = shift_h(zshift(plane, (sd, 0, 0)), sh)
        elif sd != 0:
            v = shift_d(z[plane], sd)
        else:
            v = z[plane]
        memo[key] = v
        return v

    for rd in range(2):
        for rh in range(2):
            for rw in range(2):
                acc = jnp.zeros_like(z[(0, 0, 0)]) + bv_ref[0]
                for td in (-1, 0, 1):
                    ad, bd = divmod(rd + td, 2)       # coarse shift / src parity
                    for th in (-1, 0, 1):
                        ah, bh = divmod(rh + th, 2)
                        for tw in (-1, 0, 1):
                            aw, bw = divmod(rw + tw, 2)
                            wv = wv_ref[((td + 1) * 3 + (th + 1)) * 3 + (tw + 1)]
                            acc = acc + wv * zshift((bd, bh, bw), (ad, ah, aw))
                o_ref[rd, rh, rw] = acc


# ----------------------------------------------------------------------------
# Decoder forward
# ----------------------------------------------------------------------------
def decoder_forward(x, params, size_list):
    size_list = list(reversed(size_list))      # Decoder.forward reverses it
    N = x.shape[0]
    D, H, W = x.shape[2:]
    blocks = params["up_blocks"]

    # pack NCDHW -> (C, D, N*H*W): D on sublanes, (n, h, w) flattened on lanes.
    cur = jnp.transpose(x, (1, 2, 0, 3, 4)).reshape(x.shape[1], D, N * H * W)

    for i, p in enumerate(blocks):
        tgt = tuple(size_list[i])
        if tgt[0] > SCALE * D or tgt[1] > SCALE * H or tgt[2] > SCALE * W:
            # TODO(synk): F.interpolate fallback branch of UpBlock is never hit
            # at these shapes (x2 upsample lands exactly on shape_before_pool).
            raise NotImplementedError("interpolate branch not exercised")

        last = i == len(blocks) - 1
        c_in = p["wx"].shape[1]
        c_out = p["wx"].shape[0]
        M = N * H * W
        rows, lanes = max(D, 8), max(M, 128)   # keep every tile a full (8,128)
        xp = jnp.pad(cur, ((0, 0), (0, rows - D), (0, lanes - M)))
        weights = (p["wx"].reshape(-1), p["bx"], p["wy"].reshape(-1), p["by"],
                   p["wz"].reshape(-1), p["bz"])

        if last:
            assert c_out == 1
            out = pl.pallas_call(
                functools.partial(_up_block_vox_kernel, c_in=c_in,
                                  D=D, H=H, W=W),
                out_shape=jax.ShapeDtypeStruct((2, 2, 2, rows, lanes),
                                               jnp.float32),
                in_specs=[pl.BlockSpec(memory_space=pltpu.MemorySpace.VMEM)]
                         + [pl.BlockSpec(memory_space=pltpu.MemorySpace.SMEM)] * 8,
                out_specs=pl.BlockSpec(memory_space=pltpu.MemorySpace.VMEM),
            )(xp, *weights, params["vox_w"].reshape(-1), params["vox_b"])
            out = out[:, :, :, None]           # channel axis (c_out == 1)
        else:
            out = pl.pallas_call(
                functools.partial(_up_block_kernel, c_in=c_in, c_out=c_out,
                                  D=D, H=H, W=W),
                out_shape=jax.ShapeDtypeStruct((2, 2, 2, c_out, rows, lanes),
                                               jnp.float32),
                in_specs=[pl.BlockSpec(memory_space=pltpu.MemorySpace.VMEM)]
                         + [pl.BlockSpec(memory_space=pltpu.MemorySpace.SMEM)] * 6,
                out_specs=pl.BlockSpec(memory_space=pltpu.MemorySpace.VMEM),
            )(xp, *weights)

        # interleave the even/odd polyphase planes into the x2-finer grid
        # (tiny XLA transpose of a <=64 KiB tensor between the two calls).
        out = out[..., :D, :M].reshape(2, 2, 2, c_out, D, N, H, W)
        D, H, W = 2 * D, 2 * H, 2 * W
        cur = jnp.transpose(out, (3, 4, 0, 5, 6, 1, 7, 2)).reshape(
            c_out, D, N * H * W)

    # cur holds the vox output: (1, D, N*H*W) -> (N, 1, D, H, W)
    y = cur.reshape(D, N, H, W)
    return jnp.transpose(y, (1, 0, 2, 3))[:, None]


# ----------------------------------------------------------------------------
# Pure-JAX reference (for correctness check)
# ----------------------------------------------------------------------------
def upsample_nearest(x, scale):
    x = jnp.repeat(x, scale, axis=2)
    x = jnp.repeat(x, scale, axis=3)
    x = jnp.repeat(x, scale, axis=4)
    return x


def _conv3d_ref(x, w, b, pad):
    dn = lax.conv_dimension_numbers(x.shape, w.shape, ("NCDHW", "OIDHW", "NCDHW"))
    out = lax.conv_general_dilated(x, w, (1, 1, 1), [(p, p) for p in pad],
                                   dimension_numbers=dn,
                                   precision=lax.Precision.HIGHEST)
    return out + b.reshape(1, -1, 1, 1, 1)


def decoder_ref(x, params, size_list):
    for p in params["up_blocks"]:
        x = upsample_nearest(x, SCALE)
        x = _conv3d_ref(x, p["wx"], p["bx"], (CONV_PAD, 0, 0))
        x = _conv3d_ref(x, p["wy"], p["by"], (0, CONV_PAD, 0))
        x = _conv3d_ref(x, p["wz"], p["bz"], (0, 0, CONV_PAD))
        x = jnp.maximum(x, 0.0)
    x = _conv3d_ref(x, params["vox_w"], params["vox_b"], (1, 1, 1))
    return x


# ----------------------------------------------------------------------------
# Deterministic parameter init (xavier_uniform with gain('relu'), zero bias;
# vox uses PyTorch's default kaiming-uniform-style bounds)
# ----------------------------------------------------------------------------
def _xavier_uniform(key, shape, gain):
    fan_in = shape[1] * shape[2] * shape[3] * shape[4]
    fan_out = shape[0] * shape[2] * shape[3] * shape[4]
    bound = gain * (6.0 / (fan_in + fan_out)) ** 0.5
    return jax.random.uniform(key, shape, jnp.float32, -bound, bound)


def init_params(key):
    gain = 2.0 ** 0.5  # calculate_gain('relu')
    params = {"up_blocks": []}
    for i in range(DEPTH):
        c_in, c_out = CHANNELS[i], CHANNELS[i + 1]
        key, kx, ky, kz = jax.random.split(key, 4)
        params["up_blocks"].append({
            "wx": _xavier_uniform(kx, (c_out, c_in, CONV_K, 1, 1), gain),
            "bx": jnp.zeros((c_out,), jnp.float32),
            "wy": _xavier_uniform(ky, (c_out, c_out, 1, CONV_K, 1), gain),
            "by": jnp.zeros((c_out,), jnp.float32),
            "wz": _xavier_uniform(kz, (c_out, c_out, 1, 1, CONV_K), gain),
            "bz": jnp.zeros((c_out,), jnp.float32),
        })
    key, kv, kb = jax.random.split(key, 3)
    fan_in = 1 * 3 * 3 * 3
    bound = 1.0 / fan_in ** 0.5
    params["vox_w"] = jax.random.uniform(kv, (1, 1, 3, 3, 3), jnp.float32, -bound, bound)
    params["vox_b"] = jax.random.uniform(kb, (1,), jnp.float32, -bound, bound)
    return params


# ----------------------------------------------------------------------------
if __name__ == "__main__":
    key = jax.random.PRNGKey(0)
    k_x, k_p = jax.random.split(key)

    N, D, H, W = 2, 4, 4, 4
    x = jax.random.normal(k_x, (N, CHANNELS[0], D, H, W), jnp.float32)
    params = init_params(k_p)

    # encoder pre-pool sizes, shallow -> deep (Decoder reverses in forward)
    size_list = [(16, 16, 16), (8, 8, 8)]

    fwd = jax.jit(functools.partial(decoder_forward, size_list=size_list))
    out = fwd(x, params)
    jax.block_until_ready(out)

    ref = decoder_ref(x, params, size_list)
    assert out.shape == (N, 1, 16, 16, 16), out.shape
    err = float(jnp.abs(out - ref).max())
    assert jnp.allclose(out, ref, atol=1e-4, rtol=1e-4), err
    print("KERNEL_OK")
</pallas_src>

<mosaic_0001>
module attributes {stable_mosaic.version = 11 : i64} {
  func.func @_up_block_kernel(%arg0: memref<4x8x128xf32, #tpu.memory_space<vmem>>, %arg1: memref<24xf32, #tpu.memory_space<smem>>, %arg2: memref<2xf32, #tpu.memory_space<smem>>, %arg3: memref<12xf32, #tpu.memory_space<smem>>, %arg4: memref<2xf32, #tpu.memory_space<smem>>, %arg5: memref<12xf32, #tpu.memory_space<smem>>, %arg6: memref<2xf32, #tpu.memory_space<smem>>, %arg7: memref<2x2x2x2x8x128xf32, #tpu.memory_space<vmem>>) attributes {dimension_semantics = [], scalar_prefetch = 0 : i64, scratch_operands = 0 : i64, tpu.core_type = #tpu.core_type<tc>} {
    %0 = tpu.iota {dimensions = array<i32: 0>} : vector<8x128xi32>
    %1 = tpu.iota {dimensions = array<i32: 1>} : vector<8x128xi32>
    %c16_i32 = arith.constant 16 : i32
    %c0_i32 = arith.constant 0 : i32
    %2 = arith.cmpi eq, %c16_i32, %c0_i32 : i32
    %c1_i32 = arith.constant 1 : i32
    %3 = arith.select %2, %c1_i32, %c16_i32 : i32
    %4 = vector.broadcast %3 : i32 to vector<8x128xi32>
    %5 = arith.remsi %1, %4 : vector<8x128xi32>
    %c0_i32_0 = arith.constant 0 : i32
    %6 = vector.broadcast %c0_i32_0 : i32 to vector<8x128xi32>
    %7 = arith.cmpi ne, %5, %6 : vector<8x128xi32>
    %c0_i32_1 = arith.constant 0 : i32
    %8 = vector.broadcast %c0_i32_1 : i32 to vector<8x128xi32>
    %9 = arith.cmpi slt, %5, %8 : vector<8x128xi32>
    %c0_i32_2 = arith.constant 0 : i32
    %10 = arith.cmpi slt, %3, %c0_i32_2 : i32
    %11 = vector.broadcast %10 : i1 to vector<8x128xi1>
    %12 = vector.broadcast %11 : vector<8x128xi1> to vector<8x128xi1>
    %13 = arith.xori %9, %12 : vector<8x128xi1>
    %14 = arith.andi %13, %7 : vector<8x128xi1>
    %15 = vector.broadcast %3 : i32 to vector<8x128xi32>
    %16 = arith.addi %5, %15 : vector<8x128xi32>
    %17 = arith.select %14, %16, %5 : vector<8x128xi1>, vector<8x128xi32>
    %c4_i32 = arith.constant 4 : i32
    %c0_i32_3 = arith.constant 0 : i32
    %18 = arith.cmpi eq, %c4_i32, %c0_i32_3 : i32
    %c1_i32_4 = arith.constant 1 : i32
    %19 = arith.select %18, %c1_i32_4, %c4_i32 : i32
    %20 = vector.broadcast %19 : i32 to vector<8x128xi32>
    %21 = arith.remsi %1, %20 : vector<8x128xi32>
    %c0_i32_5 = arith.constant 0 : i32
    %22 = vector.broadcast %c0_i32_5 : i32 to vector<8x128xi32>
    %23 = arith.cmpi ne, %21, %22 : vector<8x128xi32>
    %c0_i32_6 = arith.constant 0 : i32
    %24 = vector.broadcast %c0_i32_6 : i32 to vector<8x128xi32>
    %25 = arith.cmpi slt, %21, %24 : vector<8x128xi32>
    %c0_i32_7 = arith.constant 0 : i32
    %26 = arith.cmpi slt, %19, %c0_i32_7 : i32
    %27 = vector.broadcast %26 : i1 to vector<8x128xi1>
    %28 = vector.broadcast %27 : vector<8x128xi1> to vector<8x128xi1>
    %29 = arith.xori %25, %28 : vector<8x128xi1>
    %30 = arith.andi %29, %23 : vector<8x128xi1>
    %31 = vector.broadcast %19 : i32 to vector<8x128xi32>
    %32 = arith.addi %21, %31 : vector<8x128xi32>
    %33 = arith.select %30, %32, %21 : vector<8x128xi1>, vector<8x128xi32>
    %c0 = arith.constant 0 : index
    %c0_8 = arith.constant 0 : index
    %c0_9 = arith.constant 0 : index
    %34 = vector.load %arg0[%c0, %c0_8, %c0_9] : memref<4x8x128xf32, #tpu.memory_space<vmem>>, vector<1x8x128xf32>
    %35 = vector.shape_cast %34 : vector<1x8x128xf32> to vector<8x128xf32>
    %c1 = arith.constant 1 : index
    %c0_10 = arith.constant 0 : index
    %c0_11 = arith.constant 0 : index
    %36 = vector.load %arg0[%c1, %c0_10, %c0_11] : memref<4x8x128xf32, #tpu.memory_space<vmem>>, vector<1x8x128xf32>
    %37 = vector.shape_cast %36 : vector<1x8x128xf32> to vector<8x128xf32>
    %c2 = arith.constant 2 : index
    %c0_12 = arith.constant 0 : index
    %c0_13 = arith.constant 0 : index
    %38 = vector.load %arg0[%c2, %c0_12, %c0_13] : memref<4x8x128xf32, #tpu.memory_space<vmem>>, vector<1x8x128xf32>
    %39 = vector.shape_cast %38 : vector<1x8x128xf32> to vector<8x128xf32>
    %c3 = arith.constant 3 : index
    %c0_14 = arith.constant 0 : index
    %c0_15 = arith.constant 0 : index
    %40 = vector.load %arg0[%c3, %c0_14, %c0_15] : memref<4x8x128xf32, #tpu.memory_space<vmem>>, vector<1x8x128xf32>
    %41 = vector.shape_cast %40 : vector<1x8x128xf32> to vector<8x128xf32>
    %c1_i32_16 = arith.constant 1 : i32
    %42 = tpu.dynamic_rotate %35 by %c1_i32_16 dim 0 : vector<8x128xf32>, i32 -> vector<8x128xf32>
    %c-1_i32 = arith.constant -1 : i32
    %43 = vector.broadcast %c-1_i32 : i32 to vector<8x128xi32>
    %44 = arith.addi %0, %43 : vector<8x128xi32>
    %c0_i32_17 = arith.constant 0 : i32
    %45 = vector.broadcast %c0_i32_17 : i32 to vector<8x128xi32>
    %46 = arith.cmpi sge, %44, %45 : vector<8x128xi32>
    %c-1_i32_18 = arith.constant -1 : i32
    %47 = vector.broadcast %c-1_i32_18 : i32 to vector<8x128xi32>
    %48 = arith.addi %0, %47 : vector<8x128xi32>
    %c4_i32_19 = arith.constant 4 : i32
    %49 = vector.broadcast %c4_i32_19 : i32 to vector<8x128xi32>
    %50 = arith.cmpi slt, %48, %49 : vector<8x128xi32>
    %51 = arith.andi %46, %50 : vector<8x128xi1>
    %cst = arith.constant 0.000000e+00 : f32
    %52 = vector.broadcast %cst : f32 to vector<8x128xf32>
    %53 = arith.select %51, %42, %52 : vector<8x128xi1>, vector<8x128xf32>
    %c1_i32_20 = arith.constant 1 : i32
    %54 = tpu.dynamic_rotate %37 by %c1_i32_20 dim 0 : vector<8x128xf32>, i32 -> vector<8x128xf32>
    %c-1_i32_21 = arith.constant -1 : i32
    %55 = vector.broadcast %c-1_i32_21 : i32 to vector<8x128xi32>
    %56 = arith.addi %0, %55 : vector<8x128xi32>
    %c0_i32_22 = arith.constant 0 : i32
    %57 = vector.broadcast %c0_i32_22 : i32 to vector<8x128xi32>
    %58 = arith.cmpi sge, %56, %57 : vector<8x128xi32>
    %c-1_i32_23 = arith.constant -1 : i32
    %59 = vector.broadcast %c-1_i32_23 : i32 to vector<8x128xi32>
    %60 = arith.addi %0, %59 : vector<8x128xi32>
    %c4_i32_24 = arith.constant 4 : i32
    %61 = vector.broadcast %c4_i32_24 : i32 to vector<8x128xi32>
    %62 = arith.cmpi slt, %60, %61 : vector<8x128xi32>
    %63 = arith.andi %58, %62 : vector<8x128xi1>
    %cst_25 = arith.constant 0.000000e+00 : f32
    %64 = vector.broadcast %cst_25 : f32 to vector<8x128xf32>
    %65 = arith.select %63, %54, %64 : vector<8x128xi1>, vector<8x128xf32>
    %c1_i32_26 = arith.constant 1 : i32
    %66 = tpu.dynamic_rotate %39 by %c1_i32_26 dim 0 : vector<8x128xf32>, i32 -> vector<8x128xf32>
    %c-1_i32_27 = arith.constant -1 : i32
    %67 = vector.broadcast %c-1_i32_27 : i32 to vector<8x128xi32>
    %68 = arith.addi %0, %67 : vector<8x128xi32>
    %c0_i32_28 = arith.constant 0 : i32
    %69 = vector.broadcast %c0_i32_28 : i32 to vector<8x128xi32>
    %70 = arith.cmpi sge, %68, %69 : vector<8x128xi32>
    %c-1_i32_29 = arith.constant -1 : i32
    %71 = vector.broadcast %c-1_i32_29 : i32 to vector<8x128xi32>
    %72 = arith.addi %0, %71 : vector<8x128xi32>
    %c4_i32_30 = arith.constant 4 : i32
    %73 = vector.broadcast %c4_i32_30 : i32 to vector<8x128xi32>
    %74 = arith.cmpi slt, %72, %73 : vector<8x128xi32>
    %75 = arith.andi %70, %74 : vector<8x128xi1>
    %cst_31 = arith.constant 0.000000e+00 : f32
    %76 = vector.broadcast %cst_31 : f32 to vector<8x128xf32>
    %77 = arith.select %75, %66, %76 : vector<8x128xi1>, vector<8x128xf32>
    %c1_i32_32 = arith.constant 1 : i32
    %78 = tpu.dynamic_rotate %41 by %c1_i32_32 dim 0 : vector<8x128xf32>, i32 -> vector<8x128xf32>
    %c-1_i32_33 = arith.constant -1 : i32
    %79 = vector.broadcast %c-1_i32_33 : i32 to vector<8x128xi32>
    %80 = arith.addi %0, %79 : vector<8x128xi32>
    %c0_i32_34 = arith.constant 0 : i32
    %81 = vector.broadcast %c0_i32_34 : i32 to vector<8x128xi32>
    %82 = arith.cmpi sge, %80, %81 : vector<8x128xi32>
    %c-1_i32_35 = arith.constant -1 : i32
    %83 = vector.broadcast %c-1_i32_35 : i32 to vector<8x128xi32>
    %84 = arith.addi %0, %83 : vector<8x128xi32>
    %c4_i32_36 = arith.constant 4 : i32
    %85 = vector.broadcast %c4_i32_36 : i32 to vector<8x128xi32>
    %86 = arith.cmpi slt, %84, %85 : vector<8x128xi32>
    %87 = arith.andi %82, %86 : vector<8x128xi1>
    %cst_37 = arith.constant 0.000000e+00 : f32
    %88 = vector.broadcast %cst_37 : f32 to vector<8x128xf32>
    %89 = arith.select %87, %78, %88 : vector<8x128xi1>, vector<8x128xf32>
    %cst_38 = arith.constant 0.000000e+00 : f32
    %90 = vector.broadcast %cst_38 : f32 to vector<8x128xf32>
    %c0_39 = arith.constant 0 : index
    %91 = memref.load %arg2[%c0_39] : memref<2xf32, #tpu.memory_space<smem>>
    %92 = vector.broadcast %91 : f32 to vector<8x128xf32>
    %93 = arith.addf %90, %92 : vector<8x128xf32>
    %c0_40 = arith.constant 0 : index
    %94 = memref.load %arg1[%c0_40] : memref<24xf32, #tpu.memory_space<smem>>
    %c1_41 = arith.constant 1 : index
    %95 = memref.load %arg1[%c1_41] : memref<24xf32, #tpu.memory_space<smem>>
    %c2_42 = arith.constant 2 : index
    %96 = memref.load %arg1[%c2_42] : memref<24xf32, #tpu.memory_space<smem>>
    %97 = arith.addf %95, %96 : f32
    %98 = vector.broadcast %97 : f32 to vector<8x128xf32>
    %99 = arith.mulf %98, %35 : vector<8x128xf32>
    %100 = arith.addf %93, %99 : vector<8x128xf32>
    %101 = vector.broadcast %94 : f32 to vector<8x128xf32>
    %102 = arith.mulf %101, %53 : vector<8x128xf32>
    %103 = arith.addf %100, %102 : vector<8x128xf32>
    %c3_43 = arith.constant 3 : index
    %104 = memref.load %arg1[%c3_43] : memref<24xf32, #tpu.memory_space<smem>>
    %c4 = arith.constant 4 : index
    %105 = memref.load %arg1[%c4] : memref<24xf32, #tpu.memory_space<smem>>
    %c5 = arith.constant 5 : index
    %106 = memref.load %arg1[%c5] : memref<24xf32, #tpu.memory_space<smem>>
    %107 = arith.addf %105, %106 : f32
    %108 = vector.broadcast %107 : f32 to vector<8x128xf32>
    %109 = arith.mulf %108, %37 : vector<8x128xf32>
    %110 = arith.addf %103, %109 : vector<8x128xf32>
    %111 = vector.broadcast %104 : f32 to vector<8x128xf32>
    %112 = arith.mulf %111, %65 : vector<8x128xf32>
    %113 = arith.addf %110, %112 : vector<8x128xf32>
    %c6 = arith.constant 6 : index
    %114 = memref.load %arg1[%c6] : memref<24xf32, #tpu.memory_space<smem>>
    %c7 = arith.constant 7 : index
    %115 = memref.load %arg1[%c7] : memref<24xf32, #tpu.memory_space<smem>>
    %c8 = arith.constant 8 : index
    %116 = memref.load %arg1[%c8] : memref<24xf32, #tpu.memory_space<smem>>
    %117 = arith.addf %115, %116 : f32
    %118 = vector.broadcast %117 : f32 to vector<8x128xf32>
    %119 = arith.mulf %118, %39 : vector<8x128xf32>
    %120 = arith.addf %113, %119 : vector<8x128xf32>
    %121 = vector.broadcast %114 : f32 to vector<8x128xf32>
    %122 = arith.mulf %121, %77 : vector<8x128xf32>
    %123 = arith.addf %120, %122 : vector<8x128xf32>
    %c9 = arith.constant 9 : index
    %124 = memref.load %arg1[%c9] : memref<24xf32, #tpu.memory_space<smem>>
    %c10 = arith.constant 10 : index
    %125 = memref.load %arg1[%c10] : memref<24xf32, #tpu.memory_space<smem>>
    %c11 = arith.constant 11 : index
    %126 = memref.load %arg1[%c11] : memref<24xf32, #tpu.memory_space<smem>>
    %127 = arith.addf %125, %126 : f32
    %128 = vector.broadcast %127 : f32 to vector<8x128xf32>
    %129 = arith.mulf %128, %41 : vector<8x128xf32>
    %130 = arith.addf %123, %129 : vector<8x128xf32>
    %131 = vector.broadcast %124 : f32 to vector<8x128xf32>
    %132 = arith.mulf %131, %89 : vector<8x128xf32>
    %133 = arith.addf %130, %132 : vector<8x128xf32>
    %cst_44 = arith.constant 0.000000e+00 : f32
    %134 = vector.broadcast %cst_44 : f32 to vector<8x128xf32>
    %c1_45 = arith.constant 1 : index
    %135 = memref.load %arg2[%c1_45] : memref<2xf32, #tpu.memory_space<smem>>
    %136 = vector.broadcast %135 : f32 to vector<8x128xf32>
    %137 = arith.addf %134, %136 : vector<8x128xf32>
    %c12 = arith.constant 12 : index
    %138 = memref.load %arg1[%c12] : memref<24xf32, #tpu.memory_space<smem>>
    %c13 = arith.constant 13 : index
    %139 = memref.load %arg1[%c13] : memref<24xf32, #tpu.memory_space<smem>>
    %c14 = arith.constant 14 : index
    %140 = memref.load %arg1[%c14] : memref<24xf32, #tpu.memory_space<smem>>
    %141 = arith.addf %139, %140 : f32
    %142 = vector.broadcast %141 : f32 to vector<8x128xf32>
    %143 = arith.mulf %142, %35 : vector<8x128xf32>
    %144 = arith.addf %137, %143 : vector<8x128xf32>
    %145 = vector.broadcast %138 : f32 to vector<8x128xf32>
    %146 = arith.mulf %145, %53 : vector<8x128xf32>
    %147 = arith.addf %144, %146 : vector<8x128xf32>
    %c15 = arith.constant 15 : index
    %148 = memref.load %arg1[%c15] : memref<24xf32, #tpu.memory_space<smem>>
    %c16 = arith.constant 16 : index
    %149 = memref.load %arg1[%c16] : memref<24xf32, #tpu.memory_space<smem>>
    %c17 = arith.constant 17 : index
    %150 = memref.load %arg1[%c17] : memref<24xf32, #tpu.memory_space<smem>>
    %151 = arith.addf %149, %150 : f32
    %152 = vector.broadcast %151 : f32 to vector<8x128xf32>
    %153 = arith.mulf %152, %37 : vector<8x128xf32>
    %154 = arith.addf %147, %153 : vector<8x128xf32>
    %155 = vector.broadcast %148 : f32 to vector<8x128xf32>
    %156 = arith.mulf %155, %65 : vector<8x128xf32>
    %157 = arith.addf %154, %156 : vector<8x128xf32>
    %c18 = arith.constant 18 : index
    %158 = memref.load %arg1[%c18] : memref<24xf32, #tpu.memory_space<smem>>
    %c19 = arith.constant 19 : index
    %159 = memref.load %arg1[%c19] : memref<24xf32, #tpu.memory_space<smem>>
    %c20 = arith.constant 20 : index
    %160 = memref.load %arg1[%c20] : memref<24xf32, #tpu.memory_space<smem>>
    %161 = arith.addf %159, %160 : f32
    %162 = vector.broadcast %161 : f32 to vector<8x128xf32>
    %163 = arith.mulf %162, %39 : vector<8x128xf32>
    %164 = arith.addf %157, %163 : vector<8x128xf32>
    %165 = vector.broadcast %158 : f32 to vector<8x128xf32>
    %166 = arith.mulf %165, %77 : vector<8x128xf32>
    %167 = arith.addf %164, %166 : vector<8x128xf32>
    %c21 = arith.constant 21 : index
    %168 = memref.load %arg1[%c21] : memref<24xf32, #tpu.memory_space<smem>>
    %c22 = arith.constant 22 : index
    %169 = memref.load %arg1[%c22] : memref<24xf32, #tpu.memory_space<smem>>
    %c23 = arith.constant 23 : index
    %170 = memref.load %arg1[%c23] : memref<24xf32, #tpu.memory_space<smem>>
    %171 = arith.addf %169, %170 : f32
    %172 = vector.broadcast %171 : f32 to vector<8x128xf32>
    %173 = arith.mulf %172, %41 : vector<8x128xf32>
    %174 = arith.addf %167, %173 : vector<8x128xf32>
    %175 = vector.broadcast %168 : f32 to vector<8x128xf32>
    %176 = arith.mulf %175, %89 : vector<8x128xf32>
    %177 = arith.addf %174, %176 : vector<8x128xf32>
    %c4_i32_46 = arith.constant 4 : i32
    %178 = tpu.dynamic_rotate %133 by %c4_i32_46 dim 1 : vector<8x128xf32>, i32 -> vector<8x128xf32>
    %c-4_i32 = arith.constant -4 : i32
    %179 = vector.broadcast %c-4_i32 : i32 to vector<8x128xi32>
    %180 = arith.addi %17, %179 : vector<8x128xi32>
    %c0_i32_47 = arith.constant 0 : i32
    %181 = vector.broadcast %c0_i32_47 : i32 to vector<8x128xi32>
    %182 = arith.cmpi sge, %180, %181 : vector<8x128xi32>
    %c-4_i32_48 = arith.constant -4 : i32
    %183 = vector.broadcast %c-4_i32_48 : i32 to vector<8x128xi32>
    %184 = arith.addi %17, %183 : vector<8x128xi32>
    %c16_i32_49 = arith.constant 16 : i32
    %185 = vector.broadcast %c16_i32_49 : i32 to vector<8x128xi32>
    %186 = arith.cmpi slt, %184, %185 : vector<8x128xi32>
    %187 = arith.andi %182, %186 : vector<8x128xi1>
    %cst_50 = arith.constant 0.000000e+00 : f32
    %188 = vector.broadcast %cst_50 : f32 to vector<8x128xf32>
    %189 = arith.select %187, %178, %188 : vector<8x128xi1>, vector<8x128xf32>
    %c4_i32_51 = arith.constant 4 : i32
    %190 = tpu.dynamic_rotate %177 by %c4_i32_51 dim 1 : vector<8x128xf32>, i32 -> vector<8x128xf32>
    %c-4_i32_52 = arith.constant -4 : i32
    %191 = vector.broadcast %c-4_i32_52 : i32 to vector<8x128xi32>
    %192 = arith.addi %17, %191 : vector<8x128xi32>
    %c0_i32_53 = arith.constant 0 : i32
    %193 = vector.broadcast %c0_i32_53 : i32 to vector<8x128xi32>
    %194 = arith.cmpi sge, %192, %193 : vector<8x128xi32>
    %c-4_i32_54 = arith.constant -4 : i32
    %195 = vector.broadcast %c-4_i32_54 : i32 to vector<8x128xi32>
    %196 = arith.addi %17, %195 : vector<8x128xi32>
    %c16_i32_55 = arith.constant 16 : i32
    %197 = vector.broadcast %c16_i32_55 : i32 to vector<8x128xi32>
    %198 = arith.cmpi slt, %196, %197 : vector<8x128xi32>
    %199 = arith.andi %194, %198 : vector<8x128xi1>
    %cst_56 = arith.constant 0.000000e+00 : f32
    %200 = vector.broadcast %cst_56 : f32 to vector<8x128xf32>
    %201 = arith.select %199, %190, %200 : vector<8x128xi1>, vector<8x128xf32>
    %cst_57 = arith.constant 0.000000e+00 : f32
    %202 = vector.broadcast %cst_57 : f32 to vector<8x128xf32>
    %c0_58 = arith.constant 0 : index
    %203 = memref.load %arg4[%c0_58] : memref<2xf32, #tpu.memory_space<smem>>
    %204 = vector.broadcast %203 : f32 to vector<8x128xf32>
    %205 = arith.addf %202, %204 : vector<8x128xf32>
    %c0_59 = arith.constant 0 : index
    %206 = memref.load %arg3[%c0_59] : memref<12xf32, #tpu.memory_space<smem>>
    %c1_60 = arith.constant 1 : index
    %207 = memref.load %arg3[%c1_60] : memref<12xf32, #tpu.memory_space<smem>>
    %c2_61 = arith.constant 2 : index
    %208 = memref.load %arg3[%c2_61] : memref<12xf32, #tpu.memory_space<smem>>
    %209 = arith.addf %207, %208 : f32
    %210 = vector.broadcast %209 : f32 to vector<8x128xf32>
    %211 = arith.mulf %210, %133 : vector<8x128xf32>
    %212 = arith.addf %205, %211 : vector<8x128xf32>
    %213 = vector.broadcast %206 : f32 to vector<8x128xf32>
    %214 = arith.mulf %213, %189 : vector<8x128xf32>
    %215 = arith.addf %212, %214 : vector<8x128xf32>
    %c3_62 = arith.constant 3 : index
    %216 = memref.load %arg3[%c3_62] : memref<12xf32, #tpu.memory_space<smem>>
    %c4_63 = arith.constant 4 : index
    %217 = memref.load %arg3[%c4_63] : memref<12xf32, #tpu.memory_space<smem>>
    %c5_64 = arith.constant 5 : index
    %218 = memref.load %arg3[%c5_64] : memref<12xf32, #tpu.memory_space<smem>>
    %219 = arith.addf %217, %218 : f32
    %220 = vector.broadcast %219 : f32 to vector<8x128xf32>
    %221 = arith.mulf %220, %177 : vector<8x128xf32>
    %222 = arith.addf %215, %221 : vector<8x128xf32>
    %223 = vector.broadcast %216 : f32 to vector<8x128xf32>
    %224 = arith.mulf %223, %201 : vector<8x128xf32>
    %225 = arith.addf %222, %224 : vector<8x128xf32>
    %cst_65 = arith.constant 0.000000e+00 : f32
    %226 = vector.broadcast %cst_65 : f32 to vector<8x128xf32>
    %c1_66 = arith.constant 1 : index
    %227 = memref.load %arg4[%c1_66] : memref<2xf32, #tpu.memory_space<smem>>
    %228 = vector.broadcast %227 : f32 to vector<8x128xf32>
    %229 = arith.addf %226, %228 : vector<8x128xf32>
    %c6_67 = arith.constant 6 : index
    %230 = memref.load %arg3[%c6_67] : memref<12xf32, #tpu.memory_space<smem>>
    %c7_68 = arith.constant 7 : index
    %231 = memref.load %arg3[%c7_68] : memref<12xf32, #tpu.memory_space<smem>>
    %c8_69 = arith.constant 8 : index
    %232 = memref.load %arg3[%c8_69] : memref<12xf32, #tpu.memory_space<smem>>
    %233 = arith.addf %231, %232 : f32
    %234 = vector.broadcast %233 : f32 to vector<8x128xf32>
    %235 = arith.mulf %234, %133 : vector<8x128xf32>
    %236 = arith.addf %229, %235 : vector<8x128xf32>
    %237 = vector.broadcast %230 : f32 to vector<8x128xf32>
    %238 = arith.mulf %237, %189 : vector<8x128xf32>
    %239 = arith.addf %236, %238 : vector<8x128xf32>
    %c9_70 = arith.constant 9 : index
    %240 = memref.load %arg3[%c9_70] : memref<12xf32, #tpu.memory_space<smem>>
    %c10_71 = arith.constant 10 : index
    %241 = memref.load %arg3[%c10_71] : memref<12xf32, #tpu.memory_space<smem>>
    %c11_72 = arith.constant 11 : index
    %242 = memref.load %arg3[%c11_72] : memref<12xf32, #tpu.memory_space<smem>>
    %243 = arith.addf %241, %242 : f32
    %244 = vector.broadcast %243 : f32 to vector<8x128xf32>
    %245 = arith.mulf %244, %177 : vector<8x128xf32>
    %246 = arith.addf %239, %245 : vector<8x128xf32>
    %247 = vector.broadcast %240 : f32 to vector<8x128xf32>
    %248 = arith.mulf %247, %201 : vector<8x128xf32>
    %249 = arith.addf %246, %248 : vector<8x128xf32>
    %c1_i32_73 = arith.constant 1 : i32
    %250 = tpu.dynamic_rotate %225 by %c1_i32_73 dim 1 : vector<8x128xf32>, i32 -> vector<8x128xf32>
    %c-1_i32_74 = arith.constant -1 : i32
    %251 = vector.broadcast %c-1_i32_74 : i32 to vector<8x128xi32>
    %252 = arith.addi %33, %251 : vector<8x128xi32>
    %c0_i32_75 = arith.constant 0 : i32
    %253 = vector.broadcast %c0_i32_75 : i32 to vector<8x128xi32>
    %254 = arith.cmpi sge, %252, %253 : vector<8x128xi32>
    %c-1_i32_76 = arith.constant -1 : i32
    %255 = vector.broadcast %c-1_i32_76 : i32 to vector<8x128xi32>
    %256 = arith.addi %33, %255 : vector<8x128xi32>
    %c4_i32_77 = arith.constant 4 : i32
    %257 = vector.broadcast %c4_i32_77 : i32 to vector<8x128xi32>
    %258 = arith.cmpi slt, %256, %257 : vector<8x128xi32>
    %259 = arith.andi %254, %258 : vector<8x128xi1>
    %cst_78 = arith.constant 0.000000e+00 : f32
    %260 = vector.broadcast %cst_78 : f32 to vector<8x128xf32>
    %261 = arith.select %259, %250, %260 : vector<8x128xi1>, vector<8x128xf32>
    %c1_i32_79 = arith.constant 1 : i32
    %262 = tpu.dynamic_rotate %249 by %c1_i32_79 dim 1 : vector<8x128xf32>, i32 -> vector<8x128xf32>
    %c-1_i32_80 = arith.constant -1 : i32
    %263 = vector.broadcast %c-1_i32_80 : i32 to vector<8x128xi32>
    %264 = arith.addi %33, %263 : vector<8x128xi32>
    %c0_i32_81 = arith.constant 0 : i32
    %265 = vector.broadcast %c0_i32_81 : i32 to vector<8x128xi32>
    %266 = arith.cmpi sge, %264, %265 : vector<8x128xi32>
    %c-1_i32_82 = arith.constant -1 : i32
    %267 = vector.broadcast %c-1_i32_82 : i32 to vector<8x128xi32>
    %268 = arith.addi %33, %267 : vector<8x128xi32>
    %c4_i32_83 = arith.constant 4 : i32
    %269 = vector.broadcast %c4_i32_83 : i32 to vector<8x128xi32>
    %270 = arith.cmpi slt, %268, %269 : vector<8x128xi32>
    %271 = arith.andi %266, %270 : vector<8x128xi1>
    %cst_84 = arith.constant 0.000000e+00 : f32
    %272 = vector.broadcast %cst_84 : f32 to vector<8x128xf32>
    %273 = arith.select %271, %262, %272 : vector<8x128xi1>, vector<8x128xf32>
    %cst_85 = arith.constant 0.000000e+00 : f32
    %274 = vector.broadcast %cst_85 : f32 to vector<8x128xf32>
    %c0_86 = arith.constant 0 : index
    %275 = memref.load %arg6[%c0_86] : memref<2xf32, #tpu.memory_space<smem>>
    %276 = vector.broadcast %275 : f32 to vector<8x128xf32>
    %277 = arith.addf %274, %276 : vector<8x128xf32>
    %c0_87 = arith.constant 0 : index
    %278 = memref.load %arg5[%c0_87] : memref<12xf32, #tpu.memory_space<smem>>
    %c1_88 = arith.constant 1 : index
    %279 = memref.load %arg5[%c1_88] : memref<12xf32, #tpu.memory_space<smem>>
    %c2_89 = arith.constant 2 : index
    %280 = memref.load %arg5[%c2_89] : memref<12xf32, #tpu.memory_space<smem>>
    %281 = arith.addf %279, %280 : f32
    %282 = vector.broadcast %281 : f32 to vector<8x128xf32>
    %283 = arith.mulf %282, %225 : vector<8x128xf32>
    %284 = arith.addf %277, %283 : vector<8x128xf32>
    %285 = vector.broadcast %278 : f32 to vector<8x128xf32>
    %286 = arith.mulf %285, %261 : vector<8x128xf32>
    %287 = arith.addf %284, %286 : vector<8x128xf32>
    %c3_90 = arith.constant 3 : index
    %288 = memref.load %arg5[%c3_90] : memref<12xf32, #tpu.memory_space<smem>>
    %c4_91 = arith.constant 4 : index
    %289 = memref.load %arg5[%c4_91] : memref<12xf32, #tpu.memory_space<smem>>
    %c5_92 = arith.constant 5 : index
    %290 = memref.load %arg5[%c5_92] : memref<12xf32, #tpu.memory_space<smem>>
    %291 = arith.addf %289, %290 : f32
    %292 = vector.broadcast %291 : f32 to vector<8x128xf32>
    %293 = arith.mulf %292, %249 : vector<8x128xf32>
    %294 = arith.addf %287, %293 : vector<8x128xf32>
    %295 = vector.broadcast %288 : f32 to vector<8x128xf32>
    %296 = arith.mulf %295, %273 : vector<8x128xf32>
    %297 = arith.addf %294, %296 : vector<8x128xf32>
    %cst_93 = arith.constant 0.000000e+00 : f32
    %298 = vector.broadcast %cst_93 : f32 to vector<8x128xf32>
    %c1_94 = arith.constant 1 : index
    %299 = memref.load %arg6[%c1_94] : memref<2xf32, #tpu.memory_space<smem>>
    %300 = vector.broadcast %299 : f32 to vector<8x128xf32>
    %301 = arith.addf %298, %300 : vector<8x128xf32>
    %c6_95 = arith.constant 6 : index
    %302 = memref.load %arg5[%c6_95] : memref<12xf32, #tpu.memory_space<smem>>
    %c7_96 = arith.constant 7 : index
    %303 = memref.load %arg5[%c7_96] : memref<12xf32, #tpu.memory_space<smem>>
    %c8_97 = arith.constant 8 : index
    %304 = memref.load %arg5[%c8_97] : memref<12xf32, #tpu.memory_space<smem>>
    %305 = arith.addf %303, %304 : f32
    %306 = vector.broadcast %305 : f32 to vector<8x128xf32>
    %307 = arith.mulf %306, %225 : vector<8x128xf32>
    %308 = arith.addf %301, %307 : vector<8x128xf32>
    %309 = vector.broadcast %302 : f32 to vector<8x128xf32>
    %310 = arith.mulf %309, %261 : vector<8x128xf32>
    %311 = arith.addf %308, %310 : vector<8x128xf32>
    %c9_98 = arith.constant 9 : index
    %312 = memref.load %arg5[%c9_98] : memref<12xf32, #tpu.memory_space<smem>>
    %c10_99 = arith.constant 10 : index
    %313 = memref.load %arg5[%c10_99] : memref<12xf32, #tpu.memory_space<smem>>
    %c11_100 = arith.constant 11 : index
    %314 = memref.load %arg5[%c11_100] : memref<12xf32, #tpu.memory_space<smem>>
    %315 = arith.addf %313, %314 : f32
    %316 = vector.broadcast %315 : f32 to vector<8x128xf32>
    %317 = arith.mulf %316, %249 : vector<8x128xf32>
    %318 = arith.addf %311, %317 : vector<8x128xf32>
    %319 = vector.broadcast %312 : f32 to vector<8x128xf32>
    %320 = arith.mulf %319, %273 : vector<8x128xf32>
    %321 = arith.addf %318, %320 : vector<8x128xf32>
    %cst_101 = arith.constant 0.000000e+00 : f32
    %322 = vector.broadcast %cst_101 : f32 to vector<8x128xf32>
    %323 = arith.maximumf %297, %322 : vector<8x128xf32>
    %c0_102 = arith.constant 0 : index
    %c0_103 = arith.constant 0 : index
    %c0_104 = arith.constant 0 : index
    %c0_105 = arith.constant 0 : index
    %c0_106 = arith.constant 0 : index
    %c0_107 = arith.constant 0 : index
    %324 = vector.load %arg7[%c0_102, %c0_103, %c0_104, %c0_105, %c0_106, %c0_107] : memref<2x2x2x2x8x128xf32, #tpu.memory_space<vmem>>, vector<1x1x1x1x8x128xf32>
    %325 = vector.shape_cast %324 : vector<1x1x1x1x8x128xf32> to vector<8x128xf32>
    %326 = vector.shape_cast %323 : vector<8x128xf32> to vector<1x1x1x1x8x128xf32>
    tpu.vector_store %arg7[%c0_102, %c0_103, %c0_104, %c0_105, %c0_106, %c0_107], %326 {strides = array<i32>} : memref<2x2x2x2x8x128xf32, #tpu.memory_space<vmem>>, vector<1x1x1x1x8x128xf32>,
    %cst_108 = arith.constant 0.000000e+00 : f32
    %327 = vector.broadcast %cst_108 : f32 to vector<8x128xf32>
    %328 = arith.maximumf %321, %327 : vector<8x128xf32>
    %c0_109 = arith.constant 0 : index
    %c0_110 = arith.constant 0 : index
    %c0_111 = arith.constant 0 : index
    %c1_112 = arith.constant 1 : index
    %c0_113 = arith.constant 0 : index
    %c0_114 = arith.constant 0 : index
    %329 = vector.load %arg7[%c0_109, %c0_110, %c0_111, %c1_112, %c0_113, %c0_114] : memref<2x2x2x2x8x128xf32, #tpu.memory_space<vmem>>, vector<1x1x1x1x8x128xf32>
    %330 = vector.shape_cast %329 : vector<1x1x1x1x8x128xf32> to vector<8x128xf32>
    %331 = vector.shape_cast %328 : vector<8x128xf32> to vector<1x1x1x1x8x128xf32>
    tpu.vector_store %arg7[%c0_109, %c0_110, %c0_111, %c1_112, %c0_113, %c0_114], %331 {strides = array<i32>} : memref<2x2x2x2x8x128xf32, #tpu.memory_space<vmem>>, vector<1x1x1x1x8x128xf32>,
    %c127_i32 = arith.constant 127 : i32
    %332 = tpu.dynamic_rotate %225 by %c127_i32 dim 1 : vector<8x128xf32>, i32 -> vector<8x128xf32>
    %c1_i32_115 = arith.constant 1 : i32
    %333 = vector.broadcast %c1_i32_115 : i32 to vector<8x128xi32>
    %334 = arith.addi %33, %333 : vector<8x128xi32>
    %c0_i32_116 = arith.constant 0 : i32
    %335 = vector.broadcast %c0_i32_116 : i32 to vector<8x128xi32>
    %336 = arith.cmpi sge, %334, %335 : vector<8x128xi32>
    %c1_i32_117 = arith.constant 1 : i32
    %337 = vector.broadcast %c1_i32_117 : i32 to vector<8x128xi32>
    %338 = arith.addi %33, %337 : vector<8x128xi32>
    %c4_i32_118 = arith.constant 4 : i32
    %339 = vector.broadcast %c4_i32_118 : i32 to vector<8x128xi32>
    %340 = arith.cmpi slt, %338, %339 : vector<8x128xi32>
    %341 = arith.andi %336, %340 : vector<8x128xi1>
    %cst_119 = arith.constant 0.000000e+00 : f32
    %342 = vector.broadcast %cst_119 : f32 to vector<8x128xf32>
    %343 = arith.select %341, %332, %342 : vector<8x128xi1>, vector<8x128xf32>
    %c127_i32_120 = arith.constant 127 : i32
    %344 = tpu.dynamic_rotate %249 by %c127_i32_120 dim 1 : vector<8x128xf32>, i32 -> vector<8x128xf32>
    %c1_i32_121 = arith.constant 1 : i32
    %345 = vector.broadcast %c1_i32_121 : i32 to vector<8x128xi32>
    %346 = arith.addi %33, %345 : vector<8x128xi32>
    %c0_i32_122 = arith.constant 0 : i32
    %347 = vector.broadcast %c0_i32_122 : i32 to vector<8x128xi32>
    %348 = arith.cmpi sge, %346, %347 : vector<8x128xi32>
    %c1_i32_123 = arith.constant 1 : i32
    %349 = vector.broadcast %c1_i32_123 : i32 to vector<8x128xi32>
    %350 = arith.addi %33, %349 : vector<8x128xi32>
    %c4_i32_124 = arith.constant 4 : i32
    %351 = vector.broadcast %c4_i32_124 : i32 to vector<8x128xi32>
    %352 = arith.cmpi slt, %350, %351 : vector<8x128xi32>
    %353 = arith.andi %348, %352 : vector<8x128xi1>
    %cst_125 = arith.constant 0.000000e+00 : f32
    %354 = vector.broadcast %cst_125 : f32 to vector<8x128xf32>
    %355 = arith.select %353, %344, %354 : vector<8x128xi1>, vector<8x128xf32>
    %cst_126 = arith.constant 0.000000e+00 : f32
    %356 = vector.broadcast %cst_126 : f32 to vector<8x128xf32>
    %c0_127 = arith.constant 0 : index
    %357 = memref.load %arg6[%c0_127] : memref<2xf32, #tpu.memory_space<smem>>
    %358 = vector.broadcast %357 : f32 to vector<8x128xf32>
    %359 = arith.addf %356, %358 : vector<8x128xf32>
    %c0_128 = arith.constant 0 : index
    %360 = memref.load %arg5[%c0_128] : memref<12xf32, #tpu.memory_space<smem>>
    %c1_129 = arith.constant 1 : index
    %361 = memref.load %arg5[%c1_129] : memref<12xf32, #tpu.memory_space<smem>>
    %c2_130 = arith.constant 2 : index
    %362 = memref.load %arg5[%c2_130] : memref<12xf32, #tpu.memory_space<smem>>
    %363 = arith.addf %360, %361 : f32
    %364 = vector.broadcast %363 : f32 to vector<8x128xf32>
    %365 = arith.mulf %364, %225 : vector<8x128xf32>
    %366 = arith.addf %359, %365 : vector<8x128xf32>
    %367 = vector.broadcast %362 : f32 to vector<8x128xf32>
    %368 = arith.mulf %367, %343 : vector<8x128xf32>
    %369 = arith.addf %366, %368 : vector<8x128xf32>
    %c3_131 = arith.constant 3 : index
    %370 = memref.load %arg5[%c3_131] : memref<12xf32, #tpu.memory_space<smem>>
    %c4_132 = arith.constant 4 : index
    %371 = memref.load %arg5[%c4_132] : memref<12xf32, #tpu.memory_space<smem>>
    %c5_133 = arith.constant 5 : index
    %372 = memref.load %arg5[%c5_133] : memref<12xf32, #tpu.memory_space<smem>>
    %373 = arith.addf %370, %371 : f32
    %374 = vector.broadcast %373 : f32 to vector<8x128xf32>
    %375 = arith.mulf %374, %249 : vector<8x128xf32>
    %376 = arith.addf %369, %375 : vector<8x128xf32>
    %377 = vector.broadcast %372 : f32 to vector<8x128xf32>
    %378 = arith.mulf %377, %355 : vector<8x128xf32>
    %379 = arith.addf %376, %378 : vector<8x128xf32>
    %cst_134 = arith.constant 0.000000e+00 : f32
    %380 = vector.broadcast %cst_134 : f32 to vector<8x128xf32>
    %c1_135 = arith.constant 1 : index
    %381 = memref.load %arg6[%c1_135] : memref<2xf32, #tpu.memory_space<smem>>
    %382 = vector.broadcast %381 : f32 to vector<8x128xf32>
    %383 = arith.addf %380, %382 : vector<8x128xf32>
    %c6_136 = arith.constant 6 : index
    %384 = memref.load %arg5[%c6_136] : memref<12xf32, #tpu.memory_space<smem>>
    %c7_137 = arith.constant 7 : index
    %385 = memref.load %arg5[%c7_137] : memref<12xf32, #tpu.memory_space<smem>>
    %c8_138 = arith.constant 8 : index
    %386 = memref.load %arg5[%c8_138] : memref<12xf32, #tpu.memory_space<smem>>
    %387 = arith.addf %384, %385 : f32
    %388 = vector.broadcast %387 : f32 to vector<8x128xf32>
    %389 = arith.mulf %388, %225 : vector<8x128xf32>
    %390 = arith.addf %383, %389 : vector<8x128xf32>
    %391 = vector.broadcast %386 : f32 to vector<8x128xf32>
    %392 = arith.mulf %391, %343 : vector<8x128xf32>
    %393 = arith.addf %390, %392 : vector<8x128xf32>
    %c9_139 = arith.constant 9 : index
    %394 = memref.load %arg5[%c9_139] : memref<12xf32, #tpu.memory_space<smem>>
    %c10_140 = arith.constant 10 : index
    %395 = memref.load %arg5[%c10_140] : memref<12xf32, #tpu.memory_space<smem>>
    %c11_141 = arith.constant 11 : index
    %396 = memref.load %arg5[%c11_141] : memref<12xf32, #tpu.memory_space<smem>>
    %397 = arith.addf %394, %395 : f32
    %398 = vector.broadcast %397 : f32 to vector<8x128xf32>
    %399 = arith.mulf %398, %249 : vector<8x128xf32>
    %400 = arith.addf %393, %399 : vector<8x128xf32>
    %401 = vector.broadcast %396 : f32 to vector<8x128xf32>
    %402 = arith.mulf %401, %355 : vector<8x128xf32>
    %403 = arith.addf %400, %402 : vector<8x128xf32>
    %cst_142 = arith.constant 0.000000e+00 : f32
    %404 = vector.broadcast %cst_142 : f32 to vector<8x128xf32>
    %405 = arith.maximumf %379, %404 : vector<8x128xf32>
    %c0_143 = arith.constant 0 : index
    %c0_144 = arith.constant 0 : index
    %c1_145 = arith.constant 1 : index
    %c0_146 = arith.constant 0 : index
    %c0_147 = arith.constant 0 : index
    %c0_148 = arith.constant 0 : index
    %406 = vector.load %arg7[%c0_143, %c0_144, %c1_145, %c0_146, %c0_147, %c0_148] : memref<2x2x2x2x8x128xf32, #tpu.memory_space<vmem>>, vector<1x1x1x1x8x128xf32>
    %407 = vector.shape_cast %406 : vector<1x1x1x1x8x128xf32> to vector<8x128xf32>
    %408 = vector.shape_cast %405 : vector<8x128xf32> to vector<1x1x1x1x8x128xf32>
    tpu.vector_store %arg7[%c0_143, %c0_144, %c1_145, %c0_146, %c0_147, %c0_148], %408 {strides = array<i32>} : memref<2x2x2x2x8x128xf32, #tpu.memory_space<vmem>>, vector<1x1x1x1x8x128xf32>,
    %cst_149 = arith.constant 0.000000e+00 : f32
    %409 = vector.broadcast %cst_149 : f32 to vector<8x128xf32>
    %410 = arith.maximumf %403, %409 : vector<8x128xf32>
    %c0_150 = arith.constant 0 : index
    %c0_151 = arith.constant 0 : index
    %c1_152 = arith.constant 1 : index
    %c1_153 = arith.constant 1 : index
    %c0_154 = arith.constant 0 : index
    %c0_155 = arith.constant 0 : index
    %411 = vector.load %arg7[%c0_150, %c0_151, %c1_152, %c1_153, %c0_154, %c0_155] : memref<2x2x2x2x8x128xf32, #tpu.memory_space<vmem>>, vector<1x1x1x1x8x128xf32>
    %412 = vector.shape_cast %411 : vector<1x1x1x1x8x128xf32> to vector<8x128xf32>
    %413 = vector.shape_cast %410 : vector<8x128xf32> to vector<1x1x1x1x8x128xf32>
    tpu.vector_store %arg7[%c0_150, %c0_151, %c1_152, %c1_153, %c0_154, %c0_155], %413 {strides = array<i32>} : memref<2x2x2x2x8x128xf32, #tpu.memory_space<vmem>>, vector<1x1x1x1x8x128xf32>,
    %c124_i32 = arith.constant 124 : i32
    %414 = tpu.dynamic_rotate %133 by %c124_i32 dim 1 : vector<8x128xf32>, i32 -> vector<8x128xf32>
    %c4_i32_156 = arith.constant 4 : i32
    %415 = vector.broadcast %c4_i32_156 : i32 to vector<8x128xi32>
    %416 = arith.addi %17, %415 : vector<8x128xi32>
    %c0_i32_157 = arith.constant 0 : i32
    %417 = vector.broadcast %c0_i32_157 : i32 to vector<8x128xi32>
    %418 = arith.cmpi sge, %416, %417 : vector<8x128xi32>
    %c4_i32_158 = arith.constant 4 : i32
    %419 = vector.broadcast %c4_i32_158 : i32 to vector<8x128xi32>
    %420 = arith.addi %17, %419 : vector<8x128xi32>
    %c16_i32_159 = arith.constant 16 : i32
    %421 = vector.broadcast %c16_i32_159 : i32 to vector<8x128xi32>
    %422 = arith.cmpi slt, %420, %421 : vector<8x128xi32>
    %423 = arith.andi %418, %422 : vector<8x128xi1>
    %cst_160 = arith.constant 0.000000e+00 : f32
    %424 = vector.broadcast %cst_160 : f32 to vector<8x128xf32>
    %425 = arith.select %423, %414, %424 : vector<8x128xi1>, vector<8x128xf32>
    %c124_i32_161 = arith.constant 124 : i32
    %426 = tpu.dynamic_rotate %177 by %c124_i32_161 dim 1 : vector<8x128xf32>, i32 -> vector<8x128xf32>
    %c4_i32_162 = arith.constant 4 : i32
    %427 = vector.broadcast %c4_i32_162 : i32 to vector<8x128xi32>
    %428 = arith.addi %17, %427 : vector<8x128xi32>
    %c0_i32_163 = arith.constant 0 : i32
    %429 = vector.broadcast %c0_i32_163 : i32 to vector<8x128xi32>
    %430 = arith.cmpi sge, %428, %429 : vector<8x128xi32>
    %c4_i32_164 = arith.constant 4 : i32
    %431 = vector.broadcast %c4_i32_164 : i32 to vector<8x128xi32>
    %432 = arith.addi %17, %431 : vector<8x128xi32>
    %c16_i32_165 = arith.constant 16 : i32
    %433 = vector.broadcast %c16_i32_165 : i32 to vector<8x128xi32>
    %434 = arith.cmpi slt, %432, %433 : vector<8x128xi32>
    %435 = arith.andi %430, %434 : vector<8x128xi1>
    %cst_166 = arith.constant 0.000000e+00 : f32
    %436 = vector.broadcast %cst_166 : f32 to vector<8x128xf32>
    %437 = arith.select %435, %426, %436 : vector<8x128xi1>, vector<8x128xf32>
    %cst_167 = arith.constant 0.000000e+00 : f32
    %438 = vector.broadcast %cst_167 : f32 to vector<8x128xf32>
    %c0_168 = arith.constant 0 : index
    %439 = memref.load %arg4[%c0_168] : memref<2xf32, #tpu.memory_space<smem>>
    %440 = vector.broadcast %439 : f32 to vector<8x128xf32>
    %441 = arith.addf %438, %440 : vector<8x128xf32>
    %c0_169 = arith.constant 0 : index
    %442 = memref.load %arg3[%c0_169] : memref<12xf32, #tpu.memory_space<smem>>
    %c1_170 = arith.constant 1 : index
    %443 = memref.load %arg3[%c1_170] : memref<12xf32, #tpu.memory_space<smem>>
    %c2_171 = arith.constant 2 : index
    %444 = memref.load %arg3[%c2_171] : memref<12xf32, #tpu.memory_space<smem>>
    %445 = arith.addf %442, %443 : f32
    %446 = vector.broadcast %445 : f32 to vector<8x128xf32>
    %447 = arith.mulf %446, %133 : vector<8x128xf32>
    %448 = arith.addf %441, %447 : vector<8x128xf32>
    %449 = vector.broadcast %444 : f32 to vector<8x128xf32>
    %450 = arith.mulf %449, %425 : vector<8x128xf32>
    %451 = arith.addf %448, %450 : vector<8x128xf32>
    %c3_172 = arith.constant 3 : index
    %452 = memref.load %arg3[%c3_172] : memref<12xf32, #tpu.memory_space<smem>>
    %c4_173 = arith.constant 4 : index
    %453 = memref.load %arg3[%c4_173] : memref<12xf32, #tpu.memory_space<smem>>
    %c5_174 = arith.constant 5 : index
    %454 = memref.load %arg3[%c5_174] : memref<12xf32, #tpu.memory_space<smem>>
    %455 = arith.addf %452, %453 : f32
    %456 = vector.broadcast %455 : f32 to vector<8x128xf32>
    %457 = arith.mulf %456, %177 : vector<8x128xf32>
    %458 = arith.addf %451, %457 : vector<8x128xf32>
    %459 = vector.broadcast %454 : f32 to vector<8x128xf32>
    %460 = arith.mulf %459, %437 : vector<8x128xf32>
    %461 = arith.addf %458, %460 : vector<8x128xf32>
    %cst_175 = arith.constant 0.000000e+00 : f32
    %462 = vector.broadcast %cst_175 : f32 to vector<8x128xf32>
    %c1_176 = arith.constant 1 : index
    %463 = memref.load %arg4[%c1_176] : memref<2xf32, #tpu.memory_space<smem>>
    %464 = vector.broadcast %463 : f32 to vector<8x128xf32>
    %465 = arith.addf %462, %464 : vector<8x128xf32>
    %c6_177 = arith.constant 6 : index
    %466 = memref.load %arg3[%c6_177] : memref<12xf32, #tpu.memory_space<smem>>
    %c7_178 = arith.constant 7 : index
    %467 = memref.load %arg3[%c7_178] : memref<12xf32, #tpu.memory_space<smem>>
    %c8_179 = arith.constant 8 : index
    %468 = memref.load %arg3[%c8_179] : memref<12xf32, #tpu.memory_space<smem>>
    %469 = arith.addf %466, %467 : f32
    %470 = vector.broadcast %469 : f32 to vector<8x128xf32>
    %471 = arith.mulf %470, %133 : vector<8x128xf32>
    %472 = arith.addf %465, %471 : vector<8x128xf32>
    %473 = vector.broadcast %468 : f32 to vector<8x128xf32>
    %474 = arith.mulf %473, %425 : vector<8x128xf32>
    %475 = arith.addf %472, %474 : vector<8x128xf32>
    %c9_180 = arith.constant 9 : index
    %476 = memref.load %arg3[%c9_180] : memref<12xf32, #tpu.memory_space<smem>>
    %c10_181 = arith.constant 10 : index
    %477 = memref.load %arg3[%c10_181] : memref<12xf32, #tpu.memory_space<smem>>
    %c11_182 = arith.constant 11 : index
    %478 = memref.load %arg3[%c11_182] : memref<12xf32, #tpu.memory_space<smem>>
    %479 = arith.addf %476, %477 : f32
    %480 = vector.broadcast %479 : f32 to vector<8x128xf32>
    %481 = arith.mulf %480, %177 : vector<8x128xf32>
    %482 = arith.addf %475, %481 : vector<8x128xf32>
    %483 = vector.broadcast %478 : f32 to vector<8x128xf32>
    %484 = arith.mulf %483, %437 : vector<8x128xf32>
    %485 = arith.addf %482, %484 : vector<8x128xf32>
    %c1_i32_183 = arith.constant 1 : i32
    %486 = tpu.dynamic_rotate %461 by %c1_i32_183 dim 1 : vector<8x128xf32>, i32 -> vector<8x128xf32>
    %c-1_i32_184 = arith.constant -1 : i32
    %487 = vector.broadcast %c-1_i32_184 : i32 to vector<8x128xi32>
    %488 = arith.addi %33, %487 : vector<8x128xi32>
    %c0_i32_185 = arith.constant 0 : i32
    %489 = vector.broadcast %c0_i32_185 : i32 to vector<8x128xi32>
    %490 = arith.cmpi sge, %488, %489 : vector<8x128xi32>
    %c-1_i32_186 = arith.constant -1 : i32
    %491 = vector.broadcast %c-1_i32_186 : i32 to vector<8x128xi32>
    %492 = arith.addi %33, %491 : vector<8x128xi32>
    %c4_i32_187 = arith.constant 4 : i32
    %493 = vector.broadcast %c4_i32_187 : i32 to vector<8x128xi32>
    %494 = arith.cmpi slt, %492, %493 : vector<8x128xi32>
    %495 = arith.andi %490, %494 : vector<8x128xi1>
    %cst_188 = arith.constant 0.000000e+00 : f32
    %496 = vector.broadcast %cst_188 : f32 to vector<8x128xf32>
    %497 = arith.select %495, %486, %496 : vector<8x128xi1>, vector<8x128xf32>
    %c1_i32_189 = arith.constant 1 : i32
    %498 = tpu.dynamic_rotate %485 by %c1_i32_189 dim 1 : vector<8x128xf32>, i32 -> vector<8x128xf32>
    %c-1_i32_190 = arith.constant -1 : i32
    %499 = vector.broadcast %c-1_i32_190 : i32 to vector<8x128xi32>
    %500 = arith.addi %33, %499 : vector<8x128xi32>
    %c0_i32_191 = arith.constant 0 : i32
    %501 = vector.broadcast %c0_i32_191 : i32 to vector<8x128xi32>
    %502 = arith.cmpi sge, %500, %501 : vector<8x128xi32>
    %c-1_i32_192 = arith.constant -1 : i32
    %503 = vector.broadcast %c-1_i32_192 : i32 to vector<8x128xi32>
    %504 = arith.addi %33, %503 : vector<8x128xi32>
    %c4_i32_193 = arith.constant 4 : i32
    %505 = vector.broadcast %c4_i32_193 : i32 to vector<8x128xi32>
    %506 = arith.cmpi slt, %504, %505 : vector<8x128xi32>
    %507 = arith.andi %502, %506 : vector<8x128xi1>
    %cst_194 = arith.constant 0.000000e+00 : f32
    %508 = vector.broadcast %cst_194 : f32 to vector<8x128xf32>
    %509 = arith.select %507, %498, %508 : vector<8x128xi1>, vector<8x128xf32>
    %cst_195 = arith.constant 0.000000e+00 : f32
    %510 = vector.broadcast %cst_195 : f32 to vector<8x128xf32>
    %c0_196 = arith.constant 0 : index
    %511 = memref.load %arg6[%c0_196] : memref<2xf32, #tpu.memory_space<smem>>
    %512 = vector.broadcast %511 : f32 to vector<8x128xf32>
    %513 = arith.addf %510, %512 : vector<8x128xf32>
    %c0_197 = arith.constant 0 : index
    %514 = memref.load %arg5[%c0_197] : memref<12xf32, #tpu.memory_space<smem>>
    %c1_198 = arith.constant 1 : index
    %515 = memref.load %arg5[%c1_198] : memref<12xf32, #tpu.memory_space<smem>>
    %c2_199 = arith.constant 2 : index
    %516 = memref.load %arg5[%c2_199] : memref<12xf32, #tpu.memory_space<smem>>
    %517 = arith.addf %515, %516 : f32
    %518 = vector.broadcast %517 : f32 to vector<8x128xf32>
    %519 = arith.mulf %518, %461 : vector<8x128xf32>
    %520 = arith.addf %513, %519 : vector<8x128xf32>
    %521 = vector.broadcast %514 : f32 to vector<8x128xf32>
    %522 = arith.mulf %521, %497 : vector<8x128xf32>
    %523 = arith.addf %520, %522 : vector<8x128xf32>
    %c3_200 = arith.constant 3 : index
    %524 = memref.load %arg5[%c3_200] : memref<12xf32, #tpu.memory_space<smem>>
    %c4_201 = arith.constant 4 : index
    %525 = memref.load %arg5[%c4_201] : memref<12xf32, #tpu.memory_space<smem>>
    %c5_202 = arith.constant 5 : index
    %526 = memref.load %arg5[%c5_202] : memref<12xf32, #tpu.memory_space<smem>>
    %527 = arith.addf %525, %526 : f32
    %528 = vector.broadcast %527 : f32 to vector<8x128xf32>
    %529 = arith.mulf %528, %485 : vector<8x128xf32>
    %530 = arith.addf %523, %529 : vector<8x128xf32>
    %531 = vector.broadcast %524 : f32 to vector<8x128xf32>
    %532 = arith.mulf %531, %509 : vector<8x128xf32>
    %533 = arith.addf %530, %532 : vector<8x128xf32>
    %cst_203 = arith.constant 0.000000e+00 : f32
    %534 = vector.broadcast %cst_203 : f32 to vector<8x128xf32>
    %c1_204 = arith.constant 1 : index
    %535 = memref.load %arg6[%c1_204] : memref<2xf32, #tpu.memory_space<smem>>
    %536 = vector.broadcast %535 : f32 to vector<8x128xf32>
    %537 = arith.addf %534, %536 : vector<8x128xf32>
    %c6_205 = arith.constant 6 : index
    %538 = memref.load %arg5[%c6_205] : memref<12xf32, #tpu.memory_space<smem>>
    %c7_206 = arith.constant 7 : index
    %539 = memref.load %arg5[%c7_206] : memref<12xf32, #tpu.memory_space<smem>>
    %c8_207 = arith.constant 8 : index
    %540 = memref.load %arg5[%c8_207] : memref<12xf32, #tpu.memory_space<smem>>
    %541 = arith.addf %539, %540 : f32
    %542 = vector.broadcast %541 : f32 to vector<8x128xf32>
    %543 = arith.mulf %542, %461 : vector<8x128xf32>
    %544 = arith.addf %537, %543 : vector<8x128xf32>
    %545 = vector.broadcast %538 : f32 to vector<8x128xf32>
    %546 = arith.mulf %545, %497 : vector<8x128xf32>
    %547 = arith.addf %544, %546 : vector<8x128xf32>
    %c9_208 = arith.constant 9 : index
    %548 = memref.load %arg5[%c9_208] : memref<12xf32, #tpu.memory_space<smem>>
    %c10_209 = arith.constant 10 : index
    %549 = memref.load %arg5[%c10_209] : memref<12xf32, #tpu.memory_space<smem>>
    %c11_210 = arith.constant 11 : index
    %550 = memref.load %arg5[%c11_210] : memref<12xf32, #tpu.memory_space<smem>>
    %551 = arith.addf %549, %550 : f32
    %552 = vector.broadcast %551 : f32 to vector<8x128xf32>
    %553 = arith.mulf %552, %485 : vector<8x128xf32>
    %554 = arith.addf %547, %553 : vector<8x128xf32>
    %555 = vector.broadcast %548 : f32 to vector<8x128xf32>
    %556 = arith.mulf %555, %509 : vector<8x128xf32>
    %557 = arith.addf %554, %556 : vector<8x128xf32>
    %cst_211 = arith.constant 0.000000e+00 : f32
    %558 = vector.broadcast %cst_211 : f32 to vector<8x128xf32>
    %559 = arith.maximumf %533, %558 : vector<8x128xf32>
    %c0_212 = arith.constant 0 : index
    %c1_213 = arith.constant 1 : index
    %c0_214 = arith.constant 0 : index
    %c0_215 = arith.constant 0 : index
    %c0_216 = arith.constant 0 : index
    %c0_217 = arith.constant 0 : index
    %560 = vector.load %arg7[%c0_212, %c1_213, %c0_214, %c0_215, %c0_216, %c0_217] : memref<2x2x2x2x8x128xf32, #tpu.memory_space<vmem>>, vector<1x1x1x1x8x128xf32>
    %561 = vector.shape_cast %560 : vector<1x1x1x1x8x128xf32> to vector<8x128xf32>
    %562 = vector.shape_cast %559 : vector<8x128xf32> to vector<1x1x1x1x8x128xf32>
    tpu.vector_store %arg7[%c0_212, %c1_213, %c0_214, %c0_215, %c0_216, %c0_217], %562 {strides = array<i32>} : memref<2x2x2x2x8x128xf32, #tpu.memory_space<vmem>>, vector<1x1x1x1x8x128xf32>,
    %cst_218 = arith.constant 0.000000e+00 : f32
    %563 = vector.broadcast %cst_218 : f32 to vector<8x128xf32>
    %564 = arith.maximumf %557, %563 : vector<8x128xf32>
    %c0_219 = arith.constant 0 : index
    %c1_220 = arith.constant 1 : index
    %c0_221 = arith.constant 0 : index
    %c1_222 = arith.constant 1 : index
    %c0_223 = arith.constant 0 : index
    %c0_224 = arith.constant 0 : index
    %565 = vector.load %arg7[%c0_219, %c1_220, %c0_221, %c1_222, %c0_223, %c0_224] : memref<2x2x2x2x8x128xf32, #tpu.memory_space<vmem>>, vector<1x1x1x1x8x128xf32>
    %566 = vector.shape_cast %565 : vector<1x1x1x1x8x128xf32> to vector<8x128xf32>
    %567 = vector.shape_cast %564 : vector<8x128xf32> to vector<1x1x1x1x8x128xf32>
    tpu.vector_store %arg7[%c0_219, %c1_220, %c0_221, %c1_222, %c0_223, %c0_224], %567 {strides = array<i32>} : memref<2x2x2x2x8x128xf32, #tpu.memory_space<vmem>>, vector<1x1x1x1x8x128xf32>,
    %c127_i32_225 = arith.constant 127 : i32
    %568 = tpu.dynamic_rotate %461 by %c127_i32_225 dim 1 : vector<8x128xf32>, i32 -> vector<8x128xf32>
    %c1_i32_226 = arith.constant 1 : i32
    %569 = vector.broadcast %c1_i32_226 : i32 to vector<8x128xi32>
    %570 = arith.addi %33, %569 : vector<8x128xi32>
    %c0_i32_227 = arith.constant 0 : i32
    %571 = vector.broadcast %c0_i32_227 : i32 to vector<8x128xi32>
    %572 = arith.cmpi sge, %570, %571 : vector<8x128xi32>
    %c1_i32_228 = arith.constant 1 : i32
    %573 = vector.broadcast %c1_i32_228 : i32 to vector<8x128xi32>
    %574 = arith.addi %33, %573 : vector<8x128xi32>
    %c4_i32_229 = arith.constant 4 : i32
    %575 = vector.broadcast %c4_i32_229 : i32 to vector<8x128xi32>
    %576 = arith.cmpi slt, %574, %575 : vector<8x128xi32>
    %577 = arith.andi %572, %576 : vector<8x128xi1>
    %cst_230 = arith.constant 0.000000e+00 : f32
    %578 = vector.broadcast %cst_230 : f32 to vector<8x128xf32>
    %579 = arith.select %577, %568, %578 : vector<8x128xi1>, vector<8x128xf32>
    %c127_i32_231 = arith.constant 127 : i32
    %580 = tpu.dynamic_rotate %485 by %c127_i32_231 dim 1 : vector<8x128xf32>, i32 -> vector<8x128xf32>
    %c1_i32_232 = arith.constant 1 : i32
    %581 = vector.broadcast %c1_i32_232 : i32 to vector<8x128xi32>
    %582 = arith.addi %33, %581 : vector<8x128xi32>
    %c0_i32_233 = arith.constant 0 : i32
    %583 = vector.broadcast %c0_i32_233 : i32 to vector<8x128xi32>
    %584 = arith.cmpi sge, %582, %583 : vector<8x128xi32>
    %c1_i32_234 = arith.constant 1 : i32
    %585 = vector.broadcast %c1_i32_234 : i32 to vector<8x128xi32>
    %586 = arith.addi %33, %585 : vector<8x128xi32>
    %c4_i32_235 = arith.constant 4 : i32
    %587 = vector.broadcast %c4_i32_235 : i32 to vector<8x128xi32>
    %588 = arith.cmpi slt, %586, %587 : vector<8x128xi32>
    %589 = arith.andi %584, %588 : vector<8x128xi1>
    %cst_236 = arith.constant 0.000000e+00 : f32
    %590 = vector.broadcast %cst_236 : f32 to vector<8x128xf32>
    %591 = arith.select %589, %580, %590 : vector<8x128xi1>, vector<8x128xf32>
    %cst_237 = arith.constant 0.000000e+00 : f32
    %592 = vector.broadcast %cst_237 : f32 to vector<8x128xf32>
    %c0_238 = arith.constant 0 : index
    %593 = memref.load %arg6[%c0_238] : memref<2xf32, #tpu.memory_space<smem>>
    %594 = vector.broadcast %593 : f32 to vector<8x128xf32>
    %595 = arith.addf %592, %594 : vector<8x128xf32>
    %c0_239 = arith.constant 0 : index
    %596 = memref.load %arg5[%c0_239] : memref<12xf32, #tpu.memory_space<smem>>
    %c1_240 = arith.constant 1 : index
    %597 = memref.load %arg5[%c1_240] : memref<12xf32, #tpu.memory_space<smem>>
    %c2_241 = arith.constant 2 : index
    %598 = memref.load %arg5[%c2_241] : memref<12xf32, #tpu.memory_space<smem>>
    %599 = arith.addf %596, %597 : f32
    %600 = vector.broadcast %599 : f32 to vector<8x128xf32>
    %601 = arith.mulf %600, %461 : vector<8x128xf32>
    %602 = arith.addf %595, %601 : vector<8x128xf32>
    %603 = vector.broadcast %598 : f32 to vector<8x128xf32>
    %604 = arith.mulf %603, %579 : vector<8x128xf32>
    %605 = arith.addf %602, %604 : vector<8x128xf32>
    %c3_242 = arith.constant 3 : index
    %606 = memref.load %arg5[%c3_242] : memref<12xf32, #tpu.memory_space<smem>>
    %c4_243 = arith.constant 4 : index
    %607 = memref.load %arg5[%c4_243] : memref<12xf32, #tpu.memory_space<smem>>
    %c5_244 = arith.constant 5 : index
    %608 = memref.load %arg5[%c5_244] : memref<12xf32, #tpu.memory_space<smem>>
    %609 = arith.addf %606, %607 : f32
    %610 = vector.broadcast %609 : f32 to vector<8x128xf32>
    %611 = arith.mulf %610, %485 : vector<8x128xf32>
    %612 = arith.addf %605, %611 : vector<8x128xf32>
    %613 = vector.broadcast %608 : f32 to vector<8x128xf32>
    %614 = arith.mulf %613, %591 : vector<8x128xf32>
    %615 = arith.addf %612, %614 : vector<8x128xf32>
    %cst_245 = arith.constant 0.000000e+00 : f32
    %616 = vector.broadcast %cst_245 : f32 to vector<8x128xf32>
    %c1_246 = arith.constant 1 : index
    %617 = memref.load %arg6[%c1_246] : memref<2xf32, #tpu.memory_space<smem>>
    %618 = vector.broadcast %617 : f32 to vector<8x128xf32>
    %619 = arith.addf %616, %618 : vector<8x128xf32>
    %c6_247 = arith.constant 6 : index
    %620 = memref.load %arg5[%c6_247] : memref<12xf32, #tpu.memory_space<smem>>
    %c7_248 = arith.constant 7 : index
    %621 = memref.load %arg5[%c7_248] : memref<12xf32, #tpu.memory_space<smem>>
    %c8_249 = arith.constant 8 : index
    %622 = memref.load %arg5[%c8_249] : memref<12xf32, #tpu.memory_space<smem>>
    %623 = arith.addf %620, %621 : f32
    %624 = vector.broadcast %623 : f32 to vector<8x128xf32>
    %625 = arith.mulf %624, %461 : vector<8x128xf32>
    %626 = arith.addf %619, %625 : vector<8x128xf32>
    %627 = vector.broadcast %622 : f32 to vector<8x128xf32>
    %628 = arith.mulf %627, %579 : vector<8x128xf32>
    %629 = arith.addf %626, %628 : vector<8x128xf32>
    %c9_250 = arith.constant 9 : index
    %630 = memref.load %arg5[%c9_250] : memref<12xf32, #tpu.memory_space<smem>>
    %c10_251 = arith.constant 10 : index
    %631 = memref.load %arg5[%c10_251] : memref<12xf32, #tpu.memory_space<smem>>
    %c11_252 = arith.constant 11 : index
    %632 = memref.load %arg5[%c11_252] : memref<12xf32, #tpu.memory_space<smem>>
    %633 = arith.addf %630, %631 : f32
    %634 = vector.broadcast %633 : f32 to vector<8x128xf32>
    %635 = arith.mulf %634, %485 : vector<8x128xf32>
    %636 = arith.addf %629, %635 : vector<8x128xf32>
    %637 = vector.broadcast %632 : f32 to vector<8x128xf32>
    %638 = arith.mulf %637, %591 : vector<8x128xf32>
    %639 = arith.addf %636, %638 : vector<8x128xf32>
    %cst_253 = arith.constant 0.000000e+00 : f32
    %640 = vector.broadcast %cst_253 : f32 to vector<8x128xf32>
    %641 = arith.maximumf %615, %640 : vector<8x128xf32>
    %c0_254 = arith.constant 0 : index
    %c1_255 = arith.constant 1 : index
    %c1_256 = arith.constant 1 : index
    %c0_257 = arith.constant 0 : index
    %c0_258 = arith.constant 0 : index
    %c0_259 = arith.constant 0 : index
    %642 = vector.load %arg7[%c0_254, %c1_255, %c1_256, %c0_257, %c0_258, %c0_259] : memref<2x2x2x2x8x128xf32, #tpu.memory_space<vmem>>, vector<1x1x1x1x8x128xf32>
    %643 = vector.shape_cast %642 : vector<1x1x1x1x8x128xf32> to vector<8x128xf32>
    %644 = vector.shape_cast %641 : vector<8x128xf32> to vector<1x1x1x1x8x128xf32>
    tpu.vector_store %arg7[%c0_254, %c1_255, %c1_256, %c0_257, %c0_258, %c0_259], %644 {strides = array<i32>} : memref<2x2x2x2x8x128xf32, #tpu.memory_space<vmem>>, vector<1x1x1x1x8x128xf32>,
    %cst_260 = arith.constant 0.000000e+00 : f32
    %645 = vector.broadcast %cst_260 : f32 to vector<8x128xf32>
    %646 = arith.maximumf %639, %645 : vector<8x128xf32>
    %c0_261 = arith.constant 0 : index
    %c1_262 = arith.constant 1 : index
    %c1_263 = arith.constant 1 : index
    %c1_264 = arith.constant 1 : index
    %c0_265 = arith.constant 0 : index
    %c0_266 = arith.constant 0 : index
    %647 = vector.load %arg7[%c0_261, %c1_262, %c1_263, %c1_264, %c0_265, %c0_266] : memref<2x2x2x2x8x128xf32, #tpu.memory_space<vmem>>, vector<1x1x1x1x8x128xf32>
    %648 = vector.shape_cast %647 : vector<1x1x1x1x8x128xf32> to vector<8x128xf32>
    %649 = vector.shape_cast %646 : vector<8x128xf32> to vector<1x1x1x1x8x128xf32>
    tpu.vector_store %arg7[%c0_261, %c1_262, %c1_263, %c1_264, %c0_265, %c0_266], %649 {strides = array<i32>} : memref<2x2x2x2x8x128xf32, #tpu.memory_space<vmem>>, vector<1x1x1x1x8x128xf32>,
    %c7_i32 = arith.constant 7 : i32
    %650 = tpu.dynamic_rotate %35 by %c7_i32 dim 0 : vector<8x128xf32>, i32 -> vector<8x128xf32>
    %c1_i32_267 = arith.constant 1 : i32
    %651 = vector.broadcast %c1_i32_267 : i32 to vector<8x128xi32>
    %652 = arith.addi %0, %651 : vector<8x128xi32>
    %c0_i32_268 = arith.constant 0 : i32
    %653 = vector.broadcast %c0_i32_268 : i32 to vector<8x128xi32>
    %654 = arith.cmpi sge, %652, %653 : vector<8x128xi32>
    %c1_i32_269 = arith.constant 1 : i32
    %655 = vector.broadcast %c1_i32_269 : i32 to vector<8x128xi32>
    %656 = arith.addi %0, %655 : vector<8x128xi32>
    %c4_i32_270 = arith.constant 4 : i32
    %657 = vector.broadcast %c4_i32_270 : i32 to vector<8x128xi32>
    %658 = arith.cmpi slt, %656, %657 : vector<8x128xi32>
    %659 = arith.andi %654, %658 : vector<8x128xi1>
    %cst_271 = arith.constant 0.000000e+00 : f32
    %660 = vector.broadcast %cst_271 : f32 to vector<8x128xf32>
    %661 = arith.select %659, %650, %660 : vector<8x128xi1>, vector<8x128xf32>
    %c7_i32_272 = arith.constant 7 : i32
    %662 = tpu.dynamic_rotate %37 by %c7_i32_272 dim 0 : vector<8x128xf32>, i32 -> vector<8x128xf32>
    %c1_i32_273 = arith.constant 1 : i32
    %663 = vector.broadcast %c1_i32_273 : i32 to vector<8x128xi32>
    %664 = arith.addi %0, %663 : vector<8x128xi32>
    %c0_i32_274 = arith.constant 0 : i32
    %665 = vector.broadcast %c0_i32_274 : i32 to vector<8x128xi32>
    %666 = arith.cmpi sge, %664, %665 : vector<8x128xi32>
    %c1_i32_275 = arith.constant 1 : i32
    %667 = vector.broadcast %c1_i32_275 : i32 to vector<8x128xi32>
    %668 = arith.addi %0, %667 : vector<8x128xi32>
    %c4_i32_276 = arith.constant 4 : i32
    %669 = vector.broadcast %c4_i32_276 : i32 to vector<8x128xi32>
    %670 = arith.cmpi slt, %668, %669 : vector<8x128xi32>
    %671 = arith.andi %666, %670 : vector<8x128xi1>
    %cst_277 = arith.constant 0.000000e+00 : f32
    %672 = vector.broadcast %cst_277 : f32 to vector<8x128xf32>
    %673 = arith.select %671, %662, %672 : vector<8x128xi1>, vector<8x128xf32>
    %c7_i32_278 = arith.constant 7 : i32
    %674 = tpu.dynamic_rotate %39 by %c7_i32_278 dim 0 : vector<8x128xf32>, i32 -> vector<8x128xf32>
    %c1_i32_279 = arith.constant 1 : i32
    %675 = vector.broadcast %c1_i32_279 : i32 to vector<8x128xi32>
    %676 = arith.addi %0, %675 : vector<8x128xi32>
    %c0_i32_280 = arith.constant 0 : i32
    %677 = vector.broadcast %c0_i32_280 : i32 to vector<8x128xi32>
    %678 = arith.cmpi sge, %676, %677 : vector<8x128xi32>
    %c1_i32_281 = arith.constant 1 : i32
    %679 = vector.broadcast %c1_i32_281 : i32 to vector<8x128xi32>
    %680 = arith.addi %0, %679 : vector<8x128xi32>
    %c4_i32_282 = arith.constant 4 : i32
    %681 = vector.broadcast %c4_i32_282 : i32 to vector<8x128xi32>
    %682 = arith.cmpi slt, %680, %681 : vector<8x128xi32>
    %683 = arith.andi %678, %682 : vector<8x128xi1>
    %cst_283 = arith.constant 0.000000e+00 : f32
    %684 = vector.broadcast %cst_283 : f32 to vector<8x128xf32>
    %685 = arith.select %683, %674, %684 : vector<8x128xi1>, vector<8x128xf32>
    %c7_i32_284 = arith.constant 7 : i32
    %686 = tpu.dynamic_rotate %41 by %c7_i32_284 dim 0 : vector<8x128xf32>, i32 -> vector<8x128xf32>
    %c1_i32_285 = arith.constant 1 : i32
    %687 = vector.broadcast %c1_i32_285 : i32 to vector<8x128xi32>
    %688 = arith.addi %0, %687 : vector<8x128xi32>
    %c0_i32_286 = arith.constant 0 : i32
    %689 = vector.broadcast %c0_i32_286 : i32 to vector<8x128xi32>
    %690 = arith.cmpi sge, %688, %689 : vector<8x128xi32>
    %c1_i32_287 = arith.constant 1 : i32
    %691 = vector.broadcast %c1_i32_287 : i32 to vector<8x128xi32>
    %692 = arith.addi %0, %691 : vector<8x128xi32>
    %c4_i32_288 = arith.constant 4 : i32
    %693 = vector.broadcast %c4_i32_288 : i32 to vector<8x128xi32>
    %694 = arith.cmpi slt, %692, %693 : vector<8x128xi32>
    %695 = arith.andi %690, %694 : vector<8x128xi1>
    %cst_289 = arith.constant 0.000000e+00 : f32
    %696 = vector.broadcast %cst_289 : f32 to vector<8x128xf32>
    %697 = arith.select %695, %686, %696 : vector<8x128xi1>, vector<8x128xf32>
    %cst_290 = arith.constant 0.000000e+00 : f32
    %698 = vector.broadcast %cst_290 : f32 to vector<8x128xf32>
    %c0_291 = arith.constant 0 : index
    %699 = memref.load %arg2[%c0_291] : memref<2xf32, #tpu.memory_space<smem>>
    %700 = vector.broadcast %699 : f32 to vector<8x128xf32>
    %701 = arith.addf %698, %700 : vector<8x128xf32>
    %c0_292 = arith.constant 0 : index
    %702 = memref.load %arg1[%c0_292] : memref<24xf32, #tpu.memory_space<smem>>
    %c1_293 = arith.constant 1 : index
    %703 = memref.load %arg1[%c1_293] : memref<24xf32, #tpu.memory_space<smem>>
    %c2_294 = arith.constant 2 : index
    %704 = memref.load %arg1[%c2_294] : memref<24xf32, #tpu.memory_space<smem>>
    %705 = arith.addf %702, %703 : f32
    %706 = vector.broadcast %705 : f32 to vector<8x128xf32>
    %707 = arith.mulf %706, %35 : vector<8x128xf32>
    %708 = arith.addf %701, %707 : vector<8x128xf32>
    %709 = vector.broadcast %704 : f32 to vector<8x128xf32>
    %710 = arith.mulf %709, %661 : vector<8x128xf32>
    %711 = arith.addf %708, %710 : vector<8x128xf32>
    %c3_295 = arith.constant 3 : index
    %712 = memref.load %arg1[%c3_295] : memref<24xf32, #tpu.memory_space<smem>>
    %c4_296 = arith.constant 4 : index
    %713 = memref.load %arg1[%c4_296] : memref<24xf32, #tpu.memory_space<smem>>
    %c5_297 = arith.constant 5 : index
    %714 = memref.load %arg1[%c5_297] : memref<24xf32, #tpu.memory_space<smem>>
    %715 = arith.addf %712, %713 : f32
    %716 = vector.broadcast %715 : f32 to vector<8x128xf32>
    %717 = arith.mulf %716, %37 : vector<8x128xf32>
    %718 = arith.addf %711, %717 : vector<8x128xf32>
    %719 = vector.broadcast %714 : f32 to vector<8x128xf32>
    %720 = arith.mulf %719, %673 : vector<8x128xf32>
    %721 = arith.addf %718, %720 : vector<8x128xf32>
    %c6_298 = arith.constant 6 : index
    %722 = memref.load %arg1[%c6_298] : memref<24xf32, #tpu.memory_space<smem>>
    %c7_299 = arith.constant 7 : index
    %723 = memref.load %arg1[%c7_299] : memref<24xf32, #tpu.memory_space<smem>>
    %c8_300 = arith.constant 8 : index
    %724 = memref.load %arg1[%c8_300] : memref<24xf32, #tpu.memory_space<smem>>
    %725 = arith.addf %722, %723 : f32
    %726 = vector.broadcast %725 : f32 to vector<8x128xf32>
    %727 = arith.mulf %726, %39 : vector<8x128xf32>
    %728 = arith.addf %721, %727 : vector<8x128xf32>
    %729 = vector.broadcast %724 : f32 to vector<8x128xf32>
    %730 = arith.mulf %729, %685 : vector<8x128xf32>
    %731 = arith.addf %728, %730 : vector<8x128xf32>
    %c9_301 = arith.constant 9 : index
    %732 = memref.load %arg1[%c9_301] : memref<24xf32, #tpu.memory_space<smem>>
    %c10_302 = arith.constant 10 : index
    %733 = memref.load %arg1[%c10_302] : memref<24xf32, #tpu.memory_space<smem>>
    %c11_303 = arith.constant 11 : index
    %734 = memref.load %arg1[%c11_303] : memref<24xf32, #tpu.memory_space<smem>>
    %735 = arith.addf %732, %733 : f32
    %736 = vector.broadcast %735 : f32 to vector<8x128xf32>
    %737 = arith.mulf %736, %41 : vector<8x128xf32>
    %738 = arith.addf %731, %737 : vector<8x128xf32>
    %739 = vector.broadcast %734 : f32 to vector<8x128xf32>
    %740 = arith.mulf %739, %697 : vector<8x128xf32>
    %741 = arith.addf %738, %740 : vector<8x128xf32>
    %cst_304 = arith.constant 0.000000e+00 : f32
    %742 = vector.broadcast %cst_304 : f32 to vector<8x128xf32>
    %c1_305 = arith.constant 1 : index
    %743 = memref.load %arg2[%c1_305] : memref<2xf32, #tpu.memory_space<smem>>
    %744 = vector.broadcast %743 : f32 to vector<8x128xf32>
    %745 = arith.addf %742, %744 : vector<8x128xf32>
    %c12_306 = arith.constant 12 : index
    %746 = memref.load %arg1[%c12_306] : memref<24xf32, #tpu.memory_space<smem>>
    %c13_307 = arith.constant 13 : index
    %747 = memref.load %arg1[%c13_307] : memref<24xf32, #tpu.memory_space<smem>>
    %c14_308 = arith.constant 14 : index
    %748 = memref.load %arg1[%c14_308] : memref<24xf32, #tpu.memory_space<smem>>
    %749 = arith.addf %746, %747 : f32
    %750 = vector.broadcast %749 : f32 to vector<8x128xf32>
    %751 = arith.mulf %750, %35 : vector<8x128xf32>
    %752 = arith.addf %745, %751 : vector<8x128xf32>
    %753 = vector.broadcast %748 : f32 to vector<8x128xf32>
    %754 = arith.mulf %753, %661 : vector<8x128xf32>
    %755 = arith.addf %752, %754 : vector<8x128xf32>
    %c15_309 = arith.constant 15 : index
    %756 = memref.load %arg1[%c15_309] : memref<24xf32, #tpu.memory_space<smem>>
    %c16_310 = arith.constant 16 : index
    %757 = memref.load %arg1[%c16_310] : memref<24xf32, #tpu.memory_space<smem>>
    %c17_311 = arith.constant 17 : index
    %758 = memref.load %arg1[%c17_311] : memref<24xf32, #tpu.memory_space<smem>>
    %759 = arith.addf %756, %757 : f32
    %760 = vector.broadcast %759 : f32 to vector<8x128xf32>
    %761 = arith.mulf %760, %37 : vector<8x128xf32>
    %762 = arith.addf %755, %761 : vector<8x128xf32>
    %763 = vector.broadcast %758 : f32 to vector<8x128xf32>
    %764 = arith.mulf %763, %673 : vector<8x128xf32>
    %765 = arith.addf %762, %764 : vector<8x128xf32>
    %c18_312 = arith.constant 18 : index
    %766 = memref.load %arg1[%c18_312] : memref<24xf32, #tpu.memory_space<smem>>
    %c19_313 = arith.constant 19 : index
    %767 = memref.load %arg1[%c19_313] : memref<24xf32, #tpu.memory_space<smem>>
    %c20_314 = arith.constant 20 : index
    %768 = memref.load %arg1[%c20_314] : memref<24xf32, #tpu.memory_space<smem>>
    %769 = arith.addf %766, %767 : f32
    %770 = vector.broadcast %769 : f32 to vector<8x128xf32>
    %771 = arith.mulf %770, %39 : vector<8x128xf32>
    %772 = arith.addf %765, %771 : vector<8x128xf32>
    %773 = vector.broadcast %768 : f32 to vector<8x128xf32>
    %774 = arith.mulf %773, %685 : vector<8x128xf32>
    %775 = arith.addf %772, %774 : vector<8x128xf32>
    %c21_315 = arith.constant 21 : index
    %776 = memref.load %arg1[%c21_315] : memref<24xf32, #tpu.memory_space<smem>>
    %c22_316 = arith.constant 22 : index
    %777 = memref.load %arg1[%c22_316] : memref<24xf32, #tpu.memory_space<smem>>
    %c23_317 = arith.constant 23 : index
    %778 = memref.load %arg1[%c23_317] : memref<24xf32, #tpu.memory_space<smem>>
    %779 = arith.addf %776, %777 : f32
    %780 = vector.broadcast %779 : f32 to vector<8x128xf32>
    %781 = arith.mulf %780, %41 : vector<8x128xf32>
    %782 = arith.addf %775, %781 : vector<8x128xf32>
    %783 = vector.broadcast %778 : f32 to vector<8x128xf32>
    %784 = arith.mulf %783, %697 : vector<8x128xf32>
    %785 = arith.addf %782, %784 : vector<8x128xf32>
    %c4_i32_318 = arith.constant 4 : i32
    %786 = tpu.dynamic_rotate %741 by %c4_i32_318 dim 1 : vector<8x128xf32>, i32 -> vector<8x128xf32>
    %c-4_i32_319 = arith.constant -4 : i32
    %787 = vector.broadcast %c-4_i32_319 : i32 to vector<8x128xi32>
    %788 = arith.addi %17, %787 : vector<8x128xi32>
    %c0_i32_320 = arith.constant 0 : i32
    %789 = vector.broadcast %c0_i32_320 : i32 to vector<8x128xi32>
    %790 = arith.cmpi sge, %788, %789 : vector<8x128xi32>
    %c-4_i32_321 = arith.constant -4 : i32
    %791 = vector.broadcast %c-4_i32_321 : i32 to vector<8x128xi32>
    %792 = arith.addi %17, %791 : vector<8x128xi32>
    %c16_i32_322 = arith.constant 16 : i32
    %793 = vector.broadcast %c16_i32_322 : i32 to vector<8x128xi32>
    %794 = arith.cmpi slt, %792, %793 : vector<8x128xi32>
    %795 = arith.andi %790, %794 : vector<8x128xi1>
    %cst_323 = arith.constant 0.000000e+00 : f32
    %796 = vector.broadcast %cst_323 : f32 to vector<8x128xf32>
    %797 = arith.select %795, %786, %796 : vector<8x128xi1>, vector<8x128xf32>
    %c4_i32_324 = arith.constant 4 : i32
    %798 = tpu.dynamic_rotate %785 by %c4_i32_324 dim 1 : vector<8x128xf32>, i32 -> vector<8x128xf32>
    %c-4_i32_325 = arith.constant -4 : i32
    %799 = vector.broadcast %c-4_i32_325 : i32 to vector<8x128xi32>
    %800 = arith.addi %17, %799 : vector<8x128xi32>
    %c0_i32_326 = arith.constant 0 : i32
    %801 = vector.broadcast %c0_i32_326 : i32 to vector<8x128xi32>
    %802 = arith.cmpi sge, %800, %801 : vector<8x128xi32>
    %c-4_i32_327 = arith.constant -4 : i32
    %803 = vector.broadcast %c-4_i32_327 : i32 to vector<8x128xi32>
    %804 = arith.addi %17, %803 : vector<8x128xi32>
    %c16_i32_328 = arith.constant 16 : i32
    %805 = vector.broadcast %c16_i32_328 : i32 to vector<8x128xi32>
    %806 = arith.cmpi slt, %804, %805 : vector<8x128xi32>
    %807 = arith.andi %802, %806 : vector<8x128xi1>
    %cst_329 = arith.constant 0.000000e+00 : f32
    %808 = vector.broadcast %cst_329 : f32 to vector<8x128xf32>
    %809 = arith.select %807, %798, %808 : vector<8x128xi1>, vector<8x128xf32>
    %cst_330 = arith.constant 0.000000e+00 : f32
    %810 = vector.broadcast %cst_330 : f32 to vector<8x128xf32>
    %c0_331 = arith.constant 0 : index
    %811 = memref.load %arg4[%c0_331] : memref<2xf32, #tpu.memory_space<smem>>
    %812 = vector.broadcast %811 : f32 to vector<8x128xf32>
    %813 = arith.addf %810, %812 : vector<8x128xf32>
    %c0_332 = arith.constant 0 : index
    %814 = memref.load %arg3[%c0_332] : memref<12xf32, #tpu.memory_space<smem>>
    %c1_333 = arith.constant 1 : index
    %815 = memref.load %arg3[%c1_333] : memref<12xf32, #tpu.memory_space<smem>>
    %c2_334 = arith.constant 2 : index
    %816 = memref.load %arg3[%c2_334] : memref<12xf32, #tpu.memory_space<smem>>
    %817 = arith.addf %815, %816 : f32
    %818 = vector.broadcast %817 : f32 to vector<8x128xf32>
    %819 = arith.mulf %818, %741 : vector<8x128xf32>
    %820 = arith.addf %813, %819 : vector<8x128xf32>
    %821 = vector.broadcast %814 : f32 to vector<8x128xf32>
    %822 = arith.mulf %821, %797 : vector<8x128xf32>
    %823 = arith.addf %820, %822 : vector<8x128xf32>
    %c3_335 = arith.constant 3 : index
    %824 = memref.load %arg3[%c3_335] : memref<12xf32, #tpu.memory_space<smem>>
    %c4_336 = arith.constant 4 : index
    %825 = memref.load %arg3[%c4_336] : memref<12xf32, #tpu.memory_space<smem>>
    %c5_337 = arith.constant 5 : index
    %826 = memref.load %arg3[%c5_337] : memref<12xf32, #tpu.memory_space<smem>>
    %827 = arith.addf %825, %826 : f32
    %828 = vector.broadcast %827 : f32 to vector<8x128xf32>
    %829 = arith.mulf %828, %785 : vector<8x128xf32>
    %830 = arith.addf %823, %829 : vector<8x128xf32>
    %831 = vector.broadcast %824 : f32 to vector<8x128xf32>
    %832 = arith.mulf %831, %809 : vector<8x128xf32>
    %833 = arith.addf %830, %832 : vector<8x128xf32>
    %cst_338 = arith.constant 0.000000e+00 : f32
    %834 = vector.broadcast %cst_338 : f32 to vector<8x128xf32>
    %c1_339 = arith.constant 1 : index
    %835 = memref.load %arg4[%c1_339] : memref<2xf32, #tpu.memory_space<smem>>
    %836 = vector.broadcast %835 : f32 to vector<8x128xf32>
    %837 = arith.addf %834, %836 : vector<8x128xf32>
    %c6_340 = arith.constant 6 : index
    %838 = memref.load %arg3[%c6_340] : memref<12xf32, #tpu.memory_space<smem>>
    %c7_341 = arith.constant 7 : index
    %839 = memref.load %arg3[%c7_341] : memref<12xf32, #tpu.memory_space<smem>>
    %c8_342 = arith.constant 8 : index
    %840 = memref.load %arg3[%c8_342] : memref<12xf32, #tpu.memory_space<smem>>
    %841 = arith.addf %839, %840 : f32
    %842 = vector.broadcast %841 : f32 to vector<8x128xf32>
    %843 = arith.mulf %842, %741 : vector<8x128xf32>
    %844 = arith.addf %837, %843 : vector<8x128xf32>
    %845 = vector.broadcast %838 : f32 to vector<8x128xf32>
    %846 = arith.mulf %845, %797 : vector<8x128xf32>
    %847 = arith.addf %844, %846 : vector<8x128xf32>
    %c9_343 = arith.constant 9 : index
    %848 = memref.load %arg3[%c9_343] : memref<12xf32, #tpu.memory_space<smem>>
    %c10_344 = arith.constant 10 : index
    %849 = memref.load %arg3[%c10_344] : memref<12xf32, #tpu.memory_space<smem>>
    %c11_345 = arith.constant 11 : index
    %850 = memref.load %arg3[%c11_345] : memref<12xf32, #tpu.memory_space<smem>>
    %851 = arith.addf %849, %850 : f32
    %852 = vector.broadcast %851 : f32 to vector<8x128xf32>
    %853 = arith.mulf %852, %785 : vector<8x128xf32>
    %854 = arith.addf %847, %853 : vector<8x128xf32>
    %855 = vector.broadcast %848 : f32 to vector<8x128xf32>
    %856 = arith.mulf %855, %809 : vector<8x128xf32>
    %857 = arith.addf %854, %856 : vector<8x128xf32>
    %c1_i32_346 = arith.constant 1 : i32
    %858 = tpu.dynamic_rotate %833 by %c1_i32_346 dim 1 : vector<8x128xf32>, i32 -> vector<8x128xf32>
    %c-1_i32_347 = arith.constant -1 : i32
    %859 = vector.broadcast %c-1_i32_347 : i32 to vector<8x128xi32>
    %860 = arith.addi %33, %859 : vector<8x128xi32>
    %c0_i32_348 = arith.constant 0 : i32
    %861 = vector.broadcast %c0_i32_348 : i32 to vector<8x128xi32>
    %862 = arith.cmpi sge, %860, %861 : vector<8x128xi32>
    %c-1_i32_349 = arith.constant -1 : i32
    %863 = vector.broadcast %c-1_i32_349 : i32 to vector<8x128xi32>
    %864 = arith.addi %33, %863 : vector<8x128xi32>
    %c4_i32_350 = arith.constant 4 : i32
    %865 = vector.broadcast %c4_i32_350 : i32 to vector<8x128xi32>
    %866 = arith.cmpi slt, %864, %865 : vector<8x128xi32>
    %867 = arith.andi %862, %866 : vector<8x128xi1>
    %cst_351 = arith.constant 0.000000e+00 : f32
    %868 = vector.broadcast %cst_351 : f32 to vector<8x128xf32>
    %869 = arith.select %867, %858, %868 : vector<8x128xi1>, vector<8x128xf32>
    %c1_i32_352 = arith.constant 1 : i32
    %870 = tpu.dynamic_rotate %857 by %c1_i32_352 dim 1 : vector<8x128xf32>, i32 -> vector<8x128xf32>
    %c-1_i32_353 = arith.constant -1 : i32
    %871 = vector.broadcast %c-1_i32_353 : i32 to vector<8x128xi32>
    %872 = arith.addi %33, %871 : vector<8x128xi32>
    %c0_i32_354 = arith.constant 0 : i32
    %873 = vector.broadcast %c0_i32_354 : i32 to vector<8x128xi32>
    %874 = arith.cmpi sge, %872, %873 : vector<8x128xi32>
    %c-1_i32_355 = arith.constant -1 : i32
    %875 = vector.broadcast %c-1_i32_355 : i32 to vector<8x128xi32>
    %876 = arith.addi %33, %875 : vector<8x128xi32>
    %c4_i32_356 = arith.constant 4 : i32
    %877 = vector.broadcast %c4_i32_356 : i32 to vector<8x128xi32>
    %878 = arith.cmpi slt, %876, %877 : vector<8x128xi32>
    %879 = arith.andi %874, %878 : vector<8x128xi1>
    %cst_357 = arith.constant 0.000000e+00 : f32
    %880 = vector.broadcast %cst_357 : f32 to vector<8x128xf32>
    %881 = arith.select %879, %870, %880 : vector<8x128xi1>, vector<8x128xf32>
    %cst_358 = arith.constant 0.000000e+00 : f32
    %882 = vector.broadcast %cst_358 : f32 to vector<8x128xf32>
    %c0_359 = arith.constant 0 : index
    %883 = memref.load %arg6[%c0_359] : memref<2xf32, #tpu.memory_space<smem>>
    %884 = vector.broadcast %883 : f32 to vector<8x128xf32>
    %885 = arith.addf %882, %884 : vector<8x128xf32>
    %c0_360 = arith.constant 0 : index
    %886 = memref.load %arg5[%c0_360] : memref<12xf32, #tpu.memory_space<smem>>
    %c1_361 = arith.constant 1 : index
    %887 = memref.load %arg5[%c1_361] : memref<12xf32, #tpu.memory_space<smem>>
    %c2_362 = arith.constant 2 : index
    %888 = memref.load %arg5[%c2_362] : memref<12xf32, #tpu.memory_space<smem>>
    %889 = arith.addf %887, %888 : f32
    %890 = vector.broadcast %889 : f32 to vector<8x128xf32>
    %891 = arith.mulf %890, %833 : vector<8x128xf32>
    %892 = arith.addf %885, %891 : vector<8x128xf32>
    %893 = vector.broadcast %886 : f32 to vector<8x128xf32>
    %894 = arith.mulf %893, %869 : vector<8x128xf32>
    %895 = arith.addf %892, %894 : vector<8x128xf32>
    %c3_363 = arith.constant 3 : index
    %896 = memref.load %arg5[%c3_363] : memref<12xf32, #tpu.memory_space<smem>>
    %c4_364 = arith.constant 4 : index
    %897 = memref.load %arg5[%c4_364] : memref<12xf32, #tpu.memory_space<smem>>
    %c5_365 = arith.constant 5 : index
    %898 = memref.load %arg5[%c5_365] : memref<12xf32, #tpu.memory_space<smem>>
    %899 = arith.addf %897, %898 : f32
    %900 = vector.broadcast %899 : f32 to vector<8x128xf32>
    %901 = arith.mulf %900, %857 : vector<8x128xf32>
    %902 = arith.addf %895, %901 : vector<8x128xf32>
    %903 = vector.broadcast %896 : f32 to vector<8x128xf32>
    %904 = arith.mulf %903, %881 : vector<8x128xf32>
    %905 = arith.addf %902, %904 : vector<8x128xf32>
    %cst_366 = arith.constant 0.000000e+00 : f32
    %906 = vector.broadcast %cst_366 : f32 to vector<8x128xf32>
    %c1_367 = arith.constant 1 : index
    %907 = memref.load %arg6[%c1_367] : memref<2xf32, #tpu.memory_space<smem>>
    %908 = vector.broadcast %907 : f32 to vector<8x128xf32>
    %909 = arith.addf %906, %908 : vector<8x128xf32>
    %c6_368 = arith.constant 6 : index
    %910 = memref.load %arg5[%c6_368] : memref<12xf32, #tpu.memory_space<smem>>
    %c7_369 = arith.constant 7 : index
    %911 = memref.load %arg5[%c7_369] : memref<12xf32, #tpu.memory_space<smem>>
    %c8_370 = arith.constant 8 : index
    %912 = memref.load %arg5[%c8_370] : memref<12xf32, #tpu.memory_space<smem>>
    %913 = arith.addf %911, %912 : f32
    %914 = vector.broadcast %913 : f32 to vector<8x128xf32>
    %915 = arith.mulf %914, %833 : vector<8x128xf32>
    %916 = arith.addf %909, %915 : vector<8x128xf32>
    %917 = vector.broadcast %910 : f32 to vector<8x128xf32>
    %918 = arith.mulf %917, %869 : vector<8x128xf32>
    %919 = arith.addf %916, %918 : vector<8x128xf32>
    %c9_371 = arith.constant 9 : index
    %920 = memref.load %arg5[%c9_371] : memref<12xf32, #tpu.memory_space<smem>>
    %c10_372 = arith.constant 10 : index
    %921 = memref.load %arg5[%c10_372] : memref<12xf32, #tpu.memory_space<smem>>
    %c11_373 = arith.constant 11 : index
    %922 = memref.load %arg5[%c11_373] : memref<12xf32, #tpu.memory_space<smem>>
    %923 = arith.addf %921, %922 : f32
    %924 = vector.broadcast %923 : f32 to vector<8x128xf32>
    %925 = arith.mulf %924, %857 : vector<8x128xf32>
    %926 = arith.addf %919, %925 : vector<8x128xf32>
    %927 = vector.broadcast %920 : f32 to vector<8x128xf32>
    %928 = arith.mulf %927, %881 : vector<8x128xf32>
    %929 = arith.addf %926, %928 : vector<8x128xf32>
    %cst_374 = arith.constant 0.000000e+00 : f32
    %930 = vector.broadcast %cst_374 : f32 to vector<8x128xf32>
    %931 = arith.maximumf %905, %930 : vector<8x128xf32>
    %c1_375 = arith.constant 1 : index
    %c0_376 = arith.constant 0 : index
    %c0_377 = arith.constant 0 : index
    %c0_378 = arith.constant 0 : index
    %c0_379 = arith.constant 0 : index
    %c0_380 = arith.constant 0 : index
    %932 = vector.load %arg7[%c1_375, %c0_376, %c0_377, %c0_378, %c0_379, %c0_380] : memref<2x2x2x2x8x128xf32, #tpu.memory_space<vmem>>, vector<1x1x1x1x8x128xf32>
    %933 = vector.shape_cast %932 : vector<1x1x1x1x8x128xf32> to vector<8x128xf32>
    %934 = vector.shape_cast %931 : vector<8x128xf32> to vector<1x1x1x1x8x128xf32>
    tpu.vector_store %arg7[%c1_375, %c0_376, %c0_377, %c0_378, %c0_379, %c0_380], %934 {strides = array<i32>} : memref<2x2x2x2x8x128xf32, #tpu.memory_space<vmem>>, vector<1x1x1x1x8x128xf32>,
    %cst_381 = arith.constant 0.000000e+00 : f32
    %935 = vector.broadcast %cst_381 : f32 to vector<8x128xf32>
    %936 = arith.maximumf %929, %935 : vector<8x128xf32>
    %c1_382 = arith.constant 1 : index
    %c0_383 = arith.constant 0 : index
    %c0_384 = arith.constant 0 : index
    %c1_385 = arith.constant 1 : index
    %c0_386 = arith.constant 0 : index
    %c0_387 = arith.constant 0 : index
    %937 = vector.load %arg7[%c1_382, %c0_383, %c0_384, %c1_385, %c0_386, %c0_387] : memref<2x2x2x2x8x128xf32, #tpu.memory_space<vmem>>, vector<1x1x1x1x8x128xf32>
    %938 = vector.shape_cast %937 : vector<1x1x1x1x8x128xf32> to vector<8x128xf32>
    %939 = vector.shape_cast %936 : vector<8x128xf32> to vector<1x1x1x1x8x128xf32>
    tpu.vector_store %arg7[%c1_382, %c0_383, %c0_384, %c1_385, %c0_386, %c0_387], %939 {strides = array<i32>} : memref<2x2x2x2x8x128xf32, #tpu.memory_space<vmem>>, vector<1x1x1x1x8x128xf32>,
    %c127_i32_388 = arith.constant 127 : i32
    %940 = tpu.dynamic_rotate %833 by %c127_i32_388 dim 1 : vector<8x128xf32>, i32 -> vector<8x128xf32>
    %c1_i32_389 = arith.constant 1 : i32
    %941 = vector.broadcast %c1_i32_389 : i32 to vector<8x128xi32>
    %942 = arith.addi %33, %941 : vector<8x128xi32>
    %c0_i32_390 = arith.constant 0 : i32
    %943 = vector.broadcast %c0_i32_390 : i32 to vector<8x128xi32>
    %944 = arith.cmpi sge, %942, %943 : vector<8x128xi32>
    %c1_i32_391 = arith.constant 1 : i32
    %945 = vector.broadcast %c1_i32_391 : i32 to vector<8x128xi32>
    %946 = arith.addi %33, %945 : vector<8x128xi32>
    %c4_i32_392 = arith.constant 4 : i32
    %947 = vector.broadcast %c4_i32_392 : i32 to vector<8x128xi32>
    %948 = arith.cmpi slt, %946, %947 : vector<8x128xi32>
    %949 = arith.andi %944, %948 : vector<8x128xi1>
    %cst_393 = arith.constant 0.000000e+00 : f32
    %950 = vector.broadcast %cst_393 : f32 to vector<8x128xf32>
    %951 = arith.select %949, %940, %950 : vector<8x128xi1>, vector<8x128xf32>
    %c127_i32_394 = arith.constant 127 : i32
    %952 = tpu.dynamic_rotate %857 by %c127_i32_394 dim 1 : vector<8x128xf32>, i32 -> vector<8x128xf32>
    %c1_i32_395 = arith.constant 1 : i32
    %953 = vector.broadcast %c1_i32_395 : i32 to vector<8x128xi32>
    %954 = arith.addi %33, %953 : vector<8x128xi32>
    %c0_i32_396 = arith.constant 0 : i32
    %955 = vector.broadcast %c0_i32_396 : i32 to vector<8x128xi32>
    %956 = arith.cmpi sge, %954, %955 : vector<8x128xi32>
    %c1_i32_397 = arith.constant 1 : i32
    %957 = vector.broadcast %c1_i32_397 : i32 to vector<8x128xi32>
    %958 = arith.addi %33, %957 : vector<8x128xi32>
    %c4_i32_398 = arith.constant 4 : i32
    %959 = vector.broadcast %c4_i32_398 : i32 to vector<8x128xi32>
    %960 = arith.cmpi slt, %958, %959 : vector<8x128xi32>
    %961 = arith.andi %956, %960 : vector<8x128xi1>
    %cst_399 = arith.constant 0.000000e+00 : f32
    %962 = vector.broadcast %cst_399 : f32 to vector<8x128xf32>
    %963 = arith.select %961, %952, %962 : vector<8x128xi1>, vector<8x128xf32>
    %cst_400 = arith.constant 0.000000e+00 : f32
    %964 = vector.broadcast %cst_400 : f32 to vector<8x128xf32>
    %c0_401 = arith.constant 0 : index
    %965 = memref.load %arg6[%c0_401] : memref<2xf32, #tpu.memory_space<smem>>
    %966 = vector.broadcast %965 : f32 to vector<8x128xf32>
    %967 = arith.addf %964, %966 : vector<8x128xf32>
    %c0_402 = arith.constant 0 : index
    %968 = memref.load %arg5[%c0_402] : memref<12xf32, #tpu.memory_space<smem>>
    %c1_403 = arith.constant 1 : index
    %969 = memref.load %arg5[%c1_403] : memref<12xf32, #tpu.memory_space<smem>>
    %c2_404 = arith.constant 2 : index
    %970 = memref.load %arg5[%c2_404] : memref<12xf32, #tpu.memory_space<smem>>
    %971 = arith.addf %968, %969 : f32
    %972 = vector.broadcast %971 : f32 to vector<8x128xf32>
    %973 = arith.mulf %972, %833 : vector<8x128xf32>
    %974 = arith.addf %967, %973 : vector<8x128xf32>
    %975 = vector.broadcast %970 : f32 to vector<8x128xf32>
    %976 = arith.mulf %975, %951 : vector<8x128xf32>
    %977 = arith.addf %974, %976 : vector<8x128xf32>
    %c3_405 = arith.constant 3 : index
    %978 = memref.load %arg5[%c3_405] : memref<12xf32, #tpu.memory_space<smem>>
    %c4_406 = arith.constant 4 : index
    %979 = memref.load %arg5[%c4_406] : memref<12xf32, #tpu.memory_space<smem>>
    %c5_407 = arith.constant 5 : index
    %980 = memref.load %arg5[%c5_407] : memref<12xf32, #tpu.memory_space<smem>>
    %981 = arith.addf %978, %979 : f32
    %982 = vector.broadcast %981 : f32 to vector<8x128xf32>
    %983 = arith.mulf %982, %857 : vector<8x128xf32>
    %984 = arith.addf %977, %983 : vector<8x128xf32>
    %985 = vector.broadcast %980 : f32 to vector<8x128xf32>
    %986 = arith.mulf %985, %963 : vector<8x128xf32>
    %987 = arith.addf %984, %986 : vector<8x128xf32>
    %cst_408 = arith.constant 0.000000e+00 : f32
    %988 = vector.broadcast %cst_408 : f32 to vector<8x128xf32>
    %c1_409 = arith.constant 1 : index
    %989 = memref.load %arg6[%c1_409] : memref<2xf32, #tpu.memory_space<smem>>
    %990 = vector.broadcast %989 : f32 to vector<8x128xf32>
    %991 = arith.addf %988, %990 : vector<8x128xf32>
    %c6_410 = arith.constant 6 : index
    %992 = memref.load %arg5[%c6_410] : memref<12xf32, #tpu.memory_space<smem>>
    %c7_411 = arith.constant 7 : index
    %993 = memref.load %arg5[%c7_411] : memref<12xf32, #tpu.memory_space<smem>>
    %c8_412 = arith.constant 8 : index
    %994 = memref.load %arg5[%c8_412] : memref<12xf32, #tpu.memory_space<smem>>
    %995 = arith.addf %992, %993 : f32
    %996 = vector.broadcast %995 : f32 to vector<8x128xf32>
    %997 = arith.mulf %996, %833 : vector<8x128xf32>
    %998 = arith.addf %991, %997 : vector<8x128xf32>
    %999 = vector.broadcast %994 : f32 to vector<8x128xf32>
    %1000 = arith.mulf %999, %951 : vector<8x128xf32>
    %1001 = arith.addf %998, %1000 : vector<8x128xf32>
    %c9_413 = arith.constant 9 : index
    %1002 = memref.load %arg5[%c9_413] : memref<12xf32, #tpu.memory_space<smem>>
    %c10_414 = arith.constant 10 : index
    %1003 = memref.load %arg5[%c10_414] : memref<12xf32, #tpu.memory_space<smem>>
    %c11_415 = arith.constant 11 : index
    %1004 = memref.load %arg5[%c11_415] : memref<12xf32, #tpu.memory_space<smem>>
    %1005 = arith.addf %1002, %1003 : f32
    %1006 = vector.broadcast %1005 : f32 to vector<8x128xf32>
    %1007 = arith.mulf %1006, %857 : vector<8x128xf32>
    %1008 = arith.addf %1001, %1007 : vector<8x128xf32>
    %1009 = vector.broadcast %1004 : f32 to vector<8x128xf32>
    %1010 = arith.mulf %1009, %963 : vector<8x128xf32>
    %1011 = arith.addf %1008, %1010 : vector<8x128xf32>
    %cst_416 = arith.constant 0.000000e+00 : f32
    %1012 = vector.broadcast %cst_416 : f32 to vector<8x128xf32>
    %1013 = arith.maximumf %987, %1012 : vector<8x128xf32>
    %c1_417 = arith.constant 1 : index
    %c0_418 = arith.constant 0 : index
    %c1_419 = arith.constant 1 : index
    %c0_420 = arith.constant 0 : index
    %c0_421 = arith.constant 0 : index
    %c0_422 = arith.constant 0 : index
    %1014 = vector.load %arg7[%c1_417, %c0_418, %c1_419, %c0_420, %c0_421, %c0_422] : memref<2x2x2x2x8x128xf32, #tpu.memory_space<vmem>>, vector<1x1x1x1x8x128xf32>
    %1015 = vector.shape_cast %1014 : vector<1x1x1x1x8x128xf32> to vector<8x128xf32>
    %1016 = vector.shape_cast %1013 : vector<8x128xf32> to vector<1x1x1x1x8x128xf32>
    tpu.vector_store %arg7[%c1_417, %c0_418, %c1_419, %c0_420, %c0_421, %c0_422], %1016 {strides = array<i32>} : memref<2x2x2x2x8x128xf32, #tpu.memory_space<vmem>>, vector<1x1x1x1x8x128xf32>,
    %cst_423 = arith.constant 0.000000e+00 : f32
    %1017 = vector.broadcast %cst_423 : f32 to vector<8x128xf32>
    %1018 = arith.maximumf %1011, %1017 : vector<8x128xf32>
    %c1_424 = arith.constant 1 : index
    %c0_425 = arith.constant 0 : index
    %c1_426 = arith.constant 1 : index
    %c1_427 = arith.constant 1 : index
    %c0_428 = arith.constant 0 : index
    %c0_429 = arith.constant 0 : index
    %1019 = vector.load %arg7[%c1_424, %c0_425, %c1_426, %c1_427, %c0_428, %c0_429] : memref<2x2x2x2x8x128xf32, #tpu.memory_space<vmem>>, vector<1x1x1x1x8x128xf32>
    %1020 = vector.shape_cast %1019 : vector<1x1x1x1x8x128xf32> to vector<8x128xf32>
    %1021 = vector.shape_cast %1018 : vector<8x128xf32> to vector<1x1x1x1x8x128xf32>
    tpu.vector_store %arg7[%c1_424, %c0_425, %c1_426, %c1_427, %c0_428, %c0_429], %1021 {strides = array<i32>} : memref<2x2x2x2x8x128xf32, #tpu.memory_space<vmem>>, vector<1x1x1x1x8x128xf32>,
    %c124_i32_430 = arith.constant 124 : i32
    %1022 = tpu.dynamic_rotate %741 by %c124_i32_430 dim 1 : vector<8x128xf32>, i32 -> vector<8x128xf32>
    %c4_i32_431 = arith.constant 4 : i32
    %1023 = vector.broadcast %c4_i32_431 : i32 to vector<8x128xi32>
    %1024 = arith.addi %17, %1023 : vector<8x128xi32>
    %c0_i32_432 = arith.constant 0 : i32
    %1025 = vector.broadcast %c0_i32_432 : i32 to vector<8x128xi32>
    %1026 = arith.cmpi sge, %1024, %1025 : vector<8x128xi32>
    %c4_i32_433 = arith.constant 4 : i32
    %1027 = vector.broadcast %c4_i32_433 : i32 to vector<8x128xi32>
    %1028 = arith.addi %17, %1027 : vector<8x128xi32>
    %c16_i32_434 = arith.constant 16 : i32
    %1029 = vector.broadcast %c16_i32_434 : i32 to vector<8x128xi32>
    %1030 = arith.cmpi slt, %1028, %1029 : vector<8x128xi32>
    %1031 = arith.andi %1026, %1030 : vector<8x128xi1>
    %cst_435 = arith.constant 0.000000e+00 : f32
    %1032 = vector.broadcast %cst_435 : f32 to vector<8x128xf32>
    %1033 = arith.select %1031, %1022, %1032 : vector<8x128xi1>, vector<8x128xf32>
    %c124_i32_436 = arith.constant 124 : i32
    %1034 = tpu.dynamic_rotate %785 by %c124_i32_436 dim 1 : vector<8x128xf32>, i32 -> vector<8x128xf32>
    %c4_i32_437 = arith.constant 4 : i32
    %1035 = vector.broadcast %c4_i32_437 : i32 to vector<8x128xi32>
    %1036 = arith.addi %17, %1035 : vector<8x128xi32>
    %c0_i32_438 = arith.constant 0 : i32
    %1037 = vector.broadcast %c0_i32_438 : i32 to vector<8x128xi32>
    %1038 = arith.cmpi sge, %1036, %1037 : vector<8x128xi32>
    %c4_i32_439 = arith.constant 4 : i32
    %1039 = vector.broadcast %c4_i32_439 : i32 to vector<8x128xi32>
    %1040 = arith.addi %17, %1039 : vector<8x128xi32>
    %c16_i32_440 = arith.constant 16 : i32
    %1041 = vector.broadcast %c16_i32_440 : i32 to vector<8x128xi32>
    %1042 = arith.cmpi slt, %1040, %1041 : vector<8x128xi32>
    %1043 = arith.andi %1038, %1042 : vector<8x128xi1>
    %cst_441 = arith.constant 0.000000e+00 : f32
    %1044 = vector.broadcast %cst_441 : f32 to vector<8x128xf32>
    %1045 = arith.select %1043, %1034, %1044 : vector<8x128xi1>, vector<8x128xf32>
    %cst_442 = arith.constant 0.000000e+00 : f32
    %1046 = vector.broadcast %cst_442 : f32 to vector<8x128xf32>
    %c0_443 = arith.constant 0 : index
    %1047 = memref.load %arg4[%c0_443] : memref<2xf32, #tpu.memory_space<smem>>
    %1048 = vector.broadcast %1047 : f32 to vector<8x128xf32>
    %1049 = arith.addf %1046, %1048 : vector<8x128xf32>
    %c0_444 = arith.constant 0 : index
    %1050 = memref.load %arg3[%c0_444] : memref<12xf32, #tpu.memory_space<smem>>
    %c1_445 = arith.constant 1 : index
    %1051 = memref.load %arg3[%c1_445] : memref<12xf32, #tpu.memory_space<smem>>
    %c2_446 = arith.constant 2 : index
    %1052 = memref.load %arg3[%c2_446] : memref<12xf32, #tpu.memory_space<smem>>
    %1053 = arith.addf %1050, %1051 : f32
    %1054 = vector.broadcast %1053 : f32 to vector<8x128xf32>
    %1055 = arith.mulf %1054, %741 : vector<8x128xf32>
    %1056 = arith.addf %1049, %1055 : vector<8x128xf32>
    %1057 = vector.broadcast %1052 : f32 to vector<8x128xf32>
    %1058 = arith.mulf %1057, %1033 : vector<8x128xf32>
    %1059 = arith.addf %1056, %1058 : vector<8x128xf32>
    %c3_447 = arith.constant 3 : index
    %1060 = memref.load %arg3[%c3_447] : memref<12xf32, #tpu.memory_space<smem>>
    %c4_448 = arith.constant 4 : index
    %1061 = memref.load %arg3[%c4_448] : memref<12xf32, #tpu.memory_space<smem>>
    %c5_449 = arith.constant 5 : index
    %1062 = memref.load %arg3[%c5_449] : memref<12xf32, #tpu.memory_space<smem>>
    %1063 = arith.addf %1060, %1061 : f32
    %1064 = vector.broadcast %1063 : f32 to vector<8x128xf32>
    %1065 = arith.mulf %1064, %785 : vector<8x128xf32>
    %1066 = arith.addf %1059, %1065 : vector<8x128xf32>
    %1067 = vector.broadcast %1062 : f32 to vector<8x128xf32>
    %1068 = arith.mulf %1067, %1045 : vector<8x128xf32>
    %1069 = arith.addf %1066, %1068 : vector<8x128xf32>
    %cst_450 = arith.constant 0.000000e+00 : f32
    %1070 = vector.broadcast %cst_450 : f32 to vector<8x128xf32>
    %c1_451 = arith.constant 1 : index
    %1071 = memref.load %arg4[%c1_451] : memref<2xf32, #tpu.memory_space<smem>>
    %1072 = vector.broadcast %1071 : f32 to vector<8x128xf32>
    %1073 = arith.addf %1070, %1072 : vector<8x128xf32>
    %c6_452 = arith.constant 6 : index
    %1074 = memref.load %arg3[%c6_452] : memref<12xf32, #tpu.memory_space<smem>>
    %c7_453 = arith.constant 7 : index
    %1075 = memref.load %arg3[%c7_453] : memref<12xf32, #tpu.memory_space<smem>>
    %c8_454 = arith.constant 8 : index
    %1076 = memref.load %arg3[%c8_454] : memref<12xf32, #tpu.memory_space<smem>>
    %1077 = arith.addf %1074, %1075 : f32
    %1078 = vector.broadcast %1077 : f32 to vector<8x128xf32>
    %1079 = arith.mulf %1078, %741 : vector<8x128xf32>
    %1080 = arith.addf %1073, %1079 : vector<8x128xf32>
    %1081 = vector.broadcast %1076 : f32 to vector<8x128xf32>
    %1082 = arith.mulf %1081, %1033 : vector<8x128xf32>
    %1083 = arith.addf %1080, %1082 : vector<8x128xf32>
    %c9_455 = arith.constant 9 : index
    %1084 = memref.load %arg3[%c9_455] : memref<12xf32, #tpu.memory_space<smem>>
    %c10_456 = arith.constant 10 : index
    %1085 = memref.load %arg3[%c10_456] : memref<12xf32, #tpu.memory_space<smem>>
    %c11_457 = arith.constant 11 : index
    %1086 = memref.load %arg3[%c11_457] : memref<12xf32, #tpu.memory_space<smem>>
    %1087 = arith.addf %1084, %1085 : f32
    %1088 = vector.broadcast %1087 : f32 to vector<8x128xf32>
    %1089 = arith.mulf %1088, %785 : vector<8x128xf32>
    %1090 = arith.addf %1083, %1089 : vector<8x128xf32>
    %1091 = vector.broadcast %1086 : f32 to vector<8x128xf32>
    %1092 = arith.mulf %1091, %1045 : vector<8x128xf32>
    %1093 = arith.addf %1090, %1092 : vector<8x128xf32>
    %c1_i32_458 = arith.constant 1 : i32
    %1094 = tpu.dynamic_rotate %1069 by %c1_i32_458 dim 1 : vector<8x128xf32>, i32 -> vector<8x128xf32>
    %c-1_i32_459 = arith.constant -1 : i32
    %1095 = vector.broadcast %c-1_i32_459 : i32 to vector<8x128xi32>
    %1096 = arith.addi %33, %1095 : vector<8x128xi32>
    %c0_i32_460 = arith.constant 0 : i32
    %1097 = vector.broadcast %c0_i32_460 : i32 to vector<8x128xi32>
    %1098 = arith.cmpi sge, %1096, %1097 : vector<8x128xi32>
    %c-1_i32_461 = arith.constant -1 : i32
    %1099 = vector.broadcast %c-1_i32_461 : i32 to vector<8x128xi32>
    %1100 = arith.addi %33, %1099 : vector<8x128xi32>
    %c4_i32_462 = arith.constant 4 : i32
    %1101 = vector.broadcast %c4_i32_462 : i32 to vector<8x128xi32>
    %1102 = arith.cmpi slt, %1100, %1101 : vector<8x128xi32>
    %1103 = arith.andi %1098, %1102 : vector<8x128xi1>
    %cst_463 = arith.constant 0.000000e+00 : f32
    %1104 = vector.broadcast %cst_463 : f32 to vector<8x128xf32>
    %1105 = arith.select %1103, %1094, %1104 : vector<8x128xi1>, vector<8x128xf32>
    %c1_i32_464 = arith.constant 1 : i32
    %1106 = tpu.dynamic_rotate %1093 by %c1_i32_464 dim 1 : vector<8x128xf32>, i32 -> vector<8x128xf32>
    %c-1_i32_465 = arith.constant -1 : i32
    %1107 = vector.broadcast %c-1_i32_465 : i32 to vector<8x128xi32>
    %1108 = arith.addi %33, %1107 : vector<8x128xi32>
    %c0_i32_466 = arith.constant 0 : i32
    %1109 = vector.broadcast %c0_i32_466 : i32 to vector<8x128xi32>
    %1110 = arith.cmpi sge, %1108, %1109 : vector<8x128xi32>
    %c-1_i32_467 = arith.constant -1 : i32
    %1111 = vector.broadcast %c-1_i32_467 : i32 to vector<8x128xi32>
    %1112 = arith.addi %33, %1111 : vector<8x128xi32>
    %c4_i32_468 = arith.constant 4 : i32
    %1113 = vector.broadcast %c4_i32_468 : i32 to vector<8x128xi32>
    %1114 = arith.cmpi slt, %1112, %1113 : vector<8x128xi32>
    %1115 = arith.andi %1110, %1114 : vector<8x128xi1>
    %cst_469 = arith.constant 0.000000e+00 : f32
    %1116 = vector.broadcast %cst_469 : f32 to vector<8x128xf32>
    %1117 = arith.select %1115, %1106, %1116 : vector<8x128xi1>, vector<8x128xf32>
    %cst_470 = arith.constant 0.000000e+00 : f32
    %1118 = vector.broadcast %cst_470 : f32 to vector<8x128xf32>
    %c0_471 = arith.constant 0 : index
    %1119 = memref.load %arg6[%c0_471] : memref<2xf32, #tpu.memory_space<smem>>
    %1120 = vector.broadcast %1119 : f32 to vector<8x128xf32>
    %1121 = arith.addf %1118, %1120 : vector<8x128xf32>
    %c0_472 = arith.constant 0 : index
    %1122 = memref.load %arg5[%c0_472] : memref<12xf32, #tpu.memory_space<smem>>
    %c1_473 = arith.constant 1 : index
    %1123 = memref.load %arg5[%c1_473] : memref<12xf32, #tpu.memory_space<smem>>
    %c2_474 = arith.constant 2 : index
    %1124 = memref.load %arg5[%c2_474] : memref<12xf32, #tpu.memory_space<smem>>
    %1125 = arith.addf %1123, %1124 : f32
    %1126 = vector.broadcast %1125 : f32 to vector<8x128xf32>
    %1127 = arith.mulf %1126, %1069 : vector<8x128xf32>
    %1128 = arith.addf %1121, %1127 : vector<8x128xf32>
    %1129 = vector.broadcast %1122 : f32 to vector<8x128xf32>
    %1130 = arith.mulf %1129, %1105 : vector<8x128xf32>
    %1131 = arith.addf %1128, %1130 : vector<8x128xf32>
    %c3_475 = arith.constant 3 : index
    %1132 = memref.load %arg5[%c3_475] : memref<12xf32, #tpu.memory_space<smem>>
    %c4_476 = arith.constant 4 : index
    %1133 = memref.load %arg5[%c4_476] : memref<12xf32, #tpu.memory_space<smem>>
    %c5_477 = arith.constant 5 : index
    %1134 = memref.load %arg5[%c5_477] : memref<12xf32, #tpu.memory_space<smem>>
    %1135 = arith.addf %1133, %1134 : f32
    %1136 = vector.broadcast %1135 : f32 to vector<8x128xf32>
    %1137 = arith.mulf %1136, %1093 : vector<8x128xf32>
    %1138 = arith.addf %1131, %1137 : vector<8x128xf32>
    %1139 = vector.broadcast %1132 : f32 to vector<8x128xf32>
    %1140 = arith.mulf %1139, %1117 : vector<8x128xf32>
    %1141 = arith.addf %1138, %1140 : vector<8x128xf32>
    %cst_478 = arith.constant 0.000000e+00 : f32
    %1142 = vector.broadcast %cst_478 : f32 to vector<8x128xf32>
    %c1_479 = arith.constant 1 : index
    %1143 = memref.load %arg6[%c1_479] : memref<2xf32, #tpu.memory_space<smem>>
    %1144 = vector.broadcast %1143 : f32 to vector<8x128xf32>
    %1145 = arith.addf %1142, %1144 : vector<8x128xf32>
    %c6_480 = arith.constant 6 : index
    %1146 = memref.load %arg5[%c6_480] : memref<12xf32, #tpu.memory_space<smem>>
    %c7_481 = arith.constant 7 : index
    %1147 = memref.load %arg5[%c7_481] : memref<12xf32, #tpu.memory_space<smem>>
    %c8_482 = arith.constant 8 : index
    %1148 = memref.load %arg5[%c8_482] : memref<12xf32, #tpu.memory_space<smem>>
    %1149 = arith.addf %1147, %1148 : f32
    %1150 = vector.broadcast %1149 : f32 to vector<8x128xf32>
    %1151 = arith.mulf %1150, %1069 : vector<8x128xf32>
    %1152 = arith.addf %1145, %1151 : vector<8x128xf32>
    %1153 = vector.broadcast %1146 : f32 to vector<8x128xf32>
    %1154 = arith.mulf %1153, %1105 : vector<8x128xf32>
    %1155 = arith.addf %1152, %1154 : vector<8x128xf32>
    %c9_483 = arith.constant 9 : index
    %1156 = memref.load %arg5[%c9_483] : memref<12xf32, #tpu.memory_space<smem>>
    %c10_484 = arith.constant 10 : index
    %1157 = memref.load %arg5[%c10_484] : memref<12xf32, #tpu.memory_space<smem>>
    %c11_485 = arith.constant 11 : index
    %1158 = memref.load %arg5[%c11_485] : memref<12xf32, #tpu.memory_space<smem>>
    %1159 = arith.addf %1157, %1158 : f32
    %1160 = vector.broadcast %1159 : f32 to vector<8x128xf32>
    %1161 = arith.mulf %1160, %1093 : vector<8x128xf32>
    %1162 = arith.addf %1155, %1161 : vector<8x128xf32>
    %1163 = vector.broadcast %1156 : f32 to vector<8x128xf32>
    %1164 = arith.mulf %1163, %1117 : vector<8x128xf32>
    %1165 = arith.addf %1162, %1164 : vector<8x128xf32>
    %cst_486 = arith.constant 0.000000e+00 : f32
    %1166 = vector.broadcast %cst_486 : f32 to vector<8x128xf32>
    %1167 = arith.maximumf %1141, %1166 : vector<8x128xf32>
    %c1_487 = arith.constant 1 : index
    %c1_488 = arith.constant 1 : index
    %c0_489 = arith.constant 0 : index
    %c0_490 = arith.constant 0 : index
    %c0_491 = arith.constant 0 : index
    %c0_492 = arith.constant 0 : index
    %1168 = vector.load %arg7[%c1_487, %c1_488, %c0_489, %c0_490, %c0_491, %c0_492] : memref<2x2x2x2x8x128xf32, #tpu.memory_space<vmem>>, vector<1x1x1x1x8x128xf32>
    %1169 = vector.shape_cast %1168 : vector<1x1x1x1x8x128xf32> to vector<8x128xf32>
    %1170 = vector.shape_cast %1167 : vector<8x128xf32> to vector<1x1x1x1x8x128xf32>
    tpu.vector_store %arg7[%c1_487, %c1_488, %c0_489, %c0_490, %c0_491, %c0_492], %1170 {strides = array<i32>} : memref<2x2x2x2x8x128xf32, #tpu.memory_space<vmem>>, vector<1x1x1x1x8x128xf32>,
    %cst_493 = arith.constant 0.000000e+00 : f32
    %1171 = vector.broadcast %cst_493 : f32 to vector<8x128xf32>
    %1172 = arith.maximumf %1165, %1171 : vector<8x128xf32>
    %c1_494 = arith.constant 1 : index
    %c1_495 = arith.constant 1 : index
    %c0_496 = arith.constant 0 : index
    %c1_497 = arith.constant 1 : index
    %c0_498 = arith.constant 0 : index
    %c0_499 = arith.constant 0 : index
    %1173 = vector.load %arg7[%c1_494, %c1_495, %c0_496, %c1_497, %c0_498, %c0_499] : memref<2x2x2x2x8x128xf32, #tpu.memory_space<vmem>>, vector<1x1x1x1x8x128xf32>
    %1174 = vector.shape_cast %1173 : vector<1x1x1x1x8x128xf32> to vector<8x128xf32>
    %1175 = vector.shape_cast %1172 : vector<8x128xf32> to vector<1x1x1x1x8x128xf32>
    tpu.vector_store %arg7[%c1_494, %c1_495, %c0_496, %c1_497, %c0_498, %c0_499], %1175 {strides = array<i32>} : memref<2x2x2x2x8x128xf32, #tpu.memory_space<vmem>>, vector<1x1x1x1x8x128xf32>,
    %c127_i32_500 = arith.constant 127 : i32
    %1176 = tpu.dynamic_rotate %1069 by %c127_i32_500 dim 1 : vector<8x128xf32>, i32 -> vector<8x128xf32>
    %c1_i32_501 = arith.constant 1 : i32
    %1177 = vector.broadcast %c1_i32_501 : i32 to vector<8x128xi32>
    %1178 = arith.addi %33, %1177 : vector<8x128xi32>
    %c0_i32_502 = arith.constant 0 : i32
    %1179 = vector.broadcast %c0_i32_502 : i32 to vector<8x128xi32>
    %1180 = arith.cmpi sge, %1178, %1179 : vector<8x128xi32>
    %c1_i32_503 = arith.constant 1 : i32
    %1181 = vector.broadcast %c1_i32_503 : i32 to vector<8x128xi32>
    %1182 = arith.addi %33, %1181 : vector<8x128xi32>
    %c4_i32_504 = arith.constant 4 : i32
    %1183 = vector.broadcast %c4_i32_504 : i32 to vector<8x128xi32>
    %1184 = arith.cmpi slt, %1182, %1183 : vector<8x128xi32>
    %1185 = arith.andi %1180, %1184 : vector<8x128xi1>
    %cst_505 = arith.constant 0.000000e+00 : f32
    %1186 = vector.broadcast %cst_505 : f32 to vector<8x128xf32>
    %1187 = arith.select %1185, %1176, %1186 : vector<8x128xi1>, vector<8x128xf32>
    %c127_i32_506 = arith.constant 127 : i32
    %1188 = tpu.dynamic_rotate %1093 by %c127_i32_506 dim 1 : vector<8x128xf32>, i32 -> vector<8x128xf32>
    %c1_i32_507 = arith.constant 1 : i32
    %1189 = vector.broadcast %c1_i32_507 : i32 to vector<8x128xi32>
    %1190 = arith.addi %33, %1189 : vector<8x128xi32>
    %c0_i32_508 = arith.constant 0 : i32
    %1191 = vector.broadcast %c0_i32_508 : i32 to vector<8x128xi32>
    %1192 = arith.cmpi sge, %1190, %1191 : vector<8x128xi32>
    %c1_i32_509 = arith.constant 1 : i32
    %1193 = vector.broadcast %c1_i32_509 : i32 to vector<8x128xi32>
    %1194 = arith.addi %33, %1193 : vector<8x128xi32>
    %c4_i32_510 = arith.constant 4 : i32
    %1195 = vector.broadcast %c4_i32_510 : i32 to vector<8x128xi32>
    %1196 = arith.cmpi slt, %1194, %1195 : vector<8x128xi32>
    %1197 = arith.andi %1192, %1196 : vector<8x128xi1>
    %cst_511 = arith.constant 0.000000e+00 : f32
    %1198 = vector.broadcast %cst_511 : f32 to vector<8x128xf32>
    %1199 = arith.select %1197, %1188, %1198 : vector<8x128xi1>, vector<8x128xf32>
    %cst_512 = arith.constant 0.000000e+00 : f32
    %1200 = vector.broadcast %cst_512 : f32 to vector<8x128xf32>
    %c0_513 = arith.constant 0 : index
    %1201 = memref.load %arg6[%c0_513] : memref<2xf32, #tpu.memory_space<smem>>
    %1202 = vector.broadcast %1201 : f32 to vector<8x128xf32>
    %1203 = arith.addf %1200, %1202 : vector<8x128xf32>
    %c0_514 = arith.constant 0 : index
    %1204 = memref.load %arg5[%c0_514] : memref<12xf32, #tpu.memory_space<smem>>
    %c1_515 = arith.constant 1 : index
    %1205 = memref.load %arg5[%c1_515] : memref<12xf32, #tpu.memory_space<smem>>
    %c2_516 = arith.constant 2 : index
    %1206 = memref.load %arg5[%c2_516] : memref<12xf32, #tpu.memory_space<smem>>
    %1207 = arith.addf %1204, %1205 : f32
    %1208 = vector.broadcast %1207 : f32 to vector<8x128xf32>
    %1209 = arith.mulf %1208, %1069 : vector<8x128xf32>
    %1210 = arith.addf %1203, %1209 : vector<8x128xf32>
    %1211 = vector.broadcast %1206 : f32 to vector<8x128xf32>
    %1212 = arith.mulf %1211, %1187 : vector<8x128xf32>
    %1213 = arith.addf %1210, %1212 : vector<8x128xf32>
    %c3_517 = arith.constant 3 : index
    %1214 = memref.load %arg5[%c3_517] : memref<12xf32, #tpu.memory_space<smem>>
    %c4_518 = arith.constant 4 : index
    %1215 = memref.load %arg5[%c4_518] : memref<12xf32, #tpu.memory_space<smem>>
    %c5_519 = arith.constant 5 : index
    %1216 = memref.load %arg5[%c5_519] : memref<12xf32, #tpu.memory_space<smem>>
    %1217 = arith.addf %1214, %1215 : f32
    %1218 = vector.broadcast %1217 : f32 to vector<8x128xf32>
    %1219 = arith.mulf %1218, %1093 : vector<8x128xf32>
    %1220 = arith.addf %1213, %1219 : vector<8x128xf32>
    %1221 = vector.broadcast %1216 : f32 to vector<8x128xf32>
    %1222 = arith.mulf %1221, %1199 : vector<8x128xf32>
    %1223 = arith.addf %1220, %1222 : vector<8x128xf32>
    %cst_520 = arith.constant 0.000000e+00 : f32
    %1224 = vector.broadcast %cst_520 : f32 to vector<8x128xf32>
    %c1_521 = arith.constant 1 : index
    %1225 = memref.load %arg6[%c1_521] : memref<2xf32, #tpu.memory_space<smem>>
    %1226 = vector.broadcast %1225 : f32 to vector<8x128xf32>
    %1227 = arith.addf %1224, %1226 : vector<8x128xf32>
    %c6_522 = arith.constant 6 : index
    %1228 = memref.load %arg5[%c6_522] : memref<12xf32, #tpu.memory_space<smem>>
    %c7_523 = arith.constant 7 : index
    %1229 = memref.load %arg5[%c7_523] : memref<12xf32, #tpu.memory_space<smem>>
    %c8_524 = arith.constant 8 : index
    %1230 = memref.load %arg5[%c8_524] : memref<12xf32, #tpu.memory_space<smem>>
    %1231 = arith.addf %1228, %1229 : f32
    %1232 = vector.broadcast %1231 : f32 to vector<8x128xf32>
    %1233 = arith.mulf %1232, %1069 : vector<8x128xf32>
    %1234 = arith.addf %1227, %1233 : vector<8x128xf32>
    %1235 = vector.broadcast %1230 : f32 to vector<8x128xf32>
    %1236 = arith.mulf %1235, %1187 : vector<8x128xf32>
    %1237 = arith.addf %1234, %1236 : vector<8x128xf32>
    %c9_525 = arith.constant 9 : index
    %1238 = memref.load %arg5[%c9_525] : memref<12xf32, #tpu.memory_space<smem>>
    %c10_526 = arith.constant 10 : index
    %1239 = memref.load %arg5[%c10_526] : memref<12xf32, #tpu.memory_space<smem>>
    %c11_527 = arith.constant 11 : index
    %1240 = memref.load %arg5[%c11_527] : memref<12xf32, #tpu.memory_space<smem>>
    %1241 = arith.addf %1238, %1239 : f32
    %1242 = vector.broadcast %1241 : f32 to vector<8x128xf32>
    %1243 = arith.mulf %1242, %1093 : vector<8x128xf32>
    %1244 = arith.addf %1237, %1243 : vector<8x128xf32>
    %1245 = vector.broadcast %1240 : f32 to vector<8x128xf32>
    %1246 = arith.mulf %1245, %1199 : vector<8x128xf32>
    %1247 = arith.addf %1244, %1246 : vector<8x128xf32>
    %cst_528 = arith.constant 0.000000e+00 : f32
    %1248 = vector.broadcast %cst_528 : f32 to vector<8x128xf32>
    %1249 = arith.maximumf %1223, %1248 : vector<8x128xf32>
    %c1_529 = arith.constant 1 : index
    %c1_530 = arith.constant 1 : index
    %c1_531 = arith.constant 1 : index
    %c0_532 = arith.constant 0 : index
    %c0_533 = arith.constant 0 : index
    %c0_534 = arith.constant 0 : index
    %1250 = vector.load %arg7[%c1_529, %c1_530, %c1_531, %c0_532, %c0_533, %c0_534] : memref<2x2x2x2x8x128xf32, #tpu.memory_space<vmem>>, vector<1x1x1x1x8x128xf32>
    %1251 = vector.shape_cast %1250 : vector<1x1x1x1x8x128xf32> to vector<8x128xf32>
    %1252 = vector.shape_cast %1249 : vector<8x128xf32> to vector<1x1x1x1x8x128xf32>
    tpu.vector_store %arg7[%c1_529, %c1_530, %c1_531, %c0_532, %c0_533, %c0_534], %1252 {strides = array<i32>} : memref<2x2x2x2x8x128xf32, #tpu.memory_space<vmem>>, vector<1x1x1x1x8x128xf32>,
    %cst_535 = arith.constant 0.000000e+00 : f32
    %1253 = vector.broadcast %cst_535 : f32 to vector<8x128xf32>
    %1254 = arith.maximumf %1247, %1253 : vector<8x128xf32>
    %c1_536 = arith.constant 1 : index
    %c1_537 = arith.constant 1 : index
    %c1_538 = arith.constant 1 : index
    %c1_539 = arith.constant 1 : index
    %c0_540 = arith.constant 0 : index
    %c0_541 = arith.constant 0 : index
    %1255 = vector.load %arg7[%c1_536, %c1_537, %c1_538, %c1_539, %c0_540, %c0_541] : memref<2x2x2x2x8x128xf32, #tpu.memory_space<vmem>>, vector<1x1x1x1x8x128xf32>
    %1256 = vector.shape_cast %1255 : vector<1x1x1x1x8x128xf32> to vector<8x128xf32>
    %1257 = vector.shape_cast %1254 : vector<8x128xf32> to vector<1x1x1x1x8x128xf32>
    tpu.vector_store %arg7[%c1_536, %c1_537, %c1_538, %c1_539, %c0_540, %c0_541], %1257 {strides = array<i32>} : memref<2x2x2x2x8x128xf32, #tpu.memory_space<vmem>>, vector<1x1x1x1x8x128xf32>,
    return
  }
}

module attributes {stable_mosaic.version = 11 : i64} {
  func.func @_up_block_vox_kernel(%arg0: memref<2x8x128xf32, #tpu.memory_space<vmem>>, %arg1: memref<6xf32, #tpu.memory_space<smem>>, %arg2: memref<1xf32, #tpu.memory_space<smem>>, %arg3: memref<3xf32, #tpu.memory_space<smem>>, %arg4: memref<1xf32, #tpu.memory_space<smem>>, %arg5: memref<3xf32, #tpu.memory_space<smem>>, %arg6: memref<1xf32, #tpu.memory_space<smem>>, %arg7: memref<27xf32, #tpu.memory_space<smem>>, %arg8: memref<1xf32, #tpu.memory_space<smem>>, %arg9: memref<2x2x2x8x128xf32, #tpu.memory_space<vmem>>) attributes {dimension_semantics = [], scalar_prefetch = 0 : i64, scratch_operands = 0 : i64, tpu.core_type = #tpu.core_type<tc>} {
    %0 = tpu.iota {dimensions = array<i32: 0>} : vector<8x128xi32>
    %1 = tpu.iota {dimensions = array<i32: 1>} : vector<8x128xi32>
    %c64_i32 = arith.constant 64 : i32
    %c0_i32 = arith.constant 0 : i32
    %2 = arith.cmpi eq, %c64_i32, %c0_i32 : i32
    %c1_i32 = arith.constant 1 : i32
    %3 = arith.select %2, %c1_i32, %c64_i32 : i32
    %4 = vector.broadcast %3 : i32 to vector<8x128xi32>
    %5 = arith.remsi %1, %4 : vector<8x128xi32>
    %c0_i32_0 = arith.constant 0 : i32
    %6 = vector.broadcast %c0_i32_0 : i32 to vector<8x128xi32>
    %7 = arith.cmpi ne, %5, %6 : vector<8x128xi32>
    %c0_i32_1 = arith.constant 0 : i32
    %8 = vector.broadcast %c0_i32_1 : i32 to vector<8x128xi32>
    %9 = arith.cmpi slt, %5, %8 : vector<8x128xi32>
    %c0_i32_2 = arith.constant 0 : i32
    %10 = arith.cmpi slt, %3, %c0_i32_2 : i32
    %11 = vector.broadcast %10 : i1 to vector<8x128xi1>
    %12 = vector.broadcast %11 : vector<8x128xi1> to vector<8x128xi1>
    %13 = arith.xori %9, %12 : vector<8x128xi1>
    %14 = arith.andi %13, %7 : vector<8x128xi1>
    %15 = vector.broadcast %3 : i32 to vector<8x128xi32>
    %16 = arith.addi %5, %15 : vector<8x128xi32>
    %17 = arith.select %14, %16, %5 : vector<8x128xi1>, vector<8x128xi32>
    %c8_i32 = arith.constant 8 : i32
    %c0_i32_3 = arith.constant 0 : i32
    %18 = arith.cmpi eq, %c8_i32, %c0_i32_3 : i32
    %c1_i32_4 = arith.constant 1 : i32
    %19 = arith.select %18, %c1_i32_4, %c8_i32 : i32
    %20 = vector.broadcast %19 : i32 to vector<8x128xi32>
    %21 = arith.remsi %1, %20 : vector<8x128xi32>
    %c0_i32_5 = arith.constant 0 : i32
    %22 = vector.broadcast %c0_i32_5 : i32 to vector<8x128xi32>
    %23 = arith.cmpi ne, %21, %22 : vector<8x128xi32>
    %c0_i32_6 = arith.constant 0 : i32
    %24 = vector.broadcast %c0_i32_6 : i32 to vector<8x128xi32>
    %25 = arith.cmpi slt, %21, %24 : vector<8x128xi32>
    %c0_i32_7 = arith.constant 0 : i32
    %26 = arith.cmpi slt, %19, %c0_i32_7 : i32
    %27 = vector.broadcast %26 : i1 to vector<8x128xi1>
    %28 = vector.broadcast %27 : vector<8x128xi1> to vector<8x128xi1>
    %29 = arith.xori %25, %28 : vector<8x128xi1>
    %30 = arith.andi %29, %23 : vector<8x128xi1>
    %31 = vector.broadcast %19 : i32 to vector<8x128xi32>
    %32 = arith.addi %21, %31 : vector<8x128xi32>
    %33 = arith.select %30, %32, %21 : vector<8x128xi1>, vector<8x128xi32>
    %c0 = arith.constant 0 : index
    %c0_8 = arith.constant 0 : index
    %c0_9 = arith.constant 0 : index
    %34 = vector.load %arg0[%c0, %c0_8, %c0_9] : memref<2x8x128xf32, #tpu.memory_space<vmem>>, vector<1x8x128xf32>
    %35 = vector.shape_cast %34 : vector<1x8x128xf32> to vector<8x128xf32>
    %c1 = arith.constant 1 : index
    %c0_10 = arith.constant 0 : index
    %c0_11 = arith.constant 0 : index
    %36 = vector.load %arg0[%c1, %c0_10, %c0_11] : memref<2x8x128xf32, #tpu.memory_space<vmem>>, vector<1x8x128xf32>
    %37 = vector.shape_cast %36 : vector<1x8x128xf32> to vector<8x128xf32>
    %c1_i32_12 = arith.constant 1 : i32
    %38 = tpu.dynamic_rotate %35 by %c1_i32_12 dim 0 : vector<8x128xf32>, i32 -> vector<8x128xf32>
    %c-1_i32 = arith.constant -1 : i32
    %39 = vector.broadcast %c-1_i32 : i32 to vector<8x128xi32>
    %40 = arith.addi %0, %39 : vector<8x128xi32>
    %c0_i32_13 = arith.constant 0 : i32
    %41 = vector.broadcast %c0_i32_13 : i32 to vector<8x128xi32>
    %42 = arith.cmpi sge, %40, %41 : vector<8x128xi32>
    %c-1_i32_14 = arith.constant -1 : i32
    %43 = vector.broadcast %c-1_i32_14 : i32 to vector<8x128xi32>
    %44 = arith.addi %0, %43 : vector<8x128xi32>
    %c8_i32_15 = arith.constant 8 : i32
    %45 = vector.broadcast %c8_i32_15 : i32 to vector<8x128xi32>
    %46 = arith.cmpi slt, %44, %45 : vector<8x128xi32>
    %47 = arith.andi %42, %46 : vector<8x128xi1>
    %cst = arith.constant 0.000000e+00 : f32
    %48 = vector.broadcast %cst : f32 to vector<8x128xf32>
    %49 = arith.select %47, %38, %48 : vector<8x128xi1>, vector<8x128xf32>
    %c1_i32_16 = arith.constant 1 : i32
    %50 = tpu.dynamic_rotate %37 by %c1_i32_16 dim 0 : vector<8x128xf32>, i32 -> vector<8x128xf32>
    %c-1_i32_17 = arith.constant -1 : i32
    %51 = vector.broadcast %c-1_i32_17 : i32 to vector<8x128xi32>
    %52 = arith.addi %0, %51 : vector<8x128xi32>
    %c0_i32_18 = arith.constant 0 : i32
    %53 = vector.broadcast %c0_i32_18 : i32 to vector<8x128xi32>
    %54 = arith.cmpi sge, %52, %53 : vector<8x128xi32>
    %c-1_i32_19 = arith.constant -1 : i32
    %55 = vector.broadcast %c-1_i32_19 : i32 to vector<8x128xi32>
    %56 = arith.addi %0, %55 : vector<8x128xi32>
    %c8_i32_20 = arith.constant 8 : i32
    %57 = vector.broadcast %c8_i32_20 : i32 to vector<8x128xi32>
    %58 = arith.cmpi slt, %56, %57 : vector<8x128xi32>
    %59 = arith.andi %54, %58 : vector<8x128xi1>
    %cst_21 = arith.constant 0.000000e+00 : f32
    %60 = vector.broadcast %cst_21 : f32 to vector<8x128xf32>
    %61 = arith.select %59, %50, %60 : vector<8x128xi1>, vector<8x128xf32>
    %cst_22 = arith.constant 0.000000e+00 : f32
    %62 = vector.broadcast %cst_22 : f32 to vector<8x128xf32>
    %c0_23 = arith.constant 0 : index
    %63 = memref.load %arg2[%c0_23] : memref<1xf32, #tpu.memory_space<smem>>
    %64 = vector.broadcast %63 : f32 to vector<8x128xf32>
    %65 = arith.addf %62, %64 : vector<8x128xf32>
    %c0_24 = arith.constant 0 : index
    %66 = memref.load %arg1[%c0_24] : memref<6xf32, #tpu.memory_space<smem>>
    %c1_25 = arith.constant 1 : index
    %67 = memref.load %arg1[%c1_25] : memref<6xf32, #tpu.memory_space<smem>>
    %c2 = arith.constant 2 : index
    %68 = memref.load %arg1[%c2] : memref<6xf32, #tpu.memory_space<smem>>
    %69 = arith.addf %67, %68 : f32
    %70 = vector.broadcast %69 : f32 to vector<8x128xf32>
    %71 = arith.mulf %70, %35 : vector<8x128xf32>
    %72 = arith.addf %65, %71 : vector<8x128xf32>
    %73 = vector.broadcast %66 : f32 to vector<8x128xf32>
    %74 = arith.mulf %73, %49 : vector<8x128xf32>
    %75 = arith.addf %72, %74 : vector<8x128xf32>
    %c3 = arith.constant 3 : index
    %76 = memref.load %arg1[%c3] : memref<6xf32, #tpu.memory_space<smem>>
    %c4 = arith.constant 4 : index
    %77 = memref.load %arg1[%c4] : memref<6xf32, #tpu.memory_space<smem>>
    %c5 = arith.constant 5 : index
    %78 = memref.load %arg1[%c5] : memref<6xf32, #tpu.memory_space<smem>>
    %79 = arith.addf %77, %78 : f32
    %80 = vector.broadcast %79 : f32 to vector<8x128xf32>
    %81 = arith.mulf %80, %37 : vector<8x128xf32>
    %82 = arith.addf %75, %81 : vector<8x128xf32>
    %83 = vector.broadcast %76 : f32 to vector<8x128xf32>
    %84 = arith.mulf %83, %61 : vector<8x128xf32>
    %85 = arith.addf %82, %84 : vector<8x128xf32>
    %c8_i32_26 = arith.constant 8 : i32
    %86 = tpu.dynamic_rotate %85 by %c8_i32_26 dim 1 : vector<8x128xf32>, i32 -> vector<8x128xf32>
    %c-8_i32 = arith.constant -8 : i32
    %87 = vector.broadcast %c-8_i32 : i32 to vector<8x128xi32>
    %88 = arith.addi %17, %87 : vector<8x128xi32>
    %c0_i32_27 = arith.constant 0 : i32
    %89 = vector.broadcast %c0_i32_27 : i32 to vector<8x128xi32>
    %90 = arith.cmpi sge, %88, %89 : vector<8x128xi32>
    %c-8_i32_28 = arith.constant -8 : i32
    %91 = vector.broadcast %c-8_i32_28 : i32 to vector<8x128xi32>
    %92 = arith.addi %17, %91 : vector<8x128xi32>
    %c64_i32_29 = arith.constant 64 : i32
    %93 = vector.broadcast %c64_i32_29 : i32 to vector<8x128xi32>
    %94 = arith.cmpi slt, %92, %93 : vector<8x128xi32>
    %95 = arith.andi %90, %94 : vector<8x128xi1>
    %cst_30 = arith.constant 0.000000e+00 : f32
    %96 = vector.broadcast %cst_30 : f32 to vector<8x128xf32>
    %97 = arith.select %95, %86, %96 : vector<8x128xi1>, vector<8x128xf32>
    %cst_31 = arith.constant 0.000000e+00 : f32
    %98 = vector.broadcast %cst_31 : f32 to vector<8x128xf32>
    %c0_32 = arith.constant 0 : index
    %99 = memref.load %arg4[%c0_32] : memref<1xf32, #tpu.memory_space<smem>>
    %100 = vector.broadcast %99 : f32 to vector<8x128xf32>
    %101 = arith.addf %98, %100 : vector<8x128xf32>
    %c0_33 = arith.constant 0 : index
    %102 = memref.load %arg3[%c0_33] : memref<3xf32, #tpu.memory_space<smem>>
    %c1_34 = arith.constant 1 : index
    %103 = memref.load %arg3[%c1_34] : memref<3xf32, #tpu.memory_space<smem>>
    %c2_35 = arith.constant 2 : index
    %104 = memref.load %arg3[%c2_35] : memref<3xf32, #tpu.memory_space<smem>>
    %105 = arith.addf %103, %104 : f32
    %106 = vector.broadcast %105 : f32 to vector<8x128xf32>
    %107 = arith.mulf %106, %85 : vector<8x128xf32>
    %108 = arith.addf %101, %107 : vector<8x128xf32>
    %109 = vector.broadcast %102 : f32 to vector<8x128xf32>
    %110 = arith.mulf %109, %97 : vector<8x128xf32>
    %111 = arith.addf %108, %110 : vector<8x128xf32>
    %c1_i32_36 = arith.constant 1 : i32
    %112 = tpu.dynamic_rotate %111 by %c1_i32_36 dim 1 : vector<8x128xf32>, i32 -> vector<8x128xf32>
    %c-1_i32_37 = arith.constant -1 : i32
    %113 = vector.broadcast %c-1_i32_37 : i32 to vector<8x128xi32>
    %114 = arith.addi %33, %113 : vector<8x128xi32>
    %c0_i32_38 = arith.constant 0 : i32
    %115 = vector.broadcast %c0_i32_38 : i32 to vector<8x128xi32>
    %116 = arith.cmpi sge, %114, %115 : vector<8x128xi32>
    %c-1_i32_39 = arith.constant -1 : i32
    %117 = vector.broadcast %c-1_i32_39 : i32 to vector<8x128xi32>
    %118 = arith.addi %33, %117 : vector<8x128xi32>
    %c8_i32_40 = arith.constant 8 : i32
    %119 = vector.broadcast %c8_i32_40 : i32 to vector<8x128xi32>
    %120 = arith.cmpi slt, %118, %119 : vector<8x128xi32>
    %121 = arith.andi %116, %120 : vector<8x128xi1>
    %cst_41 = arith.constant 0.000000e+00 : f32
    %122 = vector.broadcast %cst_41 : f32 to vector<8x128xf32>
    %123 = arith.select %121, %112, %122 : vector<8x128xi1>, vector<8x128xf32>
    %cst_42 = arith.constant 0.000000e+00 : f32
    %124 = vector.broadcast %cst_42 : f32 to vector<8x128xf32>
    %c0_43 = arith.constant 0 : index
    %125 = memref.load %arg6[%c0_43] : memref<1xf32, #tpu.memory_space<smem>>
    %126 = vector.broadcast %125 : f32 to vector<8x128xf32>
    %127 = arith.addf %124, %126 : vector<8x128xf32>
    %c0_44 = arith.constant 0 : index
    %128 = memref.load %arg5[%c0_44] : memref<3xf32, #tpu.memory_space<smem>>
    %c1_45 = arith.constant 1 : index
    %129 = memref.load %arg5[%c1_45] : memref<3xf32, #tpu.memory_space<smem>>
    %c2_46 = arith.constant 2 : index
    %130 = memref.load %arg5[%c2_46] : memref<3xf32, #tpu.memory_space<smem>>
    %131 = arith.addf %129, %130 : f32
    %132 = vector.broadcast %131 : f32 to vector<8x128xf32>
    %133 = arith.mulf %132, %111 : vector<8x128xf32>
    %134 = arith.addf %127, %133 : vector<8x128xf32>
    %135 = vector.broadcast %128 : f32 to vector<8x128xf32>
    %136 = arith.mulf %135, %123 : vector<8x128xf32>
    %137 = arith.addf %134, %136 : vector<8x128xf32>
    %cst_47 = arith.constant 0.000000e+00 : f32
    %138 = vector.broadcast %cst_47 : f32 to vector<8x128xf32>
    %139 = arith.maximumf %137, %138 : vector<8x128xf32>
    %c127_i32 = arith.constant 127 : i32
    %140 = tpu.dynamic_rotate %111 by %c127_i32 dim 1 : vector<8x128xf32>, i32 -> vector<8x128xf32>
    %c1_i32_48 = arith.constant 1 : i32
    %141 = vector.broadcast %c1_i32_48 : i32 to vector<8x128xi32>
    %142 = arith.addi %33, %141 : vector<8x128xi32>
    %c0_i32_49 = arith.constant 0 : i32
    %143 = vector.broadcast %c0_i32_49 : i32 to vector<8x128xi32>
    %144 = arith.cmpi sge, %142, %143 : vector<8x128xi32>
    %c1_i32_50 = arith.constant 1 : i32
    %145 = vector.broadcast %c1_i32_50 : i32 to vector<8x128xi32>
    %146 = arith.addi %33, %145 : vector<8x128xi32>
    %c8_i32_51 = arith.constant 8 : i32
    %147 = vector.broadcast %c8_i32_51 : i32 to vector<8x128xi32>
    %148 = arith.cmpi slt, %146, %147 : vector<8x128xi32>
    %149 = arith.andi %144, %148 : vector<8x128xi1>
    %cst_52 = arith.constant 0.000000e+00 : f32
    %150 = vector.broadcast %cst_52 : f32 to vector<8x128xf32>
    %151 = arith.select %149, %140, %150 : vector<8x128xi1>, vector<8x128xf32>
    %cst_53 = arith.constant 0.000000e+00 : f32
    %152 = vector.broadcast %cst_53 : f32 to vector<8x128xf32>
    %c0_54 = arith.constant 0 : index
    %153 = memref.load %arg6[%c0_54] : memref<1xf32, #tpu.memory_space<smem>>
    %154 = vector.broadcast %153 : f32 to vector<8x128xf32>
    %155 = arith.addf %152, %154 : vector<8x128xf32>
    %c0_55 = arith.constant 0 : index
    %156 = memref.load %arg5[%c0_55] : memref<3xf32, #tpu.memory_space<smem>>
    %c1_56 = arith.constant 1 : index
    %157 = memref.load %arg5[%c1_56] : memref<3xf32, #tpu.memory_space<smem>>
    %c2_57 = arith.constant 2 : index
    %158 = memref.load %arg5[%c2_57] : memref<3xf32, #tpu.memory_space<smem>>
    %159 = arith.addf %156, %157 : f32
    %160 = vector.broadcast %159 : f32 to vector<8x128xf32>
    %161 = arith.mulf %160, %111 : vector<8x128xf32>
    %162 = arith.addf %155, %161 : vector<8x128xf32>
    %163 = vector.broadcast %158 : f32 to vector<8x128xf32>
    %164 = arith.mulf %163, %151 : vector<8x128xf32>
    %165 = arith.addf %162, %164 : vector<8x128xf32>
    %cst_58 = arith.constant 0.000000e+00 : f32
    %166 = vector.broadcast %cst_58 : f32 to vector<8x128xf32>
    %167 = arith.maximumf %165, %166 : vector<8x128xf32>
    %c120_i32 = arith.constant 120 : i32
    %168 = tpu.dynamic_rotate %85 by %c120_i32 dim 1 : vector<8x128xf32>, i32 -> vector<8x128xf32>
    %c8_i32_59 = arith.constant 8 : i32
    %169 = vector.broadcast %c8_i32_59 : i32 to vector<8x128xi32>
    %170 = arith.addi %17, %169 : vector<8x128xi32>
    %c0_i32_60 = arith.constant 0 : i32
    %171 = vector.broadcast %c0_i32_60 : i32 to vector<8x128xi32>
    %172 = arith.cmpi sge, %170, %171 : vector<8x128xi32>
    %c8_i32_61 = arith.constant 8 : i32
    %173 = vector.broadcast %c8_i32_61 : i32 to vector<8x128xi32>
    %174 = arith.addi %17, %173 : vector<8x128xi32>
    %c64_i32_62 = arith.constant 64 : i32
    %175 = vector.broadcast %c64_i32_62 : i32 to vector<8x128xi32>
    %176 = arith.cmpi slt, %174, %175 : vector<8x128xi32>
    %177 = arith.andi %172, %176 : vector<8x128xi1>
    %cst_63 = arith.constant 0.000000e+00 : f32
    %178 = vector.broadcast %cst_63 : f32 to vector<8x128xf32>
    %179 = arith.select %177, %168, %178 : vector<8x128xi1>, vector<8x128xf32>
    %cst_64 = arith.constant 0.000000e+00 : f32
    %180 = vector.broadcast %cst_64 : f32 to vector<8x128xf32>
    %c0_65 = arith.constant 0 : index
    %181 = memref.load %arg4[%c0_65] : memref<1xf32, #tpu.memory_space<smem>>
    %182 = vector.broadcast %181 : f32 to vector<8x128xf32>
    %183 = arith.addf %180, %182 : vector<8x128xf32>
    %c0_66 = arith.constant 0 : index
    %184 = memref.load %arg3[%c0_66] : memref<3xf32, #tpu.memory_space<smem>>
    %c1_67 = arith.constant 1 : index
    %185 = memref.load %arg3[%c1_67] : memref<3xf32, #tpu.memory_space<smem>>
    %c2_68 = arith.constant 2 : index
    %186 = memref.load %arg3[%c2_68] : memref<3xf32, #tpu.memory_space<smem>>
    %187 = arith.addf %184, %185 : f32
    %188 = vector.broadcast %187 : f32 to vector<8x128xf32>
    %189 = arith.mulf %188, %85 : vector<8x128xf32>
    %190 = arith.addf %183, %189 : vector<8x128xf32>
    %191 = vector.broadcast %186 : f32 to vector<8x128xf32>
    %192 = arith.mulf %191, %179 : vector<8x128xf32>
    %193 = arith.addf %190, %192 : vector<8x128xf32>
    %c1_i32_69 = arith.constant 1 : i32
    %194 = tpu.dynamic_rotate %193 by %c1_i32_69 dim 1 : vector<8x128xf32>, i32 -> vector<8x128xf32>
    %c-1_i32_70 = arith.constant -1 : i32
    %195 = vector.broadcast %c-1_i32_70 : i32 to vector<8x128xi32>
    %196 = arith.addi %33, %195 : vector<8x128xi32>
    %c0_i32_71 = arith.constant 0 : i32
    %197 = vector.broadcast %c0_i32_71 : i32 to vector<8x128xi32>
    %198 = arith.cmpi sge, %196, %197 : vector<8x128xi32>
    %c-1_i32_72 = arith.constant -1 : i32
    %199 = vector.broadcast %c-1_i32_72 : i32 to vector<8x128xi32>
    %200 = arith.addi %33, %199 : vector<8x128xi32>
    %c8_i32_73 = arith.constant 8 : i32
    %201 = vector.broadcast %c8_i32_73 : i32 to vector<8x128xi32>
    %202 = arith.cmpi slt, %200, %201 : vector<8x128xi32>
    %203 = arith.andi %198, %202 : vector<8x128xi1>
    %cst_74 = arith.constant 0.000000e+00 : f32
    %204 = vector.broadcast %cst_74 : f32 to vector<8x128xf32>
    %205 = arith.select %203, %194, %204 : vector<8x128xi1>, vector<8x128xf32>
    %cst_75 = arith.constant 0.000000e+00 : f32
    %206 = vector.broadcast %cst_75 : f32 to vector<8x128xf32>
    %c0_76 = arith.constant 0 : index
    %207 = memref.load %arg6[%c0_76] : memref<1xf32, #tpu.memory_space<smem>>
    %208 = vector.broadcast %207 : f32 to vector<8x128xf32>
    %209 = arith.addf %206, %208 : vector<8x128xf32>
    %c0_77 = arith.constant 0 : index
    %210 = memref.load %arg5[%c0_77] : memref<3xf32, #tpu.memory_space<smem>>
    %c1_78 = arith.constant 1 : index
    %211 = memref.load %arg5[%c1_78] : memref<3xf32, #tpu.memory_space<smem>>
    %c2_79 = arith.constant 2 : index
    %212 = memref.load %arg5[%c2_79] : memref<3xf32, #tpu.memory_space<smem>>
    %213 = arith.addf %211, %212 : f32
    %214 = vector.broadcast %213 : f32 to vector<8x128xf32>
    %215 = arith.mulf %214, %193 : vector<8x128xf32>
    %216 = arith.addf %209, %215 : vector<8x128xf32>
    %217 = vector.broadcast %210 : f32 to vector<8x128xf32>
    %218 = arith.mulf %217, %205 : vector<8x128xf32>
    %219 = arith.addf %216, %218 : vector<8x128xf32>
    %cst_80 = arith.constant 0.000000e+00 : f32
    %220 = vector.broadcast %cst_80 : f32 to vector<8x128xf32>
    %221 = arith.maximumf %219, %220 : vector<8x128xf32>
    %c127_i32_81 = arith.constant 127 : i32
    %222 = tpu.dynamic_rotate %193 by %c127_i32_81 dim 1 : vector<8x128xf32>, i32 -> vector<8x128xf32>
    %c1_i32_82 = arith.constant 1 : i32
    %223 = vector.broadcast %c1_i32_82 : i32 to vector<8x128xi32>
    %224 = arith.addi %33, %223 : vector<8x128xi32>
    %c0_i32_83 = arith.constant 0 : i32
    %225 = vector.broadcast %c0_i32_83 : i32 to vector<8x128xi32>
    %226 = arith.cmpi sge, %224, %225 : vector<8x128xi32>
    %c1_i32_84 = arith.constant 1 : i32
    %227 = vector.broadcast %c1_i32_84 : i32 to vector<8x128xi32>
    %228 = arith.addi %33, %227 : vector<8x128xi32>
    %c8_i32_85 = arith.constant 8 : i32
    %229 = vector.broadcast %c8_i32_85 : i32 to vector<8x128xi32>
    %230 = arith.cmpi slt, %228, %229 : vector<8x128xi32>
    %231 = arith.andi %226, %230 : vector<8x128xi1>
    %cst_86 = arith.constant 0.000000e+00 : f32
    %232 = vector.broadcast %cst_86 : f32 to vector<8x128xf32>
    %233 = arith.select %231, %222, %232 : vector<8x128xi1>, vector<8x128xf32>
    %cst_87 = arith.constant 0.000000e+00 : f32
    %234 = vector.broadcast %cst_87 : f32 to vector<8x128xf32>
    %c0_88 = arith.constant 0 : index
    %235 = memref.load %arg6[%c0_88] : memref<1xf32, #tpu.memory_space<smem>>
    %236 = vector.broadcast %235 : f32 to vector<8x128xf32>
    %237 = arith.addf %234, %236 : vector<8x128xf32>
    %c0_89 = arith.constant 0 : index
    %238 = memref.load %arg5[%c0_89] : memref<3xf32, #tpu.memory_space<smem>>
    %c1_90 = arith.constant 1 : index
    %239 = memref.load %arg5[%c1_90] : memref<3xf32, #tpu.memory_space<smem>>
    %c2_91 = arith.constant 2 : index
    %240 = memref.load %arg5[%c2_91] : memref<3xf32, #tpu.memory_space<smem>>
    %241 = arith.addf %238, %239 : f32
    %242 = vector.broadcast %241 : f32 to vector<8x128xf32>
    %243 = arith.mulf %242, %193 : vector<8x128xf32>
    %244 = arith.addf %237, %243 : vector<8x128xf32>
    %245 = vector.broadcast %240 : f32 to vector<8x128xf32>
    %246 = arith.mulf %245, %233 : vector<8x128xf32>
    %247 = arith.addf %244, %246 : vector<8x128xf32>
    %cst_92 = arith.constant 0.000000e+00 : f32
    %248 = vector.broadcast %cst_92 : f32 to vector<8x128xf32>
    %249 = arith.maximumf %247, %248 : vector<8x128xf32>
    %c7_i32 = arith.constant 7 : i32
    %250 = tpu.dynamic_rotate %35 by %c7_i32 dim 0 : vector<8x128xf32>, i32 -> vector<8x128xf32>
    %c1_i32_93 = arith.constant 1 : i32
    %251 = vector.broadcast %c1_i32_93 : i32 to vector<8x128xi32>
    %252 = arith.addi %0, %251 : vector<8x128xi32>
    %c0_i32_94 = arith.constant 0 : i32
    %253 = vector.broadcast %c0_i32_94 : i32 to vector<8x128xi32>
    %254 = arith.cmpi sge, %252, %253 : vector<8x128xi32>
    %c1_i32_95 = arith.constant 1 : i32
    %255 = vector.broadcast %c1_i32_95 : i32 to vector<8x128xi32>
    %256 = arith.addi %0, %255 : vector<8x128xi32>
    %c8_i32_96 = arith.constant 8 : i32
    %257 = vector.broadcast %c8_i32_96 : i32 to vector<8x128xi32>
    %258 = arith.cmpi slt, %256, %257 : vector<8x128xi32>
    %259 = arith.andi %254, %258 : vector<8x128xi1>
    %cst_97 = arith.constant 0.000000e+00 : f32
    %260 = vector.broadcast %cst_97 : f32 to vector<8x128xf32>
    %261 = arith.select %259, %250, %260 : vector<8x128xi1>, vector<8x128xf32>
    %c7_i32_98 = arith.constant 7 : i32
    %262 = tpu.dynamic_rotate %37 by %c7_i32_98 dim 0 : vector<8x128xf32>, i32 -> vector<8x128xf32>
    %c1_i32_99 = arith.constant 1 : i32
    %263 = vector.broadcast %c1_i32_99 : i32 to vector<8x128xi32>
    %264 = arith.addi %0, %263 : vector<8x128xi32>
    %c0_i32_100 = arith.constant 0 : i32
    %265 = vector.broadcast %c0_i32_100 : i32 to vector<8x128xi32>
    %266 = arith.cmpi sge, %264, %265 : vector<8x128xi32>
    %c1_i32_101 = arith.constant 1 : i32
    %267 = vector.broadcast %c1_i32_101 : i32 to vector<8x128xi32>
    %268 = arith.addi %0, %267 : vector<8x128xi32>
    %c8_i32_102 = arith.constant 8 : i32
    %269 = vector.broadcast %c8_i32_102 : i32 to vector<8x128xi32>
    %270 = arith.cmpi slt, %268, %269 : vector<8x128xi32>
    %271 = arith.andi %266, %270 : vector<8x128xi1>
    %cst_103 = arith.constant 0.000000e+00 : f32
    %272 = vector.broadcast %cst_103 : f32 to vector<8x128xf32>
    %273 = arith.select %271, %262, %272 : vector<8x128xi1>, vector<8x128xf32>
    %cst_104 = arith.constant 0.000000e+00 : f32
    %274 = vector.broadcast %cst_104 : f32 to vector<8x128xf32>
    %c0_105 = arith.constant 0 : index
    %275 = memref.load %arg2[%c0_105] : memref<1xf32, #tpu.memory_space<smem>>
    %276 = vector.broadcast %275 : f32 to vector<8x128xf32>
    %277 = arith.addf %274, %276 : vector<8x128xf32>
    %c0_106 = arith.constant 0 : index
    %278 = memref.load %arg1[%c0_106] : memref<6xf32, #tpu.memory_space<smem>>
    %c1_107 = arith.constant 1 : index
    %279 = memref.load %arg1[%c1_107] : memref<6xf32, #tpu.memory_space<smem>>
    %c2_108 = arith.constant 2 : index
    %280 = memref.load %arg1[%c2_108] : memref<6xf32, #tpu.memory_space<smem>>
    %281 = arith.addf %278, %279 : f32
    %282 = vector.broadcast %281 : f32 to vector<8x128xf32>
    %283 = arith.mulf %282, %35 : vector<8x128xf32>
    %284 = arith.addf %277, %283 : vector<8x128xf32>
    %285 = vector.broadcast %280 : f32 to vector<8x128xf32>
    %286 = arith.mulf %285, %261 : vector<8x128xf32>
    %287 = arith.addf %284, %286 : vector<8x128xf32>
    %c3_109 = arith.constant 3 : index
    %288 = memref.load %arg1[%c3_109] : memref<6xf32, #tpu.memory_space<smem>>
    %c4_110 = arith.constant 4 : index
    %289 = memref.load %arg1[%c4_110] : memref<6xf32, #tpu.memory_space<smem>>
    %c5_111 = arith.constant 5 : index
    %290 = memref.load %arg1[%c5_111] : memref<6xf32, #tpu.memory_space<smem>>
    %291 = arith.addf %288, %289 : f32
    %292 = vector.broadcast %291 : f32 to vector<8x128xf32>
    %293 = arith.mulf %292, %37 : vector<8x128xf32>
    %294 = arith.addf %287, %293 : vector<8x128xf32>
    %295 = vector.broadcast %290 : f32 to vector<8x128xf32>
    %296 = arith.mulf %295, %273 : vector<8x128xf32>
    %297 = arith.addf %294, %296 : vector<8x128xf32>
    %c8_i32_112 = arith.constant 8 : i32
    %298 = tpu.dynamic_rotate %297 by %c8_i32_112 dim 1 : vector<8x128xf32>, i32 -> vector<8x128xf32>
    %c-8_i32_113 = arith.constant -8 : i32
    %299 = vector.broadcast %c-8_i32_113 : i32 to vector<8x128xi32>
    %300 = arith.addi %17, %299 : vector<8x128xi32>
    %c0_i32_114 = arith.constant 0 : i32
    %301 = vector.broadcast %c0_i32_114 : i32 to vector<8x128xi32>
    %302 = arith.cmpi sge, %300, %301 : vector<8x128xi32>
    %c-8_i32_115 = arith.constant -8 : i32
    %303 = vector.broadcast %c-8_i32_115 : i32 to vector<8x128xi32>
    %304 = arith.addi %17, %303 : vector<8x128xi32>
    %c64_i32_116 = arith.constant 64 : i32
    %305 = vector.broadcast %c64_i32_116 : i32 to vector<8x128xi32>
    %306 = arith.cmpi slt, %304, %305 : vector<8x128xi32>
    %307 = arith.andi %302, %306 : vector<8x128xi1>
    %cst_117 = arith.constant 0.000000e+00 : f32
    %308 = vector.broadcast %cst_117 : f32 to vector<8x128xf32>
    %309 = arith.select %307, %298, %308 : vector<8x128xi1>, vector<8x128xf32>
    %cst_118 = arith.constant 0.000000e+00 : f32
    %310 = vector.broadcast %cst_118 : f32 to vector<8x128xf32>
    %c0_119 = arith.constant 0 : index
    %311 = memref.load %arg4[%c0_119] : memref<1xf32, #tpu.memory_space<smem>>
    %312 = vector.broadcast %311 : f32 to vector<8x128xf32>
    %313 = arith.addf %310, %312 : vector<8x128xf32>
    %c0_120 = arith.constant 0 : index
    %314 = memref.load %arg3[%c0_120] : memref<3xf32, #tpu.memory_space<smem>>
    %c1_121 = arith.constant 1 : index
    %315 = memref.load %arg3[%c1_121] : memref<3xf32, #tpu.memory_space<smem>>
    %c2_122 = arith.constant 2 : index
    %316 = memref.load %arg3[%c2_122] : memref<3xf32, #tpu.memory_space<smem>>
    %317 = arith.addf %315, %316 : f32
    %318 = vector.broadcast %317 : f32 to vector<8x128xf32>
    %319 = arith.mulf %318, %297 : vector<8x128xf32>
    %320 = arith.addf %313, %319 : vector<8x128xf32>
    %321 = vector.broadcast %314 : f32 to vector<8x128xf32>
    %322 = arith.mulf %321, %309 : vector<8x128xf32>
    %323 = arith.addf %320, %322 : vector<8x128xf32>
    %c1_i32_123 = arith.constant 1 : i32
    %324 = tpu.dynamic_rotate %323 by %c1_i32_123 dim 1 : vector<8x128xf32>, i32 -> vector<8x128xf32>
    %c-1_i32_124 = arith.constant -1 : i32
    %325 = vector.broadcast %c-1_i32_124 : i32 to vector<8x128xi32>
    %326 = arith.addi %33, %325 : vector<8x128xi32>
    %c0_i32_125 = arith.constant 0 : i32
    %327 = vector.broadcast %c0_i32_125 : i32 to vector<8x128xi32>
    %328 = arith.cmpi sge, %326, %327 : vector<8x128xi32>
    %c-1_i32_126 = arith.constant -1 : i32
    %329 = vector.broadcast %c-1_i32_126 : i32 to vector<8x128xi32>
    %330 = arith.addi %33, %329 : vector<8x128xi32>
    %c8_i32_127 = arith.constant 8 : i32
    %331 = vector.broadcast %c8_i32_127 : i32 to vector<8x128xi32>
    %332 = arith.cmpi slt, %330, %331 : vector<8x128xi32>
    %333 = arith.andi %328, %332 : vector<8x128xi1>
    %cst_128 = arith.constant 0.000000e+00 : f32
    %334 = vector.broadcast %cst_128 : f32 to vector<8x128xf32>
    %335 = arith.select %333, %324, %334 : vector<8x128xi1>, vector<8x128xf32>
    %cst_129 = arith.constant 0.000000e+00 : f32
    %336 = vector.broadcast %cst_129 : f32 to vector<8x128xf32>
    %c0_130 = arith.constant 0 : index
    %337 = memref.load %arg6[%c0_130] : memref<1xf32, #tpu.memory_space<smem>>
    %338 = vector.broadcast %337 : f32 to vector<8x128xf32>
    %339 = arith.addf %336, %338 : vector<8x128xf32>
    %c0_131 = arith.constant 0 : index
    %340 = memref.load %arg5[%c0_131] : memref<3xf32, #tpu.memory_space<smem>>
    %c1_132 = arith.constant 1 : index
    %341 = memref.load %arg5[%c1_132] : memref<3xf32, #tpu.memory_space<smem>>
    %c2_133 = arith.constant 2 : index
    %342 = memref.load %arg5[%c2_133] : memref<3xf32, #tpu.memory_space<smem>>
    %343 = arith.addf %341, %342 : f32
    %344 = vector.broadcast %343 : f32 to vector<8x128xf32>
    %345 = arith.mulf %344, %323 : vector<8x128xf32>
    %346 = arith.addf %339, %345 : vector<8x128xf32>
    %347 = vector.broadcast %340 : f32 to vector<8x128xf32>
    %348 = arith.mulf %347, %335 : vector<8x128xf32>
    %349 = arith.addf %346, %348 : vector<8x128xf32>
    %cst_134 = arith.constant 0.000000e+00 : f32
    %350 = vector.broadcast %cst_134 : f32 to vector<8x128xf32>
    %351 = arith.maximumf %349, %350 : vector<8x128xf32>
    %c127_i32_135 = arith.constant 127 : i32
    %352 = tpu.dynamic_rotate %323 by %c127_i32_135 dim 1 : vector<8x128xf32>, i32 -> vector<8x128xf32>
    %c1_i32_136 = arith.constant 1 : i32
    %353 = vector.broadcast %c1_i32_136 : i32 to vector<8x128xi32>
    %354 = arith.addi %33, %353 : vector<8x128xi32>
    %c0_i32_137 = arith.constant 0 : i32
    %355 = vector.broadcast %c0_i32_137 : i32 to vector<8x128xi32>
    %356 = arith.cmpi sge, %354, %355 : vector<8x128xi32>
    %c1_i32_138 = arith.constant 1 : i32
    %357 = vector.broadcast %c1_i32_138 : i32 to vector<8x128xi32>
    %358 = arith.addi %33, %357 : vector<8x128xi32>
    %c8_i32_139 = arith.constant 8 : i32
    %359 = vector.broadcast %c8_i32_139 : i32 to vector<8x128xi32>
    %360 = arith.cmpi slt, %358, %359 : vector<8x128xi32>
    %361 = arith.andi %356, %360 : vector<8x128xi1>
    %cst_140 = arith.constant 0.000000e+00 : f32
    %362 = vector.broadcast %cst_140 : f32 to vector<8x128xf32>
    %363 = arith.select %361, %352, %362 : vector<8x128xi1>, vector<8x128xf32>
    %cst_141 = arith.constant 0.000000e+00 : f32
    %364 = vector.broadcast %cst_141 : f32 to vector<8x128xf32>
    %c0_142 = arith.constant 0 : index
    %365 = memref.load %arg6[%c0_142] : memref<1xf32, #tpu.memory_space<smem>>
    %366 = vector.broadcast %365 : f32 to vector<8x128xf32>
    %367 = arith.addf %364, %366 : vector<8x128xf32>
    %c0_143 = arith.constant 0 : index
    %368 = memref.load %arg5[%c0_143] : memref<3xf32, #tpu.memory_space<smem>>
    %c1_144 = arith.constant 1 : index
    %369 = memref.load %arg5[%c1_144] : memref<3xf32, #tpu.memory_space<smem>>
    %c2_145 = arith.constant 2 : index
    %370 = memref.load %arg5[%c2_145] : memref<3xf32, #tpu.memory_space<smem>>
    %371 = arith.addf %368, %369 : f32
    %372 = vector.broadcast %371 : f32 to vector<8x128xf32>
    %373 = arith.mulf %372, %323 : vector<8x128xf32>
    %374 = arith.addf %367, %373 : vector<8x128xf32>
    %375 = vector.broadcast %370 : f32 to vector<8x128xf32>
    %376 = arith.mulf %375, %363 : vector<8x128xf32>
    %377 = arith.addf %374, %376 : vector<8x128xf32>
    %cst_146 = arith.constant 0.000000e+00 : f32
    %378 = vector.broadcast %cst_146 : f32 to vector<8x128xf32>
    %379 = arith.maximumf %377, %378 : vector<8x128xf32>
    %c120_i32_147 = arith.constant 120 : i32
    %380 = tpu.dynamic_rotate %297 by %c120_i32_147 dim 1 : vector<8x128xf32>, i32 -> vector<8x128xf32>
    %c8_i32_148 = arith.constant 8 : i32
    %381 = vector.broadcast %c8_i32_148 : i32 to vector<8x128xi32>
    %382 = arith.addi %17, %381 : vector<8x128xi32>
    %c0_i32_149 = arith.constant 0 : i32
    %383 = vector.broadcast %c0_i32_149 : i32 to vector<8x128xi32>
    %384 = arith.cmpi sge, %382, %383 : vector<8x128xi32>
    %c8_i32_150 = arith.constant 8 : i32
    %385 = vector.broadcast %c8_i32_150 : i32 to vector<8x128xi32>
    %386 = arith.addi %17, %385 : vector<8x128xi32>
    %c64_i32_151 = arith.constant 64 : i32
    %387 = vector.broadcast %c64_i32_151 : i32 to vector<8x128xi32>
    %388 = arith.cmpi slt, %386, %387 : vector<8x128xi32>
    %389 = arith.andi %384, %388 : vector<8x128xi1>
    %cst_152 = arith.constant 0.000000e+00 : f32
    %390 = vector.broadcast %cst_152 : f32 to vector<8x128xf32>
    %391 = arith.select %389, %380, %390 : vector<8x128xi1>, vector<8x128xf32>
    %cst_153 = arith.constant 0.000000e+00 : f32
    %392 = vector.broadcast %cst_153 : f32 to vector<8x128xf32>
    %c0_154 = arith.constant 0 : index
    %393 = memref.load %arg4[%c0_154] : memref<1xf32, #tpu.memory_space<smem>>
    %394 = vector.broadcast %393 : f32 to vector<8x128xf32>
    %395 = arith.addf %392, %394 : vector<8x128xf32>
    %c0_155 = arith.constant 0 : index
    %396 = memref.load %arg3[%c0_155] : memref<3xf32, #tpu.memory_space<smem>>
    %c1_156 = arith.constant 1 : index
    %397 = memref.load %arg3[%c1_156] : memref<3xf32, #tpu.memory_space<smem>>
    %c2_157 = arith.constant 2 : index
    %398 = memref.load %arg3[%c2_157] : memref<3xf32, #tpu.memory_space<smem>>
    %399 = arith.addf %396, %397 : f32
    %400 = vector.broadcast %399 : f32 to vector<8x128xf32>
    %401 = arith.mulf %400, %297 : vector<8x128xf32>
    %402 = arith.addf %395, %401 : vector<8x128xf32>
    %403 = vector.broadcast %398 : f32 to vector<8x128xf32>
    %404 = arith.mulf %403, %391 : vector<8x128xf32>
    %405 = arith.addf %402, %404 : vector<8x128xf32>
    %c1_i32_158 = arith.constant 1 : i32
    %406 = tpu.dynamic_rotate %405 by %c1_i32_158 dim 1 : vector<8x128xf32>, i32 -> vector<8x128xf32>
    %c-1_i32_159 = arith.constant -1 : i32
    %407 = vector.broadcast %c-1_i32_159 : i32 to vector<8x128xi32>
    %408 = arith.addi %33, %407 : vector<8x128xi32>
    %c0_i32_160 = arith.constant 0 : i32
    %409 = vector.broadcast %c0_i32_160 : i32 to vector<8x128xi32>
    %410 = arith.cmpi sge, %408, %409 : vector<8x128xi32>
    %c-1_i32_161 = arith.constant -1 : i32
    %411 = vector.broadcast %c-1_i32_161 : i32 to vector<8x128xi32>
    %412 = arith.addi %33, %411 : vector<8x128xi32>
    %c8_i32_162 = arith.constant 8 : i32
    %413 = vector.broadcast %c8_i32_162 : i32 to vector<8x128xi32>
    %414 = arith.cmpi slt, %412, %413 : vector<8x128xi32>
    %415 = arith.andi %410, %414 : vector<8x128xi1>
    %cst_163 = arith.constant 0.000000e+00 : f32
    %416 = vector.broadcast %cst_163 : f32 to vector<8x128xf32>
    %417 = arith.select %415, %406, %416 : vector<8x128xi1>, vector<8x128xf32>
    %cst_164 = arith.constant 0.000000e+00 : f32
    %418 = vector.broadcast %cst_164 : f32 to vector<8x128xf32>
    %c0_165 = arith.constant 0 : index
    %419 = memref.load %arg6[%c0_165] : memref<1xf32, #tpu.memory_space<smem>>
    %420 = vector.broadcast %419 : f32 to vector<8x128xf32>
    %421 = arith.addf %418, %420 : vector<8x128xf32>
    %c0_166 = arith.constant 0 : index
    %422 = memref.load %arg5[%c0_166] : memref<3xf32, #tpu.memory_space<smem>>
    %c1_167 = arith.constant 1 : index
    %423 = memref.load %arg5[%c1_167] : memref<3xf32, #tpu.memory_space<smem>>
    %c2_168 = arith.constant 2 : index
    %424 = memref.load %arg5[%c2_168] : memref<3xf32, #tpu.memory_space<smem>>
    %425 = arith.addf %423, %424 : f32
    %426 = vector.broadcast %425 : f32 to vector<8x128xf32>
    %427 = arith.mulf %426, %405 : vector<8x128xf32>
    %428 = arith.addf %421, %427 : vector<8x128xf32>
    %429 = vector.broadcast %422 : f32 to vector<8x128xf32>
    %430 = arith.mulf %429, %417 : vector<8x128xf32>
    %431 = arith.addf %428, %430 : vector<8x128xf32>
    %cst_169 = arith.constant 0.000000e+00 : f32
    %432 = vector.broadcast %cst_169 : f32 to vector<8x128xf32>
    %433 = arith.maximumf %431, %432 : vector<8x128xf32>
    %c127_i32_170 = arith.constant 127 : i32
    %434 = tpu.dynamic_rotate %405 by %c127_i32_170 dim 1 : vector<8x128xf32>, i32 -> vector<8x128xf32>
    %c1_i32_171 = arith.constant 1 : i32
    %435 = vector.broadcast %c1_i32_171 : i32 to vector<8x128xi32>
    %436 = arith.addi %33, %435 : vector<8x128xi32>
    %c0_i32_172 = arith.constant 0 : i32
    %437 = vector.broadcast %c0_i32_172 : i32 to vector<8x128xi32>
    %438 = arith.cmpi sge, %436, %437 : vector<8x128xi32>
    %c1_i32_173 = arith.constant 1 : i32
    %439 = vector.broadcast %c1_i32_173 : i32 to vector<8x128xi32>
    %440 = arith.addi %33, %439 : vector<8x128xi32>
    %c8_i32_174 = arith.constant 8 : i32
    %441 = vector.broadcast %c8_i32_174 : i32 to vector<8x128xi32>
    %442 = arith.cmpi slt, %440, %441 : vector<8x128xi32>
    %443 = arith.andi %438, %442 : vector<8x128xi1>
    %cst_175 = arith.constant 0.000000e+00 : f32
    %444 = vector.broadcast %cst_175 : f32 to vector<8x128xf32>
    %445 = arith.select %443, %434, %444 : vector<8x128xi1>, vector<8x128xf32>
    %cst_176 = arith.constant 0.000000e+00 : f32
    %446 = vector.broadcast %cst_176 : f32 to vector<8x128xf32>
    %c0_177 = arith.constant 0 : index
    %447 = memref.load %arg6[%c0_177] : memref<1xf32, #tpu.memory_space<smem>>
    %448 = vector.broadcast %447 : f32 to vector<8x128xf32>
    %449 = arith.addf %446, %448 : vector<8x128xf32>
    %c0_178 = arith.constant 0 : index
    %450 = memref.load %arg5[%c0_178] : memref<3xf32, #tpu.memory_space<smem>>
    %c1_179 = arith.constant 1 : index
    %451 = memref.load %arg5[%c1_179] : memref<3xf32, #tpu.memory_space<smem>>
    %c2_180 = arith.constant 2 : index
    %452 = memref.load %arg5[%c2_180] : memref<3xf32, #tpu.memory_space<smem>>
    %453 = arith.addf %450, %451 : f32
    %454 = vector.broadcast %453 : f32 to vector<8x128xf32>
    %455 = arith.mulf %454, %405 : vector<8x128xf32>
    %456 = arith.addf %449, %455 : vector<8x128xf32>
    %457 = vector.broadcast %452 : f32 to vector<8x128xf32>
    %458 = arith.mulf %457, %445 : vector<8x128xf32>
    %459 = arith.addf %456, %458 : vector<8x128xf32>
    %cst_181 = arith.constant 0.000000e+00 : f32
    %460 = vector.broadcast %cst_181 : f32 to vector<8x128xf32>
    %461 = arith.maximumf %459, %460 : vector<8x128xf32>
    %cst_182 = arith.constant 0.000000e+00 : f32
    %462 = vector.broadcast %cst_182 : f32 to vector<8x128xf32>
    %c0_183 = arith.constant 0 : index
    %463 = memref.load %arg8[%c0_183] : memref<1xf32, #tpu.memory_space<smem>>
    %464 = vector.broadcast %463 : f32 to vector<8x128xf32>
    %465 = arith.addf %462, %464 : vector<8x128xf32>
    %c0_184 = arith.constant 0 : index
    %466 = memref.load %arg7[%c0_184] : memref<27xf32, #tpu.memory_space<smem>>
    %c1_i32_185 = arith.constant 1 : i32
    %467 = tpu.dynamic_rotate %461 by %c1_i32_185 dim 0 : vector<8x128xf32>, i32 -> vector<8x128xf32>
    %c-1_i32_186 = arith.constant -1 : i32
    %468 = vector.broadcast %c-1_i32_186 : i32 to vector<8x128xi32>
    %469 = arith.addi %0, %468 : vector<8x128xi32>
    %c0_i32_187 = arith.constant 0 : i32
    %470 = vector.broadcast %c0_i32_187 : i32 to vector<8x128xi32>
    %471 = arith.cmpi sge, %469, %470 : vector<8x128xi32>
    %c-1_i32_188 = arith.constant -1 : i32
    %472 = vector.broadcast %c-1_i32_188 : i32 to vector<8x128xi32>
    %473 = arith.addi %0, %472 : vector<8x128xi32>
    %c8_i32_189 = arith.constant 8 : i32
    %474 = vector.broadcast %c8_i32_189 : i32 to vector<8x128xi32>
    %475 = arith.cmpi slt, %473, %474 : vector<8x128xi32>
    %476 = arith.andi %471, %475 : vector<8x128xi1>
    %cst_190 = arith.constant 0.000000e+00 : f32
    %477 = vector.broadcast %cst_190 : f32 to vector<8x128xf32>
    %478 = arith.select %476, %467, %477 : vector<8x128xi1>, vector<8x128xf32>
    %c8_i32_191 = arith.constant 8 : i32
    %479 = tpu.dynamic_rotate %478 by %c8_i32_191 dim 1 : vector<8x128xf32>, i32 -> vector<8x128xf32>
    %c-8_i32_192 = arith.constant -8 : i32
    %480 = vector.broadcast %c-8_i32_192 : i32 to vector<8x128xi32>
    %481 = arith.addi %17, %480 : vector<8x128xi32>
    %c0_i32_193 = arith.constant 0 : i32
    %482 = vector.broadcast %c0_i32_193 : i32 to vector<8x128xi32>
    %483 = arith.cmpi sge, %481, %482 : vector<8x128xi32>
    %c-8_i32_194 = arith.constant -8 : i32
    %484 = vector.broadcast %c-8_i32_194 : i32 to vector<8x128xi32>
    %485 = arith.addi %17, %484 : vector<8x128xi32>
    %c64_i32_195 = arith.constant 64 : i32
    %486 = vector.broadcast %c64_i32_195 : i32 to vector<8x128xi32>
    %487 = arith.cmpi slt, %485, %486 : vector<8x128xi32>
    %488 = arith.andi %483, %487 : vector<8x128xi1>
    %cst_196 = arith.constant 0.000000e+00 : f32
    %489 = vector.broadcast %cst_196 : f32 to vector<8x128xf32>
    %490 = arith.select %488, %479, %489 : vector<8x128xi1>, vector<8x128xf32>
    %c1_i32_197 = arith.constant 1 : i32
    %491 = tpu.dynamic_rotate %490 by %c1_i32_197 dim 1 : vector<8x128xf32>, i32 -> vector<8x128xf32>
    %c-1_i32_198 = arith.constant -1 : i32
    %492 = vector.broadcast %c-1_i32_198 : i32 to vector<8x128xi32>
    %493 = arith.addi %33, %492 : vector<8x128xi32>
    %c0_i32_199 = arith.constant 0 : i32
    %494 = vector.broadcast %c0_i32_199 : i32 to vector<8x128xi32>
    %495 = arith.cmpi sge, %493, %494 : vector<8x128xi32>
    %c-1_i32_200 = arith.constant -1 : i32
    %496 = vector.broadcast %c-1_i32_200 : i32 to vector<8x128xi32>
    %497 = arith.addi %33, %496 : vector<8x128xi32>
    %c8_i32_201 = arith.constant 8 : i32
    %498 = vector.broadcast %c8_i32_201 : i32 to vector<8x128xi32>
    %499 = arith.cmpi slt, %497, %498 : vector<8x128xi32>
    %500 = arith.andi %495, %499 : vector<8x128xi1>
    %cst_202 = arith.constant 0.000000e+00 : f32
    %501 = vector.broadcast %cst_202 : f32 to vector<8x128xf32>
    %502 = arith.select %500, %491, %501 : vector<8x128xi1>, vector<8x128xf32>
    %503 = vector.broadcast %466 : f32 to vector<8x128xf32>
    %504 = arith.mulf %503, %502 : vector<8x128xf32>
    %505 = arith.addf %465, %504 : vector<8x128xf32>
    %c1_203 = arith.constant 1 : index
    %506 = memref.load %arg7[%c1_203] : memref<27xf32, #tpu.memory_space<smem>>
    %c1_i32_204 = arith.constant 1 : i32
    %507 = tpu.dynamic_rotate %433 by %c1_i32_204 dim 0 : vector<8x128xf32>, i32 -> vector<8x128xf32>
    %c-1_i32_205 = arith.constant -1 : i32
    %508 = vector.broadcast %c-1_i32_205 : i32 to vector<8x128xi32>
    %509 = arith.addi %0, %508 : vector<8x128xi32>
    %c0_i32_206 = arith.constant 0 : i32
    %510 = vector.broadcast %c0_i32_206 : i32 to vector<8x128xi32>
    %511 = arith.cmpi sge, %509, %510 : vector<8x128xi32>
    %c-1_i32_207 = arith.constant -1 : i32
    %512 = vector.broadcast %c-1_i32_207 : i32 to vector<8x128xi32>
    %513 = arith.addi %0, %512 : vector<8x128xi32>
    %c8_i32_208 = arith.constant 8 : i32
    %514 = vector.broadcast %c8_i32_208 : i32 to vector<8x128xi32>
    %515 = arith.cmpi slt, %513, %514 : vector<8x128xi32>
    %516 = arith.andi %511, %515 : vector<8x128xi1>
    %cst_209 = arith.constant 0.000000e+00 : f32
    %517 = vector.broadcast %cst_209 : f32 to vector<8x128xf32>
    %518 = arith.select %516, %507, %517 : vector<8x128xi1>, vector<8x128xf32>
    %c8_i32_210 = arith.constant 8 : i32
    %519 = tpu.dynamic_rotate %518 by %c8_i32_210 dim 1 : vector<8x128xf32>, i32 -> vector<8x128xf32>
    %c-8_i32_211 = arith.constant -8 : i32
    %520 = vector.broadcast %c-8_i32_211 : i32 to vector<8x128xi32>
    %521 = arith.addi %17, %520 : vector<8x128xi32>
    %c0_i32_212 = arith.constant 0 : i32
    %522 = vector.broadcast %c0_i32_212 : i32 to vector<8x128xi32>
    %523 = arith.cmpi sge, %521, %522 : vector<8x128xi32>
    %c-8_i32_213 = arith.constant -8 : i32
    %524 = vector.broadcast %c-8_i32_213 : i32 to vector<8x128xi32>
    %525 = arith.addi %17, %524 : vector<8x128xi32>
    %c64_i32_214 = arith.constant 64 : i32
    %526 = vector.broadcast %c64_i32_214 : i32 to vector<8x128xi32>
    %527 = arith.cmpi slt, %525, %526 : vector<8x128xi32>
    %528 = arith.andi %523, %527 : vector<8x128xi1>
    %cst_215 = arith.constant 0.000000e+00 : f32
    %529 = vector.broadcast %cst_215 : f32 to vector<8x128xf32>
    %530 = arith.select %528, %519, %529 : vector<8x128xi1>, vector<8x128xf32>
    %531 = vector.broadcast %506 : f32 to vector<8x128xf32>
    %532 = arith.mulf %531, %530 : vector<8x128xf32>
    %533 = arith.addf %505, %532 : vector<8x128xf32>
    %c2_216 = arith.constant 2 : index
    %534 = memref.load %arg7[%c2_216] : memref<27xf32, #tpu.memory_space<smem>>
    %535 = vector.broadcast %534 : f32 to vector<8x128xf32>
    %536 = arith.mulf %535, %490 : vector<8x128xf32>
    %537 = arith.addf %533, %536 : vector<8x128xf32>
    %c3_217 = arith.constant 3 : index
    %538 = memref.load %arg7[%c3_217] : memref<27xf32, #tpu.memory_space<smem>>
    %c1_i32_218 = arith.constant 1 : i32
    %539 = tpu.dynamic_rotate %379 by %c1_i32_218 dim 0 : vector<8x128xf32>, i32 -> vector<8x128xf32>
    %c-1_i32_219 = arith.constant -1 : i32
    %540 = vector.broadcast %c-1_i32_219 : i32 to vector<8x128xi32>
    %541 = arith.addi %0, %540 : vector<8x128xi32>
    %c0_i32_220 = arith.constant 0 : i32
    %542 = vector.broadcast %c0_i32_220 : i32 to vector<8x128xi32>
    %543 = arith.cmpi sge, %541, %542 : vector<8x128xi32>
    %c-1_i32_221 = arith.constant -1 : i32
    %544 = vector.broadcast %c-1_i32_221 : i32 to vector<8x128xi32>
    %545 = arith.addi %0, %544 : vector<8x128xi32>
    %c8_i32_222 = arith.constant 8 : i32
    %546 = vector.broadcast %c8_i32_222 : i32 to vector<8x128xi32>
    %547 = arith.cmpi slt, %545, %546 : vector<8x128xi32>
    %548 = arith.andi %543, %547 : vector<8x128xi1>
    %cst_223 = arith.constant 0.000000e+00 : f32
    %549 = vector.broadcast %cst_223 : f32 to vector<8x128xf32>
    %550 = arith.select %548, %539, %549 : vector<8x128xi1>, vector<8x128xf32>
    %c1_i32_224 = arith.constant 1 : i32
    %551 = tpu.dynamic_rotate %550 by %c1_i32_224 dim 1 : vector<8x128xf32>, i32 -> vector<8x128xf32>
    %c-1_i32_225 = arith.constant -1 : i32
    %552 = vector.broadcast %c-1_i32_225 : i32 to vector<8x128xi32>
    %553 = arith.addi %33, %552 : vector<8x128xi32>
    %c0_i32_226 = arith.constant 0 : i32
    %554 = vector.broadcast %c0_i32_226 : i32 to vector<8x128xi32>
    %555 = arith.cmpi sge, %553, %554 : vector<8x128xi32>
    %c-1_i32_227 = arith.constant -1 : i32
    %556 = vector.broadcast %c-1_i32_227 : i32 to vector<8x128xi32>
    %557 = arith.addi %33, %556 : vector<8x128xi32>
    %c8_i32_228 = arith.constant 8 : i32
    %558 = vector.broadcast %c8_i32_228 : i32 to vector<8x128xi32>
    %559 = arith.cmpi slt, %557, %558 : vector<8x128xi32>
    %560 = arith.andi %555, %559 : vector<8x128xi1>
    %cst_229 = arith.constant 0.000000e+00 : f32
    %561 = vector.broadcast %cst_229 : f32 to vector<8x128xf32>
    %562 = arith.select %560, %551, %561 : vector<8x128xi1>, vector<8x128xf32>
    %563 = vector.broadcast %538 : f32 to vector<8x128xf32>
    %564 = arith.mulf %563, %562 : vector<8x128xf32>
    %565 = arith.addf %537, %564 : vector<8x128xf32>
    %c4_230 = arith.constant 4 : index
    %566 = memref.load %arg7[%c4_230] : memref<27xf32, #tpu.memory_space<smem>>
    %c1_i32_231 = arith.constant 1 : i32
    %567 = tpu.dynamic_rotate %351 by %c1_i32_231 dim 0 : vector<8x128xf32>, i32 -> vector<8x128xf32>
    %c-1_i32_232 = arith.constant -1 : i32
    %568 = vector.broadcast %c-1_i32_232 : i32 to vector<8x128xi32>
    %569 = arith.addi %0, %568 : vector<8x128xi32>
    %c0_i32_233 = arith.constant 0 : i32
    %570 = vector.broadcast %c0_i32_233 : i32 to vector<8x128xi32>
    %571 = arith.cmpi sge, %569, %570 : vector<8x128xi32>
    %c-1_i32_234 = arith.constant -1 : i32
    %572 = vector.broadcast %c-1_i32_234 : i32 to vector<8x128xi32>
    %573 = arith.addi %0, %572 : vector<8x128xi32>
    %c8_i32_235 = arith.constant 8 : i32
    %574 = vector.broadcast %c8_i32_235 : i32 to vector<8x128xi32>
    %575 = arith.cmpi slt, %573, %574 : vector<8x128xi32>
    %576 = arith.andi %571, %575 : vector<8x128xi1>
    %cst_236 = arith.constant 0.000000e+00 : f32
    %577 = vector.broadcast %cst_236 : f32 to vector<8x128xf32>
    %578 = arith.select %576, %567, %577 : vector<8x128xi1>, vector<8x128xf32>
    %579 = vector.broadcast %566 : f32 to vector<8x128xf32>
    %580 = arith.mulf %579, %578 : vector<8x128xf32>
    %581 = arith.addf %565, %580 : vector<8x128xf32>
    %c5_237 = arith.constant 5 : index
    %582 = memref.load %arg7[%c5_237] : memref<27xf32, #tpu.memory_space<smem>>
    %583 = vector.broadcast %582 : f32 to vector<8x128xf32>
    %584 = arith.mulf %583, %550 : vector<8x128xf32>
    %585 = arith.addf %581, %584 : vector<8x128xf32>
    %c6 = arith.constant 6 : index
    %586 = memref.load %arg7[%c6] : memref<27xf32, #tpu.memory_space<smem>>
    %c1_i32_238 = arith.constant 1 : i32
    %587 = tpu.dynamic_rotate %478 by %c1_i32_238 dim 1 : vector<8x128xf32>, i32 -> vector<8x128xf32>
    %c-1_i32_239 = arith.constant -1 : i32
    %588 = vector.broadcast %c-1_i32_239 : i32 to vector<8x128xi32>
    %589 = arith.addi %33, %588 : vector<8x128xi32>
    %c0_i32_240 = arith.constant 0 : i32
    %590 = vector.broadcast %c0_i32_240 : i32 to vector<8x128xi32>
    %591 = arith.cmpi sge, %589, %590 : vector<8x128xi32>
    %c-1_i32_241 = arith.constant -1 : i32
    %592 = vector.broadcast %c-1_i32_241 : i32 to vector<8x128xi32>
    %593 = arith.addi %33, %592 : vector<8x128xi32>
    %c8_i32_242 = arith.constant 8 : i32
    %594 = vector.broadcast %c8_i32_242 : i32 to vector<8x128xi32>
    %595 = arith.cmpi slt, %593, %594 : vector<8x128xi32>
    %596 = arith.andi %591, %595 : vector<8x128xi1>
    %cst_243 = arith.constant 0.000000e+00 : f32
    %597 = vector.broadcast %cst_243 : f32 to vector<8x128xf32>
    %598 = arith.select %596, %587, %597 : vector<8x128xi1>, vector<8x128xf32>
    %599 = vector.broadcast %586 : f32 to vector<8x128xf32>
    %600 = arith.mulf %599, %598 : vector<8x128xf32>
    %601 = arith.addf %585, %600 : vector<8x128xf32>
    %c7 = arith.constant 7 : index
    %602 = memref.load %arg7[%c7] : memref<27xf32, #tpu.memory_space<smem>>
    %603 = vector.broadcast %602 : f32 to vector<8x128xf32>
    %604 = arith.mulf %603, %518 : vector<8x128xf32>
    %605 = arith.addf %601, %604 : vector<8x128xf32>
    %c8 = arith.constant 8 : index
    %606 = memref.load %arg7[%c8] : memref<27xf32, #tpu.memory_space<smem>>
    %607 = vector.broadcast %606 : f32 to vector<8x128xf32>
    %608 = arith.mulf %607, %478 : vector<8x128xf32>
    %609 = arith.addf %605, %608 : vector<8x128xf32>
    %c9 = arith.constant 9 : index
    %610 = memref.load %arg7[%c9] : memref<27xf32, #tpu.memory_space<smem>>
    %c8_i32_244 = arith.constant 8 : i32
    %611 = tpu.dynamic_rotate %249 by %c8_i32_244 dim 1 : vector<8x128xf32>, i32 -> vector<8x128xf32>
    %c-8_i32_245 = arith.constant -8 : i32
    %612 = vector.broadcast %c-8_i32_245 : i32 to vector<8x128xi32>
    %613 = arith.addi %17, %612 : vector<8x128xi32>
    %c0_i32_246 = arith.constant 0 : i32
    %614 = vector.broadcast %c0_i32_246 : i32 to vector<8x128xi32>
    %615 = arith.cmpi sge, %613, %614 : vector<8x128xi32>
    %c-8_i32_247 = arith.constant -8 : i32
    %616 = vector.broadcast %c-8_i32_247 : i32 to vector<8x128xi32>
    %617 = arith.addi %17, %616 : vector<8x128xi32>
    %c64_i32_248 = arith.constant 64 : i32
    %618 = vector.broadcast %c64_i32_248 : i32 to vector<8x128xi32>
    %619 = arith.cmpi slt, %617, %618 : vector<8x128xi32>
    %620 = arith.andi %615, %619 : vector<8x128xi1>
    %cst_249 = arith.constant 0.000000e+00 : f32
    %621 = vector.broadcast %cst_249 : f32 to vector<8x128xf32>
    %622 = arith.select %620, %611, %621 : vector<8x128xi1>, vector<8x128xf32>
    %c1_i32_250 = arith.constant 1 : i32
    %623 = tpu.dynamic_rotate %622 by %c1_i32_250 dim 1 : vector<8x128xf32>, i32 -> vector<8x128xf32>
    %c-1_i32_251 = arith.constant -1 : i32
    %624 = vector.broadcast %c-1_i32_251 : i32 to vector<8x128xi32>
    %625 = arith.addi %33, %624 : vector<8x128xi32>
    %c0_i32_252 = arith.constant 0 : i32
    %626 = vector.broadcast %c0_i32_252 : i32 to vector<8x128xi32>
    %627 = arith.cmpi sge, %625, %626 : vector<8x128xi32>
    %c-1_i32_253 = arith.constant -1 : i32
    %628 = vector.broadcast %c-1_i32_253 : i32 to vector<8x128xi32>
    %629 = arith.addi %33, %628 : vector<8x128xi32>
    %c8_i32_254 = arith.constant 8 : i32
    %630 = vector.broadcast %c8_i32_254 : i32 to vector<8x128xi32>
    %631 = arith.cmpi slt, %629, %630 : vector<8x128xi32>
    %632 = arith.andi %627, %631 : vector<8x128xi1>
    %cst_255 = arith.constant 0.000000e+00 : f32
    %633 = vector.broadcast %cst_255 : f32 to vector<8x128xf32>
    %634 = arith.select %632, %623, %633 : vector<8x128xi1>, vector<8x128xf32>
    %635 = vector.broadcast %610 : f32 to vector<8x128xf32>
    %636 = arith.mulf %635, %634 : vector<8x128xf32>
    %637 = arith.addf %609, %636 : vector<8x128xf32>
    %c10 = arith.constant 10 : index
    %638 = memref.load %arg7[%c10] : memref<27xf32, #tpu.memory_space<smem>>
    %c8_i32_256 = arith.constant 8 : i32
    %639 = tpu.dynamic_rotate %221 by %c8_i32_256 dim 1 : vector<8x128xf32>, i32 -> vector<8x128xf32>
    %c-8_i32_257 = arith.constant -8 : i32
    %640 = vector.broadcast %c-8_i32_257 : i32 to vector<8x128xi32>
    %641 = arith.addi %17, %640 : vector<8x128xi32>
    %c0_i32_258 = arith.constant 0 : i32
    %642 = vector.broadcast %c0_i32_258 : i32 to vector<8x128xi32>
    %643 = arith.cmpi sge, %641, %642 : vector<8x128xi32>
    %c-8_i32_259 = arith.constant -8 : i32
    %644 = vector.broadcast %c-8_i32_259 : i32 to vector<8x128xi32>
    %645 = arith.addi %17, %644 : vector<8x128xi32>
    %c64_i32_260 = arith.constant 64 : i32
    %646 = vector.broadcast %c64_i32_260 : i32 to vector<8x128xi32>
    %647 = arith.cmpi slt, %645, %646 : vector<8x128xi32>
    %648 = arith.andi %643, %647 : vector<8x128xi1>
    %cst_261 = arith.constant 0.000000e+00 : f32
    %649 = vector.broadcast %cst_261 : f32 to vector<8x128xf32>
    %650 = arith.select %648, %639, %649 : vector<8x128xi1>, vector<8x128xf32>
    %651 = vector.broadcast %638 : f32 to vector<8x128xf32>
    %652 = arith.mulf %651, %650 : vector<8x128xf32>
    %653 = arith.addf %637, %652 : vector<8x128xf32>
    %c11 = arith.constant 11 : index
    %654 = memref.load %arg7[%c11] : memref<27xf32, #tpu.memory_space<smem>>
    %655 = vector.broadcast %654 : f32 to vector<8x128xf32>
    %656 = arith.mulf %655, %622 : vector<8x128xf32>
    %657 = arith.addf %653, %656 : vector<8x128xf32>
    %c12 = arith.constant 12 : index
    %658 = memref.load %arg7[%c12] : memref<27xf32, #tpu.memory_space<smem>>
    %c1_i32_262 = arith.constant 1 : i32
    %659 = tpu.dynamic_rotate %167 by %c1_i32_262 dim 1 : vector<8x128xf32>, i32 -> vector<8x128xf32>
    %c-1_i32_263 = arith.constant -1 : i32
    %660 = vector.broadcast %c-1_i32_263 : i32 to vector<8x128xi32>
    %661 = arith.addi %33, %660 : vector<8x128xi32>
    %c0_i32_264 = arith.constant 0 : i32
    %662 = vector.broadcast %c0_i32_264 : i32 to vector<8x128xi32>
    %663 = arith.cmpi sge, %661, %662 : vector<8x128xi32>
    %c-1_i32_265 = arith.constant -1 : i32
    %664 = vector.broadcast %c-1_i32_265 : i32 to vector<8x128xi32>
    %665 = arith.addi %33, %664 : vector<8x128xi32>
    %c8_i32_266 = arith.constant 8 : i32
    %666 = vector.broadcast %c8_i32_266 : i32 to vector<8x128xi32>
    %667 = arith.cmpi slt, %665, %666 : vector<8x128xi32>
    %668 = arith.andi %663, %667 : vector<8x128xi1>
    %cst_267 = arith.constant 0.000000e+00 : f32
    %669 = vector.broadcast %cst_267 : f32 to vector<8x128xf32>
    %670 = arith.select %668, %659, %669 : vector<8x128xi1>, vector<8x128xf32>
    %671 = vector.broadcast %658 : f32 to vector<8x128xf32>
    %672 = arith.mulf %671, %670 : vector<8x128xf32>
    %673 = arith.addf %657, %672 : vector<8x128xf32>
    %c13 = arith.constant 13 : index
    %674 = memref.load %arg7[%c13] : memref<27xf32, #tpu.memory_space<smem>>
    %675 = vector.broadcast %674 : f32 to vector<8x128xf32>
    %676 = arith.mulf %675, %139 : vector<8x128xf32>
    %677 = arith.addf %673, %676 : vector<8x128xf32>
    %c14 = arith.constant 14 : index
    %678 = memref.load %arg7[%c14] : memref<27xf32, #tpu.memory_space<smem>>
    %679 = vector.broadcast %678 : f32 to vector<8x128xf32>
    %680 = arith.mulf %679, %167 : vector<8x128xf32>
    %681 = arith.addf %677, %680 : vector<8x128xf32>
    %c15 = arith.constant 15 : index
    %682 = memref.load %arg7[%c15] : memref<27xf32, #tpu.memory_space<smem>>
    %c1_i32_268 = arith.constant 1 : i32
    %683 = tpu.dynamic_rotate %249 by %c1_i32_268 dim 1 : vector<8x128xf32>, i32 -> vector<8x128xf32>
    %c-1_i32_269 = arith.constant -1 : i32
    %684 = vector.broadcast %c-1_i32_269 : i32 to vector<8x128xi32>
    %685 = arith.addi %33, %684 : vector<8x128xi32>
    %c0_i32_270 = arith.constant 0 : i32
    %686 = vector.broadcast %c0_i32_270 : i32 to vector<8x128xi32>
    %687 = arith.cmpi sge, %685, %686 : vector<8x128xi32>
    %c-1_i32_271 = arith.constant -1 : i32
    %688 = vector.broadcast %c-1_i32_271 : i32 to vector<8x128xi32>
    %689 = arith.addi %33, %688 : vector<8x128xi32>
    %c8_i32_272 = arith.constant 8 : i32
    %690 = vector.broadcast %c8_i32_272 : i32 to vector<8x128xi32>
    %691 = arith.cmpi slt, %689, %690 : vector<8x128xi32>
    %692 = arith.andi %687, %691 : vector<8x128xi1>
    %cst_273 = arith.constant 0.000000e+00 : f32
    %693 = vector.broadcast %cst_273 : f32 to vector<8x128xf32>
    %694 = arith.select %692, %683, %693 : vector<8x128xi1>, vector<8x128xf32>
    %695 = vector.broadcast %682 : f32 to vector<8x128xf32>
    %696 = arith.mulf %695, %694 : vector<8x128xf32>
    %697 = arith.addf %681, %696 : vector<8x128xf32>
    %c16 = arith.constant 16 : index
    %698 = memref.load %arg7[%c16] : memref<27xf32, #tpu.memory_space<smem>>
    %699 = vector.broadcast %698 : f32 to vector<8x128xf32>
    %700 = arith.mulf %699, %221 : vector<8x128xf32>
    %701 = arith.addf %697, %700 : vector<8x128xf32>
    %c17 = arith.constant 17 : index
    %702 = memref.load %arg7[%c17] : memref<27xf32, #tpu.memory_space<smem>>
    %703 = vector.broadcast %702 : f32 to vector<8x128xf32>
    %704 = arith.mulf %703, %249 : vector<8x128xf32>
    %705 = arith.addf %701, %704 : vector<8x128xf32>
    %c18 = arith.constant 18 : index
    %706 = memref.load %arg7[%c18] : memref<27xf32, #tpu.memory_space<smem>>
    %c8_i32_274 = arith.constant 8 : i32
    %707 = tpu.dynamic_rotate %461 by %c8_i32_274 dim 1 : vector<8x128xf32>, i32 -> vector<8x128xf32>
    %c-8_i32_275 = arith.constant -8 : i32
    %708 = vector.broadcast %c-8_i32_275 : i32 to vector<8x128xi32>
    %709 = arith.addi %17, %708 : vector<8x128xi32>
    %c0_i32_276 = arith.constant 0 : i32
    %710 = vector.broadcast %c0_i32_276 : i32 to vector<8x128xi32>
    %711 = arith.cmpi sge, %709, %710 : vector<8x128xi32>
    %c-8_i32_277 = arith.constant -8 : i32
    %712 = vector.broadcast %c-8_i32_277 : i32 to vector<8x128xi32>
    %713 = arith.addi %17, %712 : vector<8x128xi32>
    %c64_i32_278 = arith.constant 64 : i32
    %714 = vector.broadcast %c64_i32_278 : i32 to vector<8x128xi32>
    %715 = arith.cmpi slt, %713, %714 : vector<8x128xi32>
    %716 = arith.andi %711, %715 : vector<8x128xi1>
    %cst_279 = arith.constant 0.000000e+00 : f32
    %717 = vector.broadcast %cst_279 : f32 to vector<8x128xf32>
    %718 = arith.select %716, %707, %717 : vector<8x128xi1>, vector<8x128xf32>
    %c1_i32_280 = arith.constant 1 : i32
    %719 = tpu.dynamic_rotate %718 by %c1_i32_280 dim 1 : vector<8x128xf32>, i32 -> vector<8x128xf32>
    %c-1_i32_281 = arith.constant -1 : i32
    %720 = vector.broadcast %c-1_i32_281 : i32 to vector<8x128xi32>
    %721 = arith.addi %33, %720 : vector<8x128xi32>
    %c0_i32_282 = arith.constant 0 : i32
    %722 = vector.broadcast %c0_i32_282 : i32 to vector<8x128xi32>
    %723 = arith.cmpi sge, %721, %722 : vector<8x128xi32>
    %c-1_i32_283 = arith.constant -1 : i32
    %724 = vector.broadcast %c-1_i32_283 : i32 to vector<8x128xi32>
    %725 = arith.addi %33, %724 : vector<8x128xi32>
    %c8_i32_284 = arith.constant 8 : i32
    %726 = vector.broadcast %c8_i32_284 : i32 to vector<8x128xi32>
    %727 = arith.cmpi slt, %725, %726 : vector<8x128xi32>
    %728 = arith.andi %723, %727 : vector<8x128xi1>
    %cst_285 = arith.constant 0.000000e+00 : f32
    %729 = vector.broadcast %cst_285 : f32 to vector<8x128xf32>
    %730 = arith.select %728, %719, %729 : vector<8x128xi1>, vector<8x128xf32>
    %731 = vector.broadcast %706 : f32 to vector<8x128xf32>
    %732 = arith.mulf %731, %730 : vector<8x128xf32>
    %733 = arith.addf %705, %732 : vector<8x128xf32>
    %c19 = arith.constant 19 : index
    %734 = memref.load %arg7[%c19] : memref<27xf32, #tpu.memory_space<smem>>
    %c8_i32_286 = arith.constant 8 : i32
    %735 = tpu.dynamic_rotate %433 by %c8_i32_286 dim 1 : vector<8x128xf32>, i32 -> vector<8x128xf32>
    %c-8_i32_287 = arith.constant -8 : i32
    %736 = vector.broadcast %c-8_i32_287 : i32 to vector<8x128xi32>
    %737 = arith.addi %17, %736 : vector<8x128xi32>
    %c0_i32_288 = arith.constant 0 : i32
    %738 = vector.broadcast %c0_i32_288 : i32 to vector<8x128xi32>
    %739 = arith.cmpi sge, %737, %738 : vector<8x128xi32>
    %c-8_i32_289 = arith.constant -8 : i32
    %740 = vector.broadcast %c-8_i32_289 : i32 to vector<8x128xi32>
    %741 = arith.addi %17, %740 : vector<8x128xi32>
    %c64_i32_290 = arith.constant 64 : i32
    %742 = vector.broadcast %c64_i32_290 : i32 to vector<8x128xi32>
    %743 = arith.cmpi slt, %741, %742 : vector<8x128xi32>
    %744 = arith.andi %739, %743 : vector<8x128xi1>
    %cst_291 = arith.constant 0.000000e+00 : f32
    %745 = vector.broadcast %cst_291 : f32 to vector<8x128xf32>
    %746 = arith.select %744, %735, %745 : vector<8x128xi1>, vector<8x128xf32>
    %747 = vector.broadcast %734 : f32 to vector<8x128xf32>
    %748 = arith.mulf %747, %746 : vector<8x128xf32>
    %749 = arith.addf %733, %748 : vector<8x128xf32>
    %c20 = arith.constant 20 : index
    %750 = memref.load %arg7[%c20] : memref<27xf32, #tpu.memory_space<smem>>
    %751 = vector.broadcast %750 : f32 to vector<8x128xf32>
    %752 = arith.mulf %751, %718 : vector<8x128xf32>
    %753 = arith.addf %749, %752 : vector<8x128xf32>
    %c21 = arith.constant 21 : index
    %754 = memref.load %arg7[%c21] : memref<27xf32, #tpu.memory_space<smem>>
    %c1_i32_292 = arith.constant 1 : i32
    %755 = tpu.dynamic_rotate %379 by %c1_i32_292 dim 1 : vector<8x128xf32>, i32 -> vector<8x128xf32>
    %c-1_i32_293 = arith.constant -1 : i32
    %756 = vector.broadcast %c-1_i32_293 : i32 to vector<8x128xi32>
    %757 = arith.addi %33, %756 : vector<8x128xi32>
    %c0_i32_294 = arith.constant 0 : i32
    %758 = vector.broadcast %c0_i32_294 : i32 to vector<8x128xi32>
    %759 = arith.cmpi sge, %757, %758 : vector<8x128xi32>
    %c-1_i32_295 = arith.constant -1 : i32
    %760 = vector.broadcast %c-1_i32_295 : i32 to vector<8x128xi32>
    %761 = arith.addi %33, %760 : vector<8x128xi32>
    %c8_i32_296 = arith.constant 8 : i32
    %762 = vector.broadcast %c8_i32_296 : i32 to vector<8x128xi32>
    %763 = arith.cmpi slt, %761, %762 : vector<8x128xi32>
    %764 = arith.andi %759, %763 : vector<8x128xi1>
    %cst_297 = arith.constant 0.000000e+00 : f32
    %765 = vector.broadcast %cst_297 : f32 to vector<8x128xf32>
    %766 = arith.select %764, %755, %765 : vector<8x128xi1>, vector<8x128xf32>
    %767 = vector.broadcast %754 : f32 to vector<8x128xf32>
    %768 = arith.mulf %767, %766 : vector<8x128xf32>
    %769 = arith.addf %753, %768 : vector<8x128xf32>
    %c22 = arith.constant 22 : index
    %770 = memref.load %arg7[%c22] : memref<27xf32, #tpu.memory_space<smem>>
    %771 = vector.broadcast %770 : f32 to vector<8x128xf32>
    %772 = arith.mulf %771, %351 : vector<8x128xf32>
    %773 = arith.addf %769, %772 : vector<8x128xf32>
    %c23 = arith.constant 23 : index
    %774 = memref.load %arg7[%c23] : memref<27xf32, #tpu.memory_space<smem>>
    %775 = vector.broadcast %774 : f32 to vector<8x128xf32>
    %776 = arith.mulf %775, %379 : vector<8x128xf32>
    %777 = arith.addf %773, %776 : vector<8x128xf32>
    %c24 = arith.constant 24 : index
    %778 = memref.load %arg7[%c24] : memref<27xf32, #tpu.memory_space<smem>>
    %c1_i32_298 = arith.constant 1 : i32
    %779 = tpu.dynamic_rotate %461 by %c1_i32_298 dim 1 : vector<8x128xf32>, i32 -> vector<8x128xf32>
    %c-1_i32_299 = arith.constant -1 : i32
    %780 = vector.broadcast %c-1_i32_299 : i32 to vector<8x128xi32>
    %781 = arith.addi %33, %780 : vector<8x128xi32>
    %c0_i32_300 = arith.constant 0 : i32
    %782 = vector.broadcast %c0_i32_300 : i32 to vector<8x128xi32>
    %783 = arith.cmpi sge, %781, %782 : vector<8x128xi32>
    %c-1_i32_301 = arith.constant -1 : i32
    %784 = vector.broadcast %c-1_i32_301 : i32 to vector<8x128xi32>
    %785 = arith.addi %33, %784 : vector<8x128xi32>
    %c8_i32_302 = arith.constant 8 : i32
    %786 = vector.broadcast %c8_i32_302 : i32 to vector<8x128xi32>
    %787 = arith.cmpi slt, %785, %786 : vector<8x128xi32>
    %788 = arith.andi %783, %787 : vector<8x128xi1>
    %cst_303 = arith.constant 0.000000e+00 : f32
    %789 = vector.broadcast %cst_303 : f32 to vector<8x128xf32>
    %790 = arith.select %788, %779, %789 : vector<8x128xi1>, vector<8x128xf32>
    %791 = vector.broadcast %778 : f32 to vector<8x128xf32>
    %792 = arith.mulf %791, %790 : vector<8x128xf32>
    %793 = arith.addf %777, %792 : vector<8x128xf32>
    %c25 = arith.constant 25 : index
    %794 = memref.load %arg7[%c25] : memref<27xf32, #tpu.memory_space<smem>>
    %795 = vector.broadcast %794 : f32 to vector<8x128xf32>
    %796 = arith.mulf %795, %433 : vector<8x128xf32>
    %797 = arith.addf %793, %796 : vector<8x128xf32>
    %c26 = arith.constant 26 : index
    %798 = memref.load %arg7[%c26] : memref<27xf32, #tpu.memory_space<smem>>
    %799 = vector.broadcast %798 : f32 to vector<8x128xf32>
    %800 = arith.mulf %799, %461 : vector<8x128xf32>
    %801 = arith.addf %797, %800 : vector<8x128xf32>
    %c0_304 = arith.constant 0 : index
    %c0_305 = arith.constant 0 : index
    %c0_306 = arith.constant 0 : index
    %c0_307 = arith.constant 0 : index
    %c0_308 = arith.constant 0 : index
    %802 = vector.load %arg9[%c0_304, %c0_305, %c0_306, %c0_307, %c0_308] : memref<2x2x2x8x128xf32, #tpu.memory_space<vmem>>, vector<1x1x1x8x128xf32>
    %803 = vector.shape_cast %802 : vector<1x1x1x8x128xf32> to vector<8x128xf32>
    %804 = vector.shape_cast %801 : vector<8x128xf32> to vector<1x1x1x8x128xf32>
    tpu.vector_store %arg9[%c0_304, %c0_305, %c0_306, %c0_307, %c0_308], %804 {strides = array<i32>} : memref<2x2x2x8x128xf32, #tpu.memory_space<vmem>>, vector<1x1x1x8x128xf32>,
    %cst_309 = arith.constant 0.000000e+00 : f32
    %805 = vector.broadcast %cst_309 : f32 to vector<8x128xf32>
    %c0_310 = arith.constant 0 : index
    %806 = memref.load %arg8[%c0_310] : memref<1xf32, #tpu.memory_space<smem>>
    %807 = vector.broadcast %806 : f32 to vector<8x128xf32>
    %808 = arith.addf %805, %807 : vector<8x128xf32>
    %c0_311 = arith.constant 0 : index
    %809 = memref.load %arg7[%c0_311] : memref<27xf32, #tpu.memory_space<smem>>
    %810 = vector.broadcast %809 : f32 to vector<8x128xf32>
    %811 = arith.mulf %810, %530 : vector<8x128xf32>
    %812 = arith.addf %808, %811 : vector<8x128xf32>
    %c1_312 = arith.constant 1 : index
    %813 = memref.load %arg7[%c1_312] : memref<27xf32, #tpu.memory_space<smem>>
    %814 = vector.broadcast %813 : f32 to vector<8x128xf32>
    %815 = arith.mulf %814, %490 : vector<8x128xf32>
    %816 = arith.addf %812, %815 : vector<8x128xf32>
    %c2_313 = arith.constant 2 : index
    %817 = memref.load %arg7[%c2_313] : memref<27xf32, #tpu.memory_space<smem>>
    %c127_i32_314 = arith.constant 127 : i32
    %818 = tpu.dynamic_rotate %530 by %c127_i32_314 dim 1 : vector<8x128xf32>, i32 -> vector<8x128xf32>
    %c1_i32_315 = arith.constant 1 : i32
    %819 = vector.broadcast %c1_i32_315 : i32 to vector<8x128xi32>
    %820 = arith.addi %33, %819 : vector<8x128xi32>
    %c0_i32_316 = arith.constant 0 : i32
    %821 = vector.broadcast %c0_i32_316 : i32 to vector<8x128xi32>
    %822 = arith.cmpi sge, %820, %821 : vector<8x128xi32>
    %c1_i32_317 = arith.constant 1 : i32
    %823 = vector.broadcast %c1_i32_317 : i32 to vector<8x128xi32>
    %824 = arith.addi %33, %823 : vector<8x128xi32>
    %c8_i32_318 = arith.constant 8 : i32
    %825 = vector.broadcast %c8_i32_318 : i32 to vector<8x128xi32>
    %826 = arith.cmpi slt, %824, %825 : vector<8x128xi32>
    %827 = arith.andi %822, %826 : vector<8x128xi1>
    %cst_319 = arith.constant 0.000000e+00 : f32
    %828 = vector.broadcast %cst_319 : f32 to vector<8x128xf32>
    %829 = arith.select %827, %818, %828 : vector<8x128xi1>, vector<8x128xf32>
    %830 = vector.broadcast %817 : f32 to vector<8x128xf32>
    %831 = arith.mulf %830, %829 : vector<8x128xf32>
    %832 = arith.addf %816, %831 : vector<8x128xf32>
    %c3_320 = arith.constant 3 : index
    %833 = memref.load %arg7[%c3_320] : memref<27xf32, #tpu.memory_space<smem>>
    %834 = vector.broadcast %833 : f32 to vector<8x128xf32>
    %835 = arith.mulf %834, %578 : vector<8x128xf32>
    %836 = arith.addf %832, %835 : vector<8x128xf32>
    %c4_321 = arith.constant 4 : index
    %837 = memref.load %arg7[%c4_321] : memref<27xf32, #tpu.memory_space<smem>>
    %838 = vector.broadcast %837 : f32 to vector<8x128xf32>
    %839 = arith.mulf %838, %550 : vector<8x128xf32>
    %840 = arith.addf %836, %839 : vector<8x128xf32>
    %c5_322 = arith.constant 5 : index
    %841 = memref.load %arg7[%c5_322] : memref<27xf32, #tpu.memory_space<smem>>
    %c127_i32_323 = arith.constant 127 : i32
    %842 = tpu.dynamic_rotate %578 by %c127_i32_323 dim 1 : vector<8x128xf32>, i32 -> vector<8x128xf32>
    %c1_i32_324 = arith.constant 1 : i32
    %843 = vector.broadcast %c1_i32_324 : i32 to vector<8x128xi32>
    %844 = arith.addi %33, %843 : vector<8x128xi32>
    %c0_i32_325 = arith.constant 0 : i32
    %845 = vector.broadcast %c0_i32_325 : i32 to vector<8x128xi32>
    %846 = arith.cmpi sge, %844, %845 : vector<8x128xi32>
    %c1_i32_326 = arith.constant 1 : i32
    %847 = vector.broadcast %c1_i32_326 : i32 to vector<8x128xi32>
    %848 = arith.addi %33, %847 : vector<8x128xi32>
    %c8_i32_327 = arith.constant 8 : i32
    %849 = vector.broadcast %c8_i32_327 : i32 to vector<8x128xi32>
    %850 = arith.cmpi slt, %848, %849 : vector<8x128xi32>
    %851 = arith.andi %846, %850 : vector<8x128xi1>
    %cst_328 = arith.constant 0.000000e+00 : f32
    %852 = vector.broadcast %cst_328 : f32 to vector<8x128xf32>
    %853 = arith.select %851, %842, %852 : vector<8x128xi1>, vector<8x128xf32>
    %854 = vector.broadcast %841 : f32 to vector<8x128xf32>
    %855 = arith.mulf %854, %853 : vector<8x128xf32>
    %856 = arith.addf %840, %855 : vector<8x128xf32>
    %c6_329 = arith.constant 6 : index
    %857 = memref.load %arg7[%c6_329] : memref<27xf32, #tpu.memory_space<smem>>
    %858 = vector.broadcast %857 : f32 to vector<8x128xf32>
    %859 = arith.mulf %858, %518 : vector<8x128xf32>
    %860 = arith.addf %856, %859 : vector<8x128xf32>
    %c7_330 = arith.constant 7 : index
    %861 = memref.load %arg7[%c7_330] : memref<27xf32, #tpu.memory_space<smem>>
    %862 = vector.broadcast %861 : f32 to vector<8x128xf32>
    %863 = arith.mulf %862, %478 : vector<8x128xf32>
    %864 = arith.addf %860, %863 : vector<8x128xf32>
    %c8_331 = arith.constant 8 : index
    %865 = memref.load %arg7[%c8_331] : memref<27xf32, #tpu.memory_space<smem>>
    %c127_i32_332 = arith.constant 127 : i32
    %866 = tpu.dynamic_rotate %518 by %c127_i32_332 dim 1 : vector<8x128xf32>, i32 -> vector<8x128xf32>
    %c1_i32_333 = arith.constant 1 : i32
    %867 = vector.broadcast %c1_i32_333 : i32 to vector<8x128xi32>
    %868 = arith.addi %33, %867 : vector<8x128xi32>
    %c0_i32_334 = arith.constant 0 : i32
    %869 = vector.broadcast %c0_i32_334 : i32 to vector<8x128xi32>
    %870 = arith.cmpi sge, %868, %869 : vector<8x128xi32>
    %c1_i32_335 = arith.constant 1 : i32
    %871 = vector.broadcast %c1_i32_335 : i32 to vector<8x128xi32>
    %872 = arith.addi %33, %871 : vector<8x128xi32>
    %c8_i32_336 = arith.constant 8 : i32
    %873 = vector.broadcast %c8_i32_336 : i32 to vector<8x128xi32>
    %874 = arith.cmpi slt, %872, %873 : vector<8x128xi32>
    %875 = arith.andi %870, %874 : vector<8x128xi1>
    %cst_337 = arith.constant 0.000000e+00 : f32
    %876 = vector.broadcast %cst_337 : f32 to vector<8x128xf32>
    %877 = arith.select %875, %866, %876 : vector<8x128xi1>, vector<8x128xf32>
    %878 = vector.broadcast %865 : f32 to vector<8x128xf32>
    %879 = arith.mulf %878, %877 : vector<8x128xf32>
    %880 = arith.addf %864, %879 : vector<8x128xf32>
    %c9_338 = arith.constant 9 : index
    %881 = memref.load %arg7[%c9_338] : memref<27xf32, #tpu.memory_space<smem>>
    %882 = vector.broadcast %881 : f32 to vector<8x128xf32>
    %883 = arith.mulf %882, %650 : vector<8x128xf32>
    %884 = arith.addf %880, %883 : vector<8x128xf32>
    %c10_339 = arith.constant 10 : index
    %885 = memref.load %arg7[%c10_339] : memref<27xf32, #tpu.memory_space<smem>>
    %886 = vector.broadcast %885 : f32 to vector<8x128xf32>
    %887 = arith.mulf %886, %622 : vector<8x128xf32>
    %888 = arith.addf %884, %887 : vector<8x128xf32>
    %c11_340 = arith.constant 11 : index
    %889 = memref.load %arg7[%c11_340] : memref<27xf32, #tpu.memory_space<smem>>
    %c127_i32_341 = arith.constant 127 : i32
    %890 = tpu.dynamic_rotate %650 by %c127_i32_341 dim 1 : vector<8x128xf32>, i32 -> vector<8x128xf32>
    %c1_i32_342 = arith.constant 1 : i32
    %891 = vector.broadcast %c1_i32_342 : i32 to vector<8x128xi32>
    %892 = arith.addi %33, %891 : vector<8x128xi32>
    %c0_i32_343 = arith.constant 0 : i32
    %893 = vector.broadcast %c0_i32_343 : i32 to vector<8x128xi32>
    %894 = arith.cmpi sge, %892, %893 : vector<8x128xi32>
    %c1_i32_344 = arith.constant 1 : i32
    %895 = vector.broadcast %c1_i32_344 : i32 to vector<8x128xi32>
    %896 = arith.addi %33, %895 : vector<8x128xi32>
    %c8_i32_345 = arith.constant 8 : i32
    %897 = vector.broadcast %c8_i32_345 : i32 to vector<8x128xi32>
    %898 = arith.cmpi slt, %896, %897 : vector<8x128xi32>
    %899 = arith.andi %894, %898 : vector<8x128xi1>
    %cst_346 = arith.constant 0.000000e+00 : f32
    %900 = vector.broadcast %cst_346 : f32 to vector<8x128xf32>
    %901 = arith.select %899, %890, %900 : vector<8x128xi1>, vector<8x128xf32>
    %902 = vector.broadcast %889 : f32 to vector<8x128xf32>
    %903 = arith.mulf %902, %901 : vector<8x128xf32>
    %904 = arith.addf %888, %903 : vector<8x128xf32>
    %c12_347 = arith.constant 12 : index
    %905 = memref.load %arg7[%c12_347] : memref<27xf32, #tpu.memory_space<smem>>
    %906 = vector.broadcast %905 : f32 to vector<8x128xf32>
    %907 = arith.mulf %906, %139 : vector<8x128xf32>
    %908 = arith.addf %904, %907 : vector<8x128xf32>
    %c13_348 = arith.constant 13 : index
    %909 = memref.load %arg7[%c13_348] : memref<27xf32, #tpu.memory_space<smem>>
    %910 = vector.broadcast %909 : f32 to vector<8x128xf32>
    %911 = arith.mulf %910, %167 : vector<8x128xf32>
    %912 = arith.addf %908, %911 : vector<8x128xf32>
    %c14_349 = arith.constant 14 : index
    %913 = memref.load %arg7[%c14_349] : memref<27xf32, #tpu.memory_space<smem>>
    %c127_i32_350 = arith.constant 127 : i32
    %914 = tpu.dynamic_rotate %139 by %c127_i32_350 dim 1 : vector<8x128xf32>, i32 -> vector<8x128xf32>
    %c1_i32_351 = arith.constant 1 : i32
    %915 = vector.broadcast %c1_i32_351 : i32 to vector<8x128xi32>
    %916 = arith.addi %33, %915 : vector<8x128xi32>
    %c0_i32_352 = arith.constant 0 : i32
    %917 = vector.broadcast %c0_i32_352 : i32 to vector<8x128xi32>
    %918 = arith.cmpi sge, %916, %917 : vector<8x128xi32>
    %c1_i32_353 = arith.constant 1 : i32
    %919 = vector.broadcast %c1_i32_353 : i32 to vector<8x128xi32>
    %920 = arith.addi %33, %919 : vector<8x128xi32>
    %c8_i32_354 = arith.constant 8 : i32
    %921 = vector.broadcast %c8_i32_354 : i32 to vector<8x128xi32>
    %922 = arith.cmpi slt, %920, %921 : vector<8x128xi32>
    %923 = arith.andi %918, %922 : vector<8x128xi1>
    %cst_355 = arith.constant 0.000000e+00 : f32
    %924 = vector.broadcast %cst_355 : f32 to vector<8x128xf32>
    %925 = arith.select %923, %914, %924 : vector<8x128xi1>, vector<8x128xf32>
    %926 = vector.broadcast %913 : f32 to vector<8x128xf32>
    %927 = arith.mulf %926, %925 : vector<8x128xf32>
    %928 = arith.addf %912, %927 : vector<8x128xf32>
    %c15_356 = arith.constant 15 : index
    %929 = memref.load %arg7[%c15_356] : memref<27xf32, #tpu.memory_space<smem>>
    %930 = vector.broadcast %929 : f32 to vector<8x128xf32>
    %931 = arith.mulf %930, %221 : vector<8x128xf32>
    %932 = arith.addf %928, %931 : vector<8x128xf32>
    %c16_357 = arith.constant 16 : index
    %933 = memref.load %arg7[%c16_357] : memref<27xf32, #tpu.memory_space<smem>>
    %934 = vector.broadcast %933 : f32 to vector<8x128xf32>
    %935 = arith.mulf %934, %249 : vector<8x128xf32>
    %936 = arith.addf %932, %935 : vector<8x128xf32>
    %c17_358 = arith.constant 17 : index
    %937 = memref.load %arg7[%c17_358] : memref<27xf32, #tpu.memory_space<smem>>
    %c127_i32_359 = arith.constant 127 : i32
    %938 = tpu.dynamic_rotate %221 by %c127_i32_359 dim 1 : vector<8x128xf32>, i32 -> vector<8x128xf32>
    %c1_i32_360 = arith.constant 1 : i32
    %939 = vector.broadcast %c1_i32_360 : i32 to vector<8x128xi32>
    %940 = arith.addi %33, %939 : vector<8x128xi32>
    %c0_i32_361 = arith.constant 0 : i32
    %941 = vector.broadcast %c0_i32_361 : i32 to vector<8x128xi32>
    %942 = arith.cmpi sge, %940, %941 : vector<8x128xi32>
    %c1_i32_362 = arith.constant 1 : i32
    %943 = vector.broadcast %c1_i32_362 : i32 to vector<8x128xi32>
    %944 = arith.addi %33, %943 : vector<8x128xi32>
    %c8_i32_363 = arith.constant 8 : i32
    %945 = vector.broadcast %c8_i32_363 : i32 to vector<8x128xi32>
    %946 = arith.cmpi slt, %944, %945 : vector<8x128xi32>
    %947 = arith.andi %942, %946 : vector<8x128xi1>
    %cst_364 = arith.constant 0.000000e+00 : f32
    %948 = vector.broadcast %cst_364 : f32 to vector<8x128xf32>
    %949 = arith.select %947, %938, %948 : vector<8x128xi1>, vector<8x128xf32>
    %950 = vector.broadcast %937 : f32 to vector<8x128xf32>
    %951 = arith.mulf %950, %949 : vector<8x128xf32>
    %952 = arith.addf %936, %951 : vector<8x128xf32>
    %c18_365 = arith.constant 18 : index
    %953 = memref.load %arg7[%c18_365] : memref<27xf32, #tpu.memory_space<smem>>
    %954 = vector.broadcast %953 : f32 to vector<8x128xf32>
    %955 = arith.mulf %954, %746 : vector<8x128xf32>
    %956 = arith.addf %952, %955 : vector<8x128xf32>
    %c19_366 = arith.constant 19 : index
    %957 = memref.load %arg7[%c19_366] : memref<27xf32, #tpu.memory_space<smem>>
    %958 = vector.broadcast %957 : f32 to vector<8x128xf32>
    %959 = arith.mulf %958, %718 : vector<8x128xf32>
    %960 = arith.addf %956, %959 : vector<8x128xf32>
    %c20_367 = arith.constant 20 : index
    %961 = memref.load %arg7[%c20_367] : memref<27xf32, #tpu.memory_space<smem>>
    %c127_i32_368 = arith.constant 127 : i32
    %962 = tpu.dynamic_rotate %746 by %c127_i32_368 dim 1 : vector<8x128xf32>, i32 -> vector<8x128xf32>
    %c1_i32_369 = arith.constant 1 : i32
    %963 = vector.broadcast %c1_i32_369 : i32 to vector<8x128xi32>
    %964 = arith.addi %33, %963 : vector<8x128xi32>
    %c0_i32_370 = arith.constant 0 : i32
    %965 = vector.broadcast %c0_i32_370 : i32 to vector<8x128xi32>
    %966 = arith.cmpi sge, %964, %965 : vector<8x128xi32>
    %c1_i32_371 = arith.constant 1 : i32
    %967 = vector.broadcast %c1_i32_371 : i32 to vector<8x128xi32>
    %968 = arith.addi %33, %967 : vector<8x128xi32>
    %c8_i32_372 = arith.constant 8 : i32
    %969 = vector.broadcast %c8_i32_372 : i32 to vector<8x128xi32>
    %970 = arith.cmpi slt, %968, %969 : vector<8x128xi32>
    %971 = arith.andi %966, %970 : vector<8x128xi1>
    %cst_373 = arith.constant 0.000000e+00 : f32
    %972 = vector.broadcast %cst_373 : f32 to vector<8x128xf32>
    %973 = arith.select %971, %962, %972 : vector<8x128xi1>, vector<8x128xf32>
    %974 = vector.broadcast %961 : f32 to vector<8x128xf32>
    %975 = arith.mulf %974, %973 : vector<8x128xf32>
    %976 = arith.addf %960, %975 : vector<8x128xf32>
    %c21_374 = arith.constant 21 : index
    %977 = memref.load %arg7[%c21_374] : memref<27xf32, #tpu.memory_space<smem>>
    %978 = vector.broadcast %977 : f32 to vector<8x128xf32>
    %979 = arith.mulf %978, %351 : vector<8x128xf32>
    %980 = arith.addf %976, %979 : vector<8x128xf32>
    %c22_375 = arith.constant 22 : index
    %981 = memref.load %arg7[%c22_375] : memref<27xf32, #tpu.memory_space<smem>>
    %982 = vector.broadcast %981 : f32 to vector<8x128xf32>
    %983 = arith.mulf %982, %379 : vector<8x128xf32>
    %984 = arith.addf %980, %983 : vector<8x128xf32>
    %c23_376 = arith.constant 23 : index
    %985 = memref.load %arg7[%c23_376] : memref<27xf32, #tpu.memory_space<smem>>
    %c127_i32_377 = arith.constant 127 : i32
    %986 = tpu.dynamic_rotate %351 by %c127_i32_377 dim 1 : vector<8x128xf32>, i32 -> vector<8x128xf32>
    %c1_i32_378 = arith.constant 1 : i32
    %987 = vector.broadcast %c1_i32_378 : i32 to vector<8x128xi32>
    %988 = arith.addi %33, %987 : vector<8x128xi32>
    %c0_i32_379 = arith.constant 0 : i32
    %989 = vector.broadcast %c0_i32_379 : i32 to vector<8x128xi32>
    %990 = arith.cmpi sge, %988, %989 : vector<8x128xi32>
    %c1_i32_380 = arith.constant 1 : i32
    %991 = vector.broadcast %c1_i32_380 : i32 to vector<8x128xi32>
    %992 = arith.addi %33, %991 : vector<8x128xi32>
    %c8_i32_381 = arith.constant 8 : i32
    %993 = vector.broadcast %c8_i32_381 : i32 to vector<8x128xi32>
    %994 = arith.cmpi slt, %992, %993 : vector<8x128xi32>
    %995 = arith.andi %990, %994 : vector<8x128xi1>
    %cst_382 = arith.constant 0.000000e+00 : f32
    %996 = vector.broadcast %cst_382 : f32 to vector<8x128xf32>
    %997 = arith.select %995, %986, %996 : vector<8x128xi1>, vector<8x128xf32>
    %998 = vector.broadcast %985 : f32 to vector<8x128xf32>
    %999 = arith.mulf %998, %997 : vector<8x128xf32>
    %1000 = arith.addf %984, %999 : vector<8x128xf32>
    %c24_383 = arith.constant 24 : index
    %1001 = memref.load %arg7[%c24_383] : memref<27xf32, #tpu.memory_space<smem>>
    %1002 = vector.broadcast %1001 : f32 to vector<8x128xf32>
    %1003 = arith.mulf %1002, %433 : vector<8x128xf32>
    %1004 = arith.addf %1000, %1003 : vector<8x128xf32>
    %c25_384 = arith.constant 25 : index
    %1005 = memref.load %arg7[%c25_384] : memref<27xf32, #tpu.memory_space<smem>>
    %1006 = vector.broadcast %1005 : f32 to vector<8x128xf32>
    %1007 = arith.mulf %1006, %461 : vector<8x128xf32>
    %1008 = arith.addf %1004, %1007 : vector<8x128xf32>
    %c26_385 = arith.constant 26 : index
    %1009 = memref.load %arg7[%c26_385] : memref<27xf32, #tpu.memory_space<smem>>
    %c127_i32_386 = arith.constant 127 : i32
    %1010 = tpu.dynamic_rotate %433 by %c127_i32_386 dim 1 : vector<8x128xf32>, i32 -> vector<8x128xf32>
    %c1_i32_387 = arith.constant 1 : i32
    %1011 = vector.broadcast %c1_i32_387 : i32 to vector<8x128xi32>
    %1012 = arith.addi %33, %1011 : vector<8x128xi32>
    %c0_i32_388 = arith.constant 0 : i32
    %1013 = vector.broadcast %c0_i32_388 : i32 to vector<8x128xi32>
    %1014 = arith.cmpi sge, %1012, %1013 : vector<8x128xi32>
    %c1_i32_389 = arith.constant 1 : i32
    %1015 = vector.broadcast %c1_i32_389 : i32 to vector<8x128xi32>
    %1016 = arith.addi %33, %1015 : vector<8x128xi32>
    %c8_i32_390 = arith.constant 8 : i32
    %1017 = vector.broadcast %c8_i32_390 : i32 to vector<8x128xi32>
    %1018 = arith.cmpi slt, %1016, %1017 : vector<8x128xi32>
    %1019 = arith.andi %1014, %1018 : vector<8x128xi1>
    %cst_391 = arith.constant 0.000000e+00 : f32
    %1020 = vector.broadcast %cst_391 : f32 to vector<8x128xf32>
    %1021 = arith.select %1019, %1010, %1020 : vector<8x128xi1>, vector<8x128xf32>
    %1022 = vector.broadcast %1009 : f32 to vector<8x128xf32>
    %1023 = arith.mulf %1022, %1021 : vector<8x128xf32>
    %1024 = arith.addf %1008, %1023 : vector<8x128xf32>
    %c0_392 = arith.constant 0 : index
    %c0_393 = arith.constant 0 : index
    %c1_394 = arith.constant 1 : index
    %c0_395 = arith.constant 0 : index
    %c0_396 = arith.constant 0 : index
    %1025 = vector.load %arg9[%c0_392, %c0_393, %c1_394, %c0_395, %c0_396] : memref<2x2x2x8x128xf32, #tpu.memory_space<vmem>>, vector<1x1x1x8x128xf32>
    %1026 = vector.shape_cast %1025 : vector<1x1x1x8x128xf32> to vector<8x128xf32>
    %1027 = vector.shape_cast %1024 : vector<8x128xf32> to vector<1x1x1x8x128xf32>
    tpu.vector_store %arg9[%c0_392, %c0_393, %c1_394, %c0_395, %c0_396], %1027 {strides = array<i32>} : memref<2x2x2x8x128xf32, #tpu.memory_space<vmem>>, vector<1x1x1x8x128xf32>,
    %cst_397 = arith.constant 0.000000e+00 : f32
    %1028 = vector.broadcast %cst_397 : f32 to vector<8x128xf32>
    %c0_398 = arith.constant 0 : index
    %1029 = memref.load %arg8[%c0_398] : memref<1xf32, #tpu.memory_space<smem>>
    %1030 = vector.broadcast %1029 : f32 to vector<8x128xf32>
    %1031 = arith.addf %1028, %1030 : vector<8x128xf32>
    %c0_399 = arith.constant 0 : index
    %1032 = memref.load %arg7[%c0_399] : memref<27xf32, #tpu.memory_space<smem>>
    %1033 = vector.broadcast %1032 : f32 to vector<8x128xf32>
    %1034 = arith.mulf %1033, %562 : vector<8x128xf32>
    %1035 = arith.addf %1031, %1034 : vector<8x128xf32>
    %c1_400 = arith.constant 1 : index
    %1036 = memref.load %arg7[%c1_400] : memref<27xf32, #tpu.memory_space<smem>>
    %1037 = vector.broadcast %1036 : f32 to vector<8x128xf32>
    %1038 = arith.mulf %1037, %578 : vector<8x128xf32>
    %1039 = arith.addf %1035, %1038 : vector<8x128xf32>
    %c2_401 = arith.constant 2 : index
    %1040 = memref.load %arg7[%c2_401] : memref<27xf32, #tpu.memory_space<smem>>
    %1041 = vector.broadcast %1040 : f32 to vector<8x128xf32>
    %1042 = arith.mulf %1041, %550 : vector<8x128xf32>
    %1043 = arith.addf %1039, %1042 : vector<8x128xf32>
    %c3_402 = arith.constant 3 : index
    %1044 = memref.load %arg7[%c3_402] : memref<27xf32, #tpu.memory_space<smem>>
    %1045 = vector.broadcast %1044 : f32 to vector<8x128xf32>
    %1046 = arith.mulf %1045, %598 : vector<8x128xf32>
    %1047 = arith.addf %1043, %1046 : vector<8x128xf32>
    %c4_403 = arith.constant 4 : index
    %1048 = memref.load %arg7[%c4_403] : memref<27xf32, #tpu.memory_space<smem>>
    %1049 = vector.broadcast %1048 : f32 to vector<8x128xf32>
    %1050 = arith.mulf %1049, %518 : vector<8x128xf32>
    %1051 = arith.addf %1047, %1050 : vector<8x128xf32>
    %c5_404 = arith.constant 5 : index
    %1052 = memref.load %arg7[%c5_404] : memref<27xf32, #tpu.memory_space<smem>>
    %1053 = vector.broadcast %1052 : f32 to vector<8x128xf32>
    %1054 = arith.mulf %1053, %478 : vector<8x128xf32>
    %1055 = arith.addf %1051, %1054 : vector<8x128xf32>
    %c6_405 = arith.constant 6 : index
    %1056 = memref.load %arg7[%c6_405] : memref<27xf32, #tpu.memory_space<smem>>
    %c120_i32_406 = arith.constant 120 : i32
    %1057 = tpu.dynamic_rotate %550 by %c120_i32_406 dim 1 : vector<8x128xf32>, i32 -> vector<8x128xf32>
    %c8_i32_407 = arith.constant 8 : i32
    %1058 = vector.broadcast %c8_i32_407 : i32 to vector<8x128xi32>
    %1059 = arith.addi %17, %1058 : vector<8x128xi32>
    %c0_i32_408 = arith.constant 0 : i32
    %1060 = vector.broadcast %c0_i32_408 : i32 to vector<8x128xi32>
    %1061 = arith.cmpi sge, %1059, %1060 : vector<8x128xi32>
    %c8_i32_409 = arith.constant 8 : i32
    %1062 = vector.broadcast %c8_i32_409 : i32 to vector<8x128xi32>
    %1063 = arith.addi %17, %1062 : vector<8x128xi32>
    %c64_i32_410 = arith.constant 64 : i32
    %1064 = vector.broadcast %c64_i32_410 : i32 to vector<8x128xi32>
    %1065 = arith.cmpi slt, %1063, %1064 : vector<8x128xi32>
    %1066 = arith.andi %1061, %1065 : vector<8x128xi1>
    %cst_411 = arith.constant 0.000000e+00 : f32
    %1067 = vector.broadcast %cst_411 : f32 to vector<8x128xf32>
    %1068 = arith.select %1066, %1057, %1067 : vector<8x128xi1>, vector<8x128xf32>
    %c1_i32_412 = arith.constant 1 : i32
    %1069 = tpu.dynamic_rotate %1068 by %c1_i32_412 dim 1 : vector<8x128xf32>, i32 -> vector<8x128xf32>
    %c-1_i32_413 = arith.constant -1 : i32
    %1070 = vector.broadcast %c-1_i32_413 : i32 to vector<8x128xi32>
    %1071 = arith.addi %33, %1070 : vector<8x128xi32>
    %c0_i32_414 = arith.constant 0 : i32
    %1072 = vector.broadcast %c0_i32_414 : i32 to vector<8x128xi32>
    %1073 = arith.cmpi sge, %1071, %1072 : vector<8x128xi32>
    %c-1_i32_415 = arith.constant -1 : i32
    %1074 = vector.broadcast %c-1_i32_415 : i32 to vector<8x128xi32>
    %1075 = arith.addi %33, %1074 : vector<8x128xi32>
    %c8_i32_416 = arith.constant 8 : i32
    %1076 = vector.broadcast %c8_i32_416 : i32 to vector<8x128xi32>
    %1077 = arith.cmpi slt, %1075, %1076 : vector<8x128xi32>
    %1078 = arith.andi %1073, %1077 : vector<8x128xi1>
    %cst_417 = arith.constant 0.000000e+00 : f32
    %1079 = vector.broadcast %cst_417 : f32 to vector<8x128xf32>
    %1080 = arith.select %1078, %1069, %1079 : vector<8x128xi1>, vector<8x128xf32>
    %1081 = vector.broadcast %1056 : f32 to vector<8x128xf32>
    %1082 = arith.mulf %1081, %1080 : vector<8x128xf32>
    %1083 = arith.addf %1055, %1082 : vector<8x128xf32>
    %c7_418 = arith.constant 7 : index
    %1084 = memref.load %arg7[%c7_418] : memref<27xf32, #tpu.memory_space<smem>>
    %c120_i32_419 = arith.constant 120 : i32
    %1085 = tpu.dynamic_rotate %578 by %c120_i32_419 dim 1 : vector<8x128xf32>, i32 -> vector<8x128xf32>
    %c8_i32_420 = arith.constant 8 : i32
    %1086 = vector.broadcast %c8_i32_420 : i32 to vector<8x128xi32>
    %1087 = arith.addi %17, %1086 : vector<8x128xi32>
    %c0_i32_421 = arith.constant 0 : i32
    %1088 = vector.broadcast %c0_i32_421 : i32 to vector<8x128xi32>
    %1089 = arith.cmpi sge, %1087, %1088 : vector<8x128xi32>
    %c8_i32_422 = arith.constant 8 : i32
    %1090 = vector.broadcast %c8_i32_422 : i32 to vector<8x128xi32>
    %1091 = arith.addi %17, %1090 : vector<8x128xi32>
    %c64_i32_423 = arith.constant 64 : i32
    %1092 = vector.broadcast %c64_i32_423 : i32 to vector<8x128xi32>
    %1093 = arith.cmpi slt, %1091, %1092 : vector<8x128xi32>
    %1094 = arith.andi %1089, %1093 : vector<8x128xi1>
    %cst_424 = arith.constant 0.000000e+00 : f32
    %1095 = vector.broadcast %cst_424 : f32 to vector<8x128xf32>
    %1096 = arith.select %1094, %1085, %1095 : vector<8x128xi1>, vector<8x128xf32>
    %1097 = vector.broadcast %1084 : f32 to vector<8x128xf32>
    %1098 = arith.mulf %1097, %1096 : vector<8x128xf32>
    %1099 = arith.addf %1083, %1098 : vector<8x128xf32>
    %c8_425 = arith.constant 8 : index
    %1100 = memref.load %arg7[%c8_425] : memref<27xf32, #tpu.memory_space<smem>>
    %1101 = vector.broadcast %1100 : f32 to vector<8x128xf32>
    %1102 = arith.mulf %1101, %1068 : vector<8x128xf32>
    %1103 = arith.addf %1099, %1102 : vector<8x128xf32>
    %c9_426 = arith.constant 9 : index
    %1104 = memref.load %arg7[%c9_426] : memref<27xf32, #tpu.memory_space<smem>>
    %1105 = vector.broadcast %1104 : f32 to vector<8x128xf32>
    %1106 = arith.mulf %1105, %670 : vector<8x128xf32>
    %1107 = arith.addf %1103, %1106 : vector<8x128xf32>
    %c10_427 = arith.constant 10 : index
    %1108 = memref.load %arg7[%c10_427] : memref<27xf32, #tpu.memory_space<smem>>
    %1109 = vector.broadcast %1108 : f32 to vector<8x128xf32>
    %1110 = arith.mulf %1109, %139 : vector<8x128xf32>
    %1111 = arith.addf %1107, %1110 : vector<8x128xf32>
    %c11_428 = arith.constant 11 : index
    %1112 = memref.load %arg7[%c11_428] : memref<27xf32, #tpu.memory_space<smem>>
    %1113 = vector.broadcast %1112 : f32 to vector<8x128xf32>
    %1114 = arith.mulf %1113, %167 : vector<8x128xf32>
    %1115 = arith.addf %1111, %1114 : vector<8x128xf32>
    %c12_429 = arith.constant 12 : index
    %1116 = memref.load %arg7[%c12_429] : memref<27xf32, #tpu.memory_space<smem>>
    %1117 = vector.broadcast %1116 : f32 to vector<8x128xf32>
    %1118 = arith.mulf %1117, %694 : vector<8x128xf32>
    %1119 = arith.addf %1115, %1118 : vector<8x128xf32>
    %c13_430 = arith.constant 13 : index
    %1120 = memref.load %arg7[%c13_430] : memref<27xf32, #tpu.memory_space<smem>>
    %1121 = vector.broadcast %1120 : f32 to vector<8x128xf32>
    %1122 = arith.mulf %1121, %221 : vector<8x128xf32>
    %1123 = arith.addf %1119, %1122 : vector<8x128xf32>
    %c14_431 = arith.constant 14 : index
    %1124 = memref.load %arg7[%c14_431] : memref<27xf32, #tpu.memory_space<smem>>
    %1125 = vector.broadcast %1124 : f32 to vector<8x128xf32>
    %1126 = arith.mulf %1125, %249 : vector<8x128xf32>
    %1127 = arith.addf %1123, %1126 : vector<8x128xf32>
    %c15_432 = arith.constant 15 : index
    %1128 = memref.load %arg7[%c15_432] : memref<27xf32, #tpu.memory_space<smem>>
    %c120_i32_433 = arith.constant 120 : i32
    %1129 = tpu.dynamic_rotate %167 by %c120_i32_433 dim 1 : vector<8x128xf32>, i32 -> vector<8x128xf32>
    %c8_i32_434 = arith.constant 8 : i32
    %1130 = vector.broadcast %c8_i32_434 : i32 to vector<8x128xi32>
    %1131 = arith.addi %17, %1130 : vector<8x128xi32>
    %c0_i32_435 = arith.constant 0 : i32
    %1132 = vector.broadcast %c0_i32_435 : i32 to vector<8x128xi32>
    %1133 = arith.cmpi sge, %1131, %1132 : vector<8x128xi32>
    %c8_i32_436 = arith.constant 8 : i32
    %1134 = vector.broadcast %c8_i32_436 : i32 to vector<8x128xi32>
    %1135 = arith.addi %17, %1134 : vector<8x128xi32>
    %c64_i32_437 = arith.constant 64 : i32
    %1136 = vector.broadcast %c64_i32_437 : i32 to vector<8x128xi32>
    %1137 = arith.cmpi slt, %1135, %1136 : vector<8x128xi32>
    %1138 = arith.andi %1133, %1137 : vector<8x128xi1>
    %cst_438 = arith.constant 0.000000e+00 : f32
    %1139 = vector.broadcast %cst_438 : f32 to vector<8x128xf32>
    %1140 = arith.select %1138, %1129, %1139 : vector<8x128xi1>, vector<8x128xf32>
    %c1_i32_439 = arith.constant 1 : i32
    %1141 = tpu.dynamic_rotate %1140 by %c1_i32_439 dim 1 : vector<8x128xf32>, i32 -> vector<8x128xf32>
    %c-1_i32_440 = arith.constant -1 : i32
    %1142 = vector.broadcast %c-1_i32_440 : i32 to vector<8x128xi32>
    %1143 = arith.addi %33, %1142 : vector<8x128xi32>
    %c0_i32_441 = arith.constant 0 : i32
    %1144 = vector.broadcast %c0_i32_441 : i32 to vector<8x128xi32>
    %1145 = arith.cmpi sge, %1143, %1144 : vector<8x128xi32>
    %c-1_i32_442 = arith.constant -1 : i32
    %1146 = vector.broadcast %c-1_i32_442 : i32 to vector<8x128xi32>
    %1147 = arith.addi %33, %1146 : vector<8x128xi32>
    %c8_i32_443 = arith.constant 8 : i32
    %1148 = vector.broadcast %c8_i32_443 : i32 to vector<8x128xi32>
    %1149 = arith.cmpi slt, %1147, %1148 : vector<8x128xi32>
    %1150 = arith.andi %1145, %1149 : vector<8x128xi1>
    %cst_444 = arith.constant 0.000000e+00 : f32
    %1151 = vector.broadcast %cst_444 : f32 to vector<8x128xf32>
    %1152 = arith.select %1150, %1141, %1151 : vector<8x128xi1>, vector<8x128xf32>
    %1153 = vector.broadcast %1128 : f32 to vector<8x128xf32>
    %1154 = arith.mulf %1153, %1152 : vector<8x128xf32>
    %1155 = arith.addf %1127, %1154 : vector<8x128xf32>
    %c16_445 = arith.constant 16 : index
    %1156 = memref.load %arg7[%c16_445] : memref<27xf32, #tpu.memory_space<smem>>
    %c120_i32_446 = arith.constant 120 : i32
    %1157 = tpu.dynamic_rotate %139 by %c120_i32_446 dim 1 : vector<8x128xf32>, i32 -> vector<8x128xf32>
    %c8_i32_447 = arith.constant 8 : i32
    %1158 = vector.broadcast %c8_i32_447 : i32 to vector<8x128xi32>
    %1159 = arith.addi %17, %1158 : vector<8x128xi32>
    %c0_i32_448 = arith.constant 0 : i32
    %1160 = vector.broadcast %c0_i32_448 : i32 to vector<8x128xi32>
    %1161 = arith.cmpi sge, %1159, %1160 : vector<8x128xi32>
    %c8_i32_449 = arith.constant 8 : i32
    %1162 = vector.broadcast %c8_i32_449 : i32 to vector<8x128xi32>
    %1163 = arith.addi %17, %1162 : vector<8x128xi32>
    %c64_i32_450 = arith.constant 64 : i32
    %1164 = vector.broadcast %c64_i32_450 : i32 to vector<8x128xi32>
    %1165 = arith.cmpi slt, %1163, %1164 : vector<8x128xi32>
    %1166 = arith.andi %1161, %1165 : vector<8x128xi1>
    %cst_451 = arith.constant 0.000000e+00 : f32
    %1167 = vector.broadcast %cst_451 : f32 to vector<8x128xf32>
    %1168 = arith.select %1166, %1157, %1167 : vector<8x128xi1>, vector<8x128xf32>
    %1169 = vector.broadcast %1156 : f32 to vector<8x128xf32>
    %1170 = arith.mulf %1169, %1168 : vector<8x128xf32>
    %1171 = arith.addf %1155, %1170 : vector<8x128xf32>
    %c17_452 = arith.constant 17 : index
    %1172 = memref.load %arg7[%c17_452] : memref<27xf32, #tpu.memory_space<smem>>
    %1173 = vector.broadcast %1172 : f32 to vector<8x128xf32>
    %1174 = arith.mulf %1173, %1140 : vector<8x128xf32>
    %1175 = arith.addf %1171, %1174 : vector<8x128xf32>
    %c18_453 = arith.constant 18 : index
    %1176 = memref.load %arg7[%c18_453] : memref<27xf32, #tpu.memory_space<smem>>
    %1177 = vector.broadcast %1176 : f32 to vector<8x128xf32>
    %1178 = arith.mulf %1177, %766 : vector<8x128xf32>
    %1179 = arith.addf %1175, %1178 : vector<8x128xf32>
    %c19_454 = arith.constant 19 : index
    %1180 = memref.load %arg7[%c19_454] : memref<27xf32, #tpu.memory_space<smem>>
    %1181 = vector.broadcast %1180 : f32 to vector<8x128xf32>
    %1182 = arith.mulf %1181, %351 : vector<8x128xf32>
    %1183 = arith.addf %1179, %1182 : vector<8x128xf32>
    %c20_455 = arith.constant 20 : index
    %1184 = memref.load %arg7[%c20_455] : memref<27xf32, #tpu.memory_space<smem>>
    %1185 = vector.broadcast %1184 : f32 to vector<8x128xf32>
    %1186 = arith.mulf %1185, %379 : vector<8x128xf32>
    %1187 = arith.addf %1183, %1186 : vector<8x128xf32>
    %c21_456 = arith.constant 21 : index
    %1188 = memref.load %arg7[%c21_456] : memref<27xf32, #tpu.memory_space<smem>>
    %1189 = vector.broadcast %1188 : f32 to vector<8x128xf32>
    %1190 = arith.mulf %1189, %790 : vector<8x128xf32>
    %1191 = arith.addf %1187, %1190 : vector<8x128xf32>
    %c22_457 = arith.constant 22 : index
    %1192 = memref.load %arg7[%c22_457] : memref<27xf32, #tpu.memory_space<smem>>
    %1193 = vector.broadcast %1192 : f32 to vector<8x128xf32>
    %1194 = arith.mulf %1193, %433 : vector<8x128xf32>
    %1195 = arith.addf %1191, %1194 : vector<8x128xf32>
    %c23_458 = arith.constant 23 : index
    %1196 = memref.load %arg7[%c23_458] : memref<27xf32, #tpu.memory_space<smem>>
    %1197 = vector.broadcast %1196 : f32 to vector<8x128xf32>
    %1198 = arith.mulf %1197, %461 : vector<8x128xf32>
    %1199 = arith.addf %1195, %1198 : vector<8x128xf32>
    %c24_459 = arith.constant 24 : index
    %1200 = memref.load %arg7[%c24_459] : memref<27xf32, #tpu.memory_space<smem>>
    %c120_i32_460 = arith.constant 120 : i32
    %1201 = tpu.dynamic_rotate %379 by %c120_i32_460 dim 1 : vector<8x128xf32>, i32 -> vector<8x128xf32>
    %c8_i32_461 = arith.constant 8 : i32
    %1202 = vector.broadcast %c8_i32_461 : i32 to vector<8x128xi32>
    %1203 = arith.addi %17, %1202 : vector<8x128xi32>
    %c0_i32_462 = arith.constant 0 : i32
    %1204 = vector.broadcast %c0_i32_462 : i32 to vector<8x128xi32>
    %1205 = arith.cmpi sge, %1203, %1204 : vector<8x128xi32>
    %c8_i32_463 = arith.constant 8 : i32
    %1206 = vector.broadcast %c8_i32_463 : i32 to vector<8x128xi32>
    %1207 = arith.addi %17, %1206 : vector<8x128xi32>
    %c64_i32_464 = arith.constant 64 : i32
    %1208 = vector.broadcast %c64_i32_464 : i32 to vector<8x128xi32>
    %1209 = arith.cmpi slt, %1207, %1208 : vector<8x128xi32>
    %1210 = arith.andi %1205, %1209 : vector<8x128xi1>
    %cst_465 = arith.constant 0.000000e+00 : f32
    %1211 = vector.broadcast %cst_465 : f32 to vector<8x128xf32>
    %1212 = arith.select %1210, %1201, %1211 : vector<8x128xi1>, vector<8x128xf32>
    %c1_i32_466 = arith.constant 1 : i32
    %1213 = tpu.dynamic_rotate %1212 by %c1_i32_466 dim 1 : vector<8x128xf32>, i32 -> vector<8x128xf32>
    %c-1_i32_467 = arith.constant -1 : i32
    %1214 = vector.broadcast %c-1_i32_467 : i32 to vector<8x128xi32>
    %1215 = arith.addi %33, %1214 : vector<8x128xi32>
    %c0_i32_468 = arith.constant 0 : i32
    %1216 = vector.broadcast %c0_i32_468 : i32 to vector<8x128xi32>
    %1217 = arith.cmpi sge, %1215, %1216 : vector<8x128xi32>
    %c-1_i32_469 = arith.constant -1 : i32
    %1218 = vector.broadcast %c-1_i32_469 : i32 to vector<8x128xi32>
    %1219 = arith.addi %33, %1218 : vector<8x128xi32>
    %c8_i32_470 = arith.constant 8 : i32
    %1220 = vector.broadcast %c8_i32_470 : i32 to vector<8x128xi32>
    %1221 = arith.cmpi slt, %1219, %1220 : vector<8x128xi32>
    %1222 = arith.andi %1217, %1221 : vector<8x128xi1>
    %cst_471 = arith.constant 0.000000e+00 : f32
    %1223 = vector.broadcast %cst_471 : f32 to vector<8x128xf32>
    %1224 = arith.select %1222, %1213, %1223 : vector<8x128xi1>, vector<8x128xf32>
    %1225 = vector.broadcast %1200 : f32 to vector<8x128xf32>
    %1226 = arith.mulf %1225, %1224 : vector<8x128xf32>
    %1227 = arith.addf %1199, %1226 : vector<8x128xf32>
    %c25_472 = arith.constant 25 : index
    %1228 = memref.load %arg7[%c25_472] : memref<27xf32, #tpu.memory_space<smem>>
    %c120_i32_473 = arith.constant 120 : i32
    %1229 = tpu.dynamic_rotate %351 by %c120_i32_473 dim 1 : vector<8x128xf32>, i32 -> vector<8x128xf32>
    %c8_i32_474 = arith.constant 8 : i32
    %1230 = vector.broadcast %c8_i32_474 : i32 to vector<8x128xi32>
    %1231 = arith.addi %17, %1230 : vector<8x128xi32>
    %c0_i32_475 = arith.constant 0 : i32
    %1232 = vector.broadcast %c0_i32_475 : i32 to vector<8x128xi32>
    %1233 = arith.cmpi sge, %1231, %1232 : vector<8x128xi32>
    %c8_i32_476 = arith.constant 8 : i32
    %1234 = vector.broadcast %c8_i32_476 : i32 to vector<8x128xi32>
    %1235 = arith.addi %17, %1234 : vector<8x128xi32>
    %c64_i32_477 = arith.constant 64 : i32
    %1236 = vector.broadcast %c64_i32_477 : i32 to vector<8x128xi32>
    %1237 = arith.cmpi slt, %1235, %1236 : vector<8x128xi32>
    %1238 = arith.andi %1233, %1237 : vector<8x128xi1>
    %cst_478 = arith.constant 0.000000e+00 : f32
    %1239 = vector.broadcast %cst_478 : f32 to vector<8x128xf32>
    %1240 = arith.select %1238, %1229, %1239 : vector<8x128xi1>, vector<8x128xf32>
    %1241 = vector.broadcast %1228 : f32 to vector<8x128xf32>
    %1242 = arith.mulf %1241, %1240 : vector<8x128xf32>
    %1243 = arith.addf %1227, %1242 : vector<8x128xf32>
    %c26_479 = arith.constant 26 : index
    %1244 = memref.load %arg7[%c26_479] : memref<27xf32, #tpu.memory_space<smem>>
    %1245 = vector.broadcast %1244 : f32 to vector<8x128xf32>
    %1246 = arith.mulf %1245, %1212 : vector<8x128xf32>
    %1247 = arith.addf %1243, %1246 : vector<8x128xf32>
    %c0_480 = arith.constant 0 : index
    %c1_481 = arith.constant 1 : index
    %c0_482 = arith.constant 0 : index
    %c0_483 = arith.constant 0 : index
    %c0_484 = arith.constant 0 : index
    %1248 = vector.load %arg9[%c0_480, %c1_481, %c0_482, %c0_483, %c0_484] : memref<2x2x2x8x128xf32, #tpu.memory_space<vmem>>, vector<1x1x1x8x128xf32>
    %1249 = vector.shape_cast %1248 : vector<1x1x1x8x128xf32> to vector<8x128xf32>
    %1250 = vector.shape_cast %1247 : vector<8x128xf32> to vector<1x1x1x8x128xf32>
    tpu.vector_store %arg9[%c0_480, %c1_481, %c0_482, %c0_483, %c0_484], %1250 {strides = array<i32>} : memref<2x2x2x8x128xf32, #tpu.memory_space<vmem>>, vector<1x1x1x8x128xf32>,
    %cst_485 = arith.constant 0.000000e+00 : f32
    %1251 = vector.broadcast %cst_485 : f32 to vector<8x128xf32>
    %c0_486 = arith.constant 0 : index
    %1252 = memref.load %arg8[%c0_486] : memref<1xf32, #tpu.memory_space<smem>>
    %1253 = vector.broadcast %1252 : f32 to vector<8x128xf32>
    %1254 = arith.addf %1251, %1253 : vector<8x128xf32>
    %c0_487 = arith.constant 0 : index
    %1255 = memref.load %arg7[%c0_487] : memref<27xf32, #tpu.memory_space<smem>>
    %1256 = vector.broadcast %1255 : f32 to vector<8x128xf32>
    %1257 = arith.mulf %1256, %578 : vector<8x128xf32>
    %1258 = arith.addf %1254, %1257 : vector<8x128xf32>
    %c1_488 = arith.constant 1 : index
    %1259 = memref.load %arg7[%c1_488] : memref<27xf32, #tpu.memory_space<smem>>
    %1260 = vector.broadcast %1259 : f32 to vector<8x128xf32>
    %1261 = arith.mulf %1260, %550 : vector<8x128xf32>
    %1262 = arith.addf %1258, %1261 : vector<8x128xf32>
    %c2_489 = arith.constant 2 : index
    %1263 = memref.load %arg7[%c2_489] : memref<27xf32, #tpu.memory_space<smem>>
    %1264 = vector.broadcast %1263 : f32 to vector<8x128xf32>
    %1265 = arith.mulf %1264, %853 : vector<8x128xf32>
    %1266 = arith.addf %1262, %1265 : vector<8x128xf32>
    %c3_490 = arith.constant 3 : index
    %1267 = memref.load %arg7[%c3_490] : memref<27xf32, #tpu.memory_space<smem>>
    %1268 = vector.broadcast %1267 : f32 to vector<8x128xf32>
    %1269 = arith.mulf %1268, %518 : vector<8x128xf32>
    %1270 = arith.addf %1266, %1269 : vector<8x128xf32>
    %c4_491 = arith.constant 4 : index
    %1271 = memref.load %arg7[%c4_491] : memref<27xf32, #tpu.memory_space<smem>>
    %1272 = vector.broadcast %1271 : f32 to vector<8x128xf32>
    %1273 = arith.mulf %1272, %478 : vector<8x128xf32>
    %1274 = arith.addf %1270, %1273 : vector<8x128xf32>
    %c5_492 = arith.constant 5 : index
    %1275 = memref.load %arg7[%c5_492] : memref<27xf32, #tpu.memory_space<smem>>
    %1276 = vector.broadcast %1275 : f32 to vector<8x128xf32>
    %1277 = arith.mulf %1276, %877 : vector<8x128xf32>
    %1278 = arith.addf %1274, %1277 : vector<8x128xf32>
    %c6_493 = arith.constant 6 : index
    %1279 = memref.load %arg7[%c6_493] : memref<27xf32, #tpu.memory_space<smem>>
    %1280 = vector.broadcast %1279 : f32 to vector<8x128xf32>
    %1281 = arith.mulf %1280, %1096 : vector<8x128xf32>
    %1282 = arith.addf %1278, %1281 : vector<8x128xf32>
    %c7_494 = arith.constant 7 : index
    %1283 = memref.load %arg7[%c7_494] : memref<27xf32, #tpu.memory_space<smem>>
    %1284 = vector.broadcast %1283 : f32 to vector<8x128xf32>
    %1285 = arith.mulf %1284, %1068 : vector<8x128xf32>
    %1286 = arith.addf %1282, %1285 : vector<8x128xf32>
    %c8_495 = arith.constant 8 : index
    %1287 = memref.load %arg7[%c8_495] : memref<27xf32, #tpu.memory_space<smem>>
    %c127_i32_496 = arith.constant 127 : i32
    %1288 = tpu.dynamic_rotate %1096 by %c127_i32_496 dim 1 : vector<8x128xf32>, i32 -> vector<8x128xf32>
    %c1_i32_497 = arith.constant 1 : i32
    %1289 = vector.broadcast %c1_i32_497 : i32 to vector<8x128xi32>
    %1290 = arith.addi %33, %1289 : vector<8x128xi32>
    %c0_i32_498 = arith.constant 0 : i32
    %1291 = vector.broadcast %c0_i32_498 : i32 to vector<8x128xi32>
    %1292 = arith.cmpi sge, %1290, %1291 : vector<8x128xi32>
    %c1_i32_499 = arith.constant 1 : i32
    %1293 = vector.broadcast %c1_i32_499 : i32 to vector<8x128xi32>
    %1294 = arith.addi %33, %1293 : vector<8x128xi32>
    %c8_i32_500 = arith.constant 8 : i32
    %1295 = vector.broadcast %c8_i32_500 : i32 to vector<8x128xi32>
    %1296 = arith.cmpi slt, %1294, %1295 : vector<8x128xi32>
    %1297 = arith.andi %1292, %1296 : vector<8x128xi1>
    %cst_501 = arith.constant 0.000000e+00 : f32
    %1298 = vector.broadcast %cst_501 : f32 to vector<8x128xf32>
    %1299 = arith.select %1297, %1288, %1298 : vector<8x128xi1>, vector<8x128xf32>
    %1300 = vector.broadcast %1287 : f32 to vector<8x128xf32>
    %1301 = arith.mulf %1300, %1299 : vector<8x128xf32>
    %1302 = arith.addf %1286, %1301 : vector<8x128xf32>
    %c9_502 = arith.constant 9 : index
    %1303 = memref.load %arg7[%c9_502] : memref<27xf32, #tpu.memory_space<smem>>
    %1304 = vector.broadcast %1303 : f32 to vector<8x128xf32>
    %1305 = arith.mulf %1304, %139 : vector<8x128xf32>
    %1306 = arith.addf %1302, %1305 : vector<8x128xf32>
    %c10_503 = arith.constant 10 : index
    %1307 = memref.load %arg7[%c10_503] : memref<27xf32, #tpu.memory_space<smem>>
    %1308 = vector.broadcast %1307 : f32 to vector<8x128xf32>
    %1309 = arith.mulf %1308, %167 : vector<8x128xf32>
    %1310 = arith.addf %1306, %1309 : vector<8x128xf32>
    %c11_504 = arith.constant 11 : index
    %1311 = memref.load %arg7[%c11_504] : memref<27xf32, #tpu.memory_space<smem>>
    %1312 = vector.broadcast %1311 : f32 to vector<8x128xf32>
    %1313 = arith.mulf %1312, %925 : vector<8x128xf32>
    %1314 = arith.addf %1310, %1313 : vector<8x128xf32>
    %c12_505 = arith.constant 12 : index
    %1315 = memref.load %arg7[%c12_505] : memref<27xf32, #tpu.memory_space<smem>>
    %1316 = vector.broadcast %1315 : f32 to vector<8x128xf32>
    %1317 = arith.mulf %1316, %221 : vector<8x128xf32>
    %1318 = arith.addf %1314, %1317 : vector<8x128xf32>
    %c13_506 = arith.constant 13 : index
    %1319 = memref.load %arg7[%c13_506] : memref<27xf32, #tpu.memory_space<smem>>
    %1320 = vector.broadcast %1319 : f32 to vector<8x128xf32>
    %1321 = arith.mulf %1320, %249 : vector<8x128xf32>
    %1322 = arith.addf %1318, %1321 : vector<8x128xf32>
    %c14_507 = arith.constant 14 : index
    %1323 = memref.load %arg7[%c14_507] : memref<27xf32, #tpu.memory_space<smem>>
    %1324 = vector.broadcast %1323 : f32 to vector<8x128xf32>
    %1325 = arith.mulf %1324, %949 : vector<8x128xf32>
    %1326 = arith.addf %1322, %1325 : vector<8x128xf32>
    %c15_508 = arith.constant 15 : index
    %1327 = memref.load %arg7[%c15_508] : memref<27xf32, #tpu.memory_space<smem>>
    %1328 = vector.broadcast %1327 : f32 to vector<8x128xf32>
    %1329 = arith.mulf %1328, %1168 : vector<8x128xf32>
    %1330 = arith.addf %1326, %1329 : vector<8x128xf32>
    %c16_509 = arith.constant 16 : index
    %1331 = memref.load %arg7[%c16_509] : memref<27xf32, #tpu.memory_space<smem>>
    %1332 = vector.broadcast %1331 : f32 to vector<8x128xf32>
    %1333 = arith.mulf %1332, %1140 : vector<8x128xf32>
    %1334 = arith.addf %1330, %1333 : vector<8x128xf32>
    %c17_510 = arith.constant 17 : index
    %1335 = memref.load %arg7[%c17_510] : memref<27xf32, #tpu.memory_space<smem>>
    %c127_i32_511 = arith.constant 127 : i32
    %1336 = tpu.dynamic_rotate %1168 by %c127_i32_511 dim 1 : vector<8x128xf32>, i32 -> vector<8x128xf32>
    %c1_i32_512 = arith.constant 1 : i32
    %1337 = vector.broadcast %c1_i32_512 : i32 to vector<8x128xi32>
    %1338 = arith.addi %33, %1337 : vector<8x128xi32>
    %c0_i32_513 = arith.constant 0 : i32
    %1339 = vector.broadcast %c0_i32_513 : i32 to vector<8x128xi32>
    %1340 = arith.cmpi sge, %1338, %1339 : vector<8x128xi32>
    %c1_i32_514 = arith.constant 1 : i32
    %1341 = vector.broadcast %c1_i32_514 : i32 to vector<8x128xi32>
    %1342 = arith.addi %33, %1341 : vector<8x128xi32>
    %c8_i32_515 = arith.constant 8 : i32
    %1343 = vector.broadcast %c8_i32_515 : i32 to vector<8x128xi32>
    %1344 = arith.cmpi slt, %1342, %1343 : vector<8x128xi32>
    %1345 = arith.andi %1340, %1344 : vector<8x128xi1>
    %cst_516 = arith.constant 0.000000e+00 : f32
    %1346 = vector.broadcast %cst_516 : f32 to vector<8x128xf32>
    %1347 = arith.select %1345, %1336, %1346 : vector<8x128xi1>, vector<8x128xf32>
    %1348 = vector.broadcast %1335 : f32 to vector<8x128xf32>
    %1349 = arith.mulf %1348, %1347 : vector<8x128xf32>
    %1350 = arith.addf %1334, %1349 : vector<8x128xf32>
    %c18_517 = arith.constant 18 : index
    %1351 = memref.load %arg7[%c18_517] : memref<27xf32, #tpu.memory_space<smem>>
    %1352 = vector.broadcast %1351 : f32 to vector<8x128xf32>
    %1353 = arith.mulf %1352, %351 : vector<8x128xf32>
    %1354 = arith.addf %1350, %1353 : vector<8x128xf32>
    %c19_518 = arith.constant 19 : index
    %1355 = memref.load %arg7[%c19_518] : memref<27xf32, #tpu.memory_space<smem>>
    %1356 = vector.broadcast %1355 : f32 to vector<8x128xf32>
    %1357 = arith.mulf %1356, %379 : vector<8x128xf32>
    %1358 = arith.addf %1354, %1357 : vector<8x128xf32>
    %c20_519 = arith.constant 20 : index
    %1359 = memref.load %arg7[%c20_519] : memref<27xf32, #tpu.memory_space<smem>>
    %1360 = vector.broadcast %1359 : f32 to vector<8x128xf32>
    %1361 = arith.mulf %1360, %997 : vector<8x128xf32>
    %1362 = arith.addf %1358, %1361 : vector<8x128xf32>
    %c21_520 = arith.constant 21 : index
    %1363 = memref.load %arg7[%c21_520] : memref<27xf32, #tpu.memory_space<smem>>
    %1364 = vector.broadcast %1363 : f32 to vector<8x128xf32>
    %1365 = arith.mulf %1364, %433 : vector<8x128xf32>
    %1366 = arith.addf %1362, %1365 : vector<8x128xf32>
    %c22_521 = arith.constant 22 : index
    %1367 = memref.load %arg7[%c22_521] : memref<27xf32, #tpu.memory_space<smem>>
    %1368 = vector.broadcast %1367 : f32 to vector<8x128xf32>
    %1369 = arith.mulf %1368, %461 : vector<8x128xf32>
    %1370 = arith.addf %1366, %1369 : vector<8x128xf32>
    %c23_522 = arith.constant 23 : index
    %1371 = memref.load %arg7[%c23_522] : memref<27xf32, #tpu.memory_space<smem>>
    %1372 = vector.broadcast %1371 : f32 to vector<8x128xf32>
    %1373 = arith.mulf %1372, %1021 : vector<8x128xf32>
    %1374 = arith.addf %1370, %1373 : vector<8x128xf32>
    %c24_523 = arith.constant 24 : index
    %1375 = memref.load %arg7[%c24_523] : memref<27xf32, #tpu.memory_space<smem>>
    %1376 = vector.broadcast %1375 : f32 to vector<8x128xf32>
    %1377 = arith.mulf %1376, %1240 : vector<8x128xf32>
    %1378 = arith.addf %1374, %1377 : vector<8x128xf32>
    %c25_524 = arith.constant 25 : index
    %1379 = memref.load %arg7[%c25_524] : memref<27xf32, #tpu.memory_space<smem>>
    %1380 = vector.broadcast %1379 : f32 to vector<8x128xf32>
    %1381 = arith.mulf %1380, %1212 : vector<8x128xf32>
    %1382 = arith.addf %1378, %1381 : vector<8x128xf32>
    %c26_525 = arith.constant 26 : index
    %1383 = memref.load %arg7[%c26_525] : memref<27xf32, #tpu.memory_space<smem>>
    %c127_i32_526 = arith.constant 127 : i32
    %1384 = tpu.dynamic_rotate %1240 by %c127_i32_526 dim 1 : vector<8x128xf32>, i32 -> vector<8x128xf32>
    %c1_i32_527 = arith.constant 1 : i32
    %1385 = vector.broadcast %c1_i32_527 : i32 to vector<8x128xi32>
    %1386 = arith.addi %33, %1385 : vector<8x128xi32>
    %c0_i32_528 = arith.constant 0 : i32
    %1387 = vector.broadcast %c0_i32_528 : i32 to vector<8x128xi32>
    %1388 = arith.cmpi sge, %1386, %1387 : vector<8x128xi32>
    %c1_i32_529 = arith.constant 1 : i32
    %1389 = vector.broadcast %c1_i32_529 : i32 to vector<8x128xi32>
    %1390 = arith.addi %33, %1389 : vector<8x128xi32>
    %c8_i32_530 = arith.constant 8 : i32
    %1391 = vector.broadcast %c8_i32_530 : i32 to vector<8x128xi32>
    %1392 = arith.cmpi slt, %1390, %1391 : vector<8x128xi32>
    %1393 = arith.andi %1388, %1392 : vector<8x128xi1>
    %cst_531 = arith.constant 0.000000e+00 : f32
    %1394 = vector.broadcast %cst_531 : f32 to vector<8x128xf32>
    %1395 = arith.select %1393, %1384, %1394 : vector<8x128xi1>, vector<8x128xf32>
    %1396 = vector.broadcast %1383 : f32 to vector<8x128xf32>
    %1397 = arith.mulf %1396, %1395 : vector<8x128xf32>
    %1398 = arith.addf %1382, %1397 : vector<8x128xf32>
    %c0_532 = arith.constant 0 : index
    %c1_533 = arith.constant 1 : index
    %c1_534 = arith.constant 1 : index
    %c0_535 = arith.constant 0 : index
    %c0_536 = arith.constant 0 : index
    %1399 = vector.load %arg9[%c0_532, %c1_533, %c1_534, %c0_535, %c0_536] : memref<2x2x2x8x128xf32, #tpu.memory_space<vmem>>, vector<1x1x1x8x128xf32>
    %1400 = vector.shape_cast %1399 : vector<1x1x1x8x128xf32> to vector<8x128xf32>
    %1401 = vector.shape_cast %1398 : vector<8x128xf32> to vector<1x1x1x8x128xf32>
    tpu.vector_store %arg9[%c0_532, %c1_533, %c1_534, %c0_535, %c0_536], %1401 {strides = array<i32>} : memref<2x2x2x8x128xf32, #tpu.memory_space<vmem>>, vector<1x1x1x8x128xf32>,
    %cst_537 = arith.constant 0.000000e+00 : f32
    %1402 = vector.broadcast %cst_537 : f32 to vector<8x128xf32>
    %c0_538 = arith.constant 0 : index
    %1403 = memref.load %arg8[%c0_538] : memref<1xf32, #tpu.memory_space<smem>>
    %1404 = vector.broadcast %1403 : f32 to vector<8x128xf32>
    %1405 = arith.addf %1402, %1404 : vector<8x128xf32>
    %c0_539 = arith.constant 0 : index
    %1406 = memref.load %arg7[%c0_539] : memref<27xf32, #tpu.memory_space<smem>>
    %1407 = vector.broadcast %1406 : f32 to vector<8x128xf32>
    %1408 = arith.mulf %1407, %634 : vector<8x128xf32>
    %1409 = arith.addf %1405, %1408 : vector<8x128xf32>
    %c1_540 = arith.constant 1 : index
    %1410 = memref.load %arg7[%c1_540] : memref<27xf32, #tpu.memory_space<smem>>
    %1411 = vector.broadcast %1410 : f32 to vector<8x128xf32>
    %1412 = arith.mulf %1411, %650 : vector<8x128xf32>
    %1413 = arith.addf %1409, %1412 : vector<8x128xf32>
    %c2_541 = arith.constant 2 : index
    %1414 = memref.load %arg7[%c2_541] : memref<27xf32, #tpu.memory_space<smem>>
    %1415 = vector.broadcast %1414 : f32 to vector<8x128xf32>
    %1416 = arith.mulf %1415, %622 : vector<8x128xf32>
    %1417 = arith.addf %1413, %1416 : vector<8x128xf32>
    %c3_542 = arith.constant 3 : index
    %1418 = memref.load %arg7[%c3_542] : memref<27xf32, #tpu.memory_space<smem>>
    %1419 = vector.broadcast %1418 : f32 to vector<8x128xf32>
    %1420 = arith.mulf %1419, %670 : vector<8x128xf32>
    %1421 = arith.addf %1417, %1420 : vector<8x128xf32>
    %c4_543 = arith.constant 4 : index
    %1422 = memref.load %arg7[%c4_543] : memref<27xf32, #tpu.memory_space<smem>>
    %1423 = vector.broadcast %1422 : f32 to vector<8x128xf32>
    %1424 = arith.mulf %1423, %139 : vector<8x128xf32>
    %1425 = arith.addf %1421, %1424 : vector<8x128xf32>
    %c5_544 = arith.constant 5 : index
    %1426 = memref.load %arg7[%c5_544] : memref<27xf32, #tpu.memory_space<smem>>
    %1427 = vector.broadcast %1426 : f32 to vector<8x128xf32>
    %1428 = arith.mulf %1427, %167 : vector<8x128xf32>
    %1429 = arith.addf %1425, %1428 : vector<8x128xf32>
    %c6_545 = arith.constant 6 : index
    %1430 = memref.load %arg7[%c6_545] : memref<27xf32, #tpu.memory_space<smem>>
    %1431 = vector.broadcast %1430 : f32 to vector<8x128xf32>
    %1432 = arith.mulf %1431, %694 : vector<8x128xf32>
    %1433 = arith.addf %1429, %1432 : vector<8x128xf32>
    %c7_546 = arith.constant 7 : index
    %1434 = memref.load %arg7[%c7_546] : memref<27xf32, #tpu.memory_space<smem>>
    %1435 = vector.broadcast %1434 : f32 to vector<8x128xf32>
    %1436 = arith.mulf %1435, %221 : vector<8x128xf32>
    %1437 = arith.addf %1433, %1436 : vector<8x128xf32>
    %c8_547 = arith.constant 8 : index
    %1438 = memref.load %arg7[%c8_547] : memref<27xf32, #tpu.memory_space<smem>>
    %1439 = vector.broadcast %1438 : f32 to vector<8x128xf32>
    %1440 = arith.mulf %1439, %249 : vector<8x128xf32>
    %1441 = arith.addf %1437, %1440 : vector<8x128xf32>
    %c9_548 = arith.constant 9 : index
    %1442 = memref.load %arg7[%c9_548] : memref<27xf32, #tpu.memory_space<smem>>
    %1443 = vector.broadcast %1442 : f32 to vector<8x128xf32>
    %1444 = arith.mulf %1443, %730 : vector<8x128xf32>
    %1445 = arith.addf %1441, %1444 : vector<8x128xf32>
    %c10_549 = arith.constant 10 : index
    %1446 = memref.load %arg7[%c10_549] : memref<27xf32, #tpu.memory_space<smem>>
    %1447 = vector.broadcast %1446 : f32 to vector<8x128xf32>
    %1448 = arith.mulf %1447, %746 : vector<8x128xf32>
    %1449 = arith.addf %1445, %1448 : vector<8x128xf32>
    %c11_550 = arith.constant 11 : index
    %1450 = memref.load %arg7[%c11_550] : memref<27xf32, #tpu.memory_space<smem>>
    %1451 = vector.broadcast %1450 : f32 to vector<8x128xf32>
    %1452 = arith.mulf %1451, %718 : vector<8x128xf32>
    %1453 = arith.addf %1449, %1452 : vector<8x128xf32>
    %c12_551 = arith.constant 12 : index
    %1454 = memref.load %arg7[%c12_551] : memref<27xf32, #tpu.memory_space<smem>>
    %1455 = vector.broadcast %1454 : f32 to vector<8x128xf32>
    %1456 = arith.mulf %1455, %766 : vector<8x128xf32>
    %1457 = arith.addf %1453, %1456 : vector<8x128xf32>
    %c13_552 = arith.constant 13 : index
    %1458 = memref.load %arg7[%c13_552] : memref<27xf32, #tpu.memory_space<smem>>
    %1459 = vector.broadcast %1458 : f32 to vector<8x128xf32>
    %1460 = arith.mulf %1459, %351 : vector<8x128xf32>
    %1461 = arith.addf %1457, %1460 : vector<8x128xf32>
    %c14_553 = arith.constant 14 : index
    %1462 = memref.load %arg7[%c14_553] : memref<27xf32, #tpu.memory_space<smem>>
    %1463 = vector.broadcast %1462 : f32 to vector<8x128xf32>
    %1464 = arith.mulf %1463, %379 : vector<8x128xf32>
    %1465 = arith.addf %1461, %1464 : vector<8x128xf32>
    %c15_554 = arith.constant 15 : index
    %1466 = memref.load %arg7[%c15_554] : memref<27xf32, #tpu.memory_space<smem>>
    %1467 = vector.broadcast %1466 : f32 to vector<8x128xf32>
    %1468 = arith.mulf %1467, %790 : vector<8x128xf32>
    %1469 = arith.addf %1465, %1468 : vector<8x128xf32>
    %c16_555 = arith.constant 16 : index
    %1470 = memref.load %arg7[%c16_555] : memref<27xf32, #tpu.memory_space<smem>>
    %1471 = vector.broadcast %1470 : f32 to vector<8x128xf32>
    %1472 = arith.mulf %1471, %433 : vector<8x128xf32>
    %1473 = arith.addf %1469, %1472 : vector<8x128xf32>
    %c17_556 = arith.constant 17 : index
    %1474 = memref.load %arg7[%c17_556] : memref<27xf32, #tpu.memory_space<smem>>
    %1475 = vector.broadcast %1474 : f32 to vector<8x128xf32>
    %1476 = arith.mulf %1475, %461 : vector<8x128xf32>
    %1477 = arith.addf %1473, %1476 : vector<8x128xf32>
    %c18_557 = arith.constant 18 : index
    %1478 = memref.load %arg7[%c18_557] : memref<27xf32, #tpu.memory_space<smem>>
    %c7_i32_558 = arith.constant 7 : i32
    %1479 = tpu.dynamic_rotate %249 by %c7_i32_558 dim 0 : vector<8x128xf32>, i32 -> vector<8x128xf32>
    %c1_i32_559 = arith.constant 1 : i32
    %1480 = vector.broadcast %c1_i32_559 : i32 to vector<8x128xi32>
    %1481 = arith.addi %0, %1480 : vector<8x128xi32>
    %c0_i32_560 = arith.constant 0 : i32
    %1482 = vector.broadcast %c0_i32_560 : i32 to vector<8x128xi32>
    %1483 = arith.cmpi sge, %1481, %1482 : vector<8x128xi32>
    %c1_i32_561 = arith.constant 1 : i32
    %1484 = vector.broadcast %c1_i32_561 : i32 to vector<8x128xi32>
    %1485 = arith.addi %0, %1484 : vector<8x128xi32>
    %c8_i32_562 = arith.constant 8 : i32
    %1486 = vector.broadcast %c8_i32_562 : i32 to vector<8x128xi32>
    %1487 = arith.cmpi slt, %1485, %1486 : vector<8x128xi32>
    %1488 = arith.andi %1483, %1487 : vector<8x128xi1>
    %cst_563 = arith.constant 0.000000e+00 : f32
    %1489 = vector.broadcast %cst_563 : f32 to vector<8x128xf32>
    %1490 = arith.select %1488, %1479, %1489 : vector<8x128xi1>, vector<8x128xf32>
    %c8_i32_564 = arith.constant 8 : i32
    %1491 = tpu.dynamic_rotate %1490 by %c8_i32_564 dim 1 : vector<8x128xf32>, i32 -> vector<8x128xf32>
    %c-8_i32_565 = arith.constant -8 : i32
    %1492 = vector.broadcast %c-8_i32_565 : i32 to vector<8x128xi32>
    %1493 = arith.addi %17, %1492 : vector<8x128xi32>
    %c0_i32_566 = arith.constant 0 : i32
    %1494 = vector.broadcast %c0_i32_566 : i32 to vector<8x128xi32>
    %1495 = arith.cmpi sge, %1493, %1494 : vector<8x128xi32>
    %c-8_i32_567 = arith.constant -8 : i32
    %1496 = vector.broadcast %c-8_i32_567 : i32 to vector<8x128xi32>
    %1497 = arith.addi %17, %1496 : vector<8x128xi32>
    %c64_i32_568 = arith.constant 64 : i32
    %1498 = vector.broadcast %c64_i32_568 : i32 to vector<8x128xi32>
    %1499 = arith.cmpi slt, %1497, %1498 : vector<8x128xi32>
    %1500 = arith.andi %1495, %1499 : vector<8x128xi1>
    %cst_569 = arith.constant 0.000000e+00 : f32
    %1501 = vector.broadcast %cst_569 : f32 to vector<8x128xf32>
    %1502 = arith.select %1500, %1491, %1501 : vector<8x128xi1>, vector<8x128xf32>
    %c1_i32_570 = arith.constant 1 : i32
    %1503 = tpu.dynamic_rotate %1502 by %c1_i32_570 dim 1 : vector<8x128xf32>, i32 -> vector<8x128xf32>
    %c-1_i32_571 = arith.constant -1 : i32
    %1504 = vector.broadcast %c-1_i32_571 : i32 to vector<8x128xi32>
    %1505 = arith.addi %33, %1504 : vector<8x128xi32>
    %c0_i32_572 = arith.constant 0 : i32
    %1506 = vector.broadcast %c0_i32_572 : i32 to vector<8x128xi32>
    %1507 = arith.cmpi sge, %1505, %1506 : vector<8x128xi32>
    %c-1_i32_573 = arith.constant -1 : i32
    %1508 = vector.broadcast %c-1_i32_573 : i32 to vector<8x128xi32>
    %1509 = arith.addi %33, %1508 : vector<8x128xi32>
    %c8_i32_574 = arith.constant 8 : i32
    %1510 = vector.broadcast %c8_i32_574 : i32 to vector<8x128xi32>
    %1511 = arith.cmpi slt, %1509, %1510 : vector<8x128xi32>
    %1512 = arith.andi %1507, %1511 : vector<8x128xi1>
    %cst_575 = arith.constant 0.000000e+00 : f32
    %1513 = vector.broadcast %cst_575 : f32 to vector<8x128xf32>
    %1514 = arith.select %1512, %1503, %1513 : vector<8x128xi1>, vector<8x128xf32>
    %1515 = vector.broadcast %1478 : f32 to vector<8x128xf32>
    %1516 = arith.mulf %1515, %1514 : vector<8x128xf32>
    %1517 = arith.addf %1477, %1516 : vector<8x128xf32>
    %c19_576 = arith.constant 19 : index
    %1518 = memref.load %arg7[%c19_576] : memref<27xf32, #tpu.memory_space<smem>>
    %c7_i32_577 = arith.constant 7 : i32
    %1519 = tpu.dynamic_rotate %221 by %c7_i32_577 dim 0 : vector<8x128xf32>, i32 -> vector<8x128xf32>
    %c1_i32_578 = arith.constant 1 : i32
    %1520 = vector.broadcast %c1_i32_578 : i32 to vector<8x128xi32>
    %1521 = arith.addi %0, %1520 : vector<8x128xi32>
    %c0_i32_579 = arith.constant 0 : i32
    %1522 = vector.broadcast %c0_i32_579 : i32 to vector<8x128xi32>
    %1523 = arith.cmpi sge, %1521, %1522 : vector<8x128xi32>
    %c1_i32_580 = arith.constant 1 : i32
    %1524 = vector.broadcast %c1_i32_580 : i32 to vector<8x128xi32>
    %1525 = arith.addi %0, %1524 : vector<8x128xi32>
    %c8_i32_581 = arith.constant 8 : i32
    %1526 = vector.broadcast %c8_i32_581 : i32 to vector<8x128xi32>
    %1527 = arith.cmpi slt, %1525, %1526 : vector<8x128xi32>
    %1528 = arith.andi %1523, %1527 : vector<8x128xi1>
    %cst_582 = arith.constant 0.000000e+00 : f32
    %1529 = vector.broadcast %cst_582 : f32 to vector<8x128xf32>
    %1530 = arith.select %1528, %1519, %1529 : vector<8x128xi1>, vector<8x128xf32>
    %c8_i32_583 = arith.constant 8 : i32
    %1531 = tpu.dynamic_rotate %1530 by %c8_i32_583 dim 1 : vector<8x128xf32>, i32 -> vector<8x128xf32>
    %c-8_i32_584 = arith.constant -8 : i32
    %1532 = vector.broadcast %c-8_i32_584 : i32 to vector<8x128xi32>
    %1533 = arith.addi %17, %1532 : vector<8x128xi32>
    %c0_i32_585 = arith.constant 0 : i32
    %1534 = vector.broadcast %c0_i32_585 : i32 to vector<8x128xi32>
    %1535 = arith.cmpi sge, %1533, %1534 : vector<8x128xi32>
    %c-8_i32_586 = arith.constant -8 : i32
    %1536 = vector.broadcast %c-8_i32_586 : i32 to vector<8x128xi32>
    %1537 = arith.addi %17, %1536 : vector<8x128xi32>
    %c64_i32_587 = arith.constant 64 : i32
    %1538 = vector.broadcast %c64_i32_587 : i32 to vector<8x128xi32>
    %1539 = arith.cmpi slt, %1537, %1538 : vector<8x128xi32>
    %1540 = arith.andi %1535, %1539 : vector<8x128xi1>
    %cst_588 = arith.constant 0.000000e+00 : f32
    %1541 = vector.broadcast %cst_588 : f32 to vector<8x128xf32>
    %1542 = arith.select %1540, %1531, %1541 : vector<8x128xi1>, vector<8x128xf32>
    %1543 = vector.broadcast %1518 : f32 to vector<8x128xf32>
    %1544 = arith.mulf %1543, %1542 : vector<8x128xf32>
    %1545 = arith.addf %1517, %1544 : vector<8x128xf32>
    %c20_589 = arith.constant 20 : index
    %1546 = memref.load %arg7[%c20_589] : memref<27xf32, #tpu.memory_space<smem>>
    %1547 = vector.broadcast %1546 : f32 to vector<8x128xf32>
    %1548 = arith.mulf %1547, %1502 : vector<8x128xf32>
    %1549 = arith.addf %1545, %1548 : vector<8x128xf32>
    %c21_590 = arith.constant 21 : index
    %1550 = memref.load %arg7[%c21_590] : memref<27xf32, #tpu.memory_space<smem>>
    %c7_i32_591 = arith.constant 7 : i32
    %1551 = tpu.dynamic_rotate %167 by %c7_i32_591 dim 0 : vector<8x128xf32>, i32 -> vector<8x128xf32>
    %c1_i32_592 = arith.constant 1 : i32
    %1552 = vector.broadcast %c1_i32_592 : i32 to vector<8x128xi32>
    %1553 = arith.addi %0, %1552 : vector<8x128xi32>
    %c0_i32_593 = arith.constant 0 : i32
    %1554 = vector.broadcast %c0_i32_593 : i32 to vector<8x128xi32>
    %1555 = arith.cmpi sge, %1553, %1554 : vector<8x128xi32>
    %c1_i32_594 = arith.constant 1 : i32
    %1556 = vector.broadcast %c1_i32_594 : i32 to vector<8x128xi32>
    %1557 = arith.addi %0, %1556 : vector<8x128xi32>
    %c8_i32_595 = arith.constant 8 : i32
    %1558 = vector.broadcast %c8_i32_595 : i32 to vector<8x128xi32>
    %1559 = arith.cmpi slt, %1557, %1558 : vector<8x128xi32>
    %1560 = arith.andi %1555, %1559 : vector<8x128xi1>
    %cst_596 = arith.constant 0.000000e+00 : f32
    %1561 = vector.broadcast %cst_596 : f32 to vector<8x128xf32>
    %1562 = arith.select %1560, %1551, %1561 : vector<8x128xi1>, vector<8x128xf32>
    %c1_i32_597 = arith.constant 1 : i32
    %1563 = tpu.dynamic_rotate %1562 by %c1_i32_597 dim 1 : vector<8x128xf32>, i32 -> vector<8x128xf32>
    %c-1_i32_598 = arith.constant -1 : i32
    %1564 = vector.broadcast %c-1_i32_598 : i32 to vector<8x128xi32>
    %1565 = arith.addi %33, %1564 : vector<8x128xi32>
    %c0_i32_599 = arith.constant 0 : i32
    %1566 = vector.broadcast %c0_i32_599 : i32 to vector<8x128xi32>
    %1567 = arith.cmpi sge, %1565, %1566 : vector<8x128xi32>
    %c-1_i32_600 = arith.constant -1 : i32
    %1568 = vector.broadcast %c-1_i32_600 : i32 to vector<8x128xi32>
    %1569 = arith.addi %33, %1568 : vector<8x128xi32>
    %c8_i32_601 = arith.constant 8 : i32
    %1570 = vector.broadcast %c8_i32_601 : i32 to vector<8x128xi32>
    %1571 = arith.cmpi slt, %1569, %1570 : vector<8x128xi32>
    %1572 = arith.andi %1567, %1571 : vector<8x128xi1>
    %cst_602 = arith.constant 0.000000e+00 : f32
    %1573 = vector.broadcast %cst_602 : f32 to vector<8x128xf32>
    %1574 = arith.select %1572, %1563, %1573 : vector<8x128xi1>, vector<8x128xf32>
    %1575 = vector.broadcast %1550 : f32 to vector<8x128xf32>
    %1576 = arith.mulf %1575, %1574 : vector<8x128xf32>
    %1577 = arith.addf %1549, %1576 : vector<8x128xf32>
    %c22_603 = arith.constant 22 : index
    %1578 = memref.load %arg7[%c22_603] : memref<27xf32, #tpu.memory_space<smem>>
    %c7_i32_604 = arith.constant 7 : i32
    %1579 = tpu.dynamic_rotate %139 by %c7_i32_604 dim 0 : vector<8x128xf32>, i32 -> vector<8x128xf32>
    %c1_i32_605 = arith.constant 1 : i32
    %1580 = vector.broadcast %c1_i32_605 : i32 to vector<8x128xi32>
    %1581 = arith.addi %0, %1580 : vector<8x128xi32>
    %c0_i32_606 = arith.constant 0 : i32
    %1582 = vector.broadcast %c0_i32_606 : i32 to vector<8x128xi32>
    %1583 = arith.cmpi sge, %1581, %1582 : vector<8x128xi32>
    %c1_i32_607 = arith.constant 1 : i32
    %1584 = vector.broadcast %c1_i32_607 : i32 to vector<8x128xi32>
    %1585 = arith.addi %0, %1584 : vector<8x128xi32>
    %c8_i32_608 = arith.constant 8 : i32
    %1586 = vector.broadcast %c8_i32_608 : i32 to vector<8x128xi32>
    %1587 = arith.cmpi slt, %1585, %1586 : vector<8x128xi32>
    %1588 = arith.andi %1583, %1587 : vector<8x128xi1>
    %cst_609 = arith.constant 0.000000e+00 : f32
    %1589 = vector.broadcast %cst_609 : f32 to vector<8x128xf32>
    %1590 = arith.select %1588, %1579, %1589 : vector<8x128xi1>, vector<8x128xf32>
    %1591 = vector.broadcast %1578 : f32 to vector<8x128xf32>
    %1592 = arith.mulf %1591, %1590 : vector<8x128xf32>
    %1593 = arith.addf %1577, %1592 : vector<8x128xf32>
    %c23_610 = arith.constant 23 : index
    %1594 = memref.load %arg7[%c23_610] : memref<27xf32, #tpu.memory_space<smem>>
    %1595 = vector.broadcast %1594 : f32 to vector<8x128xf32>
    %1596 = arith.mulf %1595, %1562 : vector<8x128xf32>
    %1597 = arith.addf %1593, %1596 : vector<8x128xf32>
    %c24_611 = arith.constant 24 : index
    %1598 = memref.load %arg7[%c24_611] : memref<27xf32, #tpu.memory_space<smem>>
    %c1_i32_612 = arith.constant 1 : i32
    %1599 = tpu.dynamic_rotate %1490 by %c1_i32_612 dim 1 : vector<8x128xf32>, i32 -> vector<8x128xf32>
    %c-1_i32_613 = arith.constant -1 : i32
    %1600 = vector.broadcast %c-1_i32_613 : i32 to vector<8x128xi32>
    %1601 = arith.addi %33, %1600 : vector<8x128xi32>
    %c0_i32_614 = arith.constant 0 : i32
    %1602 = vector.broadcast %c0_i32_614 : i32 to vector<8x128xi32>
    %1603 = arith.cmpi sge, %1601, %1602 : vector<8x128xi32>
    %c-1_i32_615 = arith.constant -1 : i32
    %1604 = vector.broadcast %c-1_i32_615 : i32 to vector<8x128xi32>
    %1605 = arith.addi %33, %1604 : vector<8x128xi32>
    %c8_i32_616 = arith.constant 8 : i32
    %1606 = vector.broadcast %c8_i32_616 : i32 to vector<8x128xi32>
    %1607 = arith.cmpi slt, %1605, %1606 : vector<8x128xi32>
    %1608 = arith.andi %1603, %1607 : vector<8x128xi1>
    %cst_617 = arith.constant 0.000000e+00 : f32
    %1609 = vector.broadcast %cst_617 : f32 to vector<8x128xf32>
    %1610 = arith.select %1608, %1599, %1609 : vector<8x128xi1>, vector<8x128xf32>
    %1611 = vector.broadcast %1598 : f32 to vector<8x128xf32>
    %1612 = arith.mulf %1611, %1610 : vector<8x128xf32>
    %1613 = arith.addf %1597, %1612 : vector<8x128xf32>
    %c25_618 = arith.constant 25 : index
    %1614 = memref.load %arg7[%c25_618] : memref<27xf32, #tpu.memory_space<smem>>
    %1615 = vector.broadcast %1614 : f32 to vector<8x128xf32>
    %1616 = arith.mulf %1615, %1530 : vector<8x128xf32>
    %1617 = arith.addf %1613, %1616 : vector<8x128xf32>
    %c26_619 = arith.constant 26 : index
    %1618 = memref.load %arg7[%c26_619] : memref<27xf32, #tpu.memory_space<smem>>
    %1619 = vector.broadcast %1618 : f32 to vector<8x128xf32>
    %1620 = arith.mulf %1619, %1490 : vector<8x128xf32>
    %1621 = arith.addf %1617, %1620 : vector<8x128xf32>
    %c1_620 = arith.constant 1 : index
    %c0_621 = arith.constant 0 : index
    %c0_622 = arith.constant 0 : index
    %c0_623 = arith.constant 0 : index
    %c0_624 = arith.constant 0 : index
    %1622 = vector.load %arg9[%c1_620, %c0_621, %c0_622, %c0_623, %c0_624] : memref<2x2x2x8x128xf32, #tpu.memory_space<vmem>>, vector<1x1x1x8x128xf32>
    %1623 = vector.shape_cast %1622 : vector<1x1x1x8x128xf32> to vector<8x128xf32>
    %1624 = vector.shape_cast %1621 : vector<8x128xf32> to vector<1x1x1x8x128xf32>
    tpu.vector_store %arg9[%c1_620, %c0_621, %c0_622, %c0_623, %c0_624], %1624 {strides = array<i32>} : memref<2x2x2x8x128xf32, #tpu.memory_space<vmem>>, vector<1x1x1x8x128xf32>,
    %cst_625 = arith.constant 0.000000e+00 : f32
    %1625 = vector.broadcast %cst_625 : f32 to vector<8x128xf32>
    %c0_626 = arith.constant 0 : index
    %1626 = memref.load %arg8[%c0_626] : memref<1xf32, #tpu.memory_space<smem>>
    %1627 = vector.broadcast %1626 : f32 to vector<8x128xf32>
    %1628 = arith.addf %1625, %1627 : vector<8x128xf32>
    %c0_627 = arith.constant 0 : index
    %1629 = memref.load %arg7[%c0_627] : memref<27xf32, #tpu.memory_space<smem>>
    %1630 = vector.broadcast %1629 : f32 to vector<8x128xf32>
    %1631 = arith.mulf %1630, %650 : vector<8x128xf32>
    %1632 = arith.addf %1628, %1631 : vector<8x128xf32>
    %c1_628 = arith.constant 1 : index
    %1633 = memref.load %arg7[%c1_628] : memref<27xf32, #tpu.memory_space<smem>>
    %1634 = vector.broadcast %1633 : f32 to vector<8x128xf32>
    %1635 = arith.mulf %1634, %622 : vector<8x128xf32>
    %1636 = arith.addf %1632, %1635 : vector<8x128xf32>
    %c2_629 = arith.constant 2 : index
    %1637 = memref.load %arg7[%c2_629] : memref<27xf32, #tpu.memory_space<smem>>
    %1638 = vector.broadcast %1637 : f32 to vector<8x128xf32>
    %1639 = arith.mulf %1638, %901 : vector<8x128xf32>
    %1640 = arith.addf %1636, %1639 : vector<8x128xf32>
    %c3_630 = arith.constant 3 : index
    %1641 = memref.load %arg7[%c3_630] : memref<27xf32, #tpu.memory_space<smem>>
    %1642 = vector.broadcast %1641 : f32 to vector<8x128xf32>
    %1643 = arith.mulf %1642, %139 : vector<8x128xf32>
    %1644 = arith.addf %1640, %1643 : vector<8x128xf32>
    %c4_631 = arith.constant 4 : index
    %1645 = memref.load %arg7[%c4_631] : memref<27xf32, #tpu.memory_space<smem>>
    %1646 = vector.broadcast %1645 : f32 to vector<8x128xf32>
    %1647 = arith.mulf %1646, %167 : vector<8x128xf32>
    %1648 = arith.addf %1644, %1647 : vector<8x128xf32>
    %c5_632 = arith.constant 5 : index
    %1649 = memref.load %arg7[%c5_632] : memref<27xf32, #tpu.memory_space<smem>>
    %1650 = vector.broadcast %1649 : f32 to vector<8x128xf32>
    %1651 = arith.mulf %1650, %925 : vector<8x128xf32>
    %1652 = arith.addf %1648, %1651 : vector<8x128xf32>
    %c6_633 = arith.constant 6 : index
    %1653 = memref.load %arg7[%c6_633] : memref<27xf32, #tpu.memory_space<smem>>
    %1654 = vector.broadcast %1653 : f32 to vector<8x128xf32>
    %1655 = arith.mulf %1654, %221 : vector<8x128xf32>
    %1656 = arith.addf %1652, %1655 : vector<8x128xf32>
    %c7_634 = arith.constant 7 : index
    %1657 = memref.load %arg7[%c7_634] : memref<27xf32, #tpu.memory_space<smem>>
    %1658 = vector.broadcast %1657 : f32 to vector<8x128xf32>
    %1659 = arith.mulf %1658, %249 : vector<8x128xf32>
    %1660 = arith.addf %1656, %1659 : vector<8x128xf32>
    %c8_635 = arith.constant 8 : index
    %1661 = memref.load %arg7[%c8_635] : memref<27xf32, #tpu.memory_space<smem>>
    %1662 = vector.broadcast %1661 : f32 to vector<8x128xf32>
    %1663 = arith.mulf %1662, %949 : vector<8x128xf32>
    %1664 = arith.addf %1660, %1663 : vector<8x128xf32>
    %c9_636 = arith.constant 9 : index
    %1665 = memref.load %arg7[%c9_636] : memref<27xf32, #tpu.memory_space<smem>>
    %1666 = vector.broadcast %1665 : f32 to vector<8x128xf32>
    %1667 = arith.mulf %1666, %746 : vector<8x128xf32>
    %1668 = arith.addf %1664, %1667 : vector<8x128xf32>
    %c10_637 = arith.constant 10 : index
    %1669 = memref.load %arg7[%c10_637] : memref<27xf32, #tpu.memory_space<smem>>
    %1670 = vector.broadcast %1669 : f32 to vector<8x128xf32>
    %1671 = arith.mulf %1670, %718 : vector<8x128xf32>
    %1672 = arith.addf %1668, %1671 : vector<8x128xf32>
    %c11_638 = arith.constant 11 : index
    %1673 = memref.load %arg7[%c11_638] : memref<27xf32, #tpu.memory_space<smem>>
    %1674 = vector.broadcast %1673 : f32 to vector<8x128xf32>
    %1675 = arith.mulf %1674, %973 : vector<8x128xf32>
    %1676 = arith.addf %1672, %1675 : vector<8x128xf32>
    %c12_639 = arith.constant 12 : index
    %1677 = memref.load %arg7[%c12_639] : memref<27xf32, #tpu.memory_space<smem>>
    %1678 = vector.broadcast %1677 : f32 to vector<8x128xf32>
    %1679 = arith.mulf %1678, %351 : vector<8x128xf32>
    %1680 = arith.addf %1676, %1679 : vector<8x128xf32>
    %c13_640 = arith.constant 13 : index
    %1681 = memref.load %arg7[%c13_640] : memref<27xf32, #tpu.memory_space<smem>>
    %1682 = vector.broadcast %1681 : f32 to vector<8x128xf32>
    %1683 = arith.mulf %1682, %379 : vector<8x128xf32>
    %1684 = arith.addf %1680, %1683 : vector<8x128xf32>
    %c14_641 = arith.constant 14 : index
    %1685 = memref.load %arg7[%c14_641] : memref<27xf32, #tpu.memory_space<smem>>
    %1686 = vector.broadcast %1685 : f32 to vector<8x128xf32>
    %1687 = arith.mulf %1686, %997 : vector<8x128xf32>
    %1688 = arith.addf %1684, %1687 : vector<8x128xf32>
    %c15_642 = arith.constant 15 : index
    %1689 = memref.load %arg7[%c15_642] : memref<27xf32, #tpu.memory_space<smem>>
    %1690 = vector.broadcast %1689 : f32 to vector<8x128xf32>
    %1691 = arith.mulf %1690, %433 : vector<8x128xf32>
    %1692 = arith.addf %1688, %1691 : vector<8x128xf32>
    %c16_643 = arith.constant 16 : index
    %1693 = memref.load %arg7[%c16_643] : memref<27xf32, #tpu.memory_space<smem>>
    %1694 = vector.broadcast %1693 : f32 to vector<8x128xf32>
    %1695 = arith.mulf %1694, %461 : vector<8x128xf32>
    %1696 = arith.addf %1692, %1695 : vector<8x128xf32>
    %c17_644 = arith.constant 17 : index
    %1697 = memref.load %arg7[%c17_644] : memref<27xf32, #tpu.memory_space<smem>>
    %1698 = vector.broadcast %1697 : f32 to vector<8x128xf32>
    %1699 = arith.mulf %1698, %1021 : vector<8x128xf32>
    %1700 = arith.addf %1696, %1699 : vector<8x128xf32>
    %c18_645 = arith.constant 18 : index
    %1701 = memref.load %arg7[%c18_645] : memref<27xf32, #tpu.memory_space<smem>>
    %1702 = vector.broadcast %1701 : f32 to vector<8x128xf32>
    %1703 = arith.mulf %1702, %1542 : vector<8x128xf32>
    %1704 = arith.addf %1700, %1703 : vector<8x128xf32>
    %c19_646 = arith.constant 19 : index
    %1705 = memref.load %arg7[%c19_646] : memref<27xf32, #tpu.memory_space<smem>>
    %1706 = vector.broadcast %1705 : f32 to vector<8x128xf32>
    %1707 = arith.mulf %1706, %1502 : vector<8x128xf32>
    %1708 = arith.addf %1704, %1707 : vector<8x128xf32>
    %c20_647 = arith.constant 20 : index
    %1709 = memref.load %arg7[%c20_647] : memref<27xf32, #tpu.memory_space<smem>>
    %c127_i32_648 = arith.constant 127 : i32
    %1710 = tpu.dynamic_rotate %1542 by %c127_i32_648 dim 1 : vector<8x128xf32>, i32 -> vector<8x128xf32>
    %c1_i32_649 = arith.constant 1 : i32
    %1711 = vector.broadcast %c1_i32_649 : i32 to vector<8x128xi32>
    %1712 = arith.addi %33, %1711 : vector<8x128xi32>
    %c0_i32_650 = arith.constant 0 : i32
    %1713 = vector.broadcast %c0_i32_650 : i32 to vector<8x128xi32>
    %1714 = arith.cmpi sge, %1712, %1713 : vector<8x128xi32>
    %c1_i32_651 = arith.constant 1 : i32
    %1715 = vector.broadcast %c1_i32_651 : i32 to vector<8x128xi32>
    %1716 = arith.addi %33, %1715 : vector<8x128xi32>
    %c8_i32_652 = arith.constant 8 : i32
    %1717 = vector.broadcast %c8_i32_652 : i32 to vector<8x128xi32>
    %1718 = arith.cmpi slt, %1716, %1717 : vector<8x128xi32>
    %1719 = arith.andi %1714, %1718 : vector<8x128xi1>
    %cst_653 = arith.constant 0.000000e+00 : f32
    %1720 = vector.broadcast %cst_653 : f32 to vector<8x128xf32>
    %1721 = arith.select %1719, %1710, %1720 : vector<8x128xi1>, vector<8x128xf32>
    %1722 = vector.broadcast %1709 : f32 to vector<8x128xf32>
    %1723 = arith.mulf %1722, %1721 : vector<8x128xf32>
    %1724 = arith.addf %1708, %1723 : vector<8x128xf32>
    %c21_654 = arith.constant 21 : index
    %1725 = memref.load %arg7[%c21_654] : memref<27xf32, #tpu.memory_space<smem>>
    %1726 = vector.broadcast %1725 : f32 to vector<8x128xf32>
    %1727 = arith.mulf %1726, %1590 : vector<8x128xf32>
    %1728 = arith.addf %1724, %1727 : vector<8x128xf32>
    %c22_655 = arith.constant 22 : index
    %1729 = memref.load %arg7[%c22_655] : memref<27xf32, #tpu.memory_space<smem>>
    %1730 = vector.broadcast %1729 : f32 to vector<8x128xf32>
    %1731 = arith.mulf %1730, %1562 : vector<8x128xf32>
    %1732 = arith.addf %1728, %1731 : vector<8x128xf32>
    %c23_656 = arith.constant 23 : index
    %1733 = memref.load %arg7[%c23_656] : memref<27xf32, #tpu.memory_space<smem>>
    %c127_i32_657 = arith.constant 127 : i32
    %1734 = tpu.dynamic_rotate %1590 by %c127_i32_657 dim 1 : vector<8x128xf32>, i32 -> vector<8x128xf32>
    %c1_i32_658 = arith.constant 1 : i32
    %1735 = vector.broadcast %c1_i32_658 : i32 to vector<8x128xi32>
    %1736 = arith.addi %33, %1735 : vector<8x128xi32>
    %c0_i32_659 = arith.constant 0 : i32
    %1737 = vector.broadcast %c0_i32_659 : i32 to vector<8x128xi32>
    %1738 = arith.cmpi sge, %1736, %1737 : vector<8x128xi32>
    %c1_i32_660 = arith.constant 1 : i32
    %1739 = vector.broadcast %c1_i32_660 : i32 to vector<8x128xi32>
    %1740 = arith.addi %33, %1739 : vector<8x128xi32>
    %c8_i32_661 = arith.constant 8 : i32
    %1741 = vector.broadcast %c8_i32_661 : i32 to vector<8x128xi32>
    %1742 = arith.cmpi slt, %1740, %1741 : vector<8x128xi32>
    %1743 = arith.andi %1738, %1742 : vector<8x128xi1>
    %cst_662 = arith.constant 0.000000e+00 : f32
    %1744 = vector.broadcast %cst_662 : f32 to vector<8x128xf32>
    %1745 = arith.select %1743, %1734, %1744 : vector<8x128xi1>, vector<8x128xf32>
    %1746 = vector.broadcast %1733 : f32 to vector<8x128xf32>
    %1747 = arith.mulf %1746, %1745 : vector<8x128xf32>
    %1748 = arith.addf %1732, %1747 : vector<8x128xf32>
    %c24_663 = arith.constant 24 : index
    %1749 = memref.load %arg7[%c24_663] : memref<27xf32, #tpu.memory_space<smem>>
    %1750 = vector.broadcast %1749 : f32 to vector<8x128xf32>
    %1751 = arith.mulf %1750, %1530 : vector<8x128xf32>
    %1752 = arith.addf %1748, %1751 : vector<8x128xf32>
    %c25_664 = arith.constant 25 : index
    %1753 = memref.load %arg7[%c25_664] : memref<27xf32, #tpu.memory_space<smem>>
    %1754 = vector.broadcast %1753 : f32 to vector<8x128xf32>
    %1755 = arith.mulf %1754, %1490 : vector<8x128xf32>
    %1756 = arith.addf %1752, %1755 : vector<8x128xf32>
    %c26_665 = arith.constant 26 : index
    %1757 = memref.load %arg7[%c26_665] : memref<27xf32, #tpu.memory_space<smem>>
    %c127_i32_666 = arith.constant 127 : i32
    %1758 = tpu.dynamic_rotate %1530 by %c127_i32_666 dim 1 : vector<8x128xf32>, i32 -> vector<8x128xf32>
    %c1_i32_667 = arith.constant 1 : i32
    %1759 = vector.broadcast %c1_i32_667 : i32 to vector<8x128xi32>
    %1760 = arith.addi %33, %1759 : vector<8x128xi32>
    %c0_i32_668 = arith.constant 0 : i32
    %1761 = vector.broadcast %c0_i32_668 : i32 to vector<8x128xi32>
    %1762 = arith.cmpi sge, %1760, %1761 : vector<8x128xi32>
    %c1_i32_669 = arith.constant 1 : i32
    %1763 = vector.broadcast %c1_i32_669 : i32 to vector<8x128xi32>
    %1764 = arith.addi %33, %1763 : vector<8x128xi32>
    %c8_i32_670 = arith.constant 8 : i32
    %1765 = vector.broadcast %c8_i32_670 : i32 to vector<8x128xi32>
    %1766 = arith.cmpi slt, %1764, %1765 : vector<8x128xi32>
    %1767 = arith.andi %1762, %1766 : vector<8x128xi1>
    %cst_671 = arith.constant 0.000000e+00 : f32
    %1768 = vector.broadcast %cst_671 : f32 to vector<8x128xf32>
    %1769 = arith.select %1767, %1758, %1768 : vector<8x128xi1>, vector<8x128xf32>
    %1770 = vector.broadcast %1757 : f32 to vector<8x128xf32>
    %1771 = arith.mulf %1770, %1769 : vector<8x128xf32>
    %1772 = arith.addf %1756, %1771 : vector<8x128xf32>
    %c1_672 = arith.constant 1 : index
    %c0_673 = arith.constant 0 : index
    %c1_674 = arith.constant 1 : index
    %c0_675 = arith.constant 0 : index
    %c0_676 = arith.constant 0 : index
    %1773 = vector.load %arg9[%c1_672, %c0_673, %c1_674, %c0_675, %c0_676] : memref<2x2x2x8x128xf32, #tpu.memory_space<vmem>>, vector<1x1x1x8x128xf32>
    %1774 = vector.shape_cast %1773 : vector<1x1x1x8x128xf32> to vector<8x128xf32>
    %1775 = vector.shape_cast %1772 : vector<8x128xf32> to vector<1x1x1x8x128xf32>
    tpu.vector_store %arg9[%c1_672, %c0_673, %c1_674, %c0_675, %c0_676], %1775 {strides = array<i32>} : memref<2x2x2x8x128xf32, #tpu.memory_space<vmem>>, vector<1x1x1x8x128xf32>,
    %cst_677 = arith.constant 0.000000e+00 : f32
    %1776 = vector.broadcast %cst_677 : f32 to vector<8x128xf32>
    %c0_678 = arith.constant 0 : index
    %1777 = memref.load %arg8[%c0_678] : memref<1xf32, #tpu.memory_space<smem>>
    %1778 = vector.broadcast %1777 : f32 to vector<8x128xf32>
    %1779 = arith.addf %1776, %1778 : vector<8x128xf32>
    %c0_679 = arith.constant 0 : index
    %1780 = memref.load %arg7[%c0_679] : memref<27xf32, #tpu.memory_space<smem>>
    %1781 = vector.broadcast %1780 : f32 to vector<8x128xf32>
    %1782 = arith.mulf %1781, %670 : vector<8x128xf32>
    %1783 = arith.addf %1779, %1782 : vector<8x128xf32>
    %c1_680 = arith.constant 1 : index
    %1784 = memref.load %arg7[%c1_680] : memref<27xf32, #tpu.memory_space<smem>>
    %1785 = vector.broadcast %1784 : f32 to vector<8x128xf32>
    %1786 = arith.mulf %1785, %139 : vector<8x128xf32>
    %1787 = arith.addf %1783, %1786 : vector<8x128xf32>
    %c2_681 = arith.constant 2 : index
    %1788 = memref.load %arg7[%c2_681] : memref<27xf32, #tpu.memory_space<smem>>
    %1789 = vector.broadcast %1788 : f32 to vector<8x128xf32>
    %1790 = arith.mulf %1789, %167 : vector<8x128xf32>
    %1791 = arith.addf %1787, %1790 : vector<8x128xf32>
    %c3_682 = arith.constant 3 : index
    %1792 = memref.load %arg7[%c3_682] : memref<27xf32, #tpu.memory_space<smem>>
    %1793 = vector.broadcast %1792 : f32 to vector<8x128xf32>
    %1794 = arith.mulf %1793, %694 : vector<8x128xf32>
    %1795 = arith.addf %1791, %1794 : vector<8x128xf32>
    %c4_683 = arith.constant 4 : index
    %1796 = memref.load %arg7[%c4_683] : memref<27xf32, #tpu.memory_space<smem>>
    %1797 = vector.broadcast %1796 : f32 to vector<8x128xf32>
    %1798 = arith.mulf %1797, %221 : vector<8x128xf32>
    %1799 = arith.addf %1795, %1798 : vector<8x128xf32>
    %c5_684 = arith.constant 5 : index
    %1800 = memref.load %arg7[%c5_684] : memref<27xf32, #tpu.memory_space<smem>>
    %1801 = vector.broadcast %1800 : f32 to vector<8x128xf32>
    %1802 = arith.mulf %1801, %249 : vector<8x128xf32>
    %1803 = arith.addf %1799, %1802 : vector<8x128xf32>
    %c6_685 = arith.constant 6 : index
    %1804 = memref.load %arg7[%c6_685] : memref<27xf32, #tpu.memory_space<smem>>
    %1805 = vector.broadcast %1804 : f32 to vector<8x128xf32>
    %1806 = arith.mulf %1805, %1152 : vector<8x128xf32>
    %1807 = arith.addf %1803, %1806 : vector<8x128xf32>
    %c7_686 = arith.constant 7 : index
    %1808 = memref.load %arg7[%c7_686] : memref<27xf32, #tpu.memory_space<smem>>
    %1809 = vector.broadcast %1808 : f32 to vector<8x128xf32>
    %1810 = arith.mulf %1809, %1168 : vector<8x128xf32>
    %1811 = arith.addf %1807, %1810 : vector<8x128xf32>
    %c8_687 = arith.constant 8 : index
    %1812 = memref.load %arg7[%c8_687] : memref<27xf32, #tpu.memory_space<smem>>
    %1813 = vector.broadcast %1812 : f32 to vector<8x128xf32>
    %1814 = arith.mulf %1813, %1140 : vector<8x128xf32>
    %1815 = arith.addf %1811, %1814 : vector<8x128xf32>
    %c9_688 = arith.constant 9 : index
    %1816 = memref.load %arg7[%c9_688] : memref<27xf32, #tpu.memory_space<smem>>
    %1817 = vector.broadcast %1816 : f32 to vector<8x128xf32>
    %1818 = arith.mulf %1817, %766 : vector<8x128xf32>
    %1819 = arith.addf %1815, %1818 : vector<8x128xf32>
    %c10_689 = arith.constant 10 : index
    %1820 = memref.load %arg7[%c10_689] : memref<27xf32, #tpu.memory_space<smem>>
    %1821 = vector.broadcast %1820 : f32 to vector<8x128xf32>
    %1822 = arith.mulf %1821, %351 : vector<8x128xf32>
    %1823 = arith.addf %1819, %1822 : vector<8x128xf32>
    %c11_690 = arith.constant 11 : index
    %1824 = memref.load %arg7[%c11_690] : memref<27xf32, #tpu.memory_space<smem>>
    %1825 = vector.broadcast %1824 : f32 to vector<8x128xf32>
    %1826 = arith.mulf %1825, %379 : vector<8x128xf32>
    %1827 = arith.addf %1823, %1826 : vector<8x128xf32>
    %c12_691 = arith.constant 12 : index
    %1828 = memref.load %arg7[%c12_691] : memref<27xf32, #tpu.memory_space<smem>>
    %1829 = vector.broadcast %1828 : f32 to vector<8x128xf32>
    %1830 = arith.mulf %1829, %790 : vector<8x128xf32>
    %1831 = arith.addf %1827, %1830 : vector<8x128xf32>
    %c13_692 = arith.constant 13 : index
    %1832 = memref.load %arg7[%c13_692] : memref<27xf32, #tpu.memory_space<smem>>
    %1833 = vector.broadcast %1832 : f32 to vector<8x128xf32>
    %1834 = arith.mulf %1833, %433 : vector<8x128xf32>
    %1835 = arith.addf %1831, %1834 : vector<8x128xf32>
    %c14_693 = arith.constant 14 : index
    %1836 = memref.load %arg7[%c14_693] : memref<27xf32, #tpu.memory_space<smem>>
    %1837 = vector.broadcast %1836 : f32 to vector<8x128xf32>
    %1838 = arith.mulf %1837, %461 : vector<8x128xf32>
    %1839 = arith.addf %1835, %1838 : vector<8x128xf32>
    %c15_694 = arith.constant 15 : index
    %1840 = memref.load %arg7[%c15_694] : memref<27xf32, #tpu.memory_space<smem>>
    %1841 = vector.broadcast %1840 : f32 to vector<8x128xf32>
    %1842 = arith.mulf %1841, %1224 : vector<8x128xf32>
    %1843 = arith.addf %1839, %1842 : vector<8x128xf32>
    %c16_695 = arith.constant 16 : index
    %1844 = memref.load %arg7[%c16_695] : memref<27xf32, #tpu.memory_space<smem>>
    %1845 = vector.broadcast %1844 : f32 to vector<8x128xf32>
    %1846 = arith.mulf %1845, %1240 : vector<8x128xf32>
    %1847 = arith.addf %1843, %1846 : vector<8x128xf32>
    %c17_696 = arith.constant 17 : index
    %1848 = memref.load %arg7[%c17_696] : memref<27xf32, #tpu.memory_space<smem>>
    %1849 = vector.broadcast %1848 : f32 to vector<8x128xf32>
    %1850 = arith.mulf %1849, %1212 : vector<8x128xf32>
    %1851 = arith.addf %1847, %1850 : vector<8x128xf32>
    %c18_697 = arith.constant 18 : index
    %1852 = memref.load %arg7[%c18_697] : memref<27xf32, #tpu.memory_space<smem>>
    %1853 = vector.broadcast %1852 : f32 to vector<8x128xf32>
    %1854 = arith.mulf %1853, %1574 : vector<8x128xf32>
    %1855 = arith.addf %1851, %1854 : vector<8x128xf32>
    %c19_698 = arith.constant 19 : index
    %1856 = memref.load %arg7[%c19_698] : memref<27xf32, #tpu.memory_space<smem>>
    %1857 = vector.broadcast %1856 : f32 to vector<8x128xf32>
    %1858 = arith.mulf %1857, %1590 : vector<8x128xf32>
    %1859 = arith.addf %1855, %1858 : vector<8x128xf32>
    %c20_699 = arith.constant 20 : index
    %1860 = memref.load %arg7[%c20_699] : memref<27xf32, #tpu.memory_space<smem>>
    %1861 = vector.broadcast %1860 : f32 to vector<8x128xf32>
    %1862 = arith.mulf %1861, %1562 : vector<8x128xf32>
    %1863 = arith.addf %1859, %1862 : vector<8x128xf32>
    %c21_700 = arith.constant 21 : index
    %1864 = memref.load %arg7[%c21_700] : memref<27xf32, #tpu.memory_space<smem>>
    %1865 = vector.broadcast %1864 : f32 to vector<8x128xf32>
    %1866 = arith.mulf %1865, %1610 : vector<8x128xf32>
    %1867 = arith.addf %1863, %1866 : vector<8x128xf32>
    %c22_701 = arith.constant 22 : index
    %1868 = memref.load %arg7[%c22_701] : memref<27xf32, #tpu.memory_space<smem>>
    %1869 = vector.broadcast %1868 : f32 to vector<8x128xf32>
    %1870 = arith.mulf %1869, %1530 : vector<8x128xf32>
    %1871 = arith.addf %1867, %1870 : vector<8x128xf32>
    %c23_702 = arith.constant 23 : index
    %1872 = memref.load %arg7[%c23_702] : memref<27xf32, #tpu.memory_space<smem>>
    %1873 = vector.broadcast %1872 : f32 to vector<8x128xf32>
    %1874 = arith.mulf %1873, %1490 : vector<8x128xf32>
    %1875 = arith.addf %1871, %1874 : vector<8x128xf32>
    %c24_703 = arith.constant 24 : index
    %1876 = memref.load %arg7[%c24_703] : memref<27xf32, #tpu.memory_space<smem>>
    %c120_i32_704 = arith.constant 120 : i32
    %1877 = tpu.dynamic_rotate %1562 by %c120_i32_704 dim 1 : vector<8x128xf32>, i32 -> vector<8x128xf32>
    %c8_i32_705 = arith.constant 8 : i32
    %1878 = vector.broadcast %c8_i32_705 : i32 to vector<8x128xi32>
    %1879 = arith.addi %17, %1878 : vector<8x128xi32>
    %c0_i32_706 = arith.constant 0 : i32
    %1880 = vector.broadcast %c0_i32_706 : i32 to vector<8x128xi32>
    %1881 = arith.cmpi sge, %1879, %1880 : vector<8x128xi32>
    %c8_i32_707 = arith.constant 8 : i32
    %1882 = vector.broadcast %c8_i32_707 : i32 to vector<8x128xi32>
    %1883 = arith.addi %17, %1882 : vector<8x128xi32>
    %c64_i32_708 = arith.constant 64 : i32
    %1884 = vector.broadcast %c64_i32_708 : i32 to vector<8x128xi32>
    %1885 = arith.cmpi slt, %1883, %1884 : vector<8x128xi32>
    %1886 = arith.andi %1881, %1885 : vector<8x128xi1>
    %cst_709 = arith.constant 0.000000e+00 : f32
    %1887 = vector.broadcast %cst_709 : f32 to vector<8x128xf32>
    %1888 = arith.select %1886, %1877, %1887 : vector<8x128xi1>, vector<8x128xf32>
    %c1_i32_710 = arith.constant 1 : i32
    %1889 = tpu.dynamic_rotate %1888 by %c1_i32_710 dim 1 : vector<8x128xf32>, i32 -> vector<8x128xf32>
    %c-1_i32_711 = arith.constant -1 : i32
    %1890 = vector.broadcast %c-1_i32_711 : i32 to vector<8x128xi32>
    %1891 = arith.addi %33, %1890 : vector<8x128xi32>
    %c0_i32_712 = arith.constant 0 : i32
    %1892 = vector.broadcast %c0_i32_712 : i32 to vector<8x128xi32>
    %1893 = arith.cmpi sge, %1891, %1892 : vector<8x128xi32>
    %c-1_i32_713 = arith.constant -1 : i32
    %1894 = vector.broadcast %c-1_i32_713 : i32 to vector<8x128xi32>
    %1895 = arith.addi %33, %1894 : vector<8x128xi32>
    %c8_i32_714 = arith.constant 8 : i32
    %1896 = vector.broadcast %c8_i32_714 : i32 to vector<8x128xi32>
    %1897 = arith.cmpi slt, %1895, %1896 : vector<8x128xi32>
    %1898 = arith.andi %1893, %1897 : vector<8x128xi1>
    %cst_715 = arith.constant 0.000000e+00 : f32
    %1899 = vector.broadcast %cst_715 : f32 to vector<8x128xf32>
    %1900 = arith.select %1898, %1889, %1899 : vector<8x128xi1>, vector<8x128xf32>
    %1901 = vector.broadcast %1876 : f32 to vector<8x128xf32>
    %1902 = arith.mulf %1901, %1900 : vector<8x128xf32>
    %1903 = arith.addf %1875, %1902 : vector<8x128xf32>
    %c25_716 = arith.constant 25 : index
    %1904 = memref.load %arg7[%c25_716] : memref<27xf32, #tpu.memory_space<smem>>
    %c120_i32_717 = arith.constant 120 : i32
    %1905 = tpu.dynamic_rotate %1590 by %c120_i32_717 dim 1 : vector<8x128xf32>, i32 -> vector<8x128xf32>
    %c8_i32_718 = arith.constant 8 : i32
    %1906 = vector.broadcast %c8_i32_718 : i32 to vector<8x128xi32>
    %1907 = arith.addi %17, %1906 : vector<8x128xi32>
    %c0_i32_719 = arith.constant 0 : i32
    %1908 = vector.broadcast %c0_i32_719 : i32 to vector<8x128xi32>
    %1909 = arith.cmpi sge, %1907, %1908 : vector<8x128xi32>
    %c8_i32_720 = arith.constant 8 : i32
    %1910 = vector.broadcast %c8_i32_720 : i32 to vector<8x128xi32>
    %1911 = arith.addi %17, %1910 : vector<8x128xi32>
    %c64_i32_721 = arith.constant 64 : i32
    %1912 = vector.broadcast %c64_i32_721 : i32 to vector<8x128xi32>
    %1913 = arith.cmpi slt, %1911, %1912 : vector<8x128xi32>
    %1914 = arith.andi %1909, %1913 : vector<8x128xi1>
    %cst_722 = arith.constant 0.000000e+00 : f32
    %1915 = vector.broadcast %cst_722 : f32 to vector<8x128xf32>
    %1916 = arith.select %1914, %1905, %1915 : vector<8x128xi1>, vector<8x128xf32>
    %1917 = vector.broadcast %1904 : f32 to vector<8x128xf32>
    %1918 = arith.mulf %1917, %1916 : vector<8x128xf32>
    %1919 = arith.addf %1903, %1918 : vector<8x128xf32>
    %c26_723 = arith.constant 26 : index
    %1920 = memref.load %arg7[%c26_723] : memref<27xf32, #tpu.memory_space<smem>>
    %1921 = vector.broadcast %1920 : f32 to vector<8x128xf32>
    %1922 = arith.mulf %1921, %1888 : vector<8x128xf32>
    %1923 = arith.addf %1919, %1922 : vector<8x128xf32>
    %c1_724 = arith.constant 1 : index
    %c1_725 = arith.constant 1 : index
    %c0_726 = arith.constant 0 : index
    %c0_727 = arith.constant 0 : index
    %c0_728 = arith.constant 0 : index
    %1924 = vector.load %arg9[%c1_724, %c1_725, %c0_726, %c0_727, %c0_728] : memref<2x2x2x8x128xf32, #tpu.memory_space<vmem>>, vector<1x1x1x8x128xf32>
    %1925 = vector.shape_cast %1924 : vector<1x1x1x8x128xf32> to vector<8x128xf32>
    %1926 = vector.shape_cast %1923 : vector<8x128xf32> to vector<1x1x1x8x128xf32>
    tpu.vector_store %arg9[%c1_724, %c1_725, %c0_726, %c0_727, %c0_728], %1926 {strides = array<i32>} : memref<2x2x2x8x128xf32, #tpu.memory_space<vmem>>, vector<1x1x1x8x128xf32>,
    %cst_729 = arith.constant 0.000000e+00 : f32
    %1927 = vector.broadcast %cst_729 : f32 to vector<8x128xf32>
    %c0_730 = arith.constant 0 : index
    %1928 = memref.load %arg8[%c0_730] : memref<1xf32, #tpu.memory_space<smem>>
    %1929 = vector.broadcast %1928 : f32 to vector<8x128xf32>
    %1930 = arith.addf %1927, %1929 : vector<8x128xf32>
    %c0_731 = arith.constant 0 : index
    %1931 = memref.load %arg7[%c0_731] : memref<27xf32, #tpu.memory_space<smem>>
    %1932 = vector.broadcast %1931 : f32 to vector<8x128xf32>
    %1933 = arith.mulf %1932, %139 : vector<8x128xf32>
    %1934 = arith.addf %1930, %1933 : vector<8x128xf32>
    %c1_732 = arith.constant 1 : index
    %1935 = memref.load %arg7[%c1_732] : memref<27xf32, #tpu.memory_space<smem>>
    %1936 = vector.broadcast %1935 : f32 to vector<8x128xf32>
    %1937 = arith.mulf %1936, %167 : vector<8x128xf32>
    %1938 = arith.addf %1934, %1937 : vector<8x128xf32>
    %c2_733 = arith.constant 2 : index
    %1939 = memref.load %arg7[%c2_733] : memref<27xf32, #tpu.memory_space<smem>>
    %1940 = vector.broadcast %1939 : f32 to vector<8x128xf32>
    %1941 = arith.mulf %1940, %925 : vector<8x128xf32>
    %1942 = arith.addf %1938, %1941 : vector<8x128xf32>
    %c3_734 = arith.constant 3 : index
    %1943 = memref.load %arg7[%c3_734] : memref<27xf32, #tpu.memory_space<smem>>
    %1944 = vector.broadcast %1943 : f32 to vector<8x128xf32>
    %1945 = arith.mulf %1944, %221 : vector<8x128xf32>
    %1946 = arith.addf %1942, %1945 : vector<8x128xf32>
    %c4_735 = arith.constant 4 : index
    %1947 = memref.load %arg7[%c4_735] : memref<27xf32, #tpu.memory_space<smem>>
    %1948 = vector.broadcast %1947 : f32 to vector<8x128xf32>
    %1949 = arith.mulf %1948, %249 : vector<8x128xf32>
    %1950 = arith.addf %1946, %1949 : vector<8x128xf32>
    %c5_736 = arith.constant 5 : index
    %1951 = memref.load %arg7[%c5_736] : memref<27xf32, #tpu.memory_space<smem>>
    %1952 = vector.broadcast %1951 : f32 to vector<8x128xf32>
    %1953 = arith.mulf %1952, %949 : vector<8x128xf32>
    %1954 = arith.addf %1950, %1953 : vector<8x128xf32>
    %c6_737 = arith.constant 6 : index
    %1955 = memref.load %arg7[%c6_737] : memref<27xf32, #tpu.memory_space<smem>>
    %1956 = vector.broadcast %1955 : f32 to vector<8x128xf32>
    %1957 = arith.mulf %1956, %1168 : vector<8x128xf32>
    %1958 = arith.addf %1954, %1957 : vector<8x128xf32>
    %c7_738 = arith.constant 7 : index
    %1959 = memref.load %arg7[%c7_738] : memref<27xf32, #tpu.memory_space<smem>>
    %1960 = vector.broadcast %1959 : f32 to vector<8x128xf32>
    %1961 = arith.mulf %1960, %1140 : vector<8x128xf32>
    %1962 = arith.addf %1958, %1961 : vector<8x128xf32>
    %c8_739 = arith.constant 8 : index
    %1963 = memref.load %arg7[%c8_739] : memref<27xf32, #tpu.memory_space<smem>>
    %1964 = vector.broadcast %1963 : f32 to vector<8x128xf32>
    %1965 = arith.mulf %1964, %1347 : vector<8x128xf32>
    %1966 = arith.addf %1962, %1965 : vector<8x128xf32>
    %c9_740 = arith.constant 9 : index
    %1967 = memref.load %arg7[%c9_740] : memref<27xf32, #tpu.memory_space<smem>>
    %1968 = vector.broadcast %1967 : f32 to vector<8x128xf32>
    %1969 = arith.mulf %1968, %351 : vector<8x128xf32>
    %1970 = arith.addf %1966, %1969 : vector<8x128xf32>
    %c10_741 = arith.constant 10 : index
    %1971 = memref.load %arg7[%c10_741] : memref<27xf32, #tpu.memory_space<smem>>
    %1972 = vector.broadcast %1971 : f32 to vector<8x128xf32>
    %1973 = arith.mulf %1972, %379 : vector<8x128xf32>
    %1974 = arith.addf %1970, %1973 : vector<8x128xf32>
    %c11_742 = arith.constant 11 : index
    %1975 = memref.load %arg7[%c11_742] : memref<27xf32, #tpu.memory_space<smem>>
    %1976 = vector.broadcast %1975 : f32 to vector<8x128xf32>
    %1977 = arith.mulf %1976, %997 : vector<8x128xf32>
    %1978 = arith.addf %1974, %1977 : vector<8x128xf32>
    %c12_743 = arith.constant 12 : index
    %1979 = memref.load %arg7[%c12_743] : memref<27xf32, #tpu.memory_space<smem>>
    %1980 = vector.broadcast %1979 : f32 to vector<8x128xf32>
    %1981 = arith.mulf %1980, %433 : vector<8x128xf32>
    %1982 = arith.addf %1978, %1981 : vector<8x128xf32>
    %c13_744 = arith.constant 13 : index
    %1983 = memref.load %arg7[%c13_744] : memref<27xf32, #tpu.memory_space<smem>>
    %1984 = vector.broadcast %1983 : f32 to vector<8x128xf32>
    %1985 = arith.mulf %1984, %461 : vector<8x128xf32>
    %1986 = arith.addf %1982, %1985 : vector<8x128xf32>
    %c14_745 = arith.constant 14 : index
    %1987 = memref.load %arg7[%c14_745] : memref<27xf32, #tpu.memory_space<smem>>
    %1988 = vector.broadcast %1987 : f32 to vector<8x128xf32>
    %1989 = arith.mulf %1988, %1021 : vector<8x128xf32>
    %1990 = arith.addf %1986, %1989 : vector<8x128xf32>
    %c15_746 = arith.constant 15 : index
    %1991 = memref.load %arg7[%c15_746] : memref<27xf32, #tpu.memory_space<smem>>
    %1992 = vector.broadcast %1991 : f32 to vector<8x128xf32>
    %1993 = arith.mulf %1992, %1240 : vector<8x128xf32>
    %1994 = arith.addf %1990, %1993 : vector<8x128xf32>
    %c16_747 = arith.constant 16 : index
    %1995 = memref.load %arg7[%c16_747] : memref<27xf32, #tpu.memory_space<smem>>
    %1996 = vector.broadcast %1995 : f32 to vector<8x128xf32>
    %1997 = arith.mulf %1996, %1212 : vector<8x128xf32>
    %1998 = arith.addf %1994, %1997 : vector<8x128xf32>
    %c17_748 = arith.constant 17 : index
    %1999 = memref.load %arg7[%c17_748] : memref<27xf32, #tpu.memory_space<smem>>
    %2000 = vector.broadcast %1999 : f32 to vector<8x128xf32>
    %2001 = arith.mulf %2000, %1395 : vector<8x128xf32>
    %2002 = arith.addf %1998, %2001 : vector<8x128xf32>
    %c18_749 = arith.constant 18 : index
    %2003 = memref.load %arg7[%c18_749] : memref<27xf32, #tpu.memory_space<smem>>
    %2004 = vector.broadcast %2003 : f32 to vector<8x128xf32>
    %2005 = arith.mulf %2004, %1590 : vector<8x128xf32>
    %2006 = arith.addf %2002, %2005 : vector<8x128xf32>
    %c19_750 = arith.constant 19 : index
    %2007 = memref.load %arg7[%c19_750] : memref<27xf32, #tpu.memory_space<smem>>
    %2008 = vector.broadcast %2007 : f32 to vector<8x128xf32>
    %2009 = arith.mulf %2008, %1562 : vector<8x128xf32>
    %2010 = arith.addf %2006, %2009 : vector<8x128xf32>
    %c20_751 = arith.constant 20 : index
    %2011 = memref.load %arg7[%c20_751] : memref<27xf32, #tpu.memory_space<smem>>
    %2012 = vector.broadcast %2011 : f32 to vector<8x128xf32>
    %2013 = arith.mulf %2012, %1745 : vector<8x128xf32>
    %2014 = arith.addf %2010, %2013 : vector<8x128xf32>
    %c21_752 = arith.constant 21 : index
    %2015 = memref.load %arg7[%c21_752] : memref<27xf32, #tpu.memory_space<smem>>
    %2016 = vector.broadcast %2015 : f32 to vector<8x128xf32>
    %2017 = arith.mulf %2016, %1530 : vector<8x128xf32>
    %2018 = arith.addf %2014, %2017 : vector<8x128xf32>
    %c22_753 = arith.constant 22 : index
    %2019 = memref.load %arg7[%c22_753] : memref<27xf32, #tpu.memory_space<smem>>
    %2020 = vector.broadcast %2019 : f32 to vector<8x128xf32>
    %2021 = arith.mulf %2020, %1490 : vector<8x128xf32>
    %2022 = arith.addf %2018, %2021 : vector<8x128xf32>
    %c23_754 = arith.constant 23 : index
    %2023 = memref.load %arg7[%c23_754] : memref<27xf32, #tpu.memory_space<smem>>
    %2024 = vector.broadcast %2023 : f32 to vector<8x128xf32>
    %2025 = arith.mulf %2024, %1769 : vector<8x128xf32>
    %2026 = arith.addf %2022, %2025 : vector<8x128xf32>
    %c24_755 = arith.constant 24 : index
    %2027 = memref.load %arg7[%c24_755] : memref<27xf32, #tpu.memory_space<smem>>
    %2028 = vector.broadcast %2027 : f32 to vector<8x128xf32>
    %2029 = arith.mulf %2028, %1916 : vector<8x128xf32>
    %2030 = arith.addf %2026, %2029 : vector<8x128xf32>
    %c25_756 = arith.constant 25 : index
    %2031 = memref.load %arg7[%c25_756] : memref<27xf32, #tpu.memory_space<smem>>
    %2032 = vector.broadcast %2031 : f32 to vector<8x128xf32>
    %2033 = arith.mulf %2032, %1888 : vector<8x128xf32>
    %2034 = arith.addf %2030, %2033 : vector<8x128xf32>
    %c26_757 = arith.constant 26 : index
    %2035 = memref.load %arg7[%c26_757] : memref<27xf32, #tpu.memory_space<smem>>
    %c127_i32_758 = arith.constant 127 : i32
    %2036 = tpu.dynamic_rotate %1916 by %c127_i32_758 dim 1 : vector<8x128xf32>, i32 -> vector<8x128xf32>
    %c1_i32_759 = arith.constant 1 : i32
    %2037 = vector.broadcast %c1_i32_759 : i32 to vector<8x128xi32>
    %2038 = arith.addi %33, %2037 : vector<8x128xi32>
    %c0_i32_760 = arith.constant 0 : i32
    %2039 = vector.broadcast %c0_i32_760 : i32 to vector<8x128xi32>
    %2040 = arith.cmpi sge, %2038, %2039 : vector<8x128xi32>
    %c1_i32_761 = arith.constant 1 : i32
    %2041 = vector.broadcast %c1_i32_761 : i32 to vector<8x128xi32>
    %2042 = arith.addi %33, %2041 : vector<8x128xi32>
    %c8_i32_762 = arith.constant 8 : i32
    %2043 = vector.broadcast %c8_i32_762 : i32 to vector<8x128xi32>
    %2044 = arith.cmpi slt, %2042, %2043 : vector<8x128xi32>
    %2045 = arith.andi %2040, %2044 : vector<8x128xi1>
    %cst_763 = arith.constant 0.000000e+00 : f32
    %2046 = vector.broadcast %cst_763 : f32 to vector<8x128xf32>
    %2047 = arith.select %2045, %2036, %2046 : vector<8x128xi1>, vector<8x128xf32>
    %2048 = vector.broadcast %2035 : f32 to vector<8x128xf32>
    %2049 = arith.mulf %2048, %2047 : vector<8x128xf32>
    %2050 = arith.addf %2034, %2049 : vector<8x128xf32>
    %c1_764 = arith.constant 1 : index
    %c1_765 = arith.constant 1 : index
    %c1_766 = arith.constant 1 : index
    %c0_767 = arith.constant 0 : index
    %c0_768 = arith.constant 0 : index
    %2051 = vector.load %arg9[%c1_764, %c1_765, %c1_766, %c0_767, %c0_768] : memref<2x2x2x8x128xf32, #tpu.memory_space<vmem>>, vector<1x1x1x8x128xf32>
    %2052 = vector.shape_cast %2051 : vector<1x1x1x8x128xf32> to vector<8x128xf32>
    %2053 = vector.shape_cast %2050 : vector<8x128xf32> to vector<1x1x1x8x128xf32>
    tpu.vector_store %arg9[%c1_764, %c1_765, %c1_766, %c0_767, %c0_768], %2053 {strides = array<i32>} : memref<2x2x2x8x128xf32, #tpu.memory_space<vmem>>, vector<1x1x1x8x128xf32>,
    return
  }
}

</mosaic_0001>

<bundles_post_ra>
// kernel: decoder_forward.2
= control target key start
LH: loop header
LB: loop body
LE: loop exit
PB: predicated region body
PF: predicated region fallthrough
CT: control target
= control target key end

     0   :  { %12 = vsyncpa [#allocation4], 0  ;;  %s2079_s0 = inlined_call_operand.vmem [shape: f32[4,8,128], index: 0, kind: input, shape index: {}]   ;;  %s2080_s1 = inlined_call_operand.vmem [shape: f32[24], index: 1, kind: input, shape index: {}]   ;;  %s2081_s2 = inlined_call_operand.hbm [shape: f32[2], index: 2, kind: input, shape index: {}]   ;;  %s2082_s3 = inlined_call_operand.vmem [shape: f32[12], index: 3, kind: input, shape index: {}]   ;;  %s2083_s4 = inlined_call_operand.hbm [shape: f32[2], index: 4, kind: input, shape index: {}]   ;;  %s2084_s5 = inlined_call_operand.vmem [shape: f32[12], index: 5, kind: input, shape index: {}]   ;;  %s2085_s6 = inlined_call_operand.hbm [shape: f32[2], index: 6, kind: input, shape index: {}]   ;;  %s2086_s7 = inlined_call_operand.vmem [shape: f32[2,2,2,2,8,128], index: 7, kind: output, shape index: {}]  }
   0x1   :  { %13 = vsyncpa [#allocation3], 0 }
   0x2   :  { %14 = vsyncpa [#allocation7], 0  ;;  %s41_s26 = sshll.u32 %s2082_s3, 4  ;;  %s42_s26 = int_to_ptr.vmem [resolvable:$true] %s41_s26 }
   0x3   :  { %15 = vsyncpa [#allocation9], 0  ;;  %s50_s29 = sshll.u32 %s2083_s4, 4  ;;  %s1327_s30 = smov [#allocation6]   ;;  %s51_s29 = int_to_ptr.hbm [resolvable:$true] %s50_s29 }
   0x4   :  { %44 = dma.vmem_to_smem %s42_s26, 16, %s1327_s30, [#allocation7]  }
   0x5   :  { %s1328_s8 = smov [#allocation8]   ;;  %s23_s11 = sshll.u32 %s2080_s1, 4  ;;  %s24_s11 = int_to_ptr.vmem [resolvable:$true] %s23_s11 }
   0x6   :  { %53 = dma.hbm_to_smem %s51_s29, 16, %s1328_s8, [#allocation9]  }
   0x7   :  { %s32_s3 = sshll.u32 %s2081_s2, 4  ;;  %s1329_s14 = smov [#allocation2]   ;;  %s33_s3 = int_to_ptr.hbm [resolvable:$true] %s32_s3 }
   0x8   :  { %26 = dma.vmem_to_smem %s24_s11, 16, %s1329_s14, [#allocation4]  }
   0x9   :  { %s1330_s15 = smov [#allocation5]   ;;  %s59_s17 = sshll.u32 %s2084_s5, 4  ;;  %s60_s17 = int_to_ptr.vmem [resolvable:$true] %s59_s17 }
   0xa   :  { %35 = dma.hbm_to_smem %s33_s3, 16, %s1330_s15, [#allocation3]  }
   0xb   :  { %s68_s20 = sshll.u32 %s2085_s6, 4  ;;  %s1331_s1 = smov [#allocation10]   ;;  %s69_s20 = int_to_ptr.hbm [resolvable:$true] %s68_s20 }
   0xc   :  { %62 = dma.vmem_to_smem %s60_s17, 16, %s1331_s1, [#allocation7]  }
   0xd   :  { %s1332_s21 = smov [#allocation11]  }
   0xe   :  { %71 = dma.hbm_to_smem %s69_s20, 16, %s1332_s21, [#allocation9]  }
   0xf   :  { %1315 = dma.done.wait [#allocation4], 16  }
  0x10   :  { %1316 = vsyncadd [#allocation4], 4294967280 }
  0x11   :  { %1317 = dma.done.wait [#allocation3], 16  }
  0x12   :  { %1318 = vsyncadd [#allocation3], 4294967280 }
  0x13   :  { %1319 = dma.done.wait [#allocation7], 16  }
  0x14   :  { %1320 = vsyncadd [#allocation7], 4294967280 }
  0x15   :  { %1321 = dma.done.wait [#allocation9], 16  }
  0x16   :  { %1322 = vsyncadd [#allocation9], 4294967280 }
  0x17   :  { %1323 = dma.done.wait [#allocation7], 16  }
  0x18   :  { %1324 = vsyncadd [#allocation7], 4294967280 }
  0x19   :  { %1325 = dma.done.wait [#allocation9], 16  }
  0x1a   :  { %1326 = vsyncadd [#allocation9], 4294967280 }
  0x1b   :  { %96 = sfence }
  0x1c   :  { %v97_v0 = vlaneseq  ;;  %s1395_s2 = sld [smem:[#allocation5]]  ;;  %v1403_v2 = vld [vmem:[%s2079_s0] sm:$0xff]  ;;  %v1417_v5 = vld [vmem:[%s2079_s0 + $0x8] sm:$0xff]  ;;  %v1442_v11 = vld [vmem:[%s2079_s0 + $0x10] sm:$0xff]  ;;  %s1333_s27 = smov 4  }
  0x1d   :  { %s1397_s5 = sld [smem:[#allocation2]]  ;;  %v132_v4 = vrot.slane %v1403_v2, 7  ;;  %v138_v8 = vrot.slane %v1417_v5, 7  ;;  %v581_v16 = vrot.slane %v1403_v2, 1  ;;  %v140_v18 = vrot.slane %v1442_v11, 7  ;;  %v1466_v20 = vld [vmem:[%s2079_s0 + $0x18] sm:$0xff] }
  0x1e   :  { %v98_v1 = vshrl.u32 %v97_v0, 7  ;;  %s1405_s23 = sld [smem:[#allocation2 + $0x1]]  ;;  %v142_v29 = vrot.slane %v1466_v20, 7  ;;  %v587_v31 = vrot.slane %v1417_v5, 1  ;;  %v589_v35 = vrot.slane %v1442_v11, 1 }
  0x1f   :  { %s1407_s24 = sld [smem:[#allocation2 + $0x2]]  ;;  %v591_v57 = vrot.slane %v1466_v20, 1 }
  0x20   :  { %v133_v3 = vadd.s32 4294967295, %v98_v1  ;;  %s1409_s25 = sld [smem:[#allocation2 + $0x3]]  ;;  %v1437_v10 = vadd.s32 1, %v98_v1 }
  0x21   :  { %s1412_s26 = sld [smem:[#allocation2 + $0x4]] }
  0x22   :  { %vm134_vm0 = vcmp.ge.s32.totalorder %v133_v3, 0  ;;  %vm135_vm1 = vcmp.lt.s32.totalorder %v133_v3, 4  ;;  %s1419_s29 = sld [smem:[#allocation2 + $0x5]]  ;;  %v145_v12 = vstv %s1395_s2  ;;  %vm584_vm3 = vcmp.lt.s32.totalorder %v1437_v10, 4 }
  0x23   :  { %vm1421_vm2 = vmand %vm134_vm0, %vm135_vm1  ;;  %s1425_s30 = sld [smem:[#allocation2 + $0x6]]  ;;  %v154_v9 = vstv %s1397_s5  ;;  %v1478_v26 = vsel %vm584_vm3, %v581_v16, 0.0  ;;  %v588_v44 = vsel %vm584_vm3, %v587_v31, 0.0  ;;  %v590_v56 = vsel %vm584_vm3, %v589_v35, 0.0 }
  0x24   :  { %s1427_s8 = sld [smem:[#allocation2 + $0x7]]  ;;  %v1431_v7 = vsel %vm1421_vm2, %v132_v4, 0.0  ;;  %v1456_v17 = vsel %vm1421_vm2, %v138_v8, 0.0  ;;  %v1483_v28 = vsel %vm1421_vm2, %v140_v18, 0.0  ;;  %v1503_v42 = vsel %vm1421_vm2, %v142_v29, 0.0 }
  0x25   :  { %s150_s9 = sadd.f32 %s1407_s24, %s1405_s23  ;;  %v155_v15 = vmul.f32 %v154_v9, %v1431_v7  ;;  %v603_v27 = vstv %s1407_s24  ;;  %v592_v4 = vsel %vm584_vm3, %v591_v57, 0.0 }
  0x26   :  { %s1444_s12 = sld [smem:[#allocation2 + $0x8]]  ;;  %v164_v19 = vstv %s1409_s25  ;;  %v604_v37 = vmul.f32 %v603_v27, %v1478_v26 }
  0x27   :  { %v151_v13 = vstv %s150_s9  ;;  %s1447_s13 = sld [smem:[#allocation2 + $0x9]]  ;;  %v165_v25 = vmul.f32 %v164_v19, %v1456_v17 }
  0x28   :  { %v152_v14 = vmul.f32 %v151_v13, %v1403_v2  ;;  %s160_s3 = sadd.f32 %s1419_s29, %s1412_s26  ;;  %v613_v45 = vstv %s1419_s29 }
  0x29   :  { %s1460_s14 = sld [smem:[#allocation2 + $0xa]]  ;;  %v174_v30 = vstv %s1425_s30  ;;  %v614_v55 = vmul.f32 %v613_v45, %v588_v44 }
  0x2a   :  { %v153_v21 = vadd.f32 %v152_v14, %v145_v12  ;;  %v161_v22 = vstv %s160_s3  ;;  %s1468_s16 = sld [smem:[#allocation2 + $0xb]]  ;;  %v175_v39 = vmul.f32 %v174_v30, %v1483_v28 }
  0x2b   :  { %v162_v23 = vmul.f32 %v1417_v5, %v161_v22  ;;  %s1471_s17 = sld [smem:[#allocation2 + $0xc]] }
  0x2c   :  { %v156_v24 = vadd.f32 %v155_v15, %v153_v21  ;;  %s170_s18 = sadd.f32 %s1444_s12, %s1427_s8  ;;  %v623_v58 = vstv %s1444_s12 }
  0x2d   :  { %s599_s0 = sadd.f32 %s1405_s23, %s1397_s5  ;;  %v184_v43 = vstv %s1447_s13  ;;  %v624_v3 = vmul.f32 %v623_v58, %v590_v56 }
  0x2e   :  { %v163_v32 = vadd.f32 %v162_v23, %v156_v24  ;;  %v171_v33 = vstv %s170_s18  ;;  %s609_s19 = sadd.f32 %s1412_s26, %s1409_s25  ;;  %v185_v53 = vmul.f32 %v184_v43, %v1503_v42 }
  0x2f   :  { %v172_v34 = vmul.f32 %v1442_v11, %v171_v33  ;;  %v600_v36 = vstv %s599_s0  ;;  %s619_s20 = sadd.f32 %s1427_s8, %s1425_s30 }
  0x30   :  { %v166_v38 = vadd.f32 %v165_v25, %v163_v32  ;;  %s180_s1 = sadd.f32 %s1468_s16, %s1460_s14  ;;  %v601_v40 = vmul.f32 %v600_v36, %v1403_v2  ;;  %v610_v41 = vstv %s609_s19  ;;  %v633_v6 = vstv %s1468_s16 }
  0x31   :  { %s629_s21 = sadd.f32 %s1460_s14, %s1447_s13  ;;  %v611_v49 = vmul.f32 %v1417_v5, %v610_v41  ;;  %v620_v51 = vstv %s619_s20  ;;  %v634_v10 = vmul.f32 %v633_v6, %v592_v4  ;;  %s1334_s13 = smov 124  }
  0x32   :  { %v173_v46 = vadd.f32 %v172_v34, %v166_v38  ;;  %v181_v47 = vstv %s180_s1  ;;  %v602_v48 = vadd.f32 %v601_v40, %v145_v12  ;;  %s1512_s2 = sld [smem:[#allocation2 + $0xe]]  ;;  %v621_v61 = vmul.f32 %v1442_v11, %v620_v51 }
  0x33   :  { %v182_v50 = vmul.f32 %v1466_v20, %v181_v47  ;;  %s1515_s5 = sld [smem:[#allocation5 + $0x1]]  ;;  %v630_v62 = vstv %s629_s21 }
  0x34   :  { %v176_v52 = vadd.f32 %v175_v39, %v173_v46  ;;  %v605_v54 = vadd.f32 %v604_v37, %v602_v48  ;;  %s1518_s6 = sld [smem:[#allocation2 + $0xd]]  ;;  %v631_v9 = vmul.f32 %v1466_v20, %v630_v62 }
  0x35   :  { %s1524_s22 = sld [smem:[#allocation2 + $0xf]] }
  0x36   :  { %v183_v59 = vadd.f32 %v182_v50, %v176_v52  ;;  %v612_v60 = vadd.f32 %v611_v49, %v605_v54  ;;  %s1527_s23 = sld [smem:[#allocation2 + $0x10]] }
  0x37   :  { %s1529_s24 = sld [smem:[#allocation2 + $0x11]] }
  0x38   :  { %v1531_v63 = vadd.f32 %v185_v53, %v183_v59  ;;  %v615_v1 = vadd.f32 %v614_v55, %v612_v60  ;;  %s1533_s25 = sld [smem:[#allocation2 + $0x12]]  ;;  %v646_v12 = vstv %s1512_s2 }
  0x39   :  { %s1538_s26 = sld [smem:[#allocation2 + $0x13]]  ;;  %v637_v14 = vstv %s1515_s5  ;;  %v647_v16 = vmul.f32 %v646_v12, %v1478_v26  ;;  %v197_v26 = vstv %s1471_s17 }
  0x3a   :  { %230 = vrot.lane.b32.xlu0 %v1531_v63, %s1333_s27  ;;  %v622_v8 = vadd.f32 %v621_v61, %v615_v1  ;;  %s642_s28 = sadd.f32 %s1518_s6, %s1471_s17  ;;  %v198_v35 = vmul.f32 %v197_v26, %v1431_v7 }
  0x3b   :  { %s1546_s29 = sld [smem:[#allocation2 + $0x14]]  ;;  %v207_v40 = vstv %s1524_s22 }
  0x3c   :  { %v625_v13 = vadd.f32 %v624_v3, %v622_v8  ;;  %v643_v15 = vstv %s642_s28  ;;  %s652_s30 = sadd.f32 %s1527_s23, %s1524_s22  ;;  %v208_v49 = vmul.f32 %v207_v40, %v1456_v17 }
  0x3d   :  { %v644_v18 = vmul.f32 %v643_v15, %v1403_v2  ;;  %s1553_s8 = sld [smem:[#allocation2 + $0x15]]  ;;  %v656_v22 = vstv %s1529_s24 }
  0x3e   :  { %v632_v19 = vadd.f32 %v631_v9, %v625_v13  ;;  %v653_v21 = vstv %s652_s30  ;;  %s1556_s9 = sld [smem:[#allocation2 + $0x16]]  ;;  %v657_v29 = vmul.f32 %v656_v22, %v588_v44  ;;  %v217_v51 = vstv %s1533_s25  ;;  %s1336_s30 = smov 1  }
  0x3f   :  { %v645_v23 = vadd.f32 %v644_v18, %v637_v14  ;;  %v654_v24 = vmul.f32 %v1417_v5, %v653_v21  ;;  %s662_s10 = sadd.f32 %s1538_s26, %s1533_s25 }
  0x40   :  { %v1561_v25 = vadd.f32 %v634_v10, %v632_v19  ;;  %s1563_s11 = sld [smem:[#allocation2 + $0x17]] }
  0x41   :  { %v648_v27 = vadd.f32 %v647_v16, %v645_v23  ;;  %v663_v30 = vstv %s662_s10  ;;  %s193_s12 = sadd.f32 %s1512_s2, %s1518_s6  ;;  %v666_v31 = vstv %s1546_s29 }
  0x42   :  { %679 = vrot.lane.b32.xlu1 %v1561_v25, %s1333_s27  ;;  %409 = vrot.lane.b32.xlu0 %v1531_v63, %s1334_s13  ;;  %s203_s3 = sadd.f32 %s1529_s24, %s1527_s23  ;;  %v664_v33 = vmul.f32 %v1442_v11, %v663_v30  ;;  %v667_v39 = vmul.f32 %v666_v31, %v590_v56  ;;  %v218_v56 = vmul.f32 %v217_v51, %v1483_v28 }
  0x43   :  { %v655_v32 = vadd.f32 %v654_v24, %v648_v27  ;;  %v194_v34 = vstv %s193_s12  ;;  %s213_s14 = sadd.f32 %s1546_s29, %s1538_s26  ;;  %v227_v58 = vstv %s1553_s8  ;;  %s1335_s29 = smov 127  }
  0x44   :  { %s672_s15 = sadd.f32 %s1556_s9, %s1553_s8  ;;  %v195_v36 = vmul.f32 %v194_v34, %v1403_v2  ;;  %v204_v37 = vstv %s203_s3  ;;  %v228_v61 = vmul.f32 %v227_v58, %v1503_v42 }
  0x45   :  { %v658_v38 = vadd.f32 %v657_v29, %v655_v32  ;;  %v205_v45 = vmul.f32 %v1417_v5, %v204_v37  ;;  %v214_v48 = vstv %s213_s14  ;;  %s1050_s16 = sld [smem:[#allocation6 + $0x1]] }
  0x46   :  { %v673_v41 = vstv %s672_s15  ;;  %v676_v43 = vstv %s1563_s11  ;;  %v196_v44 = vadd.f32 %v637_v14, %v195_v36  ;;  %s223_s4 = sadd.f32 %s1563_s11, %s1556_s9  ;;  %v215_v53 = vmul.f32 %v1442_v11, %v214_v48 }
  0x47   :  { %v665_v46 = vadd.f32 %v664_v33, %v658_v38  ;;  %v674_v47 = vmul.f32 %v1466_v20, %v673_v41  ;;  %v677_v50 = vmul.f32 %v676_v43, %v592_v4  ;;  %s1609_s17 = sld [smem:[#allocation6 + $0x2]] }
  0x48   :  { %v199_v7 = vadd.f32 %v198_v35, %v196_v44  ;;  %v224_v5 = vstv %s223_s4  ;;  %s1614_s18 = sld [smem:[#allocation6 + $0x4]] }
  0x49   :  { %v668_v2 = vadd.f32 %v667_v39, %v665_v46  ;;  %v225_v17 = vmul.f32 %v1466_v20, %v224_v5  ;;  %v1612_v20 = vand.u32 127, %v97_v0  ;;  %s1616_s0 = sld [smem:[#allocation6 + $0x5]] }
  0x4a   :  { %847 = vrot.lane.b32.xlu1 %v1561_v25, %s1334_s13  ;;  %v206_v52 = vadd.f32 %v205_v45, %v199_v7  ;;  %s240_s19 = sld [smem:[#allocation8]] }
  0x4b   :  { %v675_v54 = vadd.f32 %v674_v47, %v668_v2  ;;  %v105_v28 = vand.u32 15, %v1612_v20  ;;  %s1620_s1 = sld [smem:[#allocation6]] }
  0x4c   :  { %v209_v55 = vadd.f32 %v208_v49, %v206_v52  ;;  %s1624_s21 = sld [smem:[#allocation6 + $0x3]] }
  0x4d   :  { %v1594_v57 = vadd.f32 %v677_v50, %v675_v54  ;;  %s246_s20 = sadd.f32 %s1609_s17, %s1050_s16  ;;  %v1622_v1 = vadd.s32 4294967292, %v105_v28  ;;  %v1642_v15 = vadd.s32 4, %v105_v28  ;;  %v429_v26 = vstv %s1609_s17 }
  0x4e   :  { %v216_v59 = vadd.f32 %v215_v53, %v209_v55  ;;  %s1632_s6 = sld [smem:[#allocation6 + $0x7]] }
  0x4f   :  { %682 = vrot.lane.b32.xlu0 %v1594_v57, %s1333_s27  ;;  %v247_v42 = vstv %s246_s20  ;;  %s256_s2 = sadd.f32 %s1616_s0, %s1614_s18  ;;  %vm233_vm4 = vcmp.ge.s32.totalorder %v1622_v1, 0  ;;  %vm413_vm5 = vcmp.lt.s32.totalorder %v1642_v15, 16  ;;  %v439_v38 = vstv %s1616_s0 }
  0x50   :  { %v219_v60 = vadd.f32 %v218_v56, %v216_v59  ;;  %v248_v0 = vmul.f32 %v247_v42, %v1531_v63  ;;  %v241_v3 = vstv %s240_s19  ;;  %s1638_s22 = sld [smem:[#allocation6 + $0x8]]  ;;  %v693_v33 = vmul.f32 %v1561_v25, %v247_v42 }
  0x51   :  { %s425_s5 = sadd.f32 %s1050_s16, %s1620_s1  ;;  %v250_v4 = vstv %s1620_s1  ;;  %v257_v6 = vstv %s256_s2 }
  0x52   :  { %850 = vrot.lane.b32.xlu1 %v1594_v57, %s1334_s13  ;;  %v226_v11 = vadd.f32 %v225_v17, %v219_v60  ;;  %v249_v9 = vadd.f32 %v248_v0, %v241_v3  ;;  %v260_v16 = vstv %s1624_s21  ;;  %s435_s23 = sadd.f32 %s1614_s18, %s1624_s21  ;;  %v694_v43 = vadd.f32 %v693_v33, %v241_v3 }
  0x53   :  { %v426_v13 = vstv %s425_s5  ;;  %s1652_s24 = sld [smem:[#allocation8 + $0x1]]  ;;  %v703_v53 = vmul.f32 %v1594_v57, %v257_v6 }
  0x54   :  { %v1603_v62 = vadd.f32 %v228_v61, %v226_v11  ;;  %v427_v21 = vmul.f32 %v426_v13, %v1531_v63  ;;  %s1658_s25 = sld [smem:[#allocation6 + $0x6]]  ;;  %v436_v27 = vstv %s435_s23  ;;  %v861_v40 = vmul.f32 %v1561_v25, %v426_v13 }
  0x55   :  { %s1661_s26 = sld [smem:[#allocation6 + $0xa]]  ;;  %v871_v58 = vmul.f32 %v1594_v57, %v436_v27 }
  0x56   :  { %237 = vrot.lane.b32.xlu2 %v1603_v62, %s1333_s27  ;;  %v258_v14 = vmul.f32 %v257_v6, %v1603_v62  ;;  %v428_v32 = vadd.f32 %v427_v21, %v241_v3  ;;  %s1666_s27 = sld [smem:[#allocation6 + $0xb]]  ;;  %v437_v37 = vmul.f32 %v436_v27, %v1603_v62  ;;  %v862_v49 = vadd.f32 %v861_v40, %v241_v3 }
  0x57   :  { %s269_s28 = sadd.f32 %s1638_s22, %s1632_s6 }
  0x58   :  { %s1689_s8 = sld [smem:[#allocation6 + $0x9]] }
  0x59   :  { %v270_v46 = vstv %s269_s28  ;;  %v264_v54 = vstv %s1652_s24  ;;  %s1766_s12 = sld [smem:[#allocation10 + $0x1]] }
  0x5a   :  { %v271_v50 = vmul.f32 %v270_v46, %v1531_v63  ;;  %v273_v5 = vstv %s1658_s25  ;;  %s448_s10 = sadd.f32 %s1632_s6, %s1658_s25  ;;  %v716_v1 = vmul.f32 %v1561_v25, %v270_v46 }
  0x5b   :  { %s1770_s3 = sld [smem:[#allocation10 + $0x7]] }
  0x5c   :  { %s279_s9 = sadd.f32 %s1666_s27, %s1661_s26  ;;  %v272_v59 = vadd.f32 %v271_v50, %v264_v54  ;;  %v449_v28 = vstv %s448_s10  ;;  %v462_v33 = vstv %s1666_s27 }
  0x5d   :  { %s1772_s14 = sld [smem:[#allocation10 + $0x8]] }
  0x5e   :  { %416 = vrot.lane.b32.xlu2 %v1603_v62, %s1334_s13  ;;  %v280_v60 = vstv %s279_s9  ;;  %s458_s11 = sadd.f32 %s1661_s26, %s1689_s8 }
  0x5f   :  { %v281_v3 = vmul.f32 %v280_v60, %v1603_v62  ;;  %s1768_s13 = sld [smem:[#allocation10 + $0x2]] }
  0x60   :  { %s296_s15 = sld [smem:[#allocation11]] }
  0x61   :  { %s1067_s4 = sld [smem:[#allocation11 + $0x1]] }
  0x62   :  { %s1774_s16 = sld [smem:[#allocation10 + $0x4]] }
  0x63   :  { %s1776_s17 = sld [smem:[#allocation10 + $0x5]] }
  0x64   :  { %s1778_s18 = sld [smem:[#allocation10 + $0xa]] }
  0x65   :  { %s1780_s0 = sld [smem:[#allocation10 + $0xb]] }
  0x66   :  { %s302_s19 = sadd.f32 %s1768_s13, %s1766_s12  ;;  %v1808_v50 = vstv %s296_s15 }
  0x67   :  { %s325_s20 = sadd.f32 %s1772_s14, %s1770_s3 }
  0x68   :  { %s1787_s1 = sld [smem:[#allocation10]] }
  0x69   :  { %s1789_s21 = sld [smem:[#allocation10 + $0x6]] }
  0x6a   :  { %s753_s2 = sadd.f32 %s1776_s17, %s1774_s16 }
  0x6b   :  { %s776_s5 = sadd.f32 %s1780_s0, %s1778_s18 }
  0x6c   :  { %s1806_s6 = sld [smem:[#allocation10 + $0x3]] }
  0x6e   :  { %s535_s23 = sadd.f32 %s1766_s12, %s1787_s1 }
  0x6f   :  { %s558_s24 = sadd.f32 %s1770_s3, %s1789_s21 }
  0x72   :  { %s373_s25 = sadd.f32 %s1774_s16, %s1806_s6 }
  0xac   :  { %v231_v8 = vpop.permute.xlu0 %230 }
  0xad   :  { %v1636_v12 = vsel %vm233_vm4, %v231_v8, 0.0 }
  0xae   :  { %v251_v10 = vmul.f32 %v250_v4, %v1636_v12  ;;  %v274_v17 = vmul.f32 %v273_v5, %v1636_v12 }
  0xb0   :  { %v252_v18 = vadd.f32 %v251_v10, %v249_v9  ;;  %v238_v19 = vpop.permute.xlu2 %237  ;;  %v275_v8 = vadd.f32 %v274_v17, %v272_v59  ;;  %v450_v9 = vmul.f32 %v449_v28, %v1531_v63  ;;  %v283_v10 = vstv %s1689_s8 }
  0xb1   :  { %v1650_v22 = vsel %vm233_vm4, %v238_v19, 0.0 }
  0xb2   :  { %v259_v23 = vadd.f32 %v258_v14, %v252_v18  ;;  %v261_v24 = vmul.f32 %v260_v16, %v1650_v22  ;;  %v452_v14 = vstv %s1638_s22  ;;  %v282_v63 = vadd.f32 %v281_v3, %v275_v8  ;;  %s1818_s22 = sld [smem:[#allocation10 + $0x9]] }
  0xb3   :  { %v284_v19 = vmul.f32 %v283_v10, %v1650_v22  ;;  %v451_v15 = vadd.f32 %v450_v9, %v264_v54  ;;  %v1841_v3 = vstv %s535_s23 }
  0xb4   :  { %v680_v29 = vpop.permute.xlu1 %679  ;;  %v1663_v30 = vadd.f32 %v261_v24, %v259_v23  ;;  %v410_v31 = vpop.permute.xlu0 %409  ;;  %v459_v23 = vstv %s458_s11  ;;  %v717_v24 = vadd.f32 %v716_v1, %v264_v54 }
  0xb5   :  { %v415_v34 = vsel %vm413_vm5, %v410_v31, 0.0  ;;  %v1674_v35 = vsel %vm233_vm4, %v680_v29, 0.0  ;;  %v1734_v27 = vadd.f32 %v284_v19, %v282_v63  ;;  %v884_v31 = vmul.f32 %v1561_v25, %v449_v28 }
  0xb6   :  { %v430_v36 = vmul.f32 %v429_v26, %v415_v34  ;;  %347 = vrot.lane.b32.xlu0 %v1663_v30, %s1335_s29  ;;  %286 = vrot.lane.b32.xlu2 %v1663_v30, %s1336_s30  ;;  %v696_v44 = vmul.f32 %v1674_v35, %v250_v4  ;;  %v453_v21 = vmul.f32 %v452_v14, %v415_v34 }
  0xb7   :  { %v726_v34 = vmul.f32 %v1594_v57, %v280_v60 }
  0xb8   :  { %v431_v39 = vadd.f32 %v430_v36, %v428_v32  ;;  %v417_v41 = vpop.permute.xlu2 %416  ;;  %v697_v51 = vadd.f32 %v696_v44, %v694_v43  ;;  %v454_v29 = vadd.f32 %v453_v21, %v451_v15  ;;  %v460_v32 = vmul.f32 %v459_v23, %v1603_v62  ;;  %s396_s26 = sadd.f32 %s1778_s18, %s1818_s22 }
  0xb9   :  { %v1686_v45 = vsel %vm413_vm5, %v417_v41, 0.0  ;;  %v885_v36 = vadd.f32 %v884_v31, %v264_v54  ;;  %v894_v41 = vmul.f32 %v1594_v57, %v459_v23  ;;  %v117_v57 = vand.u32 3, %v1612_v20 }
  0xba   :  { %v438_v47 = vadd.f32 %v437_v37, %v431_v39  ;;  %v440_v48 = vmul.f32 %v439_v38, %v1686_v45  ;;  %v704_v61 = vadd.f32 %v703_v53, %v697_v51  ;;  %v1811_v51 = vstv %s1787_s1 }
  0xbb   :  { %v1816_v53 = vstv %s1789_s21  ;;  %v1869_v23 = vstv %s373_s25 }
  0xbc   :  { %v848_v7 = vpop.permute.xlu1 %847  ;;  %v1691_v2 = vadd.f32 %v440_v48, %v438_v47  ;;  %v1791_v47 = vadd.s32 4294967295, %v117_v57  ;;  %v1793_v48 = vstv %s302_s19 }
  0xbd   :  { %v849_v52 = vsel %vm413_vm5, %v848_v7, 0.0  ;;  %v1795_v7 = vstv %s325_s20  ;;  %v304_v20 = vmul.f32 %v1793_v48, %v1663_v30 }
  0xbe   :  { %v864_v55 = vmul.f32 %v849_v52, %v429_v26  ;;  %465 = vrot.lane.b32.xlu1 %v1691_v2, %s1336_s30  ;;  %523 = vrot.lane.b32.xlu2 %v1691_v2, %s1335_s29  ;;  %v719_v26 = vmul.f32 %v1674_v35, %v273_v5  ;;  %v887_v37 = vmul.f32 %v849_v52, %v452_v14  ;;  %vm289_vm6 = vcmp.ge.s32.totalorder %v1791_v47, 0 }
  0xbf   :  { %v461_v35 = vadd.f32 %v460_v32, %v454_v29  ;;  %v1813_v52 = vstv %s1067_s4  ;;  %v1822_v5 = vadd.s32 1, %v117_v57  ;;  %v305_v59 = vadd.f32 %v304_v20, %v1808_v50 }
  0xc0   :  { %v865_v56 = vadd.f32 %v864_v55, %v862_v49  ;;  %v720_v22 = vadd.f32 %v719_v26, %v717_v24  ;;  %v888_v39 = vadd.f32 %v887_v37, %v885_v36  ;;  %v327_v49 = vmul.f32 %v1795_v7, %v1663_v30 }
  0xc1   :  { %v683_v11 = vpop.permute.xlu0 %682  ;;  %vm351_vm7 = vcmp.lt.s32.totalorder %v1822_v5, 4  ;;  %v1859_v14 = vstv %s1772_s14  ;;  %v1871_v24 = vstv %s396_s26 }
  0xc2   :  { %v684_v42 = vsel %vm233_vm4, %v683_v11, 0.0  ;;  %v872_v6 = vadd.f32 %v871_v58, %v865_v56  ;;  %v727_v25 = vadd.f32 %v726_v34, %v720_v22  ;;  %v895_v44 = vadd.f32 %v894_v41, %v888_v39 }
  0xc3   :  { %v706_v0 = vmul.f32 %v684_v42, %v260_v16  ;;  %v729_v62 = vmul.f32 %v684_v42, %v283_v10  ;;  %v1828_v56 = vstv %s753_s2  ;;  %v1830_v58 = vstv %s776_s5 }
  0xc4   :  { %v851_v4 = vpop.permute.xlu1 %850  ;;  %v328_v60 = vadd.f32 %v327_v49, %v1813_v52  ;;  %v314_v42 = vmul.f32 %v1828_v56, %v1734_v27  ;;  %v1856_v10 = vstv %s1768_s13 }
  0xc5   :  { %v1715_v13 = vadd.f32 %v706_v0, %v704_v61  ;;  %v852_v12 = vsel %vm413_vm5, %v851_v4, 0.0  ;;  %v1754_v43 = vadd.f32 %v729_v62, %v727_v25  ;;  %v337_v0 = vmul.f32 %v1830_v58, %v1734_v27 }
  0xc6   :  { %v874_v18 = vmul.f32 %v852_v12, %v439_v38  ;;  %v463_v38 = vmul.f32 %v462_v33, %v1686_v45  ;;  %v897_v45 = vmul.f32 %v852_v12, %v462_v33  ;;  %v1843_v4 = vstv %s558_s24 }
  0xc7   :  { %731 = vrot.lane.b32.xlu0 %v1715_v13, %s1336_s30  ;;  %789 = vrot.lane.b32.xlu1 %v1715_v13, %s1335_s29  ;;  %v560_v8 = vmul.f32 %v1843_v4, %v1691_v2  ;;  %v388_v25 = vmul.f32 %v1843_v4, %v1663_v30 }
  0xc8   :  { %v1728_v16 = vadd.f32 %v874_v18, %v872_v6  ;;  %v1747_v40 = vadd.f32 %v463_v38, %v461_v35  ;;  %v1758_v46 = vadd.f32 %v897_v45, %v895_v44  ;;  %v537_v6 = vmul.f32 %v1841_v3, %v1691_v2 }
  0xc9   :  { %v561_v19 = vadd.f32 %v560_v8, %v1813_v52  ;;  %v365_v38 = vmul.f32 %v1841_v3, %v1663_v30  ;;  %v375_v8 = vmul.f32 %v1869_v23, %v1734_v27 }
  0xca   :  { %899 = vrot.lane.b32.xlu2 %v1728_v16, %s1336_s30  ;;  %v538_v63 = vadd.f32 %v537_v6, %v1808_v50  ;;  %v547_v31 = vmul.f32 %v1747_v40, %v1869_v23  ;;  %v570_v32 = vmul.f32 %v1747_v40, %v1871_v24  ;;  %v913_v34 = vmul.f32 %v1728_v16, %v1793_v48 }
  0xcb   :  { %v936_v36 = vmul.f32 %v1728_v16, %v1795_v7  ;;  %v923_v49 = vmul.f32 %v1758_v46, %v1828_v56 }
  0xcc   :  { %v914_v62 = vadd.f32 %v913_v34, %v1808_v50 }
  0xcd   :  { %v937_v39 = vadd.f32 %v936_v36, %v1813_v52 }
  0xcf   :  { %957 = vrot.lane.b32.xlu0 %v1728_v16, %s1335_s29  ;;  %293 = vrot.lane.b32.xlu1 %v1734_v27, %s1336_s30 }
  0xd2   :  { %354 = vrot.lane.b32.xlu2 %v1734_v27, %s1335_s29 }
  0xd7   :  { %468 = vrot.lane.b32.xlu0 %v1747_v40, %s1336_s30  ;;  %526 = vrot.lane.b32.xlu1 %v1747_v40, %s1335_s29 }
  0xda   :  { %734 = vrot.lane.b32.xlu2 %v1754_v43, %s1336_s30 }
  0xdf   :  { %792 = vrot.lane.b32.xlu0 %v1754_v43, %s1335_s29  ;;  %902 = vrot.lane.b32.xlu1 %v1758_v46, %s1336_s30 }
  0xe2   :  { %960 = vrot.lane.b32.xlu2 %v1758_v46, %s1335_s29 }
 0x110   :  { %v287_v54 = vpop.permute.xlu2 %286 }
 0x111   :  { %v292_v55 = vsel %vm289_vm6, %v287_v54, 0.0  ;;  %v946_v54 = vmul.f32 %v1758_v46, %v1830_v58 }
 0x112   :  { %v307_v17 = vmul.f32 %v1811_v51, %v292_v55  ;;  %v330_v61 = vmul.f32 %v1816_v53, %v292_v55  ;;  %v366_v55 = vadd.f32 %v365_v38, %v1808_v50 }
 0x114   :  { %v308_v11 = vadd.f32 %v307_v17, %v305_v59  ;;  %v331_v28 = vadd.f32 %v330_v61, %v328_v60  ;;  %v389_v59 = vadd.f32 %v388_v25, %v1813_v52 }
 0x116   :  { %v1851_v9 = vadd.f32 %v314_v42, %v308_v11  ;;  %v1853_v12 = vadd.f32 %v337_v0, %v331_v28  ;;  %v1910_v28 = vstv %s1776_s17  ;;  %v1913_v42 = vstv %s1780_s0 }
 0x118   :  { %v524_v18 = vpop.permute.xlu2 %523 }
 0x119   :  { %v525_v1 = vsel %vm351_vm7, %v524_v18, 0.0  ;;  %v398_v18 = vmul.f32 %v1871_v24, %v1734_v27 }
 0x11a   :  { %v540_v15 = vmul.f32 %v1856_v10, %v525_v1  ;;  %v563_v21 = vmul.f32 %v1859_v14, %v525_v1 }
 0x11c   :  { %v541_v26 = vadd.f32 %v540_v15, %v538_v63  ;;  %v564_v29 = vadd.f32 %v563_v21, %v561_v19  ;;  %v479_v19 = vmul.f32 %v1691_v2, %v1793_v48  ;;  %v502_v15 = vmul.f32 %v1691_v2, %v1795_v7 }
 0x11e   :  { %v1877_v33 = vadd.f32 %v547_v31, %v541_v26  ;;  %v1879_v22 = vadd.f32 %v570_v32, %v564_v29 }
 0x124   :  { %v900_v37 = vpop.permute.xlu2 %899 }
 0x125   :  { %v901_v35 = vsel %vm289_vm6, %v900_v37, 0.0  ;;  %v480_v37 = vadd.f32 %v479_v19, %v1808_v50  ;;  %v1970_v19 = vstv %s1806_s6 }
 0x126   :  { %v916_v41 = vmul.f32 %v901_v35, %v1811_v51  ;;  %v939_v44 = vmul.f32 %v901_v35, %v1816_v53  ;;  %v503_v35 = vadd.f32 %v502_v15, %v1813_v52  ;;  %v1973_v15 = vstv %s1818_s22 }
 0x128   :  { %v917_v45 = vadd.f32 %v916_v41, %v914_v62  ;;  %v940_v57 = vadd.f32 %v939_v44, %v937_v39  ;;  %v348_v20 = vpop.permute.xlu0 %347  ;;  %v489_v44 = vmul.f32 %v1828_v56, %v1747_v40 }
 0x129   :  { %v353_v30 = vsel %vm351_vm7, %v348_v20, 0.0  ;;  %v768_v20 = vmul.f32 %v1715_v13, %v1795_v7 }
 0x12a   :  { %v368_v17 = vmul.f32 %v1856_v10, %v353_v30  ;;  %v391_v60 = vmul.f32 %v1859_v14, %v353_v30  ;;  %v1905_v61 = vadd.f32 %v923_v49, %v917_v45  ;;  %v1907_v11 = vadd.f32 %v946_v54, %v940_v57 }
 0x12b   :  { %v512_v45 = vmul.f32 %v1830_v58, %v1747_v40  ;;  %v745_v57 = vmul.f32 %v1715_v13, %v1793_v48  ;;  %v803_v54 = vmul.f32 %v1715_v13, %v1841_v3  ;;  %v826_v30 = vmul.f32 %v1715_v13, %v1843_v4 }
 0x12c   :  { %v369_v0 = vadd.f32 %v368_v17, %v366_v55  ;;  %v392_v6 = vadd.f32 %v391_v60, %v389_v59  ;;  %v355_v1 = vpop.permute.xlu2 %354  ;;  %v755_v48 = vmul.f32 %v1828_v56, %v1754_v43  ;;  %v769_v7 = vadd.f32 %v768_v20, %v1813_v52 }
 0x12d   :  { %v356_v63 = vsel %vm351_vm7, %v355_v1, 0.0  ;;  %v746_v59 = vadd.f32 %v745_v57, %v1808_v50  ;;  %v804_v13 = vadd.f32 %v803_v54, %v1808_v50 }
 0x12e   :  { %v376_v21 = vadd.f32 %v375_v8, %v369_v0  ;;  %v378_v26 = vmul.f32 %v1910_v28, %v356_v63  ;;  %v399_v29 = vadd.f32 %v398_v18, %v392_v6  ;;  %v401_v31 = vmul.f32 %v1913_v42, %v356_v63 }
 0x12f   :  { %v827_v6 = vadd.f32 %v826_v30, %v1813_v52 }
 0x130   :  { %v379_v32 = vadd.f32 %v378_v26, %v376_v21  ;;  %v402_v34 = vadd.f32 %v401_v31, %v399_v29  ;;  %v466_v36 = vpop.permute.xlu1 %465  ;;  %v778_v26 = vmul.f32 %v1830_v58, %v1754_v43 }
 0x131   :  { %v467_v27 = vsel %vm289_vm6, %v466_v36, 0.0  ;;  %v813_v36 = vmul.f32 %v1754_v43, %v1869_v23 }
 0x132   :  { %v403_v38 = vmax.f32 %v379_v32, 0.0  ;;  %v406_v25 = vmax.f32 %v402_v34, 0.0  ;;  %v482_v2 = vmul.f32 %v467_v27, %v1811_v51  ;;  %v505_v62 = vmul.f32 %v467_v27, %v1816_v53 }
 0x133   :  { %v994_v34 = vmul.f32 %v1728_v16, %v1843_v4  ;;  %v836_v27 = vmul.f32 %v1754_v43, %v1871_v24 }
 0x134   :  { %1087 = vst [vmem:[%s2086_s7 + $0x10] sm:$0xff] %v403_v38  ;;  %v483_v39 = vadd.f32 %v482_v2, %v480_v37  ;;  %v506_v41 = vadd.f32 %v505_v62, %v503_v35  ;;  %v735_v49 = vpop.permute.xlu2 %734 }
 0x135   :  { %1088 = vst [vmem:[%s2086_s7 + $0x18] sm:$0xff] %v406_v25  ;;  %v736_v21 = vsel %vm289_vm6, %v735_v49, 0.0 }
 0x136   :  { %v1951_v55 = vadd.f32 %v489_v44, %v483_v39  ;;  %v1953_v40 = vadd.f32 %v512_v45, %v506_v41  ;;  %v758_v37 = vmul.f32 %v1970_v19, %v736_v21  ;;  %v781_v58 = vmul.f32 %v1973_v15, %v736_v21 }
 0x137   :  { %v995_v44 = vadd.f32 %v994_v34, %v1813_v52  ;;  %v981_v52 = vmul.f32 %v1758_v46, %v1869_v23 }
 0x139   :  { %v732_v17 = vpop.permute.xlu0 %731  ;;  %v790_v60 = vpop.permute.xlu1 %789 }
 0x13a   :  { %v733_v0 = vsel %vm289_vm6, %v732_v17, 0.0  ;;  %v791_v8 = vsel %vm351_vm7, %v790_v60, 0.0 }
 0x13b   :  { %v748_v18 = vmul.f32 %v733_v0, %v1811_v51  ;;  %v771_v1 = vmul.f32 %v733_v0, %v1816_v53  ;;  %v806_v56 = vmul.f32 %v791_v8, %v1856_v10  ;;  %v829_v63 = vmul.f32 %v791_v8, %v1859_v14 }
 0x13c   :  { %v971_v53 = vmul.f32 %v1728_v16, %v1841_v3  ;;  %v961_v25 = vpop.permute.xlu2 %960 }
 0x13d   :  { %v749_v29 = vadd.f32 %v748_v18, %v746_v59  ;;  %v772_v31 = vadd.f32 %v771_v1, %v769_v7  ;;  %v807_v32 = vadd.f32 %v806_v56, %v804_v13  ;;  %v830_v51 = vadd.f32 %v829_v63, %v827_v6 }
 0x13e   :  { %v972_v41 = vadd.f32 %v971_v53, %v1808_v50  ;;  %v962_v30 = vsel %vm351_vm7, %v961_v25, 0.0 }
 0x13f   :  { %v756_v35 = vadd.f32 %v755_v48, %v749_v29  ;;  %v779_v38 = vadd.f32 %v778_v26, %v772_v31  ;;  %v1989_v2 = vadd.f32 %v813_v36, %v807_v32  ;;  %v1991_v62 = vadd.f32 %v836_v27, %v830_v51 }
 0x140   :  { %v1004_v48 = vmul.f32 %v1758_v46, %v1871_v24  ;;  %v984_v60 = vmul.f32 %v962_v30, %v1910_v28  ;;  %v1007_v0 = vmul.f32 %v962_v30, %v1913_v42 }
 0x141   :  { %v759_v3 = vadd.f32 %v758_v37, %v756_v35  ;;  %v782_v39 = vadd.f32 %v781_v58, %v779_v38  ;;  %v958_v16 = vpop.permute.xlu0 %957  ;;  %v294_v4 = vpop.permute.xlu1 %293 }
 0x142   :  { %v959_v43 = vsel %vm351_vm7, %v958_v16, 0.0  ;;  %v295_v45 = vsel %vm289_vm6, %v294_v4, 0.0 }
 0x143   :  { %v783_v57 = vmax.f32 %v759_v3, 0.0  ;;  %v786_v20 = vmax.f32 %v782_v39, 0.0  ;;  %v974_v49 = vmul.f32 %v959_v43, %v1856_v10  ;;  %v997_v54 = vmul.f32 %v959_v43, %v1859_v14 }
 0x144   :  { %v317_v59 = vmul.f32 %v1970_v19, %v295_v45  ;;  %v340_v50 = vmul.f32 %v1973_v15, %v295_v45 }
 0x145   :  { %1177 = vst [vmem:[%s2086_s7 + $0x40] sm:$0xff] %v783_v57  ;;  %v975_v10 = vadd.f32 %v974_v49, %v972_v41  ;;  %v998_v7 = vadd.f32 %v997_v54, %v995_v44 }
 0x146   :  { %1178 = vst [vmem:[%s2086_s7 + $0x48] sm:$0xff] %v786_v20  ;;  %v318_v14 = vadd.f32 %v317_v59, %v1851_v9  ;;  %v341_v17 = vadd.f32 %v340_v50, %v1853_v12 }
 0x147   :  { %v982_v13 = vadd.f32 %v981_v52, %v975_v10  ;;  %v1005_v6 = vadd.f32 %v1004_v48, %v998_v7 }
 0x148   :  { %v342_v23 = vmax.f32 %v318_v14, 0.0  ;;  %v344_v8 = vmax.f32 %v341_v17, 0.0 }
 0x149   :  { %v985_v18 = vadd.f32 %v984_v60, %v982_v13  ;;  %v1008_v46 = vadd.f32 %v1007_v0, %v1005_v6  ;;  %v469_v24 = vpop.permute.xlu0 %468  ;;  %v527_v1 = vpop.permute.xlu1 %526 }
 0x14a   :  { %343 = vst [vmem:[%s2086_s7] sm:$0xff] %v342_v23  ;;  %v470_v9 = vsel %vm289_vm6, %v469_v24, 0.0  ;;  %v528_v12 = vsel %vm351_vm7, %v527_v1, 0.0 }
 0x14b   :  { %v1009_v56 = vmax.f32 %v985_v18, 0.0  ;;  %v1012_v63 = vmax.f32 %v1008_v46, 0.0  ;;  %1074 = vst [vmem:[%s2086_s7 + $0x8] sm:$0xff] %v344_v8  ;;  %v492_v21 = vmul.f32 %v1970_v19, %v470_v9  ;;  %v515_v26 = vmul.f32 %v1973_v15, %v470_v9 }
 0x14c   :  { %v550_v29 = vmul.f32 %v528_v12, %v1910_v28  ;;  %v573_v31 = vmul.f32 %v528_v12, %v1913_v42 }
 0x14d   :  { %1231 = vst [vmem:[%s2086_s7 + $0x70] sm:$0xff] %v1009_v56  ;;  %v493_v32 = vadd.f32 %v492_v21, %v1951_v55  ;;  %v516_v51 = vadd.f32 %v515_v26, %v1953_v40 }
 0x14e   :  { %1232 = vst [vmem:[%s2086_s7 + $0x78] sm:$0xff] %v1012_v63  ;;  %v551_v53 = vadd.f32 %v550_v29, %v1877_v33  ;;  %v574_v34 = vadd.f32 %v573_v31, %v1879_v22 }
 0x14f   :  { %v517_v36 = vmax.f32 %v493_v32, 0.0  ;;  %v520_v27 = vmax.f32 %v516_v51, 0.0 }
 0x150   :  { %v575_v37 = vmax.f32 %v551_v53, 0.0  ;;  %v578_v58 = vmax.f32 %v574_v34, 0.0 }
 0x151   :  { %1113 = vst [vmem:[%s2086_s7 + $0x20] sm:$0xff] %v517_v36  ;;  %v793_v35 = vpop.permute.xlu0 %792  ;;  %v903_v55 = vpop.permute.xlu1 %902 }
 0x152   :  { %1114 = vst [vmem:[%s2086_s7 + $0x28] sm:$0xff] %v520_v27  ;;  %v794_v40 = vsel %vm351_vm7, %v793_v35, 0.0  ;;  %v904_v33 = vsel %vm289_vm6, %v903_v55, 0.0 }
 0x153   :  { %1127 = vst [vmem:[%s2086_s7 + $0x30] sm:$0xff] %v575_v37  ;;  %v816_v22 = vmul.f32 %v794_v40, %v1910_v28  ;;  %v839_v38 = vmul.f32 %v794_v40, %v1913_v42  ;;  %v926_v25 = vmul.f32 %v904_v33, %v1970_v19  ;;  %v949_v3 = vmul.f32 %v904_v33, %v1973_v15 }
 0x154   :  { %1128 = vst [vmem:[%s2086_s7 + $0x38] sm:$0xff] %v578_v58 }
 0x155   :  { %v817_v5 = vadd.f32 %v816_v22, %v1989_v2  ;;  %v840_v47 = vadd.f32 %v839_v38, %v1991_v62  ;;  %v927_v39 = vadd.f32 %v926_v25, %v1905_v61  ;;  %v950_v16 = vadd.f32 %v949_v3, %v1907_v11 }
 0x157   :  { %v841_v4 = vmax.f32 %v817_v5, 0.0  ;;  %v844_v28 = vmax.f32 %v840_v47, 0.0  ;;  %v951_v41 = vmax.f32 %v927_v39, 0.0  ;;  %v954_v42 = vmax.f32 %v950_v16, 0.0 }
 0x159   :  { %1191 = vst [vmem:[%s2086_s7 + $0x50] sm:$0xff] %v841_v4 }
 0x15a   :  { %1192 = vst [vmem:[%s2086_s7 + $0x58] sm:$0xff] %v844_v28 }
 0x15b   :  { %1217 = vst [vmem:[%s2086_s7 + $0x60] sm:$0xff] %v951_v41 }
 0x15c   :  { %1218 = vst [vmem:[%s2086_s7 + $0x68] sm:$0xff] %v954_v42 }
 0x15d   :  { %1019 = vsyncpa [#allocation3], 1 }
 0x15e   :  { %1020 = vsyncpa [#allocation9], 1 }
 0x15f   :  { %1021 = vsyncpa [#allocation4], 1 }
 0x160   :  { %1022 = vsyncpa [#allocation7], 1 }

// kernel: decoder_forward.3
= control target key start
LH: loop header
LB: loop body
LE: loop exit
PB: predicated region body
PF: predicated region fallthrough
CT: control target
= control target key end

     0   :  { %18 = vsyncpa [#allocation8], 0  ;;  %s3113_s0 = inlined_call_operand.vmem [shape: f32[2,8,128], index: 0, kind: input, shape index: {}]   ;;  %s3114_s1 = inlined_call_operand.vmem [shape: f32[6], index: 1, kind: input, shape index: {}]   ;;  %s3115_s2 = inlined_call_operand.<no memory space> [shape: f32[1], index: 2, kind: input, shape index: {}]   ;;  %s3116_s3 = inlined_call_operand.hbm [shape: f32[3], index: 3, kind: input, shape index: {}]   ;;  %s3117_s4 = inlined_call_operand.<no memory space> [shape: f32[1], index: 4, kind: input, shape index: {}]   ;;  %s3118_s5 = inlined_call_operand.hbm [shape: f32[3], index: 5, kind: input, shape index: {}]   ;;  %s3119_s6 = inlined_call_operand.<no memory space> [shape: f32[1], index: 6, kind: input, shape index: {}]   ;;  %s3120_s7 = inlined_call_operand.vmem [shape: f32[27], index: 7, kind: input, shape index: {}]   ;;  %s3121_s8 = inlined_call_operand.<no memory space> [shape: f32[1], index: 8, kind: input, shape index: {}]   ;;  %s3122_s9 = inlined_call_operand.vmem [shape: f32[2,2,2,8,128], index: 9, kind: output, shape index: {}]  }
   0x1   :  { %19 = vsyncpa [#allocation7], 0 }
   0x2   :  { %20 = vsyncpa [#allocation11], 0  ;;  %s29_s11 = sshll.u32 %s3114_s1, 4  ;;  %s30_s11 = int_to_ptr.vmem [resolvable:$true] %s29_s11 }
   0x3   :  { %21 = vsyncpa [#allocation13], 0  ;;  %s40_s14 = sshll.u32 %s3116_s3, 4  ;;  %s1661_s15 = smov [#allocation6]   ;;  %s41_s14 = int_to_ptr.hbm [resolvable:$true] %s40_s14 }
   0x4   :  { %32 = dma.vmem_to_smem %s30_s11, 16, %s1661_s15, [#allocation8]  }
   0x5   :  { %s1662_s16 = smov [#allocation9]   ;;  %s51_s19 = sshll.u32 %s3118_s5, 4  ;;  %s52_s19 = int_to_ptr.hbm [resolvable:$true] %s51_s19 }
   0x6   :  { %43 = dma.hbm_to_smem %s41_s14, 16, %s1662_s16, [#allocation7]  }
   0x7   :  { %s62_s1 = sshll.u32 %s3120_s7, 4  ;;  %s1663_s22 = smov [#allocation10]   ;;  %s63_s1 = int_to_ptr.vmem [resolvable:$true] %s62_s1 }
   0x8   :  { %54 = dma.hbm_to_smem %s52_s19, 16, %s1663_s22, [#allocation11]  }
   0x9   :  { %s1664_s23 = smov [#allocation12]  }
   0xa   :  { %65 = dma.vmem_to_smem %s63_s1, 16, %s1664_s23, [#allocation13]  }
   0xb   :  { %1653 = dma.done.wait [#allocation8], 16  }
   0xc   :  { %1654 = vsyncadd [#allocation8], 4294967280 }
   0xd   :  { %1655 = dma.done.wait [#allocation7], 16  }
   0xe   :  { %1656 = vsyncadd [#allocation7], 4294967280 }
   0xf   :  { %1657 = dma.done.wait [#allocation11], 16  }
  0x10   :  { %1658 = vsyncadd [#allocation11], 4294967280 }
  0x11   :  { %1659 = dma.done.wait [#allocation13], 16  }
  0x12   :  { %1660 = vsyncadd [#allocation13], 4294967280 }
  0x13   :  { %84 = sfence }
  0x14   :  { %v85_v0 = vlaneseq  ;;  %v113_v1 = vld [vmem:[%s3113_s0] sm:$0xff]  ;;  %s1734_s7 = sld [smem:[#allocation6]]  ;;  %v1372_v4 = vld [vmem:[%s3113_s0 + $0x8] sm:$0xff]  ;;  %v125_v11 = vstv %s3115_s2  ;;  %s1665_s2 = smov 8   ;;  %v155_v44 = vstv %s3117_s4 }
  0x15   :  { %s1373_s24 = sld [smem:[#allocation6 + $0x1]]  ;;  %v233_v3 = vrot.slane %v113_v1, 1  ;;  %v116_v7 = vrot.slane %v113_v1, 7  ;;  %v239_v9 = vrot.slane %v1372_v4, 1  ;;  %v122_v25 = vrot.slane %v1372_v4, 7  ;;  %s1666_s15 = smov 120  }
  0x16   :  { %v86_v2 = vshrl.u32 %v85_v0, 7  ;;  %s1374_s25 = sld [smem:[#allocation6 + $0x2]]  ;;  %v1772_v39 = vand.u32 127, %v85_v0  ;;  %s1667_s4 = smov 127  }
  0x17   :  { %s1736_s26 = sld [smem:[#allocation6 + $0x3]]  ;;  %s1668_s22 = smov 1  }
  0x18   :  { %s1741_s29 = sld [smem:[#allocation6 + $0x4]]  ;;  %v1743_v5 = vadd.s32 1, %v86_v2  ;;  %v1745_v6 = vadd.s32 4294967295, %v86_v2  ;;  %v93_v40 = vand.u32 63, %v1772_v39 }
  0x19   :  { %s1377_s30 = sld [smem:[#allocation6 + $0x5]] }
  0x1a   :  { %vm236_vm0 = vcmp.lt.s32.totalorder %v1743_v5, 8  ;;  %vm118_vm1 = vcmp.ge.s32.totalorder %v1745_v6, 0  ;;  %v134_v14 = vstv %s1734_s7  ;;  %s1770_s16 = sld [smem:[#allocation9]]  ;;  %v1778_v42 = vadd.s32 8, %v93_v40 }
  0x1b   :  { %v238_v8 = vsel %vm236_vm0, %v233_v3, 0.0  ;;  %s241_s0 = sadd.f32 %s1373_s24, %s1734_s7  ;;  %v121_v13 = vsel %vm118_vm1, %v116_v7, 0.0  ;;  %v240_v18 = vsel %vm236_vm0, %v239_v9, 0.0  ;;  %v123_v33 = vsel %vm118_vm1, %v122_v25, 0.0 }
  0x1c   :  { %v245_v10 = vstv %s1374_s25  ;;  %s130_s10 = sadd.f32 %s1374_s25, %s1373_s24  ;;  %v135_v23 = vmul.f32 %v134_v14, %v121_v13  ;;  %vm207_vm2 = vcmp.lt.s32.totalorder %v1778_v42, 64  ;;  %v1788_v51 = vadd.s32 4294967288, %v93_v40 }
  0x1d   :  { %v242_v12 = vstv %s241_s0  ;;  %v246_v16 = vmul.f32 %v245_v10, %v238_v8  ;;  %v144_v34 = vstv %s1736_s26  ;;  %s1378_s17 = sld [smem:[#allocation9 + $0x1]]  ;;  %v105_v10 = vand.u32 7, %v1772_v39 }
  0x1e   :  { %v243_v15 = vmul.f32 %v242_v12, %v113_v1  ;;  %s248_s13 = sadd.f32 %s1741_s29, %s1736_s26  ;;  %v131_v17 = vstv %s130_s10  ;;  %v145_v37 = vmul.f32 %v144_v34, %v123_v33  ;;  %vm150_vm3 = vcmp.ge.s32.totalorder %v1788_v51, 0 }
  0x1f   :  { %v252_v19 = vstv %s1377_s30  ;;  %v132_v20 = vmul.f32 %v131_v17, %v113_v1  ;;  %s140_s14 = sadd.f32 %s1377_s30, %s1741_s29  ;;  %v1811_v12 = vadd.s32 1, %v105_v10 }
  0x20   :  { %v244_v21 = vadd.f32 %v243_v15, %v125_v11  ;;  %v249_v22 = vstv %s248_s13  ;;  %v253_v29 = vmul.f32 %v252_v19, %v240_v18  ;;  %s1776_s19 = sld [smem:[#allocation9 + $0x2]]  ;;  %v164_v56 = vstv %s1770_s16 }
  0x21   :  { %v250_v24 = vmul.f32 %v1372_v4, %v249_v22  ;;  %v133_v26 = vadd.f32 %v132_v20, %v125_v11  ;;  %v141_v27 = vstv %s140_s14  ;;  %s177_s23 = sld [smem:[#allocation10]]  ;;  %vm192_vm4 = vcmp.lt.s32.totalorder %v1811_v12, 8 }
  0x22   :  { %v247_v28 = vadd.f32 %v246_v16, %v244_v21  ;;  %v142_v32 = vmul.f32 %v1372_v4, %v141_v27  ;;  %s1380_s3 = sld [smem:[#allocation10 + $0x1]]  ;;  %v1820_v16 = vstv %s3119_s6 }
  0x23   :  { %v136_v31 = vadd.f32 %v135_v23, %v133_v26  ;;  %s210_s18 = sadd.f32 %s1378_s17, %s1770_s16 }
  0x24   :  { %v251_v30 = vadd.f32 %v250_v24, %v247_v28  ;;  %s1381_s7 = sld [smem:[#allocation10 + $0x2]]  ;;  %v1832_v24 = vadd.s32 4294967295, %v105_v10 }
  0x25   :  { %v143_v36 = vadd.f32 %v142_v32, %v136_v31  ;;  %v211_v41 = vstv %s210_s18  ;;  %s1007_s6 = sld [smem:[#allocation12]] }
  0x26   :  { %v254_v35 = vadd.f32 %v253_v29, %v251_v30  ;;  %s160_s1 = sadd.f32 %s1776_s19, %s1378_s17  ;;  %v214_v45 = vstv %s1776_s19  ;;  %3182 = vst [vmem:[#allocation18_spill] sm:$0xff] %v1832_v24  ;;  %vm170_vm5 = vcmp.ge.s32.totalorder %v1832_v24, 0 }
  0x27   :  { %v146_v38 = vadd.f32 %v145_v37, %v143_v36  ;;  %v184_v30 = vstv %s177_s23  ;;  %s1516_s27 = sld [smem:[#allocation12 + $0x1]] }
  0x28   :  { %255 = vrot.lane.b32.xlu1 %v254_v35, %s1665_s2  ;;  %278 = vrot.lane.b32.xlu0 %v254_v35, %s1666_s15  ;;  %v281_v43 = vmul.f32 %v254_v35, %v211_v41  ;;  %v161_v49 = vstv %s160_s1  ;;  %s195_s5 = sadd.f32 %s1380_s3, %s177_s23 }
  0x29   :  { %v162_v54 = vmul.f32 %v161_v49, %v146_v38  ;;  %v212_v55 = vmul.f32 %v211_v41, %v146_v38  ;;  %v258_v63 = vmul.f32 %v254_v35, %v161_v49  ;;  %s1491_s30 = sld [smem:[#allocation12 + $0x3]] }
  0x2a   :  { %v282_v48 = vadd.f32 %v281_v43, %v155_v44  ;;  %v1813_v13 = vstv %s195_s5  ;;  %v1822_v17 = vstv %s1381_s7  ;;  %s180_s26 = sadd.f32 %s1381_s7, %s1380_s3 }
  0x2b   :  { %v163_v58 = vadd.f32 %v162_v54, %v155_v44  ;;  %v213_v60 = vadd.f32 %v212_v55, %v155_v44  ;;  %v259_v7 = vadd.f32 %v258_v63, %v155_v44  ;;  %s1573_s0 = sld [smem:[#allocation12 + $0x4]] }
  0x2c   :  { %v181_v25 = vstv %s180_s26  ;;  %s1574_s10 = sld [smem:[#allocation12 + $0x5]] }
  0x2d   :  { %s1387_s11 = sld [smem:[#allocation12 + $0x6]] }
  0x2e   :  { %s1388_s12 = sld [smem:[#allocation12 + $0x7]] }
  0x2f   :  { %s1389_s13 = sld [smem:[#allocation12 + $0x8]] }
  0x30   :  { %147 = vrot.lane.b32.xlu1 %v146_v38, %s1665_s2  ;;  %203 = vrot.lane.b32.xlu0 %v146_v38, %s1666_s15  ;;  %s1394_s14 = sld [smem:[#allocation12 + $0xd]] }
  0x31   :  { %s2215_s16 = sld [smem:[#allocation12 + $0x7]] }
  0x32   :  { %s1423_s17 = sld [smem:[#allocation12 + $0x10]] }
  0x33   :  { %s2217_s18 = sld [smem:[#allocation12 + $0x1a]] }
  0x34   :  { %s2219_s19 = sld [smem:[#allocation12 + $0xe]] }
  0x35   :  { %s2221_s20 = sld [smem:[#allocation12 + $0x8]]  ;;  %v2251_v42 = vstv %s1389_s13 }
  0x36   :  { %s1429_s21 = sld [smem:[#allocation12 + $0x16]]  ;;  %v2253_v51 = vstv %s1394_s14 }
  0x37   :  { %s1595_s1 = sld [smem:[#allocation12 + $0x1a]] }
  0x38   :  { %s1484_s23 = sld [smem:[#allocation12 + $0x17]] }
  0x39   :  { %s2225_s3 = sld [smem:[#allocation12 + $0xe]] }
  0x3a   :  { %s2227_s5 = sld [smem:[#allocation12 + $0xa]] }
  0x3b   :  { %s2229_s7 = sld [smem:[#allocation12 + $0x14]] }
  0x3c   :  { %s2231_s24 = sld [smem:[#allocation12 + $0xb]] }
  0x3d   :  { %s2233_s25 = sld [smem:[#allocation12 + $0x13]] }
  0x3e   :  { %s2235_s26 = sld [smem:[#allocation12 + $0xc]] }
  0x3f   :  { %s2243_s28 = sld [smem:[#allocation12 + $0xf]] }
  0x40   :  { %s2245_s29 = sld [smem:[#allocation12 + $0xc]] }
  0x41   :  { %s2399_s13 = sld [smem:[#allocation12 + $0x9]] }
  0x42   :  { %s2454_s14 = sld [smem:[#allocation12 + $0xb]] }
  0x9a   :  { %v256_v46 = vpop.permute.xlu1 %255  ;;  %v279_v47 = vpop.permute.xlu0 %278 }
  0x9b   :  { %v280_v50 = vsel %vm207_vm2, %v279_v47, 0.0  ;;  %v257_v2 = vsel %vm150_vm3, %v256_v46, 0.0 }
  0x9c   :  { %v283_v52 = vmul.f32 %v280_v50, %v214_v45  ;;  %v260_v8 = vmul.f32 %v257_v2, %v164_v56  ;;  %v1873_v2 = vstv %s3121_s8  ;;  %s1490_s8 = sld [smem:[#allocation12 + $0x2]] }
  0x9d   :  { %3183 = vst [vmem:[#allocation19_spill] sm:$0xff] %v1873_v2 }
  0x9e   :  { %v284_v53 = vadd.f32 %v283_v52, %v282_v48  ;;  %v1803_v9 = vadd.f32 %v260_v8, %v259_v7  ;;  %v1885_v8 = vstv %s1516_s27  ;;  %s2239_s27 = sld [smem:[#allocation12 + $0x15]] }
  0x9f   :  { %3184 = vst [vmem:[#allocation20_spill] sm:$0xff] %v1885_v8 }
  0xa0   :  { %293 = vrot.lane.b32.xlu2 %v284_v53, %s1667_s4  ;;  %285 = vrot.lane.b32.xlu0 %v284_v53, %s1668_s22  ;;  %v296_v27 = vmul.f32 %v284_v53, %v1813_v13  ;;  %v288_v28 = vmul.f32 %v284_v53, %v181_v25 }
  0xa2   :  { %v148_v57 = vpop.permute.xlu1 %147  ;;  %v204_v59 = vpop.permute.xlu0 %203  ;;  %v297_v34 = vadd.f32 %v296_v27, %v1820_v16  ;;  %v289_v37 = vadd.f32 %v288_v28, %v1820_v16 }
  0xa3   :  { %v153_v61 = vsel %vm150_vm3, %v148_v57, 0.0  ;;  %v209_v62 = vsel %vm207_vm2, %v204_v59, 0.0  ;;  %v1860_v57 = vstv %s1007_s6  ;;  %s2237_s6 = sld [smem:[#allocation12 + $0x16]] }
  0xa4   :  { %v165_v0 = vmul.f32 %v164_v56, %v153_v61  ;;  %v215_v1 = vmul.f32 %v214_v45, %v209_v62 }
  0xa6   :  { %v166_v3 = vadd.f32 %v165_v0, %v163_v58  ;;  %v216_v4 = vadd.f32 %v215_v1, %v213_v60  ;;  %v265_v1 = vmul.f32 %v1803_v9, %v181_v25 }
  0xa8   :  { %217 = vrot.lane.b32.xlu1 %v216_v4, %s1668_s22  ;;  %225 = vrot.lane.b32.xlu2 %v216_v4, %s1667_s4  ;;  %v228_v14 = vmul.f32 %v216_v4, %v1813_v13  ;;  %v182_v31 = vmul.f32 %v181_v25, %v166_v3  ;;  %v220_v46 = vmul.f32 %v216_v4, %v181_v25 }
  0xa9   :  { %188 = vrot.lane.b32.xlu0 %v166_v3, %s1667_s4  ;;  %v197_v48 = vmul.f32 %v1813_v13, %v166_v3 }
  0xaa   :  { %v229_v19 = vadd.f32 %v228_v14, %v1820_v16  ;;  %v183_v41 = vadd.f32 %v182_v31, %v1820_v16  ;;  %v221_v54 = vadd.f32 %v220_v46, %v1820_v16 }
  0xab   :  { %v198_v58 = vadd.f32 %v197_v48, %v1820_v16 }
  0xb0   :  { %262 = vrot.lane.b32.xlu1 %v1803_v9, %s1668_s22  ;;  %270 = vrot.lane.b32.xlu2 %v1803_v9, %s1667_s4 }
  0xb8   :  { %167 = vrot.lane.b32.xlu2 %v166_v3, %s1668_s22 }
  0xfa   :  { %v294_v11 = vpop.permute.xlu2 %293 }
  0xfb   :  { %v295_v26 = vsel %vm192_vm4, %v294_v11, 0.0 }
  0xfc   :  { %v298_v29 = vmul.f32 %v295_v26, %v1822_v17 }
  0xfe   :  { %v299_v40 = vadd.f32 %v298_v29, %v297_v34 }
 0x100   :  { %v1848_v47 = vmax.f32 %v299_v40, 0.0 }
 0x102   :  { %v226_v15 = vpop.permute.xlu2 %225  ;;  %v305_v60 = vrot.slane %v1848_v47, 7 }
 0x103   :  { %v227_v18 = vsel %vm192_vm4, %v226_v15, 0.0  ;;  %v266_v15 = vadd.f32 %v265_v1, %v1820_v16 }
 0x104   :  { %v230_v20 = vmul.f32 %v227_v18, %v1822_v17  ;;  %v1879_v4 = vsel %vm118_vm1, %v305_v60, 0.0 }
 0x106   :  { %v231_v21 = vadd.f32 %v230_v20, %v229_v19 }
 0x108   :  { %v1828_v22 = vmax.f32 %v231_v21, 0.0  ;;  %v273_v21 = vmul.f32 %v1803_v9, %v1813_v13 }
 0x10a   :  { %v271_v23 = vpop.permute.xlu2 %270  ;;  %364 = vrot.lane.b32.xlu0 %v1828_v22, %s1665_s2  ;;  %v274_v28 = vadd.f32 %v273_v21, %v1820_v16  ;;  %v944_v16 = vrot.slane %v1828_v22, 1 }
 0x10b   :  { %v272_v19 = vsel %vm192_vm4, %v271_v23, 0.0 }
 0x10c   :  { %v275_v26 = vmul.f32 %v272_v19, %v1822_v17 }
 0x10e   :  { %v276_v23 = vadd.f32 %v275_v26, %v274_v28 }
 0x110   :  { %v1912_v9 = vmax.f32 %v276_v23, 0.0 }
 0x112   :  { %v286_v32 = vpop.permute.xlu0 %285  ;;  %v168_v33 = vpop.permute.xlu2 %167  ;;  %v330_v31 = vrot.slane %v1912_v9, 7 }
 0x113   :  { %v287_v35 = vsel %vm170_vm5, %v286_v32, 0.0  ;;  %v173_v36 = vsel %vm170_vm5, %v168_v33, 0.0 }
 0x114   :  { %v290_v38 = vmul.f32 %v287_v35, %v184_v30  ;;  %v185_v39 = vmul.f32 %v184_v30, %v173_v36  ;;  %v1944_v34 = vsel %vm118_vm1, %v330_v31, 0.0  ;;  %v2053_v31 = vstv %s1491_s30  ;;  %s2249_s30 = sld [smem:[#allocation12 + $0x10]] }
 0x116   :  { %v291_v43 = vadd.f32 %v290_v38, %v289_v37  ;;  %v186_v44 = vadd.f32 %v185_v39, %v183_v41 }
 0x118   :  { %v1846_v45 = vmax.f32 %v291_v43, 0.0  ;;  %v1853_v50 = vmax.f32 %v186_v44, 0.0 }
 0x11a   :  { %v218_v49 = vpop.permute.xlu1 %217  ;;  %425 = vrot.lane.b32.xlu0 %v1846_v45, %s1665_s2  ;;  %v1253_v63 = vmul.f32 %v1860_v57, %v1853_v50  ;;  %v317_v32 = vrot.slane %v1846_v45, 7  ;;  %v978_v6 = vrot.slane %v1853_v50, 1 }
 0x11b   :  { %v219_v52 = vsel %vm170_vm5, %v218_v49, 0.0  ;;  %v189_v53 = vpop.permute.xlu0 %188 }
 0x11c   :  { %v222_v55 = vmul.f32 %v219_v52, %v184_v30  ;;  %v194_v56 = vsel %vm192_vm4, %v189_v53, 0.0  ;;  %v1254_v14 = vadd.f32 %v1253_v63, %v1873_v2  ;;  %v1950_v35 = vsel %vm118_vm1, %v317_v32, 0.0 }
 0x11d   :  { %v200_v59 = vmul.f32 %v1822_v17, %v194_v56  ;;  %v1927_v17 = vsel %vm236_vm0, %v944_v16, 0.0  ;;  %v1976_v38 = vsel %vm236_vm0, %v978_v6, 0.0  ;;  %v1135_v63 = vmul.f32 %v1885_v8, %v1853_v50 }
 0x11e   :  { %v223_v61 = vadd.f32 %v222_v55, %v221_v54 }
 0x11f   :  { %v201_v62 = vadd.f32 %v200_v59, %v198_v58 }
 0x120   :  { %v1867_v0 = vmax.f32 %v223_v61, 0.0 }
 0x121   :  { %v1875_v3 = vmax.f32 %v201_v62, 0.0 }
 0x122   :  { %v263_v7 = vpop.permute.xlu1 %262  ;;  %374 = vrot.lane.b32.xlu1 %v1867_v0, %s1665_s2  ;;  %307 = vrot.lane.b32.xlu0 %v1879_v4, %s1665_s2 }
 0x123   :  { %v264_v10 = vsel %vm170_vm5, %v263_v7, 0.0  ;;  %679 = vrot.lane.b32.xlu2 %v1875_v3, %s1666_s15  ;;  %v1257_v11 = vmul.f32 %v1885_v8, %v1875_v3  ;;  %v969_v36 = vrot.slane %v1875_v3, 1 }
 0x124   :  { %v267_v18 = vmul.f32 %v264_v10, %v184_v30  ;;  %v956_v30 = vrot.slane %v1867_v0, 1 }
 0x125   :  { %v1897_v20 = vadd.f32 %v1257_v11, %v1254_v14  ;;  %v1959_v37 = vsel %vm236_vm0, %v969_v36, 0.0  ;;  %v2030_v11 = vstv %s1490_s8  ;;  %s2247_s8 = sld [smem:[#allocation12 + $0x18]] }
 0x126   :  { %v268_v25 = vadd.f32 %v267_v18, %v266_v15  ;;  %v1940_v33 = vsel %vm236_vm0, %v956_v30, 0.0  ;;  %v1139_v18 = vmul.f32 %v2030_v11, %v1875_v3 }
 0x128   :  { %v1902_v27 = vmax.f32 %v268_v25, 0.0 }
 0x12a   :  { %3185 = vst [vmem:[#allocation21_spill] sm:$0xff] %v1902_v27  ;;  %349 = vrot.lane.b32.xlu0 %v1879_v4, %s1668_s22  ;;  %689 = vrot.lane.b32.xlu1 %v1853_v50, %s1666_s15  ;;  %v339_v29 = vrot.slane %v1902_v27, 7 }
 0x12b   :  { %415 = vrot.lane.b32.xlu2 %v1848_v47, %s1665_s2 }
 0x12c   :  { %v1916_v13 = vsel %vm118_vm1, %v339_v29, 0.0 }
 0x12d   :  { %3186 = vst [vmem:[#allocation22_spill] sm:$0xff] %v1916_v13 }
 0x132   :  { %644 = vrot.lane.b32.xlu0 %v1916_v13, %s1666_s15  ;;  %724 = vrot.lane.b32.xlu1 %v1912_v9, %s1666_s15 }
 0x133   :  { %734 = vrot.lane.b32.xlu2 %v1902_v27, %s1666_s15 }
 0x13a   :  { %946 = vrot.lane.b32.xlu0 %v1927_v17, %s1665_s2  ;;  %538 = vrot.lane.b32.xlu1 %v1853_v50, %s1667_s4 }
 0x13b   :  { %385 = vrot.lane.b32.xlu2 %v1875_v3, %s1668_s22 }
 0x142   :  { %958 = vrot.lane.b32.xlu0 %v1940_v33, %s1665_s2  ;;  %634 = vrot.lane.b32.xlu1 %v1944_v34, %s1666_s15 }
 0x143   :  { %319 = vrot.lane.b32.xlu2 %v1950_v35, %s1665_s2  ;;  %s1478_s2 = sld [smem:[#allocation12 + $0x11]] }
 0x14a   :  { %1226 = vrot.lane.b32.xlu0 %v1959_v37, %s1666_s15  ;;  %508 = vrot.lane.b32.xlu1 %v1950_v35, %s1667_s4 }
 0x14b   :  { %400 = vrot.lane.b32.xlu2 %v1828_v22, %s1668_s22 }
 0x153   :  { %553 = vrot.lane.b32.xlu2 %v1867_v0, %s1667_s4 }
 0x15b   :  { %332 = vrot.lane.b32.xlu2 %v1944_v34, %s1668_s22 }
 0x163   :  { %493 = vrot.lane.b32.xlu2 %v1916_v13, %s1667_s4 }
 0x16b   :  { %1236 = vrot.lane.b32.xlu2 %v1976_v38, %s1666_s15  ;;  %s2211_s15 = sld [smem:[#allocation12 + $0x11]] }
 0x17c   :  { %v365_v39 = vpop.permute.xlu0 %364 }
 0x17d   :  { %v1982_v40 = vsel %vm150_vm3, %v365_v39, 0.0  ;;  %v680_v41 = vpop.permute.xlu2 %679  ;;  %v2069_v39 = vstv %s1573_s0  ;;  %s2257_s0 = sld [smem:[#allocation12 + $0x12]] }
 0x17e   :  { %3187 = vst [vmem:[#allocation23_spill] sm:$0xff] %v1982_v40  ;;  %367 = vrot.lane.b32.xlu1 %v1982_v40, %s1668_s22  ;;  %v1988_v43 = vsel %vm207_vm2, %v680_v41, 0.0  ;;  %v1013_v60 = vmul.f32 %v1885_v8, %v1982_v40 }
 0x185   :  { %v416_v44 = vpop.permute.xlu2 %415 }
 0x186   :  { %v1992_v5 = vsel %vm150_vm3, %v416_v44, 0.0  ;;  %682 = vrot.lane.b32.xlu1 %v1988_v43, %s1668_s22  ;;  %v1147_v44 = vmul.f32 %v2069_v39, %v1867_v0 }
 0x187   :  { %418 = vrot.lane.b32.xlu2 %v1992_v5, %s1668_s22 }
 0x18c   :  { %v426_v46 = vpop.permute.xlu0 %425 }
 0x18d   :  { %v1998_v48 = vpop.permute.xlu2 %734 }
 0x18f   :  { %583 = vrot.lane.b32.xlu2 %v1902_v27, %s1667_s4  ;;  %v2325_v27 = vstv %s2249_s30 }
 0x194   :  { %v375_v49 = vpop.permute.xlu1 %374  ;;  %v308_v52 = vpop.permute.xlu0 %307 }
 0x195   :  { %v2004_v53 = vsel %vm150_vm3, %v375_v49, 0.0  ;;  %v2008_v54 = vsel %vm150_vm3, %v308_v52, 0.0  ;;  %v386_v55 = vpop.permute.xlu2 %385 }
 0x196   :  { %3188 = vst [vmem:[#allocation24_spill] sm:$0xff] %v2004_v53  ;;  %v1009_v56 = vmul.f32 %v1860_v57, %v2004_v53  ;;  %523 = vrot.lane.b32.xlu0 %v2004_v53, %s1667_s4  ;;  %v2016_v58 = vsel %vm170_vm5, %v386_v55, 0.0  ;;  %310 = vrot.lane.b32.xlu1 %v2008_v54, %s1668_s22  ;;  %v475_v25 = vmul.f32 %v1885_v8, %v2008_v54 }
 0x197   :  { %3189 = vst [vmem:[#allocation25_spill] sm:$0xff] %v2008_v54  ;;  %v1131_v59 = vmul.f32 %v1860_v57, %v2016_v58 }
 0x198   :  { %3190 = vst [vmem:[#allocation26_spill] sm:$0xff] %v2016_v58  ;;  %v1010_v61 = vadd.f32 %v1009_v56, %v1873_v2 }
 0x199   :  { %v1132_v62 = vadd.f32 %v1131_v59, %v1873_v2 }
 0x19a   :  { %v2028_v1 = vadd.f32 %v1013_v60, %v1010_v61  ;;  %v2081_v60 = vsel %vm150_vm3, %v426_v46, 0.0 }
 0x19b   :  { %v1136_v7 = vadd.f32 %v1135_v63, %v1132_v62  ;;  %v1265_v62 = vmul.f32 %v2053_v31, %v1867_v0 }
 0x19c   :  { %v690_v10 = vpop.permute.xlu1 %689  ;;  %v350_v28 = vpop.permute.xlu0 %349 }
 0x19d   :  { %v320_v14 = vpop.permute.xlu2 %319  ;;  %v1140_v21 = vadd.f32 %v1139_v18, %v1136_v7  ;;  %v2057_v32 = vsel %vm207_vm2, %v690_v10, 0.0  ;;  %v1269_v7 = vmul.f32 %v2069_v39, %v1828_v22  ;;  %v2098_v18 = vstv %s1574_s10  ;;  %s2259_s10 = sld [smem:[#allocation12 + $0x19]] }
 0x19e   :  { %v2034_v15 = vsel %vm150_vm3, %v320_v14, 0.0  ;;  %436 = vrot.lane.b32.xlu0 %v1912_v9, %s1668_s22 }
 0x19f   :  { %3191 = vst [vmem:[#allocation27_spill] sm:$0xff] %v2034_v15  ;;  %v471_v19 = vmul.f32 %v1860_v57, %v2034_v15  ;;  %478 = vrot.lane.b32.xlu1 %v2034_v15, %s1667_s4  ;;  %v2343_v15 = vstv %s2257_s0 }
 0x1a0   :  { %3221 = vst [vmem:[#allocation57_spill] sm:$0xff] %v2343_v15 }
 0x1a1   :  { %v472_v26 = vadd.f32 %v471_v19, %v1873_v2 }
 0x1a3   :  { %v2047_v23 = vadd.f32 %v475_v25, %v472_v26  ;;  %v2364_v15 = vstv %s2259_s10 }
 0x1a4   :  { %v725_v29 = vpop.permute.xlu1 %724  ;;  %v645_v55 = vpop.permute.xlu0 %644  ;;  %3225 = vst [vmem:[#allocation61_spill] sm:$0xff] %v2364_v15 }
 0x1a5   :  { %3192 = vst [vmem:[#allocation28_spill] sm:$0xff] %v2047_v23  ;;  %v401_v16 = vpop.permute.xlu2 %400  ;;  %v2051_v30 = vsel %vm207_vm2, %v725_v29, 0.0  ;;  %v2114_v29 = vstv %s1387_s11  ;;  %s2269_s11 = sld [smem:[#allocation12 + $0x17]] }
 0x1a6   :  { %3193 = vst [vmem:[#allocation29_spill] sm:$0xff] %v2051_v30  ;;  %v2061_v36 = vsel %vm170_vm5, %v401_v16, 0.0  ;;  %727 = vrot.lane.b32.xlu2 %v2051_v30, %s1668_s22 }
 0x1a7   :  { %v1143_v6 = vmul.f32 %v2053_v31, %v2061_v36  ;;  %821 = vrot.lane.b32.xlu1 %v2057_v32, %s1667_s4 }
 0x1a9   :  { %v1144_v41 = vadd.f32 %v1143_v6, %v1140_v21 }
 0x1ab   :  { %v2073_v49 = vadd.f32 %v1147_v44, %v1144_v41  ;;  %v751_v41 = vmul.f32 %v1860_v57, %v1916_v13  ;;  %v1277_v44 = vmul.f32 %v2057_v32, %v2114_v29 }
 0x1ac   :  { %v539_v52 = vpop.permute.xlu1 %538  ;;  %v947_v16 = vpop.permute.xlu0 %946 }
 0x1ad   :  { %v554_v56 = vpop.permute.xlu2 %553  ;;  %v2077_v59 = vsel %vm192_vm4, %v539_v52, 0.0 }
 0x1ae   :  { %3194 = vst [vmem:[#allocation30_spill] sm:$0xff] %v2077_v59  ;;  %971 = vrot.lane.b32.xlu2 %v1959_v37, %s1668_s22  ;;  %v1261_v61 = vmul.f32 %v2030_v11, %v2077_v59  ;;  %v2094_v46 = vsel %vm192_vm4, %v554_v56, 0.0  ;;  %v2124_v56 = vstv %s1388_s12  ;;  %s2290_s12 = sld [smem:[#allocation12 + $0xa]]  ;;  %v2322_v59 = vstv %s2247_s8 }
 0x1af   :  { %568 = vrot.lane.b32.xlu1 %v2081_v60, %s1667_s4  ;;  %3195 = vst [vmem:[#allocation31_spill] sm:$0xff] %v2094_v46  ;;  %v1273_v25 = vmul.f32 %v2098_v18, %v2094_v46  ;;  %v2312_v46 = vstv %s2239_s27 }
 0x1b0   :  { %v1262_v63 = vadd.f32 %v1261_v61, %v1897_v20  ;;  %v615_v61 = vmul.f32 %v1885_v8, %v1916_v13  ;;  %3216 = vst [vmem:[#allocation52_spill] sm:$0xff] %v2312_v46  ;;  %v2340_v46 = vmul.f32 %v2253_v51, %v1848_v47 }
 0x1b2   :  { %v1266_v10 = vadd.f32 %v1265_v62, %v1262_v63  ;;  %v1281_v63 = vmul.f32 %v1988_v43, %v2124_v56  ;;  %3220 = vst [vmem:[#allocation56_spill] sm:$0xff] %v2340_v46  ;;  %v2361_v46 = vmul.f32 %v2251_v42, %v1879_v4 }
 0x1b4   :  { %v635_v14 = vpop.permute.xlu1 %634  ;;  %v1270_v20 = vadd.f32 %v1269_v7, %v1266_v10  ;;  %v2133_v7 = vsel %vm170_vm5, %v350_v28, 0.0  ;;  %v755_v28 = vmul.f32 %v1885_v8, %v1944_v34 }
 0x1b5   :  { %v333_v19 = vpop.permute.xlu2 %332  ;;  %v2102_v21 = vsel %vm207_vm2, %v635_v14, 0.0  ;;  %3198 = vst [vmem:[#allocation34_spill] sm:$0xff] %v2133_v7  ;;  %v619_v14 = vmul.f32 %v2030_v11, %v1944_v34  ;;  %v623_v30 = vmul.f32 %v2053_v31, %v2133_v7 }
 0x1b6   :  { %3196 = vst [vmem:[#allocation32_spill] sm:$0xff] %v2102_v21  ;;  %v2108_v26 = vsel %vm170_vm5, %v333_v19, 0.0  ;;  %637 = vrot.lane.b32.xlu0 %v2102_v21, %s1668_s22  ;;  %988 = vrot.lane.b32.xlu2 %v1927_v17, %s1668_s22  ;;  %v1274_v52 = vadd.f32 %v1273_v25, %v1270_v20  ;;  %v752_v25 = vadd.f32 %v751_v41, %v1873_v2 }
 0x1b7   :  { %3197 = vst [vmem:[#allocation33_spill] sm:$0xff] %v2108_v26  ;;  %v611_v6 = vmul.f32 %v1860_v57, %v2108_v26  ;;  %598 = vrot.lane.b32.xlu1 %v1846_v45, %s1667_s4  ;;  %v2316_v26 = vstv %s2243_s28 }
 0x1b8   :  { %v1278_v10 = vadd.f32 %v1277_v44, %v1274_v52  ;;  %v2150_v52 = vsel %vm150_vm3, %v947_v16, 0.0  ;;  %v627_v16 = vmul.f32 %v2069_v39, %v1950_v35  ;;  %3217 = vst [vmem:[#allocation53_spill] sm:$0xff] %v2316_v26 }
 0x1b9   :  { %v612_v62 = vadd.f32 %v611_v6, %v1873_v2  ;;  %v2144_v6 = vsel %vm207_vm2, %v645_v55, 0.0  ;;  %3201 = vst [vmem:[#allocation37_spill] sm:$0xff] %v2150_v52 }
 0x1ba   :  { %v2138_v20 = vadd.f32 %v1281_v63, %v1278_v10  ;;  %3200 = vst [vmem:[#allocation36_spill] sm:$0xff] %v2144_v6  ;;  %v959_v10 = vpop.permute.xlu0 %958 }
 0x1bb   :  { %v616_v19 = vadd.f32 %v615_v61, %v612_v62  ;;  %v756_v61 = vadd.f32 %v755_v28, %v752_v25  ;;  %v631_v25 = vmul.f32 %v2098_v18, %v1879_v4 }
 0x1bc   :  { %3199 = vst [vmem:[#allocation35_spill] sm:$0xff] %v2138_v20  ;;  %v509_v62 = vpop.permute.xlu1 %508 }
 0x1bd   :  { %v620_v23 = vadd.f32 %v619_v14, %v616_v19  ;;  %v494_v44 = vpop.permute.xlu2 %493  ;;  %v763_v14 = vmul.f32 %v2053_v31, %v1950_v35  ;;  %v2170_v28 = vsel %vm192_vm4, %v509_v62, 0.0 }
 0x1be   :  { %v2154_v41 = vsel %vm192_vm4, %v494_v44, 0.0  ;;  %782 = vrot.lane.b32.xlu0 %v2144_v6, %s1667_s4  ;;  %3203 = vst [vmem:[#allocation39_spill] sm:$0xff] %v2170_v28 }
 0x1bf   :  { %3202 = vst [vmem:[#allocation38_spill] sm:$0xff] %v2154_v41  ;;  %v759_v55 = vmul.f32 %v2030_v11, %v2154_v41  ;;  %949 = vrot.lane.b32.xlu1 %v2150_v52, %s1668_s22  ;;  %v624_v63 = vadd.f32 %v623_v30, %v620_v23  ;;  %v767_v23 = vmul.f32 %v2069_v39, %v1879_v4 }
 0x1c0   :  { %v771_v41 = vmul.f32 %v2098_v18, %v2170_v28  ;;  %v2307_v28 = vstv %s2235_s26 }
 0x1c1   :  { %v760_v19 = vadd.f32 %v759_v55, %v756_v61  ;;  %v628_v44 = vadd.f32 %v627_v16, %v624_v63  ;;  %v775_v55 = vmul.f32 %v2144_v6, %v2114_v29  ;;  %v877_v6 = vmul.f32 %v1885_v8, %v2004_v53 }
 0x1c2   :  { %v1227_v16 = vpop.permute.xlu0 %1226  ;;  %v2380_v8 = vstv %s2290_s12 }
 0x1c3   :  { %v764_v20 = vadd.f32 %v763_v14, %v760_v19  ;;  %v2174_v30 = vadd.f32 %v631_v25, %v628_v44  ;;  %v2197_v14 = vsel %vm207_vm2, %v1998_v48, 0.0  ;;  %v2255_v48 = vstv %s1478_s2  ;;  %s2582_s2 = sld [smem:[#allocation12 + $0x2]] }
 0x1c4   :  { %3207 = vst [vmem:[#allocation43_spill] sm:$0xff] %v2197_v14  ;;  %v2263_v19 = vstv %s1429_s21  ;;  %v2265_v44 = vstv %s1595_s1 }
 0x1c5   :  { %3204 = vst [vmem:[#allocation40_spill] sm:$0xff] %v2174_v30  ;;  %v768_v52 = vadd.f32 %v767_v23, %v764_v20  ;;  %v1237_v7 = vpop.permute.xlu2 %1236  ;;  %v779_v20 = vmul.f32 %v2102_v21, %v2124_v56  ;;  %v2272_v23 = vstv %s2211_s15  ;;  %v2300_v21 = vstv %s2231_s24  ;;  %s2620_s15 = sld [smem:[#allocation12 + $0x14]] }
 0x1c6   :  { %v2180_v61 = vsel %vm207_vm2, %v1237_v7, 0.0  ;;  %451 = vrot.lane.b32.xlu0 %v1848_v47, %s1668_s22  ;;  %3210 = vst [vmem:[#allocation46_spill] sm:$0xff] %v2255_v48  ;;  %v2303_v30 = vstv %s2233_s25  ;;  %v2347_v53 = vmul.f32 %v2265_v44, %v1848_v47  ;;  %v2605_v24 = vmul.f32 %v2300_v21, %v1875_v3 }
 0x1c7   :  { %3205 = vst [vmem:[#allocation41_spill] sm:$0xff] %v2180_v61  ;;  %v772_v62 = vadd.f32 %v771_v41, %v768_v52  ;;  %1103 = vrot.lane.b32.xlu1 %v1976_v38, %s1667_s4  ;;  %1356 = vrot.lane.b32.xlu2 %v2180_v61, %s1667_s4  ;;  %v2201_v52 = vsel %vm207_vm2, %v1227_v16, 0.0  ;;  %v2209_v41 = vsel %vm150_vm3, %v959_v10, 0.0  ;;  %v2261_v10 = vstv %s1423_s17  ;;  %s2647_s17 = sld [smem:[#allocation12 + $0x12]] }
 0x1c8   :  { %3208 = vst [vmem:[#allocation44_spill] sm:$0xff] %v2201_v52  ;;  %v2282_v16 = vstv %s2219_s19  ;;  %v2285_v61 = vstv %s2221_s20  ;;  %v2336_v13 = vmul.f32 %v2261_v10, %v1848_v47  ;;  %s2673_s19 = sld [smem:[#allocation12 + $0xf]] }
 0x1c9   :  { %v776_v63 = vadd.f32 %v775_v55, %v772_v62  ;;  %3209 = vst [vmem:[#allocation45_spill] sm:$0xff] %v2209_v41  ;;  %v504_v55 = vstv %s2215_s16  ;;  %v2275_v62 = vstv %s1484_s23  ;;  %s2633_s16 = sld [smem:[#allocation12 + $0x13]] }
 0x1ca   :  { %3211 = vst [vmem:[#allocation47_spill] sm:$0xff] %v2265_v44  ;;  %s2800_s20 = sld [smem:[#allocation12 + $0x6]] }
 0x1cb   :  { %v2192_v7 = vadd.f32 %v779_v20, %v776_v63  ;;  %3212 = vst [vmem:[#allocation48_spill] sm:$0xff] %v2275_v62  ;;  %v2279_v63 = vstv %s2217_s18  ;;  %v2297_v20 = vstv %s2229_s7  ;;  %s2660_s18 = sld [smem:[#allocation12 + $0x18]] }
 0x1cc   :  { %3213 = vst [vmem:[#allocation49_spill] sm:$0xff] %v2279_v63 }
 0x1cd   :  { %3206 = vst [vmem:[#allocation42_spill] sm:$0xff] %v2192_v7  ;;  %v2288_v7 = vstv %s2227_s5 }
 0x1ce   :  { %860 = vrot.lane.b32.xlu0 %v2197_v14, %s1667_s4  ;;  %3215 = vst [vmem:[#allocation51_spill] sm:$0xff] %v2297_v20 }
 0x1cf   :  { %1229 = vrot.lane.b32.xlu1 %v2201_v52, %s1668_s22  ;;  %s1432_s22 = sld [smem:[#allocation12 + $0x19]]  ;;  %3219 = vst [vmem:[#allocation55_spill] sm:$0xff] %v2336_v13  ;;  %v2357_v13 = vmul.f32 %v2255_v48, %v1848_v47  ;;  %v3396_v12 = vld [vmem:[#allocation44_spill] sm:$0xff] }
 0x1d0   :  { %3222 = vst [vmem:[#allocation58_spill] sm:$0xff] %v2347_v53  ;;  %v2368_v53 = vmul.f32 %v504_v55, %v1879_v4  ;;  %v2388_v4 = vmul.f32 %v2272_v23, %v1828_v22 }
 0x1d1   :  { %3224 = vst [vmem:[#allocation60_spill] sm:$0xff] %v2357_v13  ;;  %v3226_v13 = vstv %s2225_s3 }
 0x1d2   :  { %v2377_v48 = vmul.f32 %v3226_v13, %v1848_v47  ;;  %3229 = vst [vmem:[#allocation64_spill] sm:$0xff] %v2388_v4  ;;  %v2405_v4 = vmul.f32 %v2261_v10, %v1828_v22 }
 0x1d3   :  { %3264 = vst [vmem:[#allocation95_spill] sm:$0xff] %v2605_v24  ;;  %v3270_v24 = vld [vmem:[#allocation19_spill] sm:$0xff] }
 0x1d4   :  { %3227 = vst [vmem:[#allocation62_spill] sm:$0xff] %v2377_v48 }
 0x1d5   :  { %v2267_v25 = vstv %s1432_s22  ;;  %3231 = vst [vmem:[#allocation66_spill] sm:$0xff] %v2405_v4  ;;  %v2428_v4 = vmul.f32 %v1927_v17, %v2275_v62 }
 0x1d6   :  { %1088 = vrot.lane.b32.xlu0 %v2209_v41, %s1667_s4 }
 0x1d7   :  { %3235 = vst [vmem:[#allocation70_spill] sm:$0xff] %v2428_v4  ;;  %v2444_v4 = vmul.f32 %v2263_v19, %v1912_v9 }
 0x1d9   :  { %3237 = vst [vmem:[#allocation72_spill] sm:$0xff] %v2444_v4 }
 0x1de   :  { %1118 = vrot.lane.b32.xlu0 %v1940_v33, %s1667_s4  ;;  %s2241_s4 = sld [smem:[#allocation12 + $0x9]] }
 0x1f0   :  { %v368_v52 = vpop.permute.xlu1 %367 }
 0x1f1   :  { %v2294_v41 = vsel %vm170_vm5, %v368_v52, 0.0  ;;  %v2319_v52 = vstv %s2245_s29 }
 0x1f2   :  { %3214 = vst [vmem:[#allocation50_spill] sm:$0xff] %v2294_v41  ;;  %v873_v14 = vmul.f32 %v1860_v57, %v2294_v41  ;;  %v2332_v41 = vmul.f32 %v2267_v25, %v1848_v47 }
 0x1f4   :  { %v874_v54 = vadd.f32 %v873_v14, %v1873_v2  ;;  %3218 = vst [vmem:[#allocation54_spill] sm:$0xff] %v2332_v41  ;;  %v881_v14 = vmul.f32 %v2030_v11, %v1982_v40  ;;  %v2353_v2 = vmul.f32 %v2275_v62, %v1848_v47 }
 0x1f6   :  { %v878_v41 = vadd.f32 %v877_v6, %v874_v54  ;;  %3223 = vst [vmem:[#allocation59_spill] sm:$0xff] %v2353_v2  ;;  %v885_v54 = vmul.f32 %v2053_v31, %v2016_v58  ;;  %v1151_v2 = vmul.f32 %v2098_v18, %v1828_v22  ;;  %v889_v58 = vmul.f32 %v2069_v39, %v1853_v50 }
 0x1f8   :  { %v882_v6 = vadd.f32 %v881_v14, %v878_v41  ;;  %v683_v40 = vpop.permute.xlu1 %682  ;;  %v2392_v41 = vmul.f32 %v2263_v19, %v1848_v47  ;;  %v1152_v13 = vadd.f32 %v1151_v2, %v2073_v49  ;;  %v2408_v47 = vmul.f32 %v504_v55, %v1828_v22 }
 0x1f9   :  { %v2384_v44 = vsel %vm170_vm5, %v683_v40, 0.0  ;;  %v905_v40 = vmul.f32 %v2285_v61, %v1828_v22  ;;  %v1159_v2 = vmul.f32 %v2057_v32, %v2124_v56  ;;  %v893_v49 = vmul.f32 %v2098_v18, %v1875_v3 }
 0x1fa   :  { %3228 = vst [vmem:[#allocation63_spill] sm:$0xff] %v2384_v44  ;;  %v886_v14 = vadd.f32 %v885_v54, %v882_v6  ;;  %v1155_v48 = vmul.f32 %v2384_v44, %v2114_v29  ;;  %v2412_v54 = vmul.f32 %v2282_v16, %v1828_v22  ;;  %v2420_v44 = vmul.f32 %v2279_v63, %v1927_v17 }
 0x1fb   :  { %3230 = vst [vmem:[#allocation65_spill] sm:$0xff] %v2392_v41  ;;  %v2424_v55 = vmul.f32 %v2253_v51, %v1828_v22  ;;  %v2440_v22 = vmul.f32 %v2288_v7, %v1912_v9  ;;  %v2452_v63 = vmul.f32 %v1927_v17, %v2263_v19 }
 0x1fc   :  { %3232 = vst [vmem:[#allocation67_spill] sm:$0xff] %v2412_v54  ;;  %v890_v6 = vadd.f32 %v889_v58, %v886_v14  ;;  %v1156_v41 = vadd.f32 %v1155_v48, %v1152_v13  ;;  %v2432_v54 = vmul.f32 %v1927_v17, %v2267_v25  ;;  %v1163_v58 = vmul.f32 %v1988_v43, %v2251_v42  ;;  %v419_v14 = vpop.permute.xlu2 %418 }
 0x1fd   :  { %3233 = vst [vmem:[#allocation68_spill] sm:$0xff] %v2420_v44  ;;  %v897_v48 = vmul.f32 %v2061_v36, %v2114_v29  ;;  %v2470_v17 = vmul.f32 %v2098_v18, %v1944_v34 }
 0x1fe   :  { %3234 = vst [vmem:[#allocation69_spill] sm:$0xff] %v2424_v55  ;;  %v894_v13 = vadd.f32 %v893_v49, %v890_v6  ;;  %v1160_v44 = vadd.f32 %v1159_v2, %v1156_v41  ;;  %v901_v49 = vmul.f32 %v2124_v56, %v1867_v0  ;;  %v2462_v6 = vmul.f32 %v2275_v62, %v1912_v9 }
 0x1ff   :  { %3236 = vst [vmem:[#allocation71_spill] sm:$0xff] %v2432_v54  ;;  %v2448_v54 = vmul.f32 %v2253_v51, %v1912_v9  ;;  %v2466_v55 = vsel %vm170_vm5, %v419_v14, 0.0  ;;  %v2487_v14 = vmul.f32 %v2300_v21, %v1912_v9  ;;  %v2491_v62 = vmul.f32 %v2303_v30, %v1912_v9 }
 0x200   :  { %3239 = vst [vmem:[#allocation74_spill] sm:$0xff] %v2452_v63  ;;  %v898_v41 = vadd.f32 %v897_v48, %v894_v13  ;;  %v2456_v2 = vadd.f32 %v1163_v58, %v1160_v44  ;;  %v2474_v48 = vmul.f32 %v2297_v20, %v1912_v9  ;;  %v3244_v44 = vstv %s2225_s3 }
 0x201   :  { %3238 = vst [vmem:[#allocation73_spill] sm:$0xff] %v2448_v54  ;;  %v2479_v58 = vmul.f32 %v3244_v44, %v1912_v9  ;;  %v2483_v63 = vmul.f32 %v2069_v39, %v1944_v34  ;;  %v2498_v44 = vstv %s2399_s13  ;;  %v2504_v34 = vmul.f32 %v2253_v51, %v1853_v50 }
 0x202   :  { %3240 = vst [vmem:[#allocation75_spill] sm:$0xff] %v2456_v2  ;;  %v902_v13 = vadd.f32 %v901_v49, %v898_v41  ;;  %v1021_v41 = vmul.f32 %v2053_v31, %v1853_v50  ;;  %v3248_v49 = vstv %s2237_s6  ;;  %v909_v9 = vmul.f32 %v2498_v44, %v2466_v55 }
 0x203   :  { %3241 = vst [vmem:[#allocation76_spill] sm:$0xff] %v2462_v6  ;;  %v2509_v4 = vmul.f32 %v3248_v49, %v1976_v38  ;;  %v2519_v6 = vmul.f32 %v2307_v28, %v1853_v50  ;;  %v2527_v49 = vmul.f32 %v2322_v59, %v1846_v45  ;;  %v3254_v2 = vstv %s2241_s4 }
 0x204   :  { %3242 = vst [vmem:[#allocation77_spill] sm:$0xff] %v2466_v55  ;;  %v1033_v55 = vmul.f32 %v2114_v29, %v1867_v0 }
 0x205   :  { %3243 = vst [vmem:[#allocation78_spill] sm:$0xff] %v2474_v48  ;;  %v2495_v48 = vmul.f32 %v2124_v56, %v1950_v35 }
 0x206   :  { %3245 = vst [vmem:[#allocation79_spill] sm:$0xff] %v2479_v58  ;;  %v2523_v58 = vmul.f32 %v2288_v7, %v1853_v50 }
 0x207   :  { %3246 = vst [vmem:[#allocation80_spill] sm:$0xff] %v2487_v14  ;;  %v2515_v14 = vmul.f32 %v2114_v29, %v1950_v35  ;;  %v913_v35 = vmul.f32 %v2380_v8, %v2081_v60 }
 0x208   :  { %3247 = vst [vmem:[#allocation81_spill] sm:$0xff] %v2491_v62  ;;  %v906_v62 = vadd.f32 %v905_v40, %v902_v13  ;;  %v2531_v40 = vmul.f32 %v2316_v26, %v1846_v45 }
 0x209   :  { %3249 = vst [vmem:[#allocation82_spill] sm:$0xff] %v2509_v4  ;;  %v2537_v4 = vmul.f32 %v2319_v52, %v1846_v45 }
 0x20a   :  { %3250 = vst [vmem:[#allocation83_spill] sm:$0xff] %v2519_v6  ;;  %v910_v13 = vadd.f32 %v909_v9, %v906_v62  ;;  %v2556_v62 = vmul.f32 %v2261_v10, %v1846_v45  ;;  %v2560_v9 = vmul.f32 %v2364_v15, %v1940_v33 }
 0x20b   :  { %3251 = vst [vmem:[#allocation84_spill] sm:$0xff] %v2523_v58  ;;  %v2542_v58 = vmul.f32 %v3254_v2, %v1853_v50  ;;  %v2563_v50 = vstv %s2454_s14  ;;  %v1025_v2 = vmul.f32 %v2069_v39, %v1875_v3 }
 0x20c   :  { %3252 = vst [vmem:[#allocation85_spill] sm:$0xff] %v2527_v49  ;;  %v2548_v49 = vmul.f32 %v2267_v25, %v1846_v45  ;;  %v914_v25 = vadd.f32 %v913_v35, %v910_v13  ;;  %v2590_v13 = vmul.f32 %v2282_v16, %v1875_v3 }
 0x20d   :  { %3253 = vst [vmem:[#allocation86_spill] sm:$0xff] %v2531_v40  ;;  %v2552_v40 = vmul.f32 %v2263_v19, %v1846_v45 }
 0x20e   :  { %3255 = vst [vmem:[#allocation87_spill] sm:$0xff] %v2542_v58  ;;  %v524_v58 = vpop.permute.xlu0 %523 }
 0x20f   :  { %3256 = vst [vmem:[#allocation88_spill] sm:$0xff] %v2548_v49  ;;  %v3260_v49 = vstv %s2269_s11  ;;  %v2576_v10 = vsel %vm192_vm4, %v524_v58, 0.0  ;;  %v2594_v58 = vmul.f32 %v2253_v51, %v1875_v3 }
 0x210   :  { %3257 = vst [vmem:[#allocation89_spill] sm:$0xff] %v2552_v40  ;;  %v2570_v6 = vmul.f32 %v3260_v49, %v1959_v37  ;;  %v917_v40 = vmul.f32 %v1992_v5, %v2563_v50  ;;  %v1017_v35 = vmul.f32 %v2030_v11, %v2576_v10 }
 0x211   :  { %3258 = vst [vmem:[#allocation90_spill] sm:$0xff] %v2556_v62  ;;  %v311_v62 = vpop.permute.xlu1 %310 }
 0x212   :  { %3259 = vst [vmem:[#allocation91_spill] sm:$0xff] %v2560_v9  ;;  %v2580_v9 = vmul.f32 %v2325_v27, %v1867_v0  ;;  %v312_v49 = vsel %vm170_vm5, %v311_v62, 0.0  ;;  %v2597_v54 = vadd.f32 %v917_v40, %v914_v25  ;;  %v1018_v62 = vadd.f32 %v1017_v35, %v2028_v1  ;;  %v3268_v25 = vld [vmem:[#allocation27_spill] sm:$0xff] }
 0x213   :  { %3261 = vst [vmem:[#allocation92_spill] sm:$0xff] %v2570_v6  ;;  %v314_v6 = vmul.f32 %v1860_v57, %v312_v49  ;;  %v2614_v57 = vmul.f32 %v2288_v7, %v1875_v3  ;;  %v2618_v40 = vmul.f32 %v2319_v52, %v1867_v0  ;;  %v3269_v49 = vld [vmem:[#allocation20_spill] sm:$0xff]  ;;  %v2627_v35 = vmul.f32 %v2253_v51, %v1846_v45 }
 0x214   :  { %3262 = vst [vmem:[#allocation93_spill] sm:$0xff] %v2580_v9  ;;  %v2601_v9 = vmul.f32 %v2316_v26, %v1867_v0  ;;  %v323_v26 = vmul.f32 %v3269_v49, %v3268_v25  ;;  %v2637_v7 = vmul.f32 %v1959_v37, %v2303_v30 }
 0x215   :  { %3263 = vst [vmem:[#allocation94_spill] sm:$0xff] %v2590_v13  ;;  %v2610_v13 = vmul.f32 %v2253_v51, %v1867_v0  ;;  %v315_v1 = vadd.f32 %v314_v6, %v3270_v24  ;;  %v1022_v0 = vadd.f32 %v1021_v41, %v1018_v62  ;;  %v2645_v6 = vmul.f32 %v1959_v37, %v2297_v20  ;;  %v3279_v41 = vld [vmem:[#allocation21_spill] sm:$0xff] }
 0x216   :  { %3266 = vst [vmem:[#allocation97_spill] sm:$0xff] %v2614_v57  ;;  %v3280_v62 = vstv %s2237_s6  ;;  %v2666_v57 = vmul.f32 %v2380_v8, %v3279_v41 }
 0x217   :  { %3265 = vst [vmem:[#allocation96_spill] sm:$0xff] %v2610_v13  ;;  %v3272_v13 = vld [vmem:[#allocation52_spill] sm:$0xff]  ;;  %v324_v49 = vadd.f32 %v323_v26, %v315_v1  ;;  %v3285_v1 = vld [vmem:[#allocation33_spill] sm:$0xff] }
 0x218   :  { %3267 = vst [vmem:[#allocation98_spill] sm:$0xff] %v2618_v40  ;;  %v2631_v3 = vmul.f32 %v3272_v13, %v1846_v45  ;;  %v3275_v40 = vld [vmem:[#allocation57_spill] sm:$0xff]  ;;  %v2680_v20 = vmul.f32 %v3272_v13, %v3279_v41 }
 0x219   :  { %3271 = vst [vmem:[#allocation27_spill] sm:$0xff] %v2627_v35  ;;  %v2641_v24 = vmul.f32 %v1976_v38, %v3275_v40  ;;  %v3278_v45 = vld [vmem:[#allocation25_spill] sm:$0xff] }
 0x21a   :  { %3273 = vst [vmem:[#allocation20_spill] sm:$0xff] %v2631_v3  ;;  %v327_v25 = vmul.f32 %v2030_v11, %v3278_v45  ;;  %v2654_v3 = vmul.f32 %v3280_v62, %v3279_v41  ;;  %v3284_v11 = vstv %s2241_s4  ;;  %v481_v62 = vstv %s2582_s2 }
 0x21b   :  { %3274 = vst [vmem:[#allocation19_spill] sm:$0xff] %v2637_v7  ;;  %v2658_v7 = vmul.f32 %v2253_v51, %v3279_v41  ;;  %v2671_v26 = vmul.f32 %v3284_v11, %v3279_v41  ;;  %v336_v51 = vmul.f32 %v2053_v31, %v3285_v1  ;;  %v2688_v11 = vmul.f32 %v2303_v30, %v3279_v41 }
 0x21c   :  { %3276 = vst [vmem:[#allocation52_spill] sm:$0xff] %v2641_v24  ;;  %v3282_v24 = vld [vmem:[#allocation30_spill] sm:$0xff]  ;;  %v328_v45 = vadd.f32 %v327_v25, %v324_v49 }
 0x21d   :  { %3277 = vst [vmem:[#allocation57_spill] sm:$0xff] %v2645_v6  ;;  %v1029_v35 = vmul.f32 %v2098_v18, %v3282_v24  ;;  %v1026_v6 = vadd.f32 %v1025_v2, %v1022_v0  ;;  %v2684_v0 = vmul.f32 %v2319_v52, %v3279_v41  ;;  %v3289_v25 = vld [vmem:[#allocation22_spill] sm:$0xff] }
 0x21e   :  { %3281 = vst [vmem:[#allocation25_spill] sm:$0xff] %v2654_v3  ;;  %v479_v3 = vpop.permute.xlu1 %478  ;;  %v342_v49 = vmul.f32 %v2069_v39, %v3289_v25  ;;  %v337_v1 = vadd.f32 %v336_v51, %v328_v45  ;;  %v2710_v51 = vmul.f32 %v1959_v37, %v2263_v19  ;;  %v2726_v37 = vmul.f32 %v3272_v13, %v1940_v33 }
 0x21f   :  { %3283 = vst [vmem:[#allocation21_spill] sm:$0xff] %v2666_v57  ;;  %v1030_v2 = vadd.f32 %v1029_v35, %v1026_v6  ;;  %v2692_v57 = vmul.f32 %v3275_v40, %v3279_v41  ;;  %v480_v35 = vsel %vm192_vm4, %v479_v3, 0.0  ;;  %v2700_v6 = vmul.f32 %v1940_v33, %v2263_v19 }
 0x220   :  { %3286 = vst [vmem:[#allocation30_spill] sm:$0xff] %v2680_v20  ;;  %v482_v41 = vmul.f32 %v481_v62, %v480_v35  ;;  %v343_v39 = vadd.f32 %v342_v49, %v337_v1  ;;  %v2714_v3 = vmul.f32 %v1976_v38, %v3272_v13  ;;  %v2729_v19 = vstv %s2620_s15 }
 0x221   :  { %3287 = vst [vmem:[#allocation33_spill] sm:$0xff] %v2688_v11  ;;  %v1034_v20 = vadd.f32 %v1033_v55, %v1030_v2  ;;  %v486_v11 = vmul.f32 %v2053_v31, %v3289_v25  ;;  %v2718_v55 = vmul.f32 %v1940_v33, %v2322_v59  ;;  %v3295_v31 = vld [vmem:[#allocation31_spill] sm:$0xff]  ;;  %v3298_v25 = vld [vmem:[#allocation34_spill] sm:$0xff]  ;;  %v2738_v35 = vstv %s2647_s17 }
 0x222   :  { %3288 = vst [vmem:[#allocation99_spill] sm:$0xff] %v2692_v57  ;;  %v2706_v57 = vmul.f32 %v1976_v38, %v2303_v30  ;;  %v1041_v45 = vmul.f32 %v3295_v31, %v2251_v42  ;;  %v3296_v30 = vld [vmem:[#allocation28_spill] sm:$0xff]  ;;  %v2732_v38 = vstv %s2633_s16  ;;  %v353_v49 = vmul.f32 %v2114_v29, %v3298_v25 }
 0x223   :  { %3290 = vst [vmem:[#allocation22_spill] sm:$0xff] %v2700_v6  ;;  %v483_v62 = vadd.f32 %v482_v41, %v3296_v30  ;;  %v1038_v2 = vadd.f32 %v2408_v47, %v1034_v20  ;;  %v347_v1 = vadd.f32 %v2470_v17, %v343_v39  ;;  %v1045_v41 = vmul.f32 %v2498_v44, %v2081_v60 }
 0x224   :  { %3291 = vst [vmem:[#allocation100_spill] sm:$0xff] %v2706_v57  ;;  %v1049_v33 = vmul.f32 %v2380_v8, %v1992_v5  ;;  %v2745_v47 = vstv %s2660_s18 }
 0x225   :  { %3292 = vst [vmem:[#allocation101_spill] sm:$0xff] %v2710_v51  ;;  %v487_v30 = vadd.f32 %v486_v11, %v483_v62  ;;  %v1042_v20 = vadd.f32 %v1041_v45, %v1038_v2  ;;  %v354_v6 = vadd.f32 %v353_v49, %v347_v1  ;;  %v3301_v45 = vld [vmem:[#allocation23_spill] sm:$0xff] }
 0x226   :  { %3293 = vst [vmem:[#allocation102_spill] sm:$0xff] %v2714_v3  ;;  %v822_v51 = vpop.permute.xlu1 %821  ;;  %v382_v62 = vmul.f32 %v2563_v50, %v3301_v45  ;;  %v520_v2 = vmul.f32 %v2380_v8, %v3301_v45  ;;  %v2782_v3 = vmul.f32 %v2732_v38, %v1992_v5 }
 0x227   :  { %3294 = vst [vmem:[#allocation103_spill] sm:$0xff] %v2718_v55  ;;  %v2748_v55 = vstv %s2673_s19  ;;  %v491_v17 = vadd.f32 %v2483_v63, %v487_v30  ;;  %v2755_v39 = vsel %vm192_vm4, %v822_v51, 0.0  ;;  %v1046_v11 = vadd.f32 %v1045_v41, %v1042_v20  ;;  %v584_v51 = vpop.permute.xlu2 %583  ;;  %v3302_v30 = vld [vmem:[#allocation50_spill] sm:$0xff]  ;;  %v3303_v20 = vld [vmem:[#allocation35_spill] sm:$0xff] }
 0x228   :  { %3297 = vst [vmem:[#allocation31_spill] sm:$0xff] %v2726_v37  ;;  %v3300_v37 = vld [vmem:[#allocation38_spill] sm:$0xff]  ;;  %v358_v25 = vadd.f32 %v2495_v48, %v354_v6  ;;  %v1285_v49 = vmul.f32 %v2285_v61, %v2755_v39  ;;  %v2770_v63 = vmul.f32 %v2325_v27, %v1988_v43  ;;  %v2774_v41 = vmul.f32 %v2729_v19, %v1992_v5 }
 0x229   :  { %3299 = vst [vmem:[#allocation28_spill] sm:$0xff] %v2745_v47  ;;  %v497_v29 = vmul.f32 %v2098_v18, %v3300_v37  ;;  %v2766_v18 = vmul.f32 %v2272_v23, %v1988_v43  ;;  %v1050_v1 = vadd.f32 %v1049_v33, %v1046_v11  ;;  %v371_v48 = vmul.f32 %v2498_v44, %v3302_v30 }
 0x22a   :  { %v362_v6 = vadd.f32 %v2361_v46, %v358_v25  ;;  %v1286_v45 = vadd.f32 %v1285_v49, %v3303_v20  ;;  %v2786_v43 = vmul.f32 %v2732_v38, %v2081_v60  ;;  %v2790_v33 = vmul.f32 %v2738_v35, %v2081_v60  ;;  %v3305_v49 = vld [vmem:[#allocation43_spill] sm:$0xff] }
 0x22b   :  { %v498_v37 = vadd.f32 %v497_v29, %v491_v17  ;;  %v3304_v17 = vld [vmem:[#allocation24_spill] sm:$0xff]  ;;  %v2797_v46 = vsel %vm192_vm4, %v584_v51, 0.0  ;;  %v2804_v30 = vmul.f32 %v2364_v15, %v3305_v49  ;;  %v2808_v60 = vmul.f32 %v2745_v47, %v3305_v49  ;;  %v3312_v47 = vld [vmem:[#allocation29_spill] sm:$0xff] }
 0x22c   :  { %v378_v11 = vmul.f32 %v2380_v8, %v3304_v17  ;;  %v372_v25 = vadd.f32 %v371_v48, %v362_v6  ;;  %v1290_v5 = vadd.f32 %v2671_v26, %v1286_v45  ;;  %v2815_v48 = vmul.f32 %v2325_v27, %v3305_v49 }
 0x22d   :  { %v502_v29 = vadd.f32 %v2515_v14, %v498_v37  ;;  %3306 = vst [vmem:[#allocation34_spill] sm:$0xff] %v2804_v30  ;;  %v3308_v14 = vld [vmem:[#allocation39_spill] sm:$0xff]  ;;  %v437_v37 = vpop.permute.xlu0 %436  ;;  %v2819_v26 = vmul.f32 %v2748_v55, %v3305_v49  ;;  %v2856_v57 = vmul.f32 %v3312_v47, %v2272_v23 }
 0x22e   :  { %3307 = vst [vmem:[#allocation38_spill] sm:$0xff] %v2808_v60  ;;  %v512_v8 = vmul.f32 %v3308_v14, %v2251_v42  ;;  %v379_v6 = vadd.f32 %v378_v11, %v372_v25  ;;  %v1294_v20 = vadd.f32 %v2440_v22, %v1290_v5  ;;  %v569_v45 = vpop.permute.xlu1 %568  ;;  %v516_v60 = vmul.f32 %v2498_v44, %v3304_v17 }
 0x22f   :  { %v506_v51 = vadd.f32 %v2368_v53, %v502_v29  ;;  %3309 = vst [vmem:[#allocation23_spill] sm:$0xff] %v2815_v48  ;;  %v1297_v14 = vmul.f32 %v2797_v46, %v2563_v50  ;;  %v2828_v53 = vsel %vm192_vm4, %v569_v45, 0.0  ;;  %v3310_v29 = vld [vmem:[#allocation26_spill] sm:$0xff]  ;;  %v2840_v17 = vmul.f32 %v2325_v27, %v2057_v32 }
 0x230   :  { %v389_v15 = vmul.f32 %v2307_v28, %v3310_v29  ;;  %v2834_v11 = vmul.f32 %v2498_v44, %v3310_v29  ;;  %v383_v22 = vadd.f32 %v382_v62, %v379_v6  ;;  %v1053_v25 = vmul.f32 %v2300_v21, %v2828_v53  ;;  %3313 = vst [vmem:[#allocation50_spill] sm:$0xff] %v2856_v57  ;;  %v3321_v57 = vld [vmem:[#allocation56_spill] sm:$0xff]  ;;  %v3324_v48 = vld [vmem:[#allocation86_spill] sm:$0xff] }
 0x231   :  { %v513_v30 = vadd.f32 %v512_v8, %v506_v51  ;;  %v2844_v5 = vmul.f32 %v2748_v55, %v2057_v32  ;;  %v1298_v8 = vadd.f32 %v1297_v14, %v1294_v20  ;;  %v3311_v51 = vld [vmem:[#allocation36_spill] sm:$0xff]  ;;  %v404_v62 = vmul.f32 %v2748_v55, %v2061_v36  ;;  %v3314_v20 = vld [vmem:[#allocation37_spill] sm:$0xff] }
 0x232   :  { %v648_v45 = vmul.f32 %v3311_v51, %v2124_v56  ;;  %v390_v6 = vadd.f32 %v389_v15, %v383_v22  ;;  %v1054_v29 = vadd.f32 %v1053_v25, %v1050_v1  ;;  %v2852_v21 = vmul.f32 %v2061_v36, %v2307_v28 }
 0x233   :  { %v517_v49 = vadd.f32 %v516_v60, %v513_v30  ;;  %v527_v32 = vmul.f32 %v2576_v10, %v2563_v50  ;;  %v1317_v56 = vmul.f32 %v2325_v27, %v3312_v47  ;;  %v640_v1 = vstv %s2800_s20  ;;  %v3316_v27 = vld [vmem:[#allocation94_spill] sm:$0xff] }
 0x234   :  { %v394_v60 = vadd.f32 %v2504_v34, %v390_v6  ;;  %v1058_v15 = vadd.f32 %v2684_v0, %v1054_v29  ;;  %v2867_v36 = vmul.f32 %v3314_v20, %v2729_v19  ;;  %v1085_v14 = vmul.f32 %v3314_v20, %v2732_v38  ;;  %v3317_v34 = vld [vmem:[#allocation73_spill] sm:$0xff]  ;;  %v3319_v20 = vld [vmem:[#allocation83_spill] sm:$0xff] }
 0x235   :  { %v521_v30 = vadd.f32 %v520_v2, %v517_v49  ;;  %v638_v25 = vpop.permute.xlu0 %637  ;;  %v1302_v10 = vadd.f32 %v2537_v4, %v1298_v8  ;;  %v1065_v2 = vmul.f32 %v2282_v16, %v2797_v46  ;;  %v2880_v47 = vsel %vm170_vm5, %v437_v37, 0.0 }
 0x236   :  { %3315 = vst [vmem:[#allocation35_spill] sm:$0xff] %v2867_v36  ;;  %v398_v49 = vadd.f32 %v3316_v27, %v394_v60  ;;  %v1062_v51 = vadd.f32 %v3317_v34, %v1058_v15  ;;  %v639_v6 = vsel %vm170_vm5, %v638_v25, 0.0  ;;  %v599_v29 = vpop.permute.xlu1 %598  ;;  %v557_v8 = vmul.f32 %v2272_v23, %v3295_v31  ;;  %v3320_v34 = vld [vmem:[#allocation40_spill] sm:$0xff] }
 0x237   :  { %v528_v22 = vadd.f32 %v527_v32, %v521_v30  ;;  %v641_v30 = vmul.f32 %v640_v1, %v639_v6  ;;  %v2885_v4 = vsel %vm192_vm4, %v599_v29, 0.0  ;;  %v542_v60 = vmul.f32 %v2282_v16, %v3282_v24  ;;  %v3323_v29 = vld [vmem:[#allocation93_spill] sm:$0xff] }
 0x238   :  { %v405_v15 = vadd.f32 %v404_v62, %v398_v49  ;;  %v1066_v25 = vadd.f32 %v1065_v2, %v1062_v51  ;;  %v1306_v36 = vadd.f32 %v3321_v57, %v1302_v10  ;;  %v1309_v1 = vmul.f32 %v2282_v16, %v2885_v4  ;;  %v3325_v2 = vld [vmem:[#allocation77_spill] sm:$0xff]  ;;  %v3326_v57 = vld [vmem:[#allocation64_spill] sm:$0xff] }
 0x239   :  { %v532_v32 = vadd.f32 %v3319_v20, %v528_v22  ;;  %v642_v37 = vadd.f32 %v641_v30, %v3320_v34  ;;  %v3322_v22 = vld [vmem:[#allocation32_spill] sm:$0xff]  ;;  %v921_v23 = vmul.f32 %v2880_v47, %v2307_v28  ;;  %v1167_v30 = vmul.f32 %v2498_v44, %v2880_v47  ;;  %v3327_v34 = vld [vmem:[#allocation55_spill] sm:$0xff]  ;;  %v3329_v28 = vld [vmem:[#allocation45_spill] sm:$0xff] }
 0x23a   :  { %v652_v6 = vmul.f32 %v3322_v22, %v2251_v42  ;;  %v409_v20 = vadd.f32 %v3323_v29, %v405_v15  ;;  %v1070_v62 = vadd.f32 %v3324_v48, %v1066_v25  ;;  %v3328_v15 = vld [vmem:[#allocation46_spill] sm:$0xff]  ;;  %v1081_v29 = vmul.f32 %v3329_v28, %v2738_v35 }
 0x23b   :  { %v536_v27 = vadd.f32 %v2594_v58, %v532_v32  ;;  %v422_v58 = vmul.f32 %v2738_v35, %v3325_v2  ;;  %v649_v51 = vadd.f32 %v648_v45, %v642_v37  ;;  %v1310_v32 = vadd.f32 %v1309_v1, %v1306_v36  ;;  %v728_v1 = vpop.permute.xlu2 %727 }
 0x23c   :  { %v413_v10 = vadd.f32 %v3326_v57, %v409_v20  ;;  %v1074_v42 = vadd.f32 %v3327_v34, %v1070_v62  ;;  %v1077_v22 = vmul.f32 %v3328_v15, %v2885_v4  ;;  %v810_v37 = vmul.f32 %v2282_v16, %v3295_v31  ;;  %v3330_v20 = vld [vmem:[#allocation66_spill] sm:$0xff]  ;;  %v3332_v16 = vld [vmem:[#allocation84_spill] sm:$0xff] }
 0x23d   :  { %v543_v49 = vadd.f32 %v542_v60, %v536_v27  ;;  %v653_v25 = vadd.f32 %v652_v6, %v649_v51  ;;  %v783_v2 = vpop.permute.xlu0 %782  ;;  %v1314_v45 = vadd.f32 %v2819_v26, %v1310_v32  ;;  %v922_v60 = vadd.f32 %v921_v23, %v2597_v54  ;;  %v3331_v26 = vld [vmem:[#allocation75_spill] sm:$0xff]  ;;  %v3333_v32 = vld [vmem:[#allocation42_spill] sm:$0xff] }
 0x23e   :  { %v423_v36 = vadd.f32 %v422_v58, %v413_v10  ;;  %v1078_v27 = vadd.f32 %v1077_v22, %v1074_v42  ;;  %v784_v44 = vsel %vm192_vm4, %v783_v2, 0.0  ;;  %v1168_v58 = vadd.f32 %v1167_v30, %v3331_v26  ;;  %v3335_v30 = vld [vmem:[#allocation87_spill] sm:$0xff]  ;;  %v3339_v2 = vld [vmem:[#allocation97_spill] sm:$0xff] }
 0x23f   :  { %v547_v48 = vadd.f32 %v2601_v9, %v543_v49  ;;  %v657_v57 = vadd.f32 %v2834_v11, %v653_v25  ;;  %v786_v9 = vmul.f32 %v2285_v61, %v784_v44  ;;  %v2924_v54 = vadd.f32 %v1317_v56, %v1314_v45 }
 0x240   :  { %v430_v6 = vadd.f32 %v2786_v43, %v423_v36  ;;  %v1082_v23 = vadd.f32 %v1081_v29, %v1078_v27  ;;  %v798_v49 = vmul.f32 %v3282_v24, %v2563_v50  ;;  %v440_v61 = vmul.f32 %v3272_v13, %v2880_v47  ;;  %v3334_v24 = vld [vmem:[#allocation95_spill] sm:$0xff]  ;;  %v950_v36 = vpop.permute.xlu1 %949 }
 0x241   :  { %v551_v62 = vadd.f32 %v3330_v20, %v547_v48  ;;  %v661_v31 = vadd.f32 %v3332_v16, %v657_v57  ;;  %v787_v10 = vadd.f32 %v786_v9, %v3333_v32  ;;  %v926_v43 = vadd.f32 %v2658_v7, %v922_v60 }
 0x242   :  { %v434_v11 = vadd.f32 %v2774_v41, %v430_v6  ;;  %v2934_v34 = vadd.f32 %v1085_v14, %v1082_v23  ;;  %v2938_v56 = vmul.f32 %v3329_v28, %v2732_v38  ;;  %v3336_v22 = vstv %s2269_s11  ;;  %v3337_v14 = vld [vmem:[#allocation21_spill] sm:$0xff]  ;;  %v3338_v38 = vld [vmem:[#allocation51_spill] sm:$0xff]  ;;  %v3343_v6 = vld [vmem:[#allocation76_spill] sm:$0xff] }
 0x243   :  { %v558_v51 = vadd.f32 %v557_v8, %v551_v62  ;;  %v665_v8 = vadd.f32 %v3334_v24, %v661_v31  ;;  %v791_v42 = vadd.f32 %v3335_v30, %v787_v10  ;;  %v587_v41 = vmul.f32 %v3336_v22, %v2797_v46  ;;  %v3345_v23 = vld [vmem:[#allocation80_spill] sm:$0xff]  ;;  %v3346_v31 = vld [vmem:[#allocation63_spill] sm:$0xff]  ;;  %v972_v10 = vpop.permute.xlu2 %971 }
 0x244   :  { %v2948_v29 = vmul.f32 %v2797_v46, %v2729_v19  ;;  %v441_v7 = vadd.f32 %v440_v61, %v434_v11  ;;  %v1172_v48 = vadd.f32 %v3337_v14, %v1168_v58  ;;  %v572_v28 = vmul.f32 %v3338_v38, %v2828_v53  ;;  %v3340_v19 = vld [vmem:[#allocation25_spill] sm:$0xff]  ;;  %v3342_v53 = vld [vmem:[#allocation96_spill] sm:$0xff]  ;;  %v3347_v11 = vld [vmem:[#allocation30_spill] sm:$0xff] }
 0x245   :  { %v562_v50 = vadd.f32 %v2790_v33, %v558_v51  ;;  %v669_v33 = vadd.f32 %v2852_v21, %v665_v8  ;;  %v795_v45 = vadd.f32 %v3339_v2, %v791_v42  ;;  %v452_v60 = vpop.permute.xlu0 %451  ;;  %v2958_v27 = vsel %vm170_vm5, %v728_v1, 0.0  ;;  %v3344_v1 = vld [vmem:[#allocation53_spill] sm:$0xff]  ;;  %v3352_v2 = vld [vmem:[#allocation88_spill] sm:$0xff] }
 0x246   :  { %v445_v46 = vadd.f32 %v3340_v19, %v441_v7  ;;  %v2963_v44 = vsel %vm170_vm5, %v452_v60, 0.0  ;;  %v1176_v51 = vadd.f32 %v3345_v23, %v1172_v48  ;;  %v686_v32 = vmul.f32 %v2748_v55, %v3346_v31  ;;  %v3351_v48 = vld [vmem:[#allocation69_spill] sm:$0xff]  ;;  %v3353_v60 = vld [vmem:[#allocation90_spill] sm:$0xff] }
 0x247   :  { %v566_v25 = vadd.f32 %v2782_v3, %v562_v50  ;;  %v3341_v3 = vld [vmem:[#allocation79_spill] sm:$0xff]  ;;  %v673_v57 = vadd.f32 %v3342_v53, %v669_v33  ;;  %v799_v21 = vadd.f32 %v798_v49, %v795_v45  ;;  %v455_v9 = vmul.f32 %v2322_v59, %v2963_v44  ;;  %v3349_v50 = vld [vmem:[#allocation98_spill] sm:$0xff] }
 0x248   :  { %v930_v20 = vadd.f32 %v3341_v3, %v926_v43  ;;  %v449_v26 = vadd.f32 %v3343_v6, %v445_v46  ;;  %v933_v58 = vmul.f32 %v3344_v1, %v2963_v44  ;;  %v1179_v16 = vmul.f32 %v2319_v52, %v2963_v44  ;;  %v3348_v49 = vld [vmem:[#allocation67_spill] sm:$0xff]  ;;  %v3350_v52 = vld [vmem:[#allocation72_spill] sm:$0xff] }
 0x249   :  { %v573_v62 = vadd.f32 %v572_v28, %v566_v25  ;;  %v677_v43 = vadd.f32 %v3348_v49, %v673_v57  ;;  %v803_v24 = vadd.f32 %v3349_v50, %v799_v21  ;;  %v951_v8 = vsel %vm170_vm5, %v950_v36, 0.0  ;;  %v3354_v46 = vld [vmem:[#allocation27_spill] sm:$0xff]  ;;  %v3355_v57 = vld [vmem:[#allocation58_spill] sm:$0xff] }
 0x24a   :  { %v456_v30 = vadd.f32 %v455_v9, %v449_v26  ;;  %v934_v42 = vadd.f32 %v933_v58, %v930_v20  ;;  %v1180_v22 = vadd.f32 %v1179_v16, %v1176_v51  ;;  %v1191_v7 = vmul.f32 %v2748_v55, %v2958_v27  ;;  %v3356_v9 = vld [vmem:[#allocation60_spill] sm:$0xff]  ;;  %v3357_v26 = vld [vmem:[#allocation62_spill] sm:$0xff]  ;;  %v1104_v51 = vpop.permute.xlu1 %1103 }
 0x24b   :  { %v577_v61 = vadd.f32 %v3347_v11, %v573_v62  ;;  %v807_v25 = vadd.f32 %v3351_v48, %v803_v24  ;;  %v687_v28 = vadd.f32 %v686_v32, %v677_v43  ;;  %v973_v33 = vsel %vm170_vm5, %v972_v10, 0.0 }
 0x24c   :  { %v460_v45 = vadd.f32 %v3352_v2, %v456_v30  ;;  %v938_v19 = vadd.f32 %v3353_v60, %v934_v42  ;;  %v1184_v36 = vadd.f32 %v3354_v46, %v1180_v22  ;;  %v953_v62 = vmul.f32 %v3275_v40, %v951_v8  ;;  %v3362_v42 = vld [vmem:[#allocation33_spill] sm:$0xff]  ;;  %v3367_v46 = vld [vmem:[#allocation99_spill] sm:$0xff] }
 0x24d   :  { %v581_v14 = vadd.f32 %v3350_v52, %v577_v61  ;;  %v811_v20 = vadd.f32 %v810_v37, %v807_v25  ;;  %v694_v55 = vadd.f32 %v2840_v17, %v687_v28  ;;  %v861_v53 = vpop.permute.xlu0 %860  ;;  %v701_v23 = vmul.f32 %v2738_v35, %v2880_v47  ;;  %v3359_v47 = vld [vmem:[#allocation54_spill] sm:$0xff]  ;;  %v3360_v61 = vld [vmem:[#allocation47_spill] sm:$0xff]  ;;  %v3365_v28 = vld [vmem:[#allocation52_spill] sm:$0xff] }
 0x24e   :  { %v464_v21 = vadd.f32 %v3355_v57, %v460_v45  ;;  %v942_v6 = vadd.f32 %v3356_v9, %v938_v19  ;;  %v1188_v1 = vadd.f32 %v3357_v26, %v1184_v36  ;;  %v2998_v58 = vsel %vm192_vm4, %v861_v53, 0.0  ;;  %v3364_v25 = vld [vmem:[#allocation50_spill] sm:$0xff]  ;;  %v3371_v26 = vld [vmem:[#allocation49_spill] sm:$0xff] }
 0x24f   :  { %v588_v3 = vadd.f32 %v587_v41, %v581_v14  ;;  %v3358_v41 = vld [vmem:[#allocation85_spill] sm:$0xff]  ;;  %v815_v40 = vadd.f32 %v2844_v5, %v811_v20  ;;  %v698_v17 = vadd.f32 %v2766_v18, %v694_v55  ;;  %v825_v16 = vmul.f32 %v3328_v15, %v2755_v39  ;;  %v3361_v39 = vld [vmem:[#allocation23_spill] sm:$0xff]  ;;  %v989_v14 = vpop.permute.xlu2 %988 }
 0x250   :  { %465 = vst [vmem:[%s3122_s9] sm:$0xff] %v464_v21  ;;  %v954_v31 = vadd.f32 %v953_v62, %v942_v6  ;;  %v1192_v32 = vadd.f32 %v1191_v7, %v1188_v1  ;;  %v1321_v10 = vmul.f32 %v2998_v58, %v3328_v15  ;;  %v602_v5 = vmul.f32 %v3360_v61, %v2885_v4  ;;  %v3369_v21 = vld [vmem:[#allocation81_spill] sm:$0xff] }
 0x251   :  { %v592_v37 = vadd.f32 %v3358_v41, %v588_v3  ;;  %v819_v18 = vadd.f32 %v2770_v63, %v815_v40  ;;  %v702_v49 = vadd.f32 %v701_v23, %v698_v17  ;;  %v1105_v24 = vsel %vm192_vm4, %v1104_v51, 0.0  ;;  %v3363_v63 = vld [vmem:[#allocation35_spill] sm:$0xff]  ;;  %v3370_v6 = vld [vmem:[#allocation29_spill] sm:$0xff]  ;;  %v3372_v23 = vld [vmem:[#allocation82_spill] sm:$0xff] }
 0x252   :  { %v963_v43 = vadd.f32 %v2938_v56, %v954_v31  ;;  %v1196_v50 = vadd.f32 %v3361_v39, %v1192_v32  ;;  %v1322_v8 = vadd.f32 %v1321_v10, %v2924_v54  ;;  %v975_v30 = vmul.f32 %v3272_v13, %v973_v33  ;;  %v3366_v54 = vld [vmem:[#allocation78_spill] sm:$0xff]  ;;  %v3368_v3 = vld [vmem:[#allocation19_spill] sm:$0xff]  ;;  %v3374_v51 = vld [vmem:[#allocation28_spill] sm:$0xff] }
 0x253   :  { %v596_v11 = vadd.f32 %v3359_v47, %v592_v37  ;;  %v706_v22 = vadd.f32 %v3362_v42, %v702_v49  ;;  %v826_v7 = vadd.f32 %v825_v16, %v819_v18  ;;  %v1203_v52 = vmul.f32 %v973_v33, %v2738_v35  ;;  %v3373_v37 = vld [vmem:[#allocation100_spill] sm:$0xff]  ;;  %v3375_v31 = vld [vmem:[#allocation89_spill] sm:$0xff]  ;;  %v1230_v47 = vpop.permute.xlu1 %1229 }
 0x254   :  { %v967_v48 = vadd.f32 %v3363_v63, %v963_v43  ;;  %v1200_v56 = vadd.f32 %v3364_v25, %v1196_v50  ;;  %v1326_v2 = vadd.f32 %v3365_v28, %v1322_v8  ;;  %v713_v60 = vmul.f32 %v3272_v13, %v2963_v44  ;;  %v3376_v18 = vld [vmem:[#allocation92_spill] sm:$0xff]  ;;  %v3377_v43 = vld [vmem:[#allocation57_spill] sm:$0xff] }
 0x255   :  { %v603_v15 = vadd.f32 %v602_v5, %v596_v11  ;;  %v710_v45 = vadd.f32 %v3366_v54, %v706_v22  ;;  %v1333_v19 = vmul.f32 %v1105_v24, %v3338_v38  ;;  %v830_v35 = vadd.f32 %v3367_v46, %v826_v7  ;;  %v1089_v33 = vpop.permute.xlu0 %1088  ;;  %v3378_v50 = vld [vmem:[#allocation48_spill] sm:$0xff]  ;;  %v3381_v22 = vld [vmem:[#allocation102_spill] sm:$0xff]  ;;  %v3383_v25 = vld [vmem:[#allocation65_spill] sm:$0xff] }
 0x256   :  { %v976_v36 = vadd.f32 %v975_v30, %v967_v48  ;;  %v1330_v20 = vadd.f32 %v3368_v3, %v1326_v2  ;;  %v1204_v62 = vadd.f32 %v1203_v52, %v1200_v56  ;;  %v1090_v55 = vsel %vm192_vm4, %v1089_v33, 0.0  ;;  %v3379_v30 = vld [vmem:[#allocation59_spill] sm:$0xff]  ;;  %v3384_v28 = vld [vmem:[#allocation101_spill] sm:$0xff]  ;;  %v3387_v46 = vld [vmem:[#allocation22_spill] sm:$0xff] }
 0x257   :  { %1434 = vst [vmem:[%s3122_s9 + $0x8] sm:$0xff] %v603_v15  ;;  %v990_v53 = vsel %vm170_vm5, %v989_v14, 0.0  ;;  %v714_v57 = vadd.f32 %v713_v60, %v710_v45  ;;  %v834_v9 = vadd.f32 %v3369_v21, %v830_v35  ;;  %v1092_v44 = vmul.f32 %v1090_v55, %v3338_v38  ;;  %v3380_v15 = vld [vmem:[#allocation20_spill] sm:$0xff]  ;;  %v3382_v14 = vld [vmem:[#allocation31_spill] sm:$0xff]  ;;  %v3385_v54 = vld [vmem:[#allocation61_spill] sm:$0xff]  ;;  %v1357_v33 = vpop.permute.xlu2 %1356 }
 0x258   :  { %v742_v1 = vmul.f32 %v3371_v26, %v3370_v6  ;;  %v982_v41 = vadd.f32 %v3372_v23, %v976_v36  ;;  %v1208_v40 = vadd.f32 %v3373_v37, %v1204_v62  ;;  %v1334_v17 = vadd.f32 %v1333_v19, %v1330_v20  ;;  %v3386_v60 = vld [vmem:[#allocation91_spill] sm:$0xff]  ;;  %v3388_v36 = vld [vmem:[#allocation34_spill] sm:$0xff]  ;;  %v3389_v55 = vld [vmem:[#allocation68_spill] sm:$0xff] }
 0x259   :  { %v731_v16 = vmul.f32 %v3374_v51, %v2958_v27  ;;  %v718_v32 = vadd.f32 %v3375_v31, %v714_v57  ;;  %v838_v10 = vadd.f32 %v2948_v29, %v834_v9  ;;  %v1093_v11 = vadd.f32 %v1092_v44, %v2934_v34  ;;  %v3390_v57 = vld [vmem:[#allocation70_spill] sm:$0xff]  ;;  %v3392_v23 = vld [vmem:[#allocation41_spill] sm:$0xff] }
 0x25a   :  { %v992_v38 = vmul.f32 %v990_v53, %v3374_v51  ;;  %v1215_v5 = vmul.f32 %v990_v53, %v3272_v13  ;;  %v986_v49 = vadd.f32 %v3376_v18, %v982_v41  ;;  %v1212_v39 = vadd.f32 %v3377_v43, %v1208_v40  ;;  %v3391_v9 = vld [vmem:[#allocation74_spill] sm:$0xff] }
 0x25b   :  { %v849_v8 = vmul.f32 %v3378_v50, %v2885_v4  ;;  %v722_v27 = vadd.f32 %v3379_v30, %v718_v32  ;;  %v842_v42 = vadd.f32 %v3380_v15, %v838_v10  ;;  %v1097_v29 = vadd.f32 %v3381_v22, %v1093_v11  ;;  %v3393_v40 = vld [vmem:[#allocation38_spill] sm:$0xff] }
 0x25c   :  { %v993_v7 = vadd.f32 %v992_v38, %v986_v49  ;;  %v1216_v52 = vadd.f32 %v1215_v5, %v1212_v39  ;;  %v1231_v34 = vsel %vm170_vm5, %v1230_v47, 0.0  ;;  %v1338_v13 = vadd.f32 %v3382_v14, %v1334_v17  ;;  %v3395_v38 = vld [vmem:[#allocation71_spill] sm:$0xff] }
 0x25d   :  { %v732_v63 = vadd.f32 %v731_v16, %v722_v27  ;;  %v1107_v48 = vmul.f32 %v1105_v24, %v3378_v50  ;;  %v846_v56 = vadd.f32 %v3383_v25, %v842_v42  ;;  %v1101_v4 = vadd.f32 %v3384_v28, %v1097_v29  ;;  %v1119_v2 = vpop.permute.xlu0 %1118  ;;  %v3394_v16 = vld [vmem:[#allocation103_spill] sm:$0xff] }
 0x25e   :  { %v857_v45 = vmul.f32 %v3385_v54, %v3370_v6  ;;  %v997_v19 = vadd.f32 %v3386_v60, %v993_v7  ;;  %v1220_v35 = vadd.f32 %v3387_v46, %v1216_v52  ;;  %v1120_v0 = vsel %vm192_vm4, %v1119_v2, 0.0 }
 0x25f   :  { %v739_v3 = vadd.f32 %v3388_v36, %v732_v63  ;;  %v850_v20 = vadd.f32 %v849_v8, %v846_v56  ;;  %v1233_v24 = vmul.f32 %v1231_v34, %v2322_v59  ;;  %v1108_v62 = vadd.f32 %v1107_v48, %v1101_v4 }
 0x260   :  { %v1001_v53 = vadd.f32 %v3389_v55, %v997_v19  ;;  %v1224_v21 = vadd.f32 %v3390_v57, %v1220_v35  ;;  %v1342_v44 = vadd.f32 %v3391_v9, %v1338_v13  ;;  %v1345_v6 = vmul.f32 %v1120_v0, %v3378_v50 }
 0x261   :  { %v1240_v41 = vmul.f32 %v3392_v23, %v3385_v54  ;;  %v743_v37 = vadd.f32 %v742_v1, %v739_v3  ;;  %v854_v17 = vadd.f32 %v3393_v40, %v850_v20  ;;  %v1112_v31 = vadd.f32 %v3394_v16, %v1108_v62 }
 0x262   :  { %v1349_v59 = vmul.f32 %v3392_v23, %v3374_v51  ;;  %v1358_v32 = vsel %vm192_vm4, %v1357_v33, 0.0  ;;  %1515 = vst [vmem:[%s3122_s9 + $0x20] sm:$0xff] %v1001_v53  ;;  %v1234_v10 = vadd.f32 %v1233_v24, %v1224_v21  ;;  %v1346_v47 = vadd.f32 %v1345_v6, %v1342_v44 }
 0x263   :  { %1461 = vst [vmem:[%s3122_s9 + $0x10] sm:$0xff] %v743_v37  ;;  %v858_v1 = vadd.f32 %v857_v45, %v854_v17  ;;  %v864_v11 = vmul.f32 %v3360_v61, %v2998_v58  ;;  %v1116_v5 = vadd.f32 %v3395_v38, %v1112_v31  ;;  %v1122_v51 = vmul.f32 %v3360_v61, %v1120_v0 }
 0x264   :  { %v1244_v18 = vmul.f32 %v3396_v12, %v3371_v26  ;;  %v1353_v49 = vmul.f32 %v3396_v12, %v3385_v54  ;;  %v1241_v43 = vadd.f32 %v1240_v41, %v1234_v10  ;;  %v1350_v39 = vadd.f32 %v1349_v59, %v1346_v47 }
 0x265   :  { %v865_v50 = vadd.f32 %v864_v11, %v858_v1  ;;  %v1123_v8 = vadd.f32 %v1122_v51, %v1116_v5  ;;  %v1360_v30 = vmul.f32 %v3360_v61, %v1358_v32 }
 0x266   :  { %v1245_v27 = vadd.f32 %v1244_v18, %v1241_v43  ;;  %v1354_v15 = vadd.f32 %v1353_v49, %v1350_v39 }
 0x267   :  { %1488 = vst [vmem:[%s3122_s9 + $0x18] sm:$0xff] %v865_v50 }
 0x268   :  { %1569 = vst [vmem:[%s3122_s9 + $0x30] sm:$0xff] %v1245_v27  ;;  %v1361_v58 = vadd.f32 %v1360_v30, %v1354_v15 }
 0x269   :  { %1542 = vst [vmem:[%s3122_s9 + $0x28] sm:$0xff] %v1123_v8 }
 0x26a   :  { %1596 = vst [vmem:[%s3122_s9 + $0x38] sm:$0xff] %v1361_v58 }
 0x26b   :  { %1368 = vsyncpa [#allocation7], 1 }
 0x26c   :  { %1369 = vsyncpa [#allocation11], 1 }
 0x26d   :  { %1370 = vsyncpa [#allocation8], 1 }
 0x26e   :  { %1371 = vsyncpa [#allocation13], 1 }

</bundles_post_ra>
